<compile_context>
chip_gen: v7x
topology: tpu7x:2x2x1
jax: 0.10.0
libtpu: 0.0.40
codegen_flags: <defaults>
</compile_context>

<pallas_src>
import functools

import jax
import jax.numpy as jnp
from jax.experimental import pallas as pl
from jax.experimental.pallas import tpu as pltpu

IN_FEATURES = 100 * 100 * 3   # 30000
HIDDEN = 512
OUT_FEATURES = 10

# Padded / tiled sizes for TPU.
BP = 8                 # batch padded to one sublane multiple
TK = 6016              # K-tile (=128*47); bf16 w1 tile = 5.875 MiB
KP = 30080             # 30000 padded to 128*235 = 5 * TK  (minimal padding)
NP_OUT = 128           # final output features padded to one lane width


# --------------------------------------------------------------------------
# Fused kernel:
#   grid = (KP // TK,)  -- K reduction, accumulated in a VMEM scratch.
#   step 0        : zero the accumulator
#   every step    : acc += x_tile @ w1_tile    (bf16 x bf16 -> f32 on MXU)
#   last step     : h1 = relu(acc + b1)
#                   h2 = relu(h1 @ w2 + b2)
#                   out = h2 @ w3 + b3
# w2/b2/w3/b3 use constant index maps -> DMA'd into VMEM once, reused.
# --------------------------------------------------------------------------
def netv2_kernel(x_ref, w1_ref, b1_ref, w2_ref, b2_ref, w3_ref, b3_ref,
                 o_ref, acc_ref):
    k = pl.program_id(0)

    @pl.when(k == 0)
    def _():
        acc_ref[...] = jnp.zeros_like(acc_ref)

    acc_ref[...] += jnp.dot(x_ref[...], w1_ref[...],
                            preferred_element_type=jnp.float32)

    @pl.when(k == pl.num_programs(0) - 1)
    def _():
        h1 = jnp.maximum(acc_ref[...] + b1_ref[...], 0.0)
        h2 = jnp.dot(h1.astype(jnp.bfloat16), w2_ref[...],
                     preferred_element_type=jnp.float32)
        h2 = jnp.maximum(h2 + b2_ref[...], 0.0)
        out = jnp.dot(h2, w3_ref[...], preferred_element_type=jnp.float32)
        o_ref[...] = (out + b3_ref[...]).astype(o_ref.dtype)


def prepare_params(w1, b1, w2, b2, w3, b3):
    """One-time padding / casting of the weights (do NOT redo this per call)."""
    w1_p = (jnp.zeros((KP, HIDDEN), jnp.bfloat16)
            .at[:IN_FEATURES, :].set(w1.astype(jnp.bfloat16)))
    b1_p = b1.reshape(1, HIDDEN).astype(jnp.float32)
    w2_p = w2.astype(jnp.bfloat16)
    b2_p = b2.reshape(1, HIDDEN).astype(jnp.float32)
    w3_p = jnp.zeros((HIDDEN, NP_OUT), jnp.float32).at[:, :OUT_FEATURES].set(w3)
    b3_p = jnp.zeros((1, NP_OUT), jnp.float32).at[0, :OUT_FEATURES].set(b3)
    return w1_p, b1_p, w2_p, b2_p, w3_p, b3_p


@functools.partial(jax.jit, static_argnames=())
def netv2_forward(x, w1_p, b1_p, w2_p, b2_p, w3_p, b3_p):
    """x: (B, 3, 100, 100) float32, B <= BP. Returns logits (B, 10) float32."""
    B = x.shape[0]
    # Flatten exactly like nn.Flatten (row-major over C, H, W), stream as bf16.
    x_flat = x.reshape(B, -1).astype(jnp.bfloat16)               # (B, 30000)
    x_p = jnp.zeros((BP, KP), jnp.bfloat16).at[:B, :IN_FEATURES].set(x_flat)

    flops = (2 * BP * KP * HIDDEN          # layer 1
             + 2 * BP * HIDDEN * HIDDEN    # layer 2
             + 2 * BP * HIDDEN * NP_OUT)   # layer 3 (padded)
    bytes_accessed = (KP * HIDDEN * 2      # w1 (bf16)  -- dominant stream
                      + BP * KP * 2        # x  (bf16)
                      + HIDDEN * 4         # b1
                      + HIDDEN * HIDDEN * 2   # w2 (bf16)
                      + HIDDEN * 4         # b2
                      + HIDDEN * NP_OUT * 4   # w3
                      + NP_OUT * 4         # b3
                      + BP * NP_OUT * 4)   # out

    out_p = pl.pallas_call(
        netv2_kernel,
        out_shape=jax.ShapeDtypeStruct((BP, NP_OUT), jnp.float32),
        grid_spec=pltpu.PrefetchScalarGridSpec(
            num_scalar_prefetch=0,
            grid=(KP // TK,),
            in_specs=[
                pl.BlockSpec((BP, TK), lambda k: (0, k)),        # x tile  (bf16)
                pl.BlockSpec((TK, HIDDEN), lambda k: (k, 0)),    # w1 tile (bf16)
                pl.BlockSpec((1, HIDDEN), lambda k: (0, 0)),     # b1
                pl.BlockSpec((HIDDEN, HIDDEN), lambda k: (0, 0)),  # w2 (bf16)
                pl.BlockSpec((1, HIDDEN), lambda k: (0, 0)),     # b2
                pl.BlockSpec((HIDDEN, NP_OUT), lambda k: (0, 0)),  # w3
                pl.BlockSpec((1, NP_OUT), lambda k: (0, 0)),     # b3
            ],
            out_specs=pl.BlockSpec((BP, NP_OUT), lambda k: (0, 0)),
            scratch_shapes=[pltpu.VMEM((BP, HIDDEN), jnp.float32)],
        ),
        compiler_params=pltpu.CompilerParams(
            dimension_semantics=("arbitrary",),
            vmem_limit_bytes=32 * 1024 * 1024,
        ),
        cost_estimate=pl.CostEstimate(
            flops=flops, transcendentals=0, bytes_accessed=bytes_accessed),
    )(x_p, w1_p, b1_p, w2_p, b2_p, w3_p, b3_p)

    return out_p[:B, :OUT_FEATURES]


def init_params(key):
    """Deterministic init (PyTorch-style uniform fan-in bounds)."""
    k1, k2, k3, k4, k5, k6 = jax.random.split(key, 6)

    def lin(kw, kb, fan_in, fan_out):
        bound = 1.0 / jnp.sqrt(fan_in)
        w = jax.random.uniform(kw, (fan_in, fan_out), jnp.float32, -bound, bound)
        b = jax.random.uniform(kb, (fan_out,), jnp.float32, -bound, bound)
        return w, b

    w1, b1 = lin(k1, k2, IN_FEATURES, HIDDEN)
    w2, b2 = lin(k3, k4, HIDDEN, HIDDEN)
    w3, b3 = lin(k5, k6, HIDDEN, OUT_FEATURES)
    return w1, b1, w2, b2, w3, b3


if __name__ == "__main__":
    key = jax.random.PRNGKey(0)
    kx, kp = jax.random.split(key)

    B = 2
    x = jax.random.normal(kx, (B, 3, 100, 100), jnp.float32)
    w1, b1, w2, b2, w3, b3 = init_params(kp)

    padded = prepare_params(w1, b1, w2, b2, w3, b3)   # once, outside the jit
    logits = netv2_forward(x, *padded)
    jax.block_until_ready(logits)

    # Precision-matched pure-JAX reference: bf16 operands with f32 MXU
    # accumulation for layers 1 and 2 (same as the kernel), f32 layer 3.
    xf = x.reshape(B, -1)
    h1_ref = jnp.maximum(
        jnp.dot(xf.astype(jnp.bfloat16), w1.astype(jnp.bfloat16),
                preferred_element_type=jnp.float32) + b1, 0.0)
    h2_ref = jnp.maximum(
        jnp.dot(h1_ref.astype(jnp.bfloat16), w2.astype(jnp.bfloat16),
                preferred_element_type=jnp.float32) + b2, 0.0)
    ref = h2_ref @ w3 + b3

    assert logits.shape == (B, OUT_FEATURES)
    assert jnp.allclose(logits, ref, atol=5e-3, rtol=5e-3)

    print("KERNEL_OK")
</pallas_src>

<mosaic_0001>
module attributes {stable_mosaic.version = 11 : i64} {
  func.func @netv2_kernel(%arg0: i32, %arg1: memref<8x6016xbf16, #tpu.memory_space<vmem>>, %arg2: memref<6016x512xbf16, #tpu.memory_space<vmem>>, %arg3: memref<1x512xf32, #tpu.memory_space<vmem>>, %arg4: memref<512x512xbf16, #tpu.memory_space<vmem>>, %arg5: memref<1x512xf32, #tpu.memory_space<vmem>>, %arg6: memref<512x128xf32, #tpu.memory_space<vmem>>, %arg7: memref<1x128xf32, #tpu.memory_space<vmem>>, %arg8: memref<8x128xf32, #tpu.memory_space<vmem>>, %arg9: memref<8x512xf32, #tpu.memory_space<vmem>>) attributes {dimension_semantics = [#tpu.dimension_semantics<arbitrary>], iteration_bounds = array<i64: 5>, scalar_prefetch = 0 : i64, scratch_operands = 1 : i64, tpu.core_type = #tpu.core_type<tc>, window_params = [{transform_indices = @transform_0, window_bounds = array<i64: 8, 6016>}, {transform_indices = @transform_1, window_bounds = array<i64: 6016, 512>}, {pipeline_mode = #tpu.pipeline_mode<synchronous>, transform_indices = @transform_2, window_bounds = array<i64: 1, 512>}, {pipeline_mode = #tpu.pipeline_mode<synchronous>, transform_indices = @transform_3, window_bounds = array<i64: 512, 512>}, {pipeline_mode = #tpu.pipeline_mode<synchronous>, transform_indices = @transform_4, window_bounds = array<i64: 1, 512>}, {pipeline_mode = #tpu.pipeline_mode<synchronous>, transform_indices = @transform_5, window_bounds = array<i64: 512, 128>}, {pipeline_mode = #tpu.pipeline_mode<synchronous>, transform_indices = @transform_6, window_bounds = array<i64: 1, 128>}, {pipeline_mode = #tpu.pipeline_mode<synchronous>, transform_indices = @transform_7, window_bounds = array<i64: 8, 128>}]} {
    %c0_i32 = arith.constant 0 : i32
    %0 = arith.cmpi eq, %arg0, %c0_i32 : i32
    %1 = arith.extui %0 : i1 to i32
    %c0_i32_0 = arith.constant 0 : i32
    %2 = arith.cmpi ne, %1, %c0_i32_0 : i32
    scf.if %2 {
      %cst_9 = arith.constant 0.000000e+00 : f32
      %12 = vector.broadcast %cst_9 : f32 to vector<8x512xf32>
      %c0_10 = arith.constant 0 : index
      %c0_11 = arith.constant 0 : index
      %13 = vector.load %arg9[%c0_10, %c0_11] : memref<8x512xf32, #tpu.memory_space<vmem>>, vector<8x512xf32>
      tpu.vector_store %arg9[%c0_10, %c0_11], %12 {strides = array<i32>} : memref<8x512xf32, #tpu.memory_space<vmem>>, vector<8x512xf32>,
    } else {
    }
    %c0 = arith.constant 0 : index
    %c0_1 = arith.constant 0 : index
    %3 = vector.load %arg9[%c0, %c0_1] : memref<8x512xf32, #tpu.memory_space<vmem>>, vector<8x512xf32>
    %c0_2 = arith.constant 0 : index
    %c0_3 = arith.constant 0 : index
    %4 = vector.load %arg1[%c0_2, %c0_3] : memref<8x6016xbf16, #tpu.memory_space<vmem>>, vector<8x6016xbf16>
    %c0_4 = arith.constant 0 : index
    %c0_5 = arith.constant 0 : index
    %5 = vector.load %arg2[%c0_4, %c0_5] : memref<6016x512xbf16, #tpu.memory_space<vmem>>, vector<6016x512xbf16>
    %cst = arith.constant dense<0.000000e+00> : vector<8x512xf32>
    %6 = tpu.matmul %4, %5, %cst {dimension_numbers = #tpu.dot_dimension_numbers<[1], [0], [0], [1], [0, 0, 1, 1], [], []>} : vector<8x6016xbf16>, vector<6016x512xbf16>, vector<8x512xf32> -> vector<8x512xf32>
    %7 = arith.addf %3, %6 : vector<8x512xf32>
    %c0_6 = arith.constant 0 : index
    %c0_7 = arith.constant 0 : index
    %8 = vector.load %arg9[%c0_6, %c0_7] : memref<8x512xf32, #tpu.memory_space<vmem>>, vector<8x512xf32>
    tpu.vector_store %arg9[%c0_6, %c0_7], %7 {strides = array<i32>} : memref<8x512xf32, #tpu.memory_space<vmem>>, vector<8x512xf32>,
    %c4_i32 = arith.constant 4 : i32
    %9 = arith.cmpi eq, %arg0, %c4_i32 : i32
    %10 = arith.extui %9 : i1 to i32
    %c0_i32_8 = arith.constant 0 : i32
    %11 = arith.cmpi ne, %10, %c0_i32_8 : i32
    scf.if %11 {
      %c0_9 = arith.constant 0 : index
      %c0_10 = arith.constant 0 : index
      %12 = vector.load %arg9[%c0_9, %c0_10] : memref<8x512xf32, #tpu.memory_space<vmem>>, vector<8x512xf32>
      %c0_11 = arith.constant 0 : index
      %c0_12 = arith.constant 0 : index
      %13 = vector.load %arg3[%c0_11, %c0_12] : memref<1x512xf32, #tpu.memory_space<vmem>>, vector<1x512xf32>
      %14 = vector.broadcast %13 : vector<1x512xf32> to vector<8x512xf32>
      %15 = arith.addf %12, %14 : vector<8x512xf32>
      %cst_13 = arith.constant 0.000000e+00 : f32
      %16 = vector.broadcast %cst_13 : f32 to vector<8x512xf32>
      %17 = arith.maximumf %15, %16 : vector<8x512xf32>
      %18 = arith.truncf %17 : vector<8x512xf32> to vector<8x512xbf16>
      %c0_14 = arith.constant 0 : index
      %c0_15 = arith.constant 0 : index
      %19 = vector.load %arg4[%c0_14, %c0_15] : memref<512x512xbf16, #tpu.memory_space<vmem>>, vector<512x512xbf16>
      %cst_16 = arith.constant dense<0.000000e+00> : vector<8x512xf32>
      %20 = tpu.matmul %18, %19, %cst_16 {dimension_numbers = #tpu.dot_dimension_numbers<[1], [0], [0], [1], [0, 0, 1, 1], [], []>} : vector<8x512xbf16>, vector<512x512xbf16>, vector<8x512xf32> -> vector<8x512xf32>
      %c0_17 = arith.constant 0 : index
      %c0_18 = arith.constant 0 : index
      %21 = vector.load %arg5[%c0_17, %c0_18] : memref<1x512xf32, #tpu.memory_space<vmem>>, vector<1x512xf32>
      %22 = vector.broadcast %21 : vector<1x512xf32> to vector<8x512xf32>
      %23 = arith.addf %20, %22 : vector<8x512xf32>
      %cst_19 = arith.constant 0.000000e+00 : f32
      %24 = vector.broadcast %cst_19 : f32 to vector<8x512xf32>
      %25 = arith.maximumf %23, %24 : vector<8x512xf32>
      %c0_20 = arith.constant 0 : index
      %c0_21 = arith.constant 0 : index
      %26 = vector.load %arg6[%c0_20, %c0_21] : memref<512x128xf32, #tpu.memory_space<vmem>>, vector<512x128xf32>
      %cst_22 = arith.constant dense<0.000000e+00> : vector<8x128xf32>
      %27 = tpu.matmul %25, %26, %cst_22 {dimension_numbers = #tpu.dot_dimension_numbers<[1], [0], [0], [1], [0, 0, 1, 1], [], []>} : vector<8x512xf32>, vector<512x128xf32>, vector<8x128xf32> -> vector<8x128xf32>
      %c0_23 = arith.constant 0 : index
      %c0_24 = arith.constant 0 : index
      %28 = vector.load %arg7[%c0_23, %c0_24] : memref<1x128xf32, #tpu.memory_space<vmem>>, vector<1x128xf32>
      %29 = vector.broadcast %28 : vector<1x128xf32> to vector<8x128xf32>
      %30 = arith.addf %27, %29 : vector<8x128xf32>
      %c0_25 = arith.constant 0 : index
      %c0_26 = arith.constant 0 : index
      %31 = vector.load %arg8[%c0_25, %c0_26] : memref<8x128xf32, #tpu.memory_space<vmem>>, vector<8x128xf32>
      tpu.vector_store %arg8[%c0_25, %c0_26], %30 {strides = array<i32>} : memref<8x128xf32, #tpu.memory_space<vmem>>, vector<8x128xf32>,
    } else {
    }
    return
  }
  func.func @transform_0(%arg0: i32) -> (i32, i32) {
    %c0_i32 = arith.constant 0 : i32
    %c0_i32_0 = arith.constant 0 : i32
    return %c0_i32, %arg0 : i32, i32
  }
  func.func @transform_1(%arg0: i32) -> (i32, i32) {
    %c0_i32 = arith.constant 0 : i32
    %c0_i32_0 = arith.constant 0 : i32
    return %arg0, %c0_i32 : i32, i32
  }
  func.func @transform_2(%arg0: i32) -> (i32, i32) {
    %c0_i32 = arith.constant 0 : i32
    %c0_i32_0 = arith.constant 0 : i32
    %c0_i32_1 = arith.constant 0 : i32
    return %c0_i32, %c0_i32_0 : i32, i32
  }
  func.func @transform_3(%arg0: i32) -> (i32, i32) {
    %c0_i32 = arith.constant 0 : i32
    %c0_i32_0 = arith.constant 0 : i32
    %c0_i32_1 = arith.constant 0 : i32
    return %c0_i32, %c0_i32_0 : i32, i32
  }
  func.func @transform_4(%arg0: i32) -> (i32, i32) {
    %c0_i32 = arith.constant 0 : i32
    %c0_i32_0 = arith.constant 0 : i32
    %c0_i32_1 = arith.constant 0 : i32
    return %c0_i32, %c0_i32_0 : i32, i32
  }
  func.func @transform_5(%arg0: i32) -> (i32, i32) {
    %c0_i32 = arith.constant 0 : i32
    %c0_i32_0 = arith.constant 0 : i32
    %c0_i32_1 = arith.constant 0 : i32
    return %c0_i32, %c0_i32_0 : i32, i32
  }
  func.func @transform_6(%arg0: i32) -> (i32, i32) {
    %c0_i32 = arith.constant 0 : i32
    %c0_i32_0 = arith.constant 0 : i32
    %c0_i32_1 = arith.constant 0 : i32
    return %c0_i32, %c0_i32_0 : i32, i32
  }
  func.func @transform_7(%arg0: i32) -> (i32, i32) {
    %c0_i32 = arith.constant 0 : i32
    %c0_i32_0 = arith.constant 0 : i32
    %c0_i32_1 = arith.constant 0 : i32
    return %c0_i32, %c0_i32_0 : i32, i32
  }
}

</mosaic_0001>

<bundles_post_ra>
// kernel: netv2_forward.1
= control target key start
LH: loop header
LB: loop body
LE: loop exit
PB: predicated region body
PF: predicated region fallthrough
CT: control target
= control target key end

     0   :  { %12 = vsyncpa [#allocation4], 0  ;;  %s19896_s0 = inlined_call_operand.vmem [shape: bf16[8,30080], index: 0, kind: input, shape index: {}]   ;;  %s19897_s1 = inlined_call_operand.hbm [shape: bf16[30080,512], index: 1, kind: input, shape index: {}]   ;;  %s19898_s2 = inlined_call_operand.hbm [shape: f32[1,512], index: 2, kind: input, shape index: {}]   ;;  %s19899_s3 = inlined_call_operand.hbm [shape: bf16[512,512], index: 3, kind: input, shape index: {}]   ;;  %s19900_s4 = inlined_call_operand.hbm [shape: f32[1,512], index: 4, kind: input, shape index: {}]   ;;  %s19901_s5 = inlined_call_operand.hbm [shape: f32[512,128], index: 5, kind: input, shape index: {}]   ;;  %s19902_s6 = inlined_call_operand.hbm [shape: f32[1,128], index: 6, kind: input, shape index: {}]   ;;  %s19903_s7 = inlined_call_operand.vmem [shape: f32[8,128], index: 7, kind: output, shape index: {}]  }
   0x1   :  { %14 = vsyncpa [#allocation4 + $0x1], 0 }
   0x2   :  { %15 = vsyncpa [#allocation6], 0 }
   0x3   :  { %16 = vsyncpa [#allocation9], 0 }
   0x4   :  { %17 = vsyncpa [#allocation12], 0  ;;  %s17602_s24 = smov 0   ;;  %s17604_s25 = smov 0  }
   0x5   :  { %s17606_s26 = smov 0   ;;  %s17608_s27 = smov 0  }
   0x6 LB: > { %s17550_s28 = smov [#allocation5]   ;;  %s17623_s30 = sadd.s32 4294967295, %s17548_s27   ;;  %s17548_s27 = sphi %s17608_s27, %s19933_s27   ;;  %s17544_s26 = sphi %s17606_s26, %s19932_s26   ;;  %s17540_s25 = sphi %s17604_s25, %s19931_s25   ;;  %s17536_s24 = sphi %s17602_s24, %s19930_s24  }
   0x7   : > { %s219_s29 = sshll.u32 %s17550_s28, 4  ;;  %p12889_p0 = scmp.ge.s32.totalorder %s17548_s27, 1  ;;  %s220_s29 = int_to_ptr.vmem [resolvable:$true] %s219_s29 }
   0x8   : > { %p19904_p1 = scmp.eq.s32.totalorder %s17623_s30, 0  ;;  %p206_p2 = scmp.lt.s32.totalorder %s17548_s27, 6 }
   0x9   : > { %s17551_s9 = smov [#allocation8]   ;;  %s17552_s11 = smov [#allocation7]  }
   0xa   : > { %p17629_p4 = pnand %p12889_p0, %p206_p2  ;;  %s243_s10 = sshll.u32 %s17551_s9, 4  ;;  %s17635_s10 = int_to_ptr.vmem [resolvable:$true] %s243_s10 }
   0xb   : > { %s229_s12 = sshll.u32 %s17552_s11, 4  ;;  %s17332_s16 = scalar_lea.hbm %s19898_s2, 64  ;;  %s17643_s12 = int_to_ptr.vmem [resolvable:$true] %s229_s12 }
   0xc   : > { %s19910_s8 = scalar_select %p17629_p4, 1, 0 }
   0xd   : > { %p14762_p5 = pneg %p17629_p4  ;;  %p17333_p7 = scmp.ne.s32.totalorder %s19898_s2, %s17332_s16 }
   0xe   : > { %p17339_p11 = scmp.lt.u32.totalorder %s17332_s16, %s19898_s2 }
   0xf   : > { %p17639_p6 = pnand %p14762_p5, %p19904_p1 }
  0x11   : > { %p17653_p8 = pneg %p17639_p6 }
  0x13   : > { %p17335_p9 = pnand %p17653_p8, %p17333_p7 }
  0x15   : > { %p17336_p10 = pneg %p17335_p9 }
  0x17   : > { %p17341_p12 = pnand %p17339_p11, %p17336_p10 }
  0x19   : > { %17344 = shalt.err (!%p17341_p12)
}
  0x1a   : > { %s17345_s22 = scalar_lea.vmem %s220_s29, 64  ;;  %p17353_p5 = scmp.lt.s32.totalorder %s220_s29, %s220_s29 }
  0x1b   : > { %p17346_p13 = scmp.ne.s32.totalorder %s220_s29, %s17345_s22  ;;  %p17354_p3 = scmp.lt.s32.totalorder %s17345_s22, %s17345_s22 }
  0x1d   : > { %p17348_p0 = pnand %p17346_p13, %p17653_p8  ;;  %p17355_p1 = por %p17354_p3, %p17353_p5 }
  0x1f   : > { %p17349_p2 = pneg %p17348_p0 }
  0x21   : > { %p17356_p4 = pnand %p17355_p1, %p17349_p2 }
  0x23   : > { %17359 = shalt.err (!%p17356_p4)
}
  0x24   : > { %14765 = dma.hbm_to_vmem [thread:$0]  (!%p17639_p6), %s19898_s2, 64, %s220_s29, [#allocation6]  }
  0x25   : > { %s17360_s14 = scalar_lea.hbm %s19900_s4, 64 }
  0x26   : > { %p17361_p7 = scmp.ne.s32.totalorder %s19900_s4, %s17360_s14  ;;  %p17367_p1 = scmp.lt.u32.totalorder %s17360_s14, %s19900_s4 }
  0x28   : > { %p17363_p9 = pnand %p17361_p7, %p17653_p8 }
  0x2a   : > { %p17364_p3 = pneg %p17363_p9 }
  0x2c   : > { %p17369_p4 = pnand %p17367_p1, %p17364_p3 }
  0x2e   : > { %17372 = shalt.err (!%p17369_p4)
}
  0x2f   : > { %s17373_s29 = scalar_lea.vmem %s17635_s10, 64  ;;  %p17381_p13 = scmp.lt.s32.totalorder %s17635_s10, %s17635_s10 }
  0x30   : > { %p17374_p10 = scmp.ne.s32.totalorder %s17635_s10, %s17373_s29  ;;  %p17382_p0 = scmp.lt.s32.totalorder %s17373_s29, %s17373_s29 }
  0x32   : > { %p17376_p11 = pnand %p17374_p10, %p17653_p8  ;;  %p17383_p2 = por %p17382_p0, %p17381_p13 }
  0x34   : > { %p17377_p12 = pneg %p17376_p11 }
  0x36   : > { %p17384_p5 = pnand %p17383_p2, %p17377_p12 }
  0x38   : > { %17387 = shalt.err (!%p17384_p5)
}
  0x39   : > { %14771 = dma.hbm_to_vmem [thread:$0]  (!%p17639_p6), %s19900_s4, 64, %s17635_s10, [#allocation9]  }
  0x3a   : > { %s17388_s28 = scalar_lea.hbm %s19899_s3, 16384 }
  0x3b   : > { %p17389_p7 = scmp.ne.s32.totalorder %s19899_s3, %s17388_s28  ;;  %p17395_p1 = scmp.lt.u32.totalorder %s17388_s28, %s19899_s3 }
  0x3d   : > { %p17391_p9 = pnand %p17389_p7, %p17653_p8 }
  0x3f   : > { %p17392_p3 = pneg %p17391_p9 }
  0x41   : > { %p17397_p4 = pnand %p17395_p1, %p17392_p3 }
  0x43   : > { %17400 = shalt.err (!%p17397_p4)
}
  0x44   : > { %s17401_s10 = scalar_lea.vmem %s17643_s12, 16384  ;;  %p17409_p13 = scmp.lt.s32.totalorder %s17643_s12, %s17643_s12 }
  0x45   : > { %p17402_p10 = scmp.ne.s32.totalorder %s17643_s12, %s17401_s10  ;;  %p17410_p0 = scmp.lt.s32.totalorder %s17401_s10, %s17401_s10 }
  0x47   : > { %p17404_p11 = pnand %p17402_p10, %p17653_p8  ;;  %p17411_p2 = por %p17410_p0, %p17409_p13 }
  0x49   : > { %p17405_p12 = pneg %p17404_p11 }
  0x4b   : > { %p17412_p5 = pnand %p17411_p2, %p17405_p12 }
  0x4d   : > { %17415 = shalt.err (!%p17412_p5)
}
  0x4e   : > { %s19906_s16 = smov 256   ;;  %s17554_s17 = smov 16  }
  0x4f   : > { %14768 = dma.hbm_to_vmem [thread:$0]  (!%p17639_p6), %s19899_s3, 16384, %s17643_s12, [#allocation6], %s19906_s16, %s19906_s16, %s17554_s17  }
  0x50   : > { %s17555_s20 = smov [#allocation10]   ;;  %s17416_s28 = scalar_lea.hbm %s19901_s5, 8192 }
  0x51   : > { %s253_s21 = sshll.u32 %s17555_s20, 4  ;;  %p17417_p7 = scmp.ne.s32.totalorder %s19901_s5, %s17416_s28  ;;  %s254_s21 = int_to_ptr.vmem [resolvable:$true] %s253_s21 }
  0x52   : > { %p17423_p1 = scmp.lt.u32.totalorder %s17416_s28, %s19901_s5 }
  0x53   : > { %p17419_p9 = pnand %p17417_p7, %p17653_p8 }
  0x55   : > { %p17420_p3 = pneg %p17419_p9 }
  0x57   : > { %p17425_p4 = pnand %p17423_p1, %p17420_p3 }
  0x59   : > { %17428 = shalt.err (!%p17425_p4)
}
  0x5a   : > { %s17429_s12 = scalar_lea.vmem %s254_s21, 8192  ;;  %p17437_p13 = scmp.lt.s32.totalorder %s254_s21, %s254_s21 }
  0x5b   : > { %p17430_p10 = scmp.ne.s32.totalorder %s254_s21, %s17429_s12  ;;  %p17438_p0 = scmp.lt.s32.totalorder %s17429_s12, %s17429_s12 }
  0x5d   : > { %p17432_p11 = pnand %p17430_p10, %p17653_p8  ;;  %p17439_p2 = por %p17438_p0, %p17437_p13 }
  0x5f   : > { %p17433_p12 = pneg %p17432_p11 }
  0x61   : > { %p17440_p5 = pnand %p17439_p2, %p17433_p12 }
  0x63   : > { %17443 = shalt.err (!%p17440_p5)
}
  0x64   : > { %s17556_s10 = smov 128   ;;  %s17557_s18 = smov 8  }
  0x65   : > { %14774 = dma.hbm_to_vmem [thread:$0]  (!%p17639_p6), %s19901_s5, 8192, %s254_s21, [#allocation9], %s17556_s10, %s17556_s10, %s17557_s18  }
  0x66   : > { %s17558_s22 = smov [#allocation11]   ;;  %s17444_s11 = scalar_lea.hbm %s19902_s6, 16 }
  0x67   : > { %s267_s23 = sshll.u32 %s17558_s22, 4  ;;  %p17445_p7 = scmp.ne.s32.totalorder %s19902_s6, %s17444_s11  ;;  %s268_s23 = int_to_ptr.vmem [resolvable:$true] %s267_s23 }
  0x68   : > { %p17451_p1 = scmp.lt.u32.totalorder %s17444_s11, %s19902_s6 }
  0x69   : > { %p17447_p9 = pnand %p17445_p7, %p17653_p8 }
  0x6b   : > { %p17448_p3 = pneg %p17447_p9 }
  0x6d   : > { %p17453_p4 = pnand %p17451_p1, %p17448_p3 }
  0x6f   : > { %17456 = shalt.err (!%p17453_p4)
}
  0x70   : > { %s17457_s21 = scalar_lea.vmem %s268_s23, 16  ;;  %s17464_s10 = scalar_lea.vmem %s268_s23, 32 }
  0x71   : > { %p17458_p10 = scmp.ne.s32.totalorder %s268_s23, %s17457_s21  ;;  %p17465_p13 = scmp.lt.s32.totalorder %s268_s23, %s268_s23 }
  0x72   : > { %p17466_p0 = scmp.lt.s32.totalorder %s17464_s10, %s17457_s21 }
  0x73   : > { %p17460_p11 = pnand %p17458_p10, %p17653_p8 }
  0x74   : > { %p17467_p2 = por %p17466_p0, %p17465_p13 }
  0x75   : > { %p17461_p12 = pneg %p17460_p11 }
  0x77   : > { %p17468_p5 = pnand %p17467_p2, %p17461_p12 }
  0x79   : > { %17471 = shalt.err (!%p17468_p5)
}
  0x7a   : > { %14777 = dma.hbm_to_vmem [thread:$0]  (!%p17639_p6), %s19902_s6, 16, %s268_s23, [#allocation12]  }
  0x7b   : > { %s17755_s19 = sadd.s32 1, %s17548_s27   ;;  %s56_s16 = sadd.s32 1, %s17544_s26 }
  0x7c   : > { %s53_s13 = ssub.s32 %s17548_s27, %s17755_s19  ;;  %p63_p7 = scmp.ne.s32.totalorder %s17544_s26, %s17540_s25 }
  0x7d   : > { %p54_p8 = scmp.eq.s32.totalorder %s53_s13, 0  ;;  %p64_p9 = scmp.eq.s32.totalorder %s17548_s27, 0 }
  0x7e   : > { %p69_p3 = scmp.ne.s32.totalorder %s17540_s25, %s17536_s24  ;;  %p19913_p4 = scmp.eq.s32.totalorder %s17623_s30, 0 }
  0x7f   : > { %s17766_s20 = scalar_select %p54_p8, %s17544_s26, %s56_s16  }
  0x80   : > { %p65_p1 = por %p64_p9, %p63_p7  ;;  %p17770_p10 = por %p19913_p4, %p69_p3 }
  0x81   : > { %p14787_p11 = scmp.lt.s32.totalorder %s17548_s27, 5  ;;  %s287_s28 = sand.u32 1, %s17544_s26  }
  0x82   : > { %s14738_s23 = smul.u32 12032, %s287_s28  ;;  %s17477_s13 = scalar_lea.hbm %s19897_s1, 962560 }
  0x83   : > { %s14591_s9 = smul.u32 192512, %s17548_s27  ;;  %p17777_p6 = pnand %p14787_p11, %p65_p1 }
  0x84   : > { %s291_s12 = scalar_lea.vmem [#allocation3], %s14738_s23  ;;  %s17788_s27 = scalar_lea.sflag [#allocation4], %s287_s28 }
  0x85   : > { %s17784_s24 = scalar_lea.hbm %s19897_s1, %s14591_s9  ;;  %s299_s21 = sshll.u32 %s291_s12, 4  ;;  %s17786_s21 = int_to_ptr.vmem [resolvable:$true] %s299_s21 }
  0x86   : > { %s17472_s10 = scalar_lea.hbm %s17784_s24, 192512  ;;  %p17474_p13 = pneg %p17777_p6 }
  0x87   : > { %p17473_p12 = scmp.ne.s32.totalorder %s17784_s24, %s17472_s10  ;;  %p17478_p5 = scmp.lt.u32.totalorder %s17784_s24, %s19897_s1 }
  0x88   : > { %p17479_p8 = scmp.lt.u32.totalorder %s17477_s13, %s17472_s10  ;;  %p17481_p9 = scmp.lt.u32.totalorder %s17472_s10, %s17784_s24 }
  0x89   : > { %p17475_p0 = pnand %p17474_p13, %p17473_p12 }
  0x8a   : > { %p17480_p7 = por %p17479_p8, %p17478_p5 }
  0x8b   : > { %p17476_p2 = pneg %p17475_p0 }
  0x8c   : > { %p17482_p3 = por %p17481_p9, %p17480_p7 }
  0x8e   : > { %p17483_p1 = pnand %p17482_p3, %p17476_p2 }
  0x90   : > { %17486 = shalt.err (!%p17483_p1)
}
  0x91   : > { %s17487_s28 = scalar_lea.vmem %s17786_s21, 192512  ;;  %s17559_s23 = smov [#allocation3]  }
  0x92   : > { %p17488_p4 = scmp.ne.s32.totalorder %s17786_s21, %s17487_s28  ;;  %s17492_s14 = sshll.u32 %s17559_s23, 4  ;;  %s17493_s14 = int_to_ptr.vmem [resolvable:$false] %s17492_s14 }
  0x93   : > { %s17494_s15 = scalar_lea.vmem %s17493_s14, 385024  ;;  %p17495_p0 = scmp.lt.s32.totalorder %s17786_s21, %s17493_s14 }
  0x94   : > { %p17490_p11 = pnand %p17488_p4, %p17474_p13  ;;  %p17496_p5 = scmp.lt.s32.totalorder %s17494_s15, %s17487_s28 }
  0x96   : > { %p17491_p12 = pneg %p17490_p11  ;;  %p17497_p8 = por %p17496_p5, %p17495_p0 }
  0x98   : > { %p17498_p7 = pnand %p17497_p8, %p17491_p12 }
  0x9a   : > { %17501 = shalt.err (!%p17498_p7)
}
  0x9b   : > { %s19916_s12 = smov 256   ;;  %p19917_p13 = scmp.ne.s32.totalorder %s19910_s8, 0 }
  0x9c   : > { %14781 = dma.hbm_to_vmem [thread:$0]  (!%p17777_p6), %s17784_s24, 192512, %s17786_s21, %s17788_s27, %s19916_s12, %s19916_s12, %s17554_s17  }
  0x9d   : > { %311 = sbr.rel (%p19917_p13) target bundleno = 2430 (0x97e), region = 48 }
  0xa4   : > { %s313_s10 = sand.u32 1, %s17540_s25  }
  0xa5   : > { %s14739_s18 = smul.u32 12032, %s313_s10  ;;  %s314_s29 = scalar_lea.sflag [#allocation4], %s313_s10 }
  0xa7   : > { %s17822_s13 = scalar_lea.vmem [#allocation3], %s14739_s18 }
  0xa8   : > { %17519 = dma.done.wait (%p17770_p10), %s314_s29, 192512  }
  0xa9   : > { %17521 = vsyncadd (%p17770_p10), %s314_s29, 4294774784  ;;  %p19918_p2 = scmp.eq.s32.totalorder %s17623_s30, 0 }
  0xab   : > { %17523 = dma.done.wait (%p19918_p2), [#allocation6], 16448   ;;  %p19919_p6 = pmov %p19918_p2 }
  0xac   : > { %p19920_p9 = pmov %p19918_p2 }
  0xad   : > { %17525 = vsyncadd (%p19919_p6), [#allocation6], 4294950848 }
  0xae   : > { %17527 = dma.done.wait (%p19920_p9), [#allocation9], 8256   ;;  %p19921_p3 = pmov %p19918_p2 }
  0xaf   : > { %p19922_p1 = pmov %p19918_p2 }
  0xb0   : > { %17529 = vsyncadd (%p19921_p3), [#allocation9], 4294959040 }
  0xb1   : > { %17531 = dma.done.wait (%p19922_p1), [#allocation12], 16   ;;  %p19923_p4 = pmov %p19922_p1 }
  0xb2   : > { %s368_s8 = smul.u32 47, %s17623_s30  ;;  %p19924_p11 = scmp.ne.s32.totalorder %s17623_s30, 0 }
  0xb3   : > { %17533 = vsyncadd (%p19923_p4), [#allocation12], 4294967280  ;;  %v17560_v0 = vmov (!%p19924_p11), 0.0  }
  0xb4   : > { %p369_p10 = scmp.lt.s32.totalorder %s368_s8, 234  ;;  %379 = sbr.rel (%p19924_p11) target bundleno = 187 (0xbb), region = 76  ;;  %380 = vst [vmem:[#allocation2] sm:$0xff] (!%p19924_p11), %v17560_v0  ;;  %381 = vst [vmem:[#allocation2 + $0x8] sm:$0xff] (!%p19924_p11), %v17560_v0 }
  0xb5   : > { %382 = vst [vmem:[#allocation2 + $0x10] sm:$0xff] (!%p19924_p11), %v17560_v0  ;;  %383 = vst [vmem:[#allocation2 + $0x18] sm:$0xff] (!%p19924_p11), %v17560_v0 }
  0xb6   : > { %s19935_s8 = smov (!%p369_p10, %s368_s8), 234 }
  0xb7   : > { %s12904_s17 = sshll.u32 %s19935_s8, 2 }
  0xb8   : > { %s17844_s24 = scalar_lea.vmem %s19896_s0, %s12904_s17 }
  0xbb PF: > { %v14836_v1 = vld [vmem:[%s17822_s13 + $0x4] ss:$16 sps:$4 sm:$0xff]   ;;  %v14840_v3 = vld [vmem:[%s17822_s13] ss:$16 sps:$4 sm:$0xff]   ;;  %v389_v49 = vld [vmem:[%s17844_s24 + $0x8] sm:$0xff]  ;;  %p14457_p12 = scmp.ne.s32.totalorder %s17623_s30, 4 }
  0xbc   : > { %v14838_v2 = vld [vmem:[%s17822_s13 + $0x204] ss:$16 sps:$4 sm:$0xff]   ;;  %9601 = vmatprep.subr.bf16.mxu0 %v14836_v1  ;;  %v14841_v4 = vld [vmem:[%s17822_s13 + $0x200] ss:$16 sps:$4 sm:$0xff]   ;;  %v17900_v52 = vcombine.high %v389_v49, %v389_v49 }
  0xbd   : > { %9642 = vmatprep.subr.bf16.mxu1 %v14838_v2  ;;  %v14842_v5 = vld [vmem:[%s17822_s13 + $0x24] ss:$16 sps:$4 sm:$0xff]   ;;  %9602 = vmatpush1.bf16.msra.mxu0 %v14840_v3  ;;  %v14846_v7 = vld [vmem:[%s17822_s13 + $0x20] ss:$16 sps:$4 sm:$0xff]  }
  0xbe   : > { %9643 = vmatpush1.bf16.msra.mxu1 %v14841_v4  ;;  %v14844_v6 = vld [vmem:[%s17822_s13 + $0x224] ss:$16 sps:$4 sm:$0xff]   ;;  %9603 = vmatprep.subr.bf16.mxu0 %v14842_v5  ;;  %v14847_v8 = vld [vmem:[%s17822_s13 + $0x220] ss:$16 sps:$4 sm:$0xff]  }
  0xbf   : > { %9644 = vmatprep.subr.bf16.mxu1 %v14844_v6  ;;  %v14848_v9 = vld [vmem:[%s17822_s13 + $0x44] ss:$16 sps:$4 sm:$0xff]   ;;  %v14852_v11 = vld [vmem:[%s17822_s13 + $0x40] ss:$16 sps:$4 sm:$0xff]   ;;  %9674 = vmatprep.mubr.bf16.mxu1 %v17900_v52 }
  0xc0   : > { %v14850_v10 = vld [vmem:[%s17822_s13 + $0x244] ss:$16 sps:$4 sm:$0xff]   ;;  %v14853_v12 = vld [vmem:[%s17822_s13 + $0x240] ss:$16 sps:$4 sm:$0xff]  }
  0xc1   : > { %9604 = vmatpush1.bf16.msra.mxu0 %v14846_v7  ;;  %v14854_v13 = vld [vmem:[%s17822_s13 + $0x64] ss:$16 sps:$4 sm:$0xff]   ;;  %v14858_v15 = vld [vmem:[%s17822_s13 + $0x60] ss:$16 sps:$4 sm:$0xff]  }
  0xc2   : > { %9645 = vmatpush1.bf16.msra.mxu1 %v14847_v8  ;;  %9605 = vmatprep.subr.bf16.mxu0 %v14848_v9  ;;  %v14856_v14 = vld [vmem:[%s17822_s13 + $0x264] ss:$16 sps:$4 sm:$0xff]   ;;  %v14859_v16 = vld [vmem:[%s17822_s13 + $0x260] ss:$16 sps:$4 sm:$0xff]   ;;  %v17924_v8 = vcombine.low %v389_v49, %v389_v49 }
  0xc3   : > { %9646 = vmatprep.subr.bf16.mxu1 %v14850_v10  ;;  %v14860_v17 = vld [vmem:[%s17822_s13 + $0x84] ss:$16 sps:$4 sm:$0xff]   ;;  %v14864_v19 = vld [vmem:[%s17822_s13 + $0x80] ss:$16 sps:$4 sm:$0xff]  }
  0xc4   : > { %v14862_v18 = vld [vmem:[%s17822_s13 + $0x284] ss:$16 sps:$4 sm:$0xff]   ;;  %v14865_v20 = vld [vmem:[%s17822_s13 + $0x280] ss:$16 sps:$4 sm:$0xff]  }
  0xc5   : > { %9606 = vmatpush1.bf16.msra.mxu0 %v14852_v11  ;;  %v14866_v21 = vld [vmem:[%s17822_s13 + $0xa4] ss:$16 sps:$4 sm:$0xff]   ;;  %v14870_v23 = vld [vmem:[%s17822_s13 + $0xa0] ss:$16 sps:$4 sm:$0xff]  }
  0xc6   : > { %9647 = vmatpush1.bf16.msra.mxu1 %v14853_v12  ;;  %9607 = vmatprep.subr.bf16.mxu0 %v14854_v13  ;;  %v14868_v22 = vld [vmem:[%s17822_s13 + $0x2a4] ss:$16 sps:$4 sm:$0xff]   ;;  %v14871_v24 = vld [vmem:[%s17822_s13 + $0x2a0] ss:$16 sps:$4 sm:$0xff]  }
  0xc7   : > { %9648 = vmatprep.subr.bf16.mxu1 %v14856_v14  ;;  %v14872_v25 = vld [vmem:[%s17822_s13 + $0xc4] ss:$16 sps:$4 sm:$0xff]   ;;  %v14876_v27 = vld [vmem:[%s17822_s13 + $0xc0] ss:$16 sps:$4 sm:$0xff]  }
  0xc8   : > { %v14874_v26 = vld [vmem:[%s17822_s13 + $0x2c4] ss:$16 sps:$4 sm:$0xff]   ;;  %v14877_v28 = vld [vmem:[%s17822_s13 + $0x2c0] ss:$16 sps:$4 sm:$0xff]  }
  0xc9   : > { %9608 = vmatpush1.bf16.msra.mxu0 %v14858_v15  ;;  %v14878_v29 = vld [vmem:[%s17822_s13 + $0xe4] ss:$16 sps:$4 sm:$0xff]   ;;  %v14882_v31 = vld [vmem:[%s17822_s13 + $0xe0] ss:$16 sps:$4 sm:$0xff]  }
  0xca   : > { %9649 = vmatpush1.bf16.msra.mxu1 %v14859_v16  ;;  %9609 = vmatprep.subr.bf16.mxu0 %v14860_v17  ;;  %v14880_v30 = vld [vmem:[%s17822_s13 + $0x2e4] ss:$16 sps:$4 sm:$0xff]   ;;  %v14883_v32 = vld [vmem:[%s17822_s13 + $0x2e0] ss:$16 sps:$4 sm:$0xff]  }
  0xcb   : > { %9650 = vmatprep.subr.bf16.mxu1 %v14862_v18  ;;  %v14884_v33 = vld [vmem:[%s17822_s13 + $0x104] ss:$16 sps:$4 sm:$0xff]   ;;  %v14888_v35 = vld [vmem:[%s17822_s13 + $0x100] ss:$16 sps:$4 sm:$0xff]  }
  0xcc   : > { %v14886_v34 = vld [vmem:[%s17822_s13 + $0x304] ss:$16 sps:$4 sm:$0xff]   ;;  %v14889_v36 = vld [vmem:[%s17822_s13 + $0x300] ss:$16 sps:$4 sm:$0xff]  }
  0xcd   : > { %9610 = vmatpush1.bf16.msra.mxu0 %v14864_v19  ;;  %v14890_v37 = vld [vmem:[%s17822_s13 + $0x124] ss:$16 sps:$4 sm:$0xff]   ;;  %v14894_v39 = vld [vmem:[%s17822_s13 + $0x120] ss:$16 sps:$4 sm:$0xff]  }
  0xce   : > { %9651 = vmatpush1.bf16.msra.mxu1 %v14865_v20  ;;  %9611 = vmatprep.subr.bf16.mxu0 %v14866_v21  ;;  %v14892_v38 = vld [vmem:[%s17822_s13 + $0x324] ss:$16 sps:$4 sm:$0xff]   ;;  %v14895_v40 = vld [vmem:[%s17822_s13 + $0x320] ss:$16 sps:$4 sm:$0xff]  }
  0xcf   : > { %9652 = vmatprep.subr.bf16.mxu1 %v14868_v22  ;;  %v14896_v41 = vld [vmem:[%s17822_s13 + $0x144] ss:$16 sps:$4 sm:$0xff]   ;;  %v14900_v43 = vld [vmem:[%s17822_s13 + $0x140] ss:$16 sps:$4 sm:$0xff]  }
  0xd0   : > { %v14898_v42 = vld [vmem:[%s17822_s13 + $0x344] ss:$16 sps:$4 sm:$0xff]   ;;  %v14901_v44 = vld [vmem:[%s17822_s13 + $0x340] ss:$16 sps:$4 sm:$0xff]  }
  0xd1   : > { %9612 = vmatpush1.bf16.msra.mxu0 %v14870_v23  ;;  %v14902_v45 = vld [vmem:[%s17822_s13 + $0x164] ss:$16 sps:$4 sm:$0xff]   ;;  %v14906_v50 = vld [vmem:[%s17822_s13 + $0x160] ss:$16 sps:$4 sm:$0xff]  }
  0xd2   : > { %9653 = vmatpush1.bf16.msra.mxu1 %v14871_v24  ;;  %9613 = vmatprep.subr.bf16.mxu0 %v14872_v25  ;;  %v14904_v46 = vld [vmem:[%s17822_s13 + $0x364] ss:$16 sps:$4 sm:$0xff]   ;;  %v14907_v51 = vld [vmem:[%s17822_s13 + $0x360] ss:$16 sps:$4 sm:$0xff]  }
  0xd3   : > { %9654 = vmatprep.subr.bf16.mxu1 %v14874_v26  ;;  %v388_v47 = vld [vmem:[%s17844_s24] sm:$0xff] }
  0xd4   : > { %v17895_v48 = vcombine.high %v388_v47, %v388_v47  ;;  %v14908_v53 = vld [vmem:[%s17822_s13 + $0x184] ss:$16 sps:$4 sm:$0xff]   ;;  %v14912_v55 = vld [vmem:[%s17822_s13 + $0x180] ss:$16 sps:$4 sm:$0xff]   ;;  %v17922_v7 = vcombine.low %v388_v47, %v388_v47 }
  0xd5   : > { %9614 = vmatpush1.bf16.msra.mxu0 %v14876_v27  ;;  %v14910_v54 = vld [vmem:[%s17822_s13 + $0x384] ss:$16 sps:$4 sm:$0xff]   ;;  %v14913_v56 = vld [vmem:[%s17822_s13 + $0x380] ss:$16 sps:$4 sm:$0xff]  }
  0xd6   : > { %9655 = vmatpush1.bf16.msra.mxu1 %v14877_v28  ;;  %9615 = vmatprep.subr.bf16.mxu0 %v14878_v29  ;;  %v14914_v57 = vld [vmem:[%s17822_s13 + $0x1a4] ss:$16 sps:$4 sm:$0xff]   ;;  %v14918_v59 = vld [vmem:[%s17822_s13 + $0x1a0] ss:$16 sps:$4 sm:$0xff]  }
  0xd7   : > { %9656 = vmatprep.subr.bf16.mxu1 %v14880_v30  ;;  %9633 = vmatprep.mubr.bf16.mxu0 %v17895_v48  ;;  %v14916_v58 = vld [vmem:[%s17822_s13 + $0x3a4] ss:$16 sps:$4 sm:$0xff]   ;;  %v14919_v60 = vld [vmem:[%s17822_s13 + $0x3a0] ss:$16 sps:$4 sm:$0xff]  }
  0xd8   : > { %v14920_v61 = vld [vmem:[%s17822_s13 + $0x1c4] ss:$16 sps:$4 sm:$0xff]   ;;  %v14924_v63 = vld [vmem:[%s17822_s13 + $0x1c0] ss:$16 sps:$4 sm:$0xff]  }
  0xd9   : > { %9616 = vmatpush1.bf16.msra.mxu0 %v14882_v31  ;;  %v14922_v62 = vld [vmem:[%s17822_s13 + $0x3c4] ss:$16 sps:$4 sm:$0xff]   ;;  %v14925_v0 = vld [vmem:[%s17822_s13 + $0x3c0] ss:$16 sps:$4 sm:$0xff]  }
  0xda   : > { %9657 = vmatpush1.bf16.msra.mxu1 %v14883_v32  ;;  %9617 = vmatprep.subr.bf16.mxu0 %v14884_v33  ;;  %v14926_v1 = vld [vmem:[%s17822_s13 + $0x1e4] ss:$16 sps:$4 sm:$0xff]   ;;  %v14930_v3 = vld [vmem:[%s17822_s13 + $0x1e0] ss:$16 sps:$4 sm:$0xff]  }
  0xdb   : > { %9658 = vmatprep.subr.bf16.mxu1 %v14886_v34  ;;  %v14928_v2 = vld [vmem:[%s17822_s13 + $0x3e4] ss:$16 sps:$4 sm:$0xff]   ;;  %v14931_v4 = vld [vmem:[%s17822_s13 + $0x3e0] ss:$16 sps:$4 sm:$0xff]   ;;  %v17956_v34 = vld [vmem:[%s17844_s24 + $0x18] sm:$0xff] }
  0xdc   : > { %v14938_v5 = vld [vmem:[%s17822_s13 + $0x404] ss:$16 sps:$4 sm:$0xff]   ;;  %v14936_v9 = vld [vmem:[%s17822_s13 + $0x400] ss:$16 sps:$4 sm:$0xff]  }
  0xdd   : > { %9618 = vmatpush1.bf16.msra.mxu0 %v14888_v35  ;;  %v14941_v6 = vld [vmem:[%s17822_s13 + $0x604] ss:$16 sps:$4 sm:$0xff]   ;;  %v14939_v10 = vld [vmem:[%s17822_s13 + $0x600] ss:$16 sps:$4 sm:$0xff]  }
  0xde   : > { %9659 = vmatpush1.bf16.msra.mxu1 %v14889_v36  ;;  %9619 = vmatprep.subr.bf16.mxu0 %v14890_v37  ;;  %v14944_v11 = vld [vmem:[%s17822_s13 + $0x424] ss:$16 sps:$4 sm:$0xff]   ;;  %v14942_v13 = vld [vmem:[%s17822_s13 + $0x420] ss:$16 sps:$4 sm:$0xff]  }
  0xdf   : > { %9660 = vmatprep.subr.bf16.mxu1 %v14892_v38  ;;  %v14947_v12 = vld [vmem:[%s17822_s13 + $0x624] ss:$16 sps:$4 sm:$0xff]   ;;  %v14945_v14 = vld [vmem:[%s17822_s13 + $0x620] ss:$16 sps:$4 sm:$0xff]   ;;  %v17966_v38 = vcombine.high %v17956_v34, %v17956_v34 }
  0xe0   : > { %v14950_v15 = vld [vmem:[%s17822_s13 + $0x444] ss:$16 sps:$4 sm:$0xff]   ;;  %v14948_v17 = vld [vmem:[%s17822_s13 + $0x440] ss:$16 sps:$4 sm:$0xff]  }
  0xe1   : > { %9620 = vmatpush1.bf16.msra.mxu0 %v14894_v39  ;;  %v14953_v16 = vld [vmem:[%s17822_s13 + $0x644] ss:$16 sps:$4 sm:$0xff]   ;;  %v14951_v18 = vld [vmem:[%s17822_s13 + $0x640] ss:$16 sps:$4 sm:$0xff]  }
  0xe2   : > { %9661 = vmatpush1.bf16.msra.mxu1 %v14895_v40  ;;  %9621 = vmatprep.subr.bf16.mxu0 %v14896_v41  ;;  %v14956_v19 = vld [vmem:[%s17822_s13 + $0x464] ss:$16 sps:$4 sm:$0xff]   ;;  %v14954_v21 = vld [vmem:[%s17822_s13 + $0x460] ss:$16 sps:$4 sm:$0xff]  }
  0xe3   : > { %9662 = vmatprep.subr.bf16.mxu1 %v14898_v42  ;;  %v14959_v20 = vld [vmem:[%s17822_s13 + $0x664] ss:$16 sps:$4 sm:$0xff]   ;;  %v14957_v22 = vld [vmem:[%s17822_s13 + $0x660] ss:$16 sps:$4 sm:$0xff]  }
  0xe4   : > { %v14962_v23 = vld [vmem:[%s17822_s13 + $0x484] ss:$16 sps:$4 sm:$0xff]   ;;  %v14960_v25 = vld [vmem:[%s17822_s13 + $0x480] ss:$16 sps:$4 sm:$0xff]  }
  0xe5   : > { %9622 = vmatpush1.bf16.msra.mxu0 %v14900_v43  ;;  %v14965_v24 = vld [vmem:[%s17822_s13 + $0x684] ss:$16 sps:$4 sm:$0xff]   ;;  %v14963_v26 = vld [vmem:[%s17822_s13 + $0x680] ss:$16 sps:$4 sm:$0xff]  }
  0xe6   : > { %9663 = vmatpush1.bf16.msra.mxu1 %v14901_v44  ;;  %9623 = vmatprep.subr.bf16.mxu0 %v14902_v45  ;;  %v14968_v27 = vld [vmem:[%s17822_s13 + $0x4a4] ss:$16 sps:$4 sm:$0xff]   ;;  %v14966_v29 = vld [vmem:[%s17822_s13 + $0x4a0] ss:$16 sps:$4 sm:$0xff]  }
  0xe7   : > { %9664 = vmatprep.subr.bf16.mxu1 %v14904_v46  ;;  %v14971_v28 = vld [vmem:[%s17822_s13 + $0x6a4] ss:$16 sps:$4 sm:$0xff]   ;;  %v14969_v30 = vld [vmem:[%s17822_s13 + $0x6a0] ss:$16 sps:$4 sm:$0xff]  }
  0xe8   : > { %v14974_v31 = vld [vmem:[%s17822_s13 + $0x4c4] ss:$16 sps:$4 sm:$0xff]   ;;  %v14972_v35 = vld [vmem:[%s17822_s13 + $0x4c0] ss:$16 sps:$4 sm:$0xff]  }
  0xe9   : > { %9624 = vmatpush1.bf16.msra.mxu0 %v14906_v50  ;;  %v14977_v32 = vld [vmem:[%s17822_s13 + $0x6c4] ss:$16 sps:$4 sm:$0xff]   ;;  %v14975_v36 = vld [vmem:[%s17822_s13 + $0x6c0] ss:$16 sps:$4 sm:$0xff]  }
  0xea   : > { %9665 = vmatpush1.bf16.msra.mxu1 %v14907_v51  ;;  %9625 = vmatprep.subr.bf16.mxu0 %v14908_v53  ;;  %v17953_v33 = vld [vmem:[%s17844_s24 + $0x10] sm:$0xff] }
  0xeb   : > { %9666 = vmatprep.subr.bf16.mxu1 %v14910_v54  ;;  %v17962_v37 = vcombine.high %v17953_v33, %v17953_v33  ;;  %v14980_v39 = vld [vmem:[%s17822_s13 + $0x4e4] ss:$16 sps:$4 sm:$0xff]   ;;  %v14978_v41 = vld [vmem:[%s17822_s13 + $0x4e0] ss:$16 sps:$4 sm:$0xff]  }
  0xec   : > { %v14983_v40 = vld [vmem:[%s17822_s13 + $0x6e4] ss:$16 sps:$4 sm:$0xff]   ;;  %v14981_v42 = vld [vmem:[%s17822_s13 + $0x6e0] ss:$16 sps:$4 sm:$0xff]  }
  0xed   : > { %9626 = vmatpush1.bf16.msra.mxu0 %v14912_v55  ;;  %v14986_v43 = vld [vmem:[%s17822_s13 + $0x504] ss:$16 sps:$4 sm:$0xff]   ;;  %v14984_v45 = vld [vmem:[%s17822_s13 + $0x500] ss:$16 sps:$4 sm:$0xff]  }
  0xee   : > { %9667 = vmatpush1.bf16.msra.mxu1 %v14913_v56  ;;  %9627 = vmatprep.subr.bf16.mxu0 %v14914_v57  ;;  %v14989_v44 = vld [vmem:[%s17822_s13 + $0x704] ss:$16 sps:$4 sm:$0xff]   ;;  %v14987_v46 = vld [vmem:[%s17822_s13 + $0x700] ss:$16 sps:$4 sm:$0xff]  }
  0xef   : > { %9668 = vmatprep.subr.bf16.mxu1 %v14916_v58  ;;  %v14992_v47 = vld [vmem:[%s17822_s13 + $0x524] ss:$16 sps:$4 sm:$0xff]   ;;  %v14990_v50 = vld [vmem:[%s17822_s13 + $0x520] ss:$16 sps:$4 sm:$0xff]  }
  0xf0   : > { %v14995_v49 = vld [vmem:[%s17822_s13 + $0x724] ss:$16 sps:$4 sm:$0xff]   ;;  %v14993_v51 = vld [vmem:[%s17822_s13 + $0x720] ss:$16 sps:$4 sm:$0xff]  }
  0xf1   : > { %9628 = vmatpush1.bf16.msra.mxu0 %v14918_v59  ;;  %v14998_v53 = vld [vmem:[%s17822_s13 + $0x544] ss:$16 sps:$4 sm:$0xff]   ;;  %v14996_v55 = vld [vmem:[%s17822_s13 + $0x540] ss:$16 sps:$4 sm:$0xff]  }
  0xf2   : > { %9669 = vmatpush1.bf16.msra.mxu1 %v14919_v60  ;;  %9629 = vmatprep.subr.bf16.mxu0 %v14920_v61  ;;  %v15001_v54 = vld [vmem:[%s17822_s13 + $0x744] ss:$16 sps:$4 sm:$0xff]   ;;  %v14999_v56 = vld [vmem:[%s17822_s13 + $0x740] ss:$16 sps:$4 sm:$0xff]  }
  0xf3   : > { %9670 = vmatprep.subr.bf16.mxu1 %v14922_v62  ;;  %v15004_v57 = vld [vmem:[%s17822_s13 + $0x564] ss:$16 sps:$4 sm:$0xff]   ;;  %v15002_v59 = vld [vmem:[%s17822_s13 + $0x560] ss:$16 sps:$4 sm:$0xff]  }
  0xf4   : > { %v15007_v58 = vld [vmem:[%s17822_s13 + $0x764] ss:$16 sps:$4 sm:$0xff]   ;;  %v15005_v60 = vld [vmem:[%s17822_s13 + $0x760] ss:$16 sps:$4 sm:$0xff]  }
  0xf5   : > { %9630 = vmatpush1.bf16.msra.mxu0 %v14924_v63  ;;  %v15010_v61 = vld [vmem:[%s17822_s13 + $0x584] ss:$16 sps:$4 sm:$0xff]   ;;  %v15008_v63 = vld [vmem:[%s17822_s13 + $0x580] ss:$16 sps:$4 sm:$0xff]  }
  0xf6   : > { %9671 = vmatpush1.bf16.msra.mxu1 %v14925_v0  ;;  %9631 = vmatprep.subr.bf16.mxu0 %v14926_v1  ;;  %v15013_v62 = vld [vmem:[%s17822_s13 + $0x784] ss:$16 sps:$4 sm:$0xff]   ;;  %v15011_v0 = vld [vmem:[%s17822_s13 + $0x780] ss:$16 sps:$4 sm:$0xff]  }
  0xf7   : > { %9672 = vmatprep.subr.bf16.mxu1 %v14928_v2  ;;  %v15016_v1 = vld [vmem:[%s17822_s13 + $0x5a4] ss:$16 sps:$4 sm:$0xff]  }
  0xf8   : > { %v15019_v2 = vld [vmem:[%s17822_s13 + $0x7a4] ss:$16 sps:$4 sm:$0xff]  }
  0xf9   : > { %9632 = vmatpush1.bf16.msra.mxu0 %v14930_v3  ;;  %v15014_v3 = vld [vmem:[%s17822_s13 + $0x5a0] ss:$16 sps:$4 sm:$0xff]  }
  0xfa   : > { %9673 = vmatpush1.bf16.msra.mxu1 %v14931_v4  ;;  %9683 = vmatprep.subr.bf16.mxu0 %v14938_v5  ;;  %v15017_v4 = vld [vmem:[%s17822_s13 + $0x7a0] ss:$16 sps:$4 sm:$0xff]   ;;  %v15022_v5 = vld [vmem:[%s17822_s13 + $0x5c4] ss:$16 sps:$4 sm:$0xff]  }
  0xfb   : > { %9724 = vmatprep.subr.bf16.mxu1 %v14941_v6  ;;  %v15025_v6 = vld [vmem:[%s17822_s13 + $0x7c4] ss:$16 sps:$4 sm:$0xff]  }
  0xfc   : > { %9634 = vmatmul.mubr.bf16.vlgmr.msra.gmra.mrb[0].mxu0 %v17922_v7 }
  0xfd   : > { %9675 = vmatmul.mubr.bf16.vlgmr.msra.gmra.mrb[0].mxu1 %v17924_v8  ;;  %9684 = vmatpush1.bf16.msra.mxu0 %v14936_v9  ;;  %v15020_v9 = vld [vmem:[%s17822_s13 + $0x5c0] ss:$16 sps:$4 sm:$0xff]  }
  0xfe   : > { %9725 = vmatpush1.bf16.msra.mxu1 %v14939_v10  ;;  %9685 = vmatprep.subr.bf16.mxu0 %v14944_v11  ;;  %v15023_v10 = vld [vmem:[%s17822_s13 + $0x7c0] ss:$16 sps:$4 sm:$0xff]   ;;  %v15028_v11 = vld [vmem:[%s17822_s13 + $0x5e4] ss:$16 sps:$4 sm:$0xff]  }
  0xff   : > { %9726 = vmatprep.subr.bf16.mxu1 %v14947_v12  ;;  %9715 = vmatprep.mubr.bf16.mxu0 %v17962_v37  ;;  %v15031_v12 = vld [vmem:[%s17822_s13 + $0x7e4] ss:$16 sps:$4 sm:$0xff]  }
 0x100   : > { %9756 = vmatprep.mubr.bf16.mxu1 %v17966_v38 }
 0x101   : > { %9686 = vmatpush1.bf16.msra.mxu0 %v14942_v13  ;;  %v15026_v13 = vld [vmem:[%s17822_s13 + $0x5e0] ss:$16 sps:$4 sm:$0xff]  }
 0x102   : > { %9727 = vmatpush1.bf16.msra.mxu1 %v14945_v14  ;;  %9687 = vmatprep.subr.bf16.mxu0 %v14950_v15  ;;  %v15029_v14 = vld [vmem:[%s17822_s13 + $0x7e0] ss:$16 sps:$4 sm:$0xff]   ;;  %v15038_v15 = vld [vmem:[%s17822_s13 + $0x804] ss:$16 sps:$4 sm:$0xff]  }
 0x103   : > { %9728 = vmatprep.subr.bf16.mxu1 %v14953_v16  ;;  %v15041_v16 = vld [vmem:[%s17822_s13 + $0xa04] ss:$16 sps:$4 sm:$0xff]  }
 0x105   : > { %9688 = vmatpush1.bf16.msra.mxu0 %v14948_v17  ;;  %v18010_v17 = vcombine.low %v17953_v33, %v17953_v33  ;;  %v15056_v33 = vld [vmem:[%s17822_s13 + $0x864] ss:$16 sps:$4 sm:$0xff]  }
 0x106   : > { %9729 = vmatpush1.bf16.msra.mxu1 %v14951_v18  ;;  %9689 = vmatprep.subr.bf16.mxu0 %v14956_v19  ;;  %v18014_v18 = vcombine.low %v17956_v34, %v17956_v34  ;;  %v15036_v19 = vld [vmem:[%s17822_s13 + $0x800] ss:$16 sps:$4 sm:$0xff]   ;;  %v15059_v34 = vld [vmem:[%s17822_s13 + $0xa64] ss:$16 sps:$4 sm:$0xff]  }
 0x107   : > { %9730 = vmatprep.subr.bf16.mxu1 %v14959_v20  ;;  %v15039_v20 = vld [vmem:[%s17822_s13 + $0xa00] ss:$16 sps:$4 sm:$0xff]  }
 0x109   : > { %9690 = vmatpush1.bf16.msra.mxu0 %v14954_v21  ;;  %v15044_v21 = vld [vmem:[%s17822_s13 + $0x824] ss:$16 sps:$4 sm:$0xff]  }
 0x10a   : > { %9731 = vmatpush1.bf16.msra.mxu1 %v14957_v22  ;;  %9691 = vmatprep.subr.bf16.mxu0 %v14962_v23  ;;  %v15047_v22 = vld [vmem:[%s17822_s13 + $0xa24] ss:$16 sps:$4 sm:$0xff]  }
 0x10b   : > { %9732 = vmatprep.subr.bf16.mxu1 %v14965_v24  ;;  %v18021_v23 = vld [vmem:[%s17844_s24 + $0x20] sm:$0xff]  ;;  %v18024_v24 = vld [vmem:[%s17844_s24 + $0x28] sm:$0xff] }
 0x10d   : > { %9692 = vmatpush1.bf16.msra.mxu0 %v14960_v25  ;;  %v18028_v25 = vcombine.high %v18021_v23, %v18021_v23 }
 0x10e   : > { %9733 = vmatpush1.bf16.msra.mxu1 %v14963_v26  ;;  %9693 = vmatprep.subr.bf16.mxu0 %v14968_v27  ;;  %v18032_v26 = vcombine.high %v18024_v24, %v18024_v24  ;;  %v15042_v27 = vld [vmem:[%s17822_s13 + $0x820] ss:$16 sps:$4 sm:$0xff]  }
 0x10f   : > { %9734 = vmatprep.subr.bf16.mxu1 %v14971_v28  ;;  %v15045_v28 = vld [vmem:[%s17822_s13 + $0xa20] ss:$16 sps:$4 sm:$0xff]  }
 0x111   : > { %9694 = vmatpush1.bf16.msra.mxu0 %v14966_v29  ;;  %v15050_v29 = vld [vmem:[%s17822_s13 + $0x844] ss:$16 sps:$4 sm:$0xff]  }
 0x112   : > { %9735 = vmatpush1.bf16.msra.mxu1 %v14969_v30  ;;  %9695 = vmatprep.subr.bf16.mxu0 %v14974_v31  ;;  %v15053_v30 = vld [vmem:[%s17822_s13 + $0xa44] ss:$16 sps:$4 sm:$0xff]   ;;  %v15048_v31 = vld [vmem:[%s17822_s13 + $0x840] ss:$16 sps:$4 sm:$0xff]  }
 0x113   : > { %9736 = vmatprep.subr.bf16.mxu1 %v14977_v32  ;;  %v15051_v32 = vld [vmem:[%s17822_s13 + $0xa40] ss:$16 sps:$4 sm:$0xff]  }
 0x115   : > { %9696 = vmatpush1.bf16.msra.mxu0 %v14972_v35  ;;  %v15054_v35 = vld [vmem:[%s17822_s13 + $0x860] ss:$16 sps:$4 sm:$0xff]  }
 0x116   : > { %9737 = vmatpush1.bf16.msra.mxu1 %v14975_v36  ;;  %9697 = vmatprep.subr.bf16.mxu0 %v14980_v39  ;;  %v15057_v36 = vld [vmem:[%s17822_s13 + $0xa60] ss:$16 sps:$4 sm:$0xff]   ;;  %v15062_v39 = vld [vmem:[%s17822_s13 + $0x884] ss:$16 sps:$4 sm:$0xff]  }
 0x117   : > { %9738 = vmatprep.subr.bf16.mxu1 %v14983_v40  ;;  %v15065_v40 = vld [vmem:[%s17822_s13 + $0xa84] ss:$16 sps:$4 sm:$0xff]  }
 0x119   : > { %9698 = vmatpush1.bf16.msra.mxu0 %v14978_v41  ;;  %v15060_v41 = vld [vmem:[%s17822_s13 + $0x880] ss:$16 sps:$4 sm:$0xff]  }
 0x11a   : > { %9739 = vmatpush1.bf16.msra.mxu1 %v14981_v42  ;;  %9699 = vmatprep.subr.bf16.mxu0 %v14986_v43  ;;  %v15063_v42 = vld [vmem:[%s17822_s13 + $0xa80] ss:$16 sps:$4 sm:$0xff]   ;;  %v15068_v43 = vld [vmem:[%s17822_s13 + $0x8a4] ss:$16 sps:$4 sm:$0xff]  }
 0x11b   : > { %9740 = vmatprep.subr.bf16.mxu1 %v14989_v44  ;;  %v15071_v44 = vld [vmem:[%s17822_s13 + $0xaa4] ss:$16 sps:$4 sm:$0xff]  }
 0x11d   : > { %9700 = vmatpush1.bf16.msra.mxu0 %v14984_v45  ;;  %v15066_v45 = vld [vmem:[%s17822_s13 + $0x8a0] ss:$16 sps:$4 sm:$0xff]  }
 0x11e   : > { %9741 = vmatpush1.bf16.msra.mxu1 %v14987_v46  ;;  %9701 = vmatprep.subr.bf16.mxu0 %v14992_v47  ;;  %v15069_v46 = vld [vmem:[%s17822_s13 + $0xaa0] ss:$16 sps:$4 sm:$0xff]   ;;  %v15074_v47 = vld [vmem:[%s17822_s13 + $0x8c4] ss:$16 sps:$4 sm:$0xff]  }
 0x11f   : > { %9742 = vmatprep.subr.bf16.mxu1 %v14995_v49  ;;  %v15077_v49 = vld [vmem:[%s17822_s13 + $0xac4] ss:$16 sps:$4 sm:$0xff]  }
 0x121   : > { %9702 = vmatpush1.bf16.msra.mxu0 %v14990_v50  ;;  %v15072_v50 = vld [vmem:[%s17822_s13 + $0x8c0] ss:$16 sps:$4 sm:$0xff]  }
 0x122   : > { %9743 = vmatpush1.bf16.msra.mxu1 %v14993_v51  ;;  %9703 = vmatprep.subr.bf16.mxu0 %v14998_v53  ;;  %v15075_v51 = vld [vmem:[%s17822_s13 + $0xac0] ss:$16 sps:$4 sm:$0xff]   ;;  %v15080_v53 = vld [vmem:[%s17822_s13 + $0x8e4] ss:$16 sps:$4 sm:$0xff]  }
 0x123   : > { %9744 = vmatprep.subr.bf16.mxu1 %v15001_v54  ;;  %v15083_v54 = vld [vmem:[%s17822_s13 + $0xae4] ss:$16 sps:$4 sm:$0xff]  }
 0x125   : > { %9704 = vmatpush1.bf16.msra.mxu0 %v14996_v55  ;;  %v15078_v55 = vld [vmem:[%s17822_s13 + $0x8e0] ss:$16 sps:$4 sm:$0xff]  }
 0x126   : > { %9745 = vmatpush1.bf16.msra.mxu1 %v14999_v56  ;;  %9705 = vmatprep.subr.bf16.mxu0 %v15004_v57  ;;  %v15081_v56 = vld [vmem:[%s17822_s13 + $0xae0] ss:$16 sps:$4 sm:$0xff]   ;;  %v15086_v57 = vld [vmem:[%s17822_s13 + $0x904] ss:$16 sps:$4 sm:$0xff]  }
 0x127   : > { %9746 = vmatprep.subr.bf16.mxu1 %v15007_v58  ;;  %v15089_v58 = vld [vmem:[%s17822_s13 + $0xb04] ss:$16 sps:$4 sm:$0xff]  }
 0x129   : > { %9706 = vmatpush1.bf16.msra.mxu0 %v15002_v59  ;;  %v15084_v59 = vld [vmem:[%s17822_s13 + $0x900] ss:$16 sps:$4 sm:$0xff]  }
 0x12a   : > { %9747 = vmatpush1.bf16.msra.mxu1 %v15005_v60  ;;  %9707 = vmatprep.subr.bf16.mxu0 %v15010_v61  ;;  %v15087_v60 = vld [vmem:[%s17822_s13 + $0xb00] ss:$16 sps:$4 sm:$0xff]   ;;  %v15092_v61 = vld [vmem:[%s17822_s13 + $0x924] ss:$16 sps:$4 sm:$0xff]  }
 0x12b   : > { %9748 = vmatprep.subr.bf16.mxu1 %v15013_v62  ;;  %v15095_v62 = vld [vmem:[%s17822_s13 + $0xb24] ss:$16 sps:$4 sm:$0xff]  }
 0x12d   : > { %9708 = vmatpush1.bf16.msra.mxu0 %v15008_v63  ;;  %v15090_v63 = vld [vmem:[%s17822_s13 + $0x920] ss:$16 sps:$4 sm:$0xff]  }
 0x12e   : > { %9749 = vmatpush1.bf16.msra.mxu1 %v15011_v0  ;;  %9709 = vmatprep.subr.bf16.mxu0 %v15016_v1  ;;  %v15093_v0 = vld [vmem:[%s17822_s13 + $0xb20] ss:$16 sps:$4 sm:$0xff]   ;;  %v15098_v1 = vld [vmem:[%s17822_s13 + $0x944] ss:$16 sps:$4 sm:$0xff]  }
 0x12f   : > { %9750 = vmatprep.subr.bf16.mxu1 %v15019_v2  ;;  %v15101_v2 = vld [vmem:[%s17822_s13 + $0xb44] ss:$16 sps:$4 sm:$0xff]  }
 0x131   : > { %9710 = vmatpush1.bf16.msra.mxu0 %v15014_v3  ;;  %v15096_v3 = vld [vmem:[%s17822_s13 + $0x940] ss:$16 sps:$4 sm:$0xff]  }
 0x132   : > { %9751 = vmatpush1.bf16.msra.mxu1 %v15017_v4  ;;  %9711 = vmatprep.subr.bf16.mxu0 %v15022_v5  ;;  %v15099_v4 = vld [vmem:[%s17822_s13 + $0xb40] ss:$16 sps:$4 sm:$0xff]   ;;  %v15104_v5 = vld [vmem:[%s17822_s13 + $0x964] ss:$16 sps:$4 sm:$0xff]  }
 0x133   : > { %9752 = vmatprep.subr.bf16.mxu1 %v15025_v6  ;;  %v15107_v6 = vld [vmem:[%s17822_s13 + $0xb64] ss:$16 sps:$4 sm:$0xff]  }
 0x135   : > { %9712 = vmatpush1.bf16.msra.mxu0 %v15020_v9  ;;  %v15102_v9 = vld [vmem:[%s17822_s13 + $0x960] ss:$16 sps:$4 sm:$0xff]  }
 0x136   : > { %9753 = vmatpush1.bf16.msra.mxu1 %v15023_v10  ;;  %9713 = vmatprep.subr.bf16.mxu0 %v15028_v11  ;;  %v15105_v10 = vld [vmem:[%s17822_s13 + $0xb60] ss:$16 sps:$4 sm:$0xff]   ;;  %v15110_v11 = vld [vmem:[%s17822_s13 + $0x984] ss:$16 sps:$4 sm:$0xff]  }
 0x137   : > { %9754 = vmatprep.subr.bf16.mxu1 %v15031_v12  ;;  %v15113_v12 = vld [vmem:[%s17822_s13 + $0xb84] ss:$16 sps:$4 sm:$0xff]  }
 0x139   : > { %9714 = vmatpush1.bf16.msra.mxu0 %v15026_v13  ;;  %v15108_v13 = vld [vmem:[%s17822_s13 + $0x980] ss:$16 sps:$4 sm:$0xff]  }
 0x13a   : > { %9755 = vmatpush1.bf16.msra.mxu1 %v15029_v14  ;;  %9765 = vmatprep.subr.bf16.mxu0 %v15038_v15  ;;  %v15111_v14 = vld [vmem:[%s17822_s13 + $0xb80] ss:$16 sps:$4 sm:$0xff]   ;;  %v15116_v15 = vld [vmem:[%s17822_s13 + $0x9a4] ss:$16 sps:$4 sm:$0xff]  }
 0x13b   : > { %9806 = vmatprep.subr.bf16.mxu1 %v15041_v16  ;;  %v15119_v16 = vld [vmem:[%s17822_s13 + $0xba4] ss:$16 sps:$4 sm:$0xff]  }
 0x13c   : > { %9716 = vmatmul.mubr.bf16.vlgmr.msra.gmra.mrb[4].mxu0 %v18010_v17 }
 0x13d   : > { %9757 = vmatmul.mubr.bf16.vlgmr.msra.gmra.mrb[4].mxu1 %v18014_v18  ;;  %9766 = vmatpush1.bf16.msra.mxu0 %v15036_v19  ;;  %v15114_v19 = vld [vmem:[%s17822_s13 + $0x9a0] ss:$16 sps:$4 sm:$0xff]  }
 0x13e   : > { %9807 = vmatpush1.bf16.msra.mxu1 %v15039_v20  ;;  %9767 = vmatprep.subr.bf16.mxu0 %v15044_v21  ;;  %v15117_v20 = vld [vmem:[%s17822_s13 + $0xba0] ss:$16 sps:$4 sm:$0xff]   ;;  %v15122_v21 = vld [vmem:[%s17822_s13 + $0x9c4] ss:$16 sps:$4 sm:$0xff]  }
 0x13f   : > { %9808 = vmatprep.subr.bf16.mxu1 %v15047_v22  ;;  %9797 = vmatprep.mubr.bf16.mxu0 %v18028_v25  ;;  %v15125_v22 = vld [vmem:[%s17822_s13 + $0xbc4] ss:$16 sps:$4 sm:$0xff]  }
 0x140   : > { %9838 = vmatprep.mubr.bf16.mxu1 %v18032_v26 }
 0x141   : > { %9768 = vmatpush1.bf16.msra.mxu0 %v15042_v27  ;;  %v15120_v27 = vld [vmem:[%s17822_s13 + $0x9c0] ss:$16 sps:$4 sm:$0xff]  }
 0x142   : > { %9809 = vmatpush1.bf16.msra.mxu1 %v15045_v28  ;;  %9769 = vmatprep.subr.bf16.mxu0 %v15050_v29  ;;  %v15123_v28 = vld [vmem:[%s17822_s13 + $0xbc0] ss:$16 sps:$4 sm:$0xff]   ;;  %v15128_v29 = vld [vmem:[%s17822_s13 + $0x9e4] ss:$16 sps:$4 sm:$0xff]  }
 0x143   : > { %9810 = vmatprep.subr.bf16.mxu1 %v15053_v30  ;;  %v15131_v30 = vld [vmem:[%s17822_s13 + $0xbe4] ss:$16 sps:$4 sm:$0xff]  }
 0x145   : > { %9770 = vmatpush1.bf16.msra.mxu0 %v15048_v31  ;;  %v15126_v31 = vld [vmem:[%s17822_s13 + $0x9e0] ss:$16 sps:$4 sm:$0xff]  }
 0x146   : > { %9811 = vmatpush1.bf16.msra.mxu1 %v15051_v32  ;;  %9771 = vmatprep.subr.bf16.mxu0 %v15056_v33  ;;  %v15129_v32 = vld [vmem:[%s17822_s13 + $0xbe0] ss:$16 sps:$4 sm:$0xff]   ;;  %v15138_v33 = vld [vmem:[%s17822_s13 + $0xc04] ss:$16 sps:$4 sm:$0xff]  }
 0x147   : > { %9812 = vmatprep.subr.bf16.mxu1 %v15059_v34  ;;  %v15141_v34 = vld [vmem:[%s17822_s13 + $0xe04] ss:$16 sps:$4 sm:$0xff]  }
 0x149   : > { %9772 = vmatpush1.bf16.msra.mxu0 %v15054_v35  ;;  %v15136_v35 = vld [vmem:[%s17822_s13 + $0xc00] ss:$16 sps:$4 sm:$0xff]  }
 0x14a   : > { %9813 = vmatpush1.bf16.msra.mxu1 %v15057_v36  ;;  %9773 = vmatprep.subr.bf16.mxu0 %v15062_v39  ;;  %v15139_v36 = vld [vmem:[%s17822_s13 + $0xe00] ss:$16 sps:$4 sm:$0xff]   ;;  %v18102_v39 = vcombine.low %v18021_v23, %v18021_v23 }
 0x14b   : > { %9814 = vmatprep.subr.bf16.mxu1 %v15065_v40  ;;  %v18106_v40 = vcombine.low %v18024_v24, %v18024_v24 }
 0x14d   : > { %9774 = vmatpush1.bf16.msra.mxu0 %v15060_v41  ;;  %v18109_v41 = vld [vmem:[%s17844_s24 + $0x30] sm:$0xff] }
 0x14e   : > { %9815 = vmatpush1.bf16.msra.mxu1 %v15063_v42  ;;  %9775 = vmatprep.subr.bf16.mxu0 %v15068_v43  ;;  %v18112_v42 = vld [vmem:[%s17844_s24 + $0x38] sm:$0xff]  ;;  %v15144_v43 = vld [vmem:[%s17822_s13 + $0xc24] ss:$16 sps:$4 sm:$0xff]   ;;  %v18118_v23 = vcombine.high %v18109_v41, %v18109_v41 }
 0x14f   : > { %9816 = vmatprep.subr.bf16.mxu1 %v15071_v44  ;;  %v15147_v44 = vld [vmem:[%s17822_s13 + $0xe24] ss:$16 sps:$4 sm:$0xff]   ;;  %v18122_v24 = vcombine.high %v18112_v42, %v18112_v42 }
 0x151   : > { %9776 = vmatpush1.bf16.msra.mxu0 %v15066_v45  ;;  %v15142_v45 = vld [vmem:[%s17822_s13 + $0xc20] ss:$16 sps:$4 sm:$0xff]  }
 0x152   : > { %9817 = vmatpush1.bf16.msra.mxu1 %v15069_v46  ;;  %9777 = vmatprep.subr.bf16.mxu0 %v15074_v47  ;;  %v15145_v46 = vld [vmem:[%s17822_s13 + $0xe20] ss:$16 sps:$4 sm:$0xff]   ;;  %v15150_v47 = vld [vmem:[%s17822_s13 + $0xc44] ss:$16 sps:$4 sm:$0xff]  }
 0x153   : > { %9818 = vmatprep.subr.bf16.mxu1 %v15077_v49  ;;  %v15153_v49 = vld [vmem:[%s17822_s13 + $0xe44] ss:$16 sps:$4 sm:$0xff]  }
 0x155   : > { %9778 = vmatpush1.bf16.msra.mxu0 %v15072_v50  ;;  %v15148_v50 = vld [vmem:[%s17822_s13 + $0xc40] ss:$16 sps:$4 sm:$0xff]  }
 0x156   : > { %9819 = vmatpush1.bf16.msra.mxu1 %v15075_v51  ;;  %9779 = vmatprep.subr.bf16.mxu0 %v15080_v53  ;;  %v15151_v51 = vld [vmem:[%s17822_s13 + $0xe40] ss:$16 sps:$4 sm:$0xff]   ;;  %v15156_v53 = vld [vmem:[%s17822_s13 + $0xc64] ss:$16 sps:$4 sm:$0xff]  }
 0x157   : > { %9820 = vmatprep.subr.bf16.mxu1 %v15083_v54  ;;  %v15159_v54 = vld [vmem:[%s17822_s13 + $0xe64] ss:$16 sps:$4 sm:$0xff]  }
 0x159   : > { %9780 = vmatpush1.bf16.msra.mxu0 %v15078_v55  ;;  %v15154_v55 = vld [vmem:[%s17822_s13 + $0xc60] ss:$16 sps:$4 sm:$0xff]  }
 0x15a   : > { %9821 = vmatpush1.bf16.msra.mxu1 %v15081_v56  ;;  %9781 = vmatprep.subr.bf16.mxu0 %v15086_v57  ;;  %v15157_v56 = vld [vmem:[%s17822_s13 + $0xe60] ss:$16 sps:$4 sm:$0xff]   ;;  %v15162_v57 = vld [vmem:[%s17822_s13 + $0xc84] ss:$16 sps:$4 sm:$0xff]  }
 0x15b   : > { %9822 = vmatprep.subr.bf16.mxu1 %v15089_v58  ;;  %v15165_v58 = vld [vmem:[%s17822_s13 + $0xe84] ss:$16 sps:$4 sm:$0xff]  }
 0x15d   : > { %9782 = vmatpush1.bf16.msra.mxu0 %v15084_v59  ;;  %v15160_v59 = vld [vmem:[%s17822_s13 + $0xc80] ss:$16 sps:$4 sm:$0xff]  }
 0x15e   : > { %9823 = vmatpush1.bf16.msra.mxu1 %v15087_v60  ;;  %9783 = vmatprep.subr.bf16.mxu0 %v15092_v61  ;;  %v15163_v60 = vld [vmem:[%s17822_s13 + $0xe80] ss:$16 sps:$4 sm:$0xff]   ;;  %v15168_v61 = vld [vmem:[%s17822_s13 + $0xca4] ss:$16 sps:$4 sm:$0xff]  }
 0x15f   : > { %9824 = vmatprep.subr.bf16.mxu1 %v15095_v62  ;;  %v15171_v62 = vld [vmem:[%s17822_s13 + $0xea4] ss:$16 sps:$4 sm:$0xff]  }
 0x161   : > { %9784 = vmatpush1.bf16.msra.mxu0 %v15090_v63  ;;  %v15166_v63 = vld [vmem:[%s17822_s13 + $0xca0] ss:$16 sps:$4 sm:$0xff]  }
 0x162   : > { %9825 = vmatpush1.bf16.msra.mxu1 %v15093_v0  ;;  %9785 = vmatprep.subr.bf16.mxu0 %v15098_v1  ;;  %v15169_v0 = vld [vmem:[%s17822_s13 + $0xea0] ss:$16 sps:$4 sm:$0xff]   ;;  %v15174_v1 = vld [vmem:[%s17822_s13 + $0xcc4] ss:$16 sps:$4 sm:$0xff]  }
 0x163   : > { %9826 = vmatprep.subr.bf16.mxu1 %v15101_v2  ;;  %v15177_v2 = vld [vmem:[%s17822_s13 + $0xec4] ss:$16 sps:$4 sm:$0xff]  }
 0x165   : > { %9786 = vmatpush1.bf16.msra.mxu0 %v15096_v3  ;;  %v15172_v3 = vld [vmem:[%s17822_s13 + $0xcc0] ss:$16 sps:$4 sm:$0xff]  }
 0x166   : > { %9827 = vmatpush1.bf16.msra.mxu1 %v15099_v4  ;;  %9787 = vmatprep.subr.bf16.mxu0 %v15104_v5  ;;  %v15175_v4 = vld [vmem:[%s17822_s13 + $0xec0] ss:$16 sps:$4 sm:$0xff]   ;;  %v15180_v5 = vld [vmem:[%s17822_s13 + $0xce4] ss:$16 sps:$4 sm:$0xff]  }
 0x167   : > { %9828 = vmatprep.subr.bf16.mxu1 %v15107_v6  ;;  %v15183_v6 = vld [vmem:[%s17822_s13 + $0xee4] ss:$16 sps:$4 sm:$0xff]  }
 0x169   : > { %9788 = vmatpush1.bf16.msra.mxu0 %v15102_v9  ;;  %v15178_v9 = vld [vmem:[%s17822_s13 + $0xce0] ss:$16 sps:$4 sm:$0xff]  }
 0x16a   : > { %9829 = vmatpush1.bf16.msra.mxu1 %v15105_v10  ;;  %9789 = vmatprep.subr.bf16.mxu0 %v15110_v11  ;;  %v15181_v10 = vld [vmem:[%s17822_s13 + $0xee0] ss:$16 sps:$4 sm:$0xff]   ;;  %v15186_v11 = vld [vmem:[%s17822_s13 + $0xd04] ss:$16 sps:$4 sm:$0xff]  }
 0x16b   : > { %9830 = vmatprep.subr.bf16.mxu1 %v15113_v12  ;;  %v15189_v12 = vld [vmem:[%s17822_s13 + $0xf04] ss:$16 sps:$4 sm:$0xff]  }
 0x16d   : > { %9790 = vmatpush1.bf16.msra.mxu0 %v15108_v13  ;;  %v15184_v13 = vld [vmem:[%s17822_s13 + $0xd00] ss:$16 sps:$4 sm:$0xff]  }
 0x16e   : > { %9831 = vmatpush1.bf16.msra.mxu1 %v15111_v14  ;;  %9791 = vmatprep.subr.bf16.mxu0 %v15116_v15  ;;  %v15187_v14 = vld [vmem:[%s17822_s13 + $0xf00] ss:$16 sps:$4 sm:$0xff]   ;;  %v15192_v15 = vld [vmem:[%s17822_s13 + $0xd24] ss:$16 sps:$4 sm:$0xff]  }
 0x16f   : > { %9832 = vmatprep.subr.bf16.mxu1 %v15119_v16  ;;  %v15195_v16 = vld [vmem:[%s17822_s13 + $0xf24] ss:$16 sps:$4 sm:$0xff]  }
 0x171   : > { %9792 = vmatpush1.bf16.msra.mxu0 %v15114_v19  ;;  %v15190_v19 = vld [vmem:[%s17822_s13 + $0xd20] ss:$16 sps:$4 sm:$0xff]  }
 0x172   : > { %9833 = vmatpush1.bf16.msra.mxu1 %v15117_v20  ;;  %9793 = vmatprep.subr.bf16.mxu0 %v15122_v21  ;;  %v15193_v20 = vld [vmem:[%s17822_s13 + $0xf20] ss:$16 sps:$4 sm:$0xff]   ;;  %v15198_v21 = vld [vmem:[%s17822_s13 + $0xd44] ss:$16 sps:$4 sm:$0xff]  }
 0x173   : > { %9834 = vmatprep.subr.bf16.mxu1 %v15125_v22  ;;  %v15201_v22 = vld [vmem:[%s17822_s13 + $0xf44] ss:$16 sps:$4 sm:$0xff]  }
 0x175   : > { %9794 = vmatpush1.bf16.msra.mxu0 %v15120_v27  ;;  %v15196_v27 = vld [vmem:[%s17822_s13 + $0xd40] ss:$16 sps:$4 sm:$0xff]  }
 0x176   : > { %9835 = vmatpush1.bf16.msra.mxu1 %v15123_v28  ;;  %9795 = vmatprep.subr.bf16.mxu0 %v15128_v29  ;;  %v15199_v28 = vld [vmem:[%s17822_s13 + $0xf40] ss:$16 sps:$4 sm:$0xff]   ;;  %v15204_v29 = vld [vmem:[%s17822_s13 + $0xd64] ss:$16 sps:$4 sm:$0xff]  }
 0x177   : > { %9836 = vmatprep.subr.bf16.mxu1 %v15131_v30  ;;  %v15207_v30 = vld [vmem:[%s17822_s13 + $0xf64] ss:$16 sps:$4 sm:$0xff]  }
 0x179   : > { %9796 = vmatpush1.bf16.msra.mxu0 %v15126_v31  ;;  %v15202_v31 = vld [vmem:[%s17822_s13 + $0xd60] ss:$16 sps:$4 sm:$0xff]  }
 0x17a   : > { %9837 = vmatpush1.bf16.msra.mxu1 %v15129_v32  ;;  %9847 = vmatprep.subr.bf16.mxu0 %v15138_v33  ;;  %v15205_v32 = vld [vmem:[%s17822_s13 + $0xf60] ss:$16 sps:$4 sm:$0xff]   ;;  %v15210_v33 = vld [vmem:[%s17822_s13 + $0xd84] ss:$16 sps:$4 sm:$0xff]  }
 0x17b   : > { %9888 = vmatprep.subr.bf16.mxu1 %v15141_v34  ;;  %v15213_v34 = vld [vmem:[%s17822_s13 + $0xf84] ss:$16 sps:$4 sm:$0xff]  }
 0x17c   : > { %9798 = vmatmul.mubr.bf16.vlgmr.msra.gmra.mrb[8].mxu0 %v18102_v39 }
 0x17d   : > { %9839 = vmatmul.mubr.bf16.vlgmr.msra.gmra.mrb[8].mxu1 %v18106_v40  ;;  %9848 = vmatpush1.bf16.msra.mxu0 %v15136_v35  ;;  %v15208_v35 = vld [vmem:[%s17822_s13 + $0xd80] ss:$16 sps:$4 sm:$0xff]  }
 0x17e   : > { %9889 = vmatpush1.bf16.msra.mxu1 %v15139_v36  ;;  %9849 = vmatprep.subr.bf16.mxu0 %v15144_v43  ;;  %v15211_v36 = vld [vmem:[%s17822_s13 + $0xf80] ss:$16 sps:$4 sm:$0xff]   ;;  %v15216_v43 = vld [vmem:[%s17822_s13 + $0xda4] ss:$16 sps:$4 sm:$0xff]  }
 0x17f   : > { %9890 = vmatprep.subr.bf16.mxu1 %v15147_v44  ;;  %9879 = vmatprep.mubr.bf16.mxu0 %v18118_v23  ;;  %v15219_v44 = vld [vmem:[%s17822_s13 + $0xfa4] ss:$16 sps:$4 sm:$0xff]  }
 0x180   : > { %9920 = vmatprep.mubr.bf16.mxu1 %v18122_v24 }
 0x181   : > { %9850 = vmatpush1.bf16.msra.mxu0 %v15142_v45  ;;  %v15214_v45 = vld [vmem:[%s17822_s13 + $0xda0] ss:$16 sps:$4 sm:$0xff]  }
 0x182   : > { %9891 = vmatpush1.bf16.msra.mxu1 %v15145_v46  ;;  %9851 = vmatprep.subr.bf16.mxu0 %v15150_v47  ;;  %v15217_v46 = vld [vmem:[%s17822_s13 + $0xfa0] ss:$16 sps:$4 sm:$0xff]   ;;  %v15222_v47 = vld [vmem:[%s17822_s13 + $0xdc4] ss:$16 sps:$4 sm:$0xff]  }
 0x183   : > { %9892 = vmatprep.subr.bf16.mxu1 %v15153_v49  ;;  %v15225_v49 = vld [vmem:[%s17822_s13 + $0xfc4] ss:$16 sps:$4 sm:$0xff]  }
 0x185   : > { %9852 = vmatpush1.bf16.msra.mxu0 %v15148_v50  ;;  %v15220_v50 = vld [vmem:[%s17822_s13 + $0xdc0] ss:$16 sps:$4 sm:$0xff]  }
 0x186   : > { %9893 = vmatpush1.bf16.msra.mxu1 %v15151_v51  ;;  %9853 = vmatprep.subr.bf16.mxu0 %v15156_v53  ;;  %v15223_v51 = vld [vmem:[%s17822_s13 + $0xfc0] ss:$16 sps:$4 sm:$0xff]   ;;  %v15228_v53 = vld [vmem:[%s17822_s13 + $0xde4] ss:$16 sps:$4 sm:$0xff]  }
 0x187   : > { %9894 = vmatprep.subr.bf16.mxu1 %v15159_v54  ;;  %v15231_v54 = vld [vmem:[%s17822_s13 + $0xfe4] ss:$16 sps:$4 sm:$0xff]  }
 0x189   : > { %9854 = vmatpush1.bf16.msra.mxu0 %v15154_v55  ;;  %v15226_v55 = vld [vmem:[%s17822_s13 + $0xde0] ss:$16 sps:$4 sm:$0xff]  }
 0x18a   : > { %9895 = vmatpush1.bf16.msra.mxu1 %v15157_v56  ;;  %9855 = vmatprep.subr.bf16.mxu0 %v15162_v57  ;;  %v15229_v56 = vld [vmem:[%s17822_s13 + $0xfe0] ss:$16 sps:$4 sm:$0xff]   ;;  %v15238_v57 = vld [vmem:[%s17822_s13 + $0x1004] ss:$16 sps:$4 sm:$0xff]  }
 0x18b   : > { %9896 = vmatprep.subr.bf16.mxu1 %v15165_v58  ;;  %v15241_v58 = vld [vmem:[%s17822_s13 + $0x1204] ss:$16 sps:$4 sm:$0xff]  }
 0x18d   : > { %9856 = vmatpush1.bf16.msra.mxu0 %v15160_v59  ;;  %v18189_v59 = vld [vmem:[%s17844_s24 + $0x40] sm:$0xff] }
 0x18e   : > { %9897 = vmatpush1.bf16.msra.mxu1 %v15163_v60  ;;  %9857 = vmatprep.subr.bf16.mxu0 %v15168_v61  ;;  %v18193_v60 = vcombine.low %v18109_v41, %v18109_v41  ;;  %v18197_v61 = vcombine.low %v18112_v42, %v18112_v42  ;;  %v18208_v41 = vcombine.high %v18189_v59, %v18189_v59 }
 0x18f   : > { %9898 = vmatprep.subr.bf16.mxu1 %v15171_v62  ;;  %v18200_v62 = vld [vmem:[%s17844_s24 + $0x48] sm:$0xff] }
 0x190   : > { %v18212_v42 = vcombine.high %v18200_v62, %v18200_v62 }
 0x191   : > { %9858 = vmatpush1.bf16.msra.mxu0 %v15166_v63  ;;  %v15236_v63 = vld [vmem:[%s17822_s13 + $0x1000] ss:$16 sps:$4 sm:$0xff]  }
 0x192   : > { %9899 = vmatpush1.bf16.msra.mxu1 %v15169_v0  ;;  %9859 = vmatprep.subr.bf16.mxu0 %v15174_v1  ;;  %v15239_v0 = vld [vmem:[%s17822_s13 + $0x1200] ss:$16 sps:$4 sm:$0xff]   ;;  %v15244_v1 = vld [vmem:[%s17822_s13 + $0x1024] ss:$16 sps:$4 sm:$0xff]  }
 0x193   : > { %9900 = vmatprep.subr.bf16.mxu1 %v15177_v2  ;;  %v15247_v2 = vld [vmem:[%s17822_s13 + $0x1224] ss:$16 sps:$4 sm:$0xff]  }
 0x195   : > { %9860 = vmatpush1.bf16.msra.mxu0 %v15172_v3  ;;  %v15242_v3 = vld [vmem:[%s17822_s13 + $0x1020] ss:$16 sps:$4 sm:$0xff]  }
 0x196   : > { %9901 = vmatpush1.bf16.msra.mxu1 %v15175_v4  ;;  %9861 = vmatprep.subr.bf16.mxu0 %v15180_v5  ;;  %v15245_v4 = vld [vmem:[%s17822_s13 + $0x1220] ss:$16 sps:$4 sm:$0xff]   ;;  %v15250_v5 = vld [vmem:[%s17822_s13 + $0x1044] ss:$16 sps:$4 sm:$0xff]  }
 0x197   : > { %9902 = vmatprep.subr.bf16.mxu1 %v15183_v6  ;;  %v15253_v6 = vld [vmem:[%s17822_s13 + $0x1244] ss:$16 sps:$4 sm:$0xff]  }
 0x199   : > { %9862 = vmatpush1.bf16.msra.mxu0 %v15178_v9  ;;  %v15248_v9 = vld [vmem:[%s17822_s13 + $0x1040] ss:$16 sps:$4 sm:$0xff]  }
 0x19a   : > { %9903 = vmatpush1.bf16.msra.mxu1 %v15181_v10  ;;  %9863 = vmatprep.subr.bf16.mxu0 %v15186_v11  ;;  %v15251_v10 = vld [vmem:[%s17822_s13 + $0x1240] ss:$16 sps:$4 sm:$0xff]   ;;  %v15256_v11 = vld [vmem:[%s17822_s13 + $0x1064] ss:$16 sps:$4 sm:$0xff]  }
 0x19b   : > { %9904 = vmatprep.subr.bf16.mxu1 %v15189_v12  ;;  %v15259_v12 = vld [vmem:[%s17822_s13 + $0x1264] ss:$16 sps:$4 sm:$0xff]  }
 0x19d   : > { %9864 = vmatpush1.bf16.msra.mxu0 %v15184_v13  ;;  %v15254_v13 = vld [vmem:[%s17822_s13 + $0x1060] ss:$16 sps:$4 sm:$0xff]  }
 0x19e   : > { %9905 = vmatpush1.bf16.msra.mxu1 %v15187_v14  ;;  %9865 = vmatprep.subr.bf16.mxu0 %v15192_v15  ;;  %v15257_v14 = vld [vmem:[%s17822_s13 + $0x1260] ss:$16 sps:$4 sm:$0xff]   ;;  %v15262_v15 = vld [vmem:[%s17822_s13 + $0x1084] ss:$16 sps:$4 sm:$0xff]  }
 0x19f   : > { %9906 = vmatprep.subr.bf16.mxu1 %v15195_v16  ;;  %v15265_v16 = vld [vmem:[%s17822_s13 + $0x1284] ss:$16 sps:$4 sm:$0xff]  }
 0x1a1   : > { %9866 = vmatpush1.bf16.msra.mxu0 %v15190_v19  ;;  %v15260_v19 = vld [vmem:[%s17822_s13 + $0x1080] ss:$16 sps:$4 sm:$0xff]  }
 0x1a2   : > { %9907 = vmatpush1.bf16.msra.mxu1 %v15193_v20  ;;  %9867 = vmatprep.subr.bf16.mxu0 %v15198_v21  ;;  %v15263_v20 = vld [vmem:[%s17822_s13 + $0x1280] ss:$16 sps:$4 sm:$0xff]   ;;  %v15268_v21 = vld [vmem:[%s17822_s13 + $0x10a4] ss:$16 sps:$4 sm:$0xff]  }
 0x1a3   : > { %9908 = vmatprep.subr.bf16.mxu1 %v15201_v22  ;;  %v15271_v22 = vld [vmem:[%s17822_s13 + $0x12a4] ss:$16 sps:$4 sm:$0xff]  }
 0x1a5   : > { %9868 = vmatpush1.bf16.msra.mxu0 %v15196_v27  ;;  %v15266_v27 = vld [vmem:[%s17822_s13 + $0x10a0] ss:$16 sps:$4 sm:$0xff]  }
 0x1a6   : > { %9909 = vmatpush1.bf16.msra.mxu1 %v15199_v28  ;;  %9869 = vmatprep.subr.bf16.mxu0 %v15204_v29  ;;  %v15269_v28 = vld [vmem:[%s17822_s13 + $0x12a0] ss:$16 sps:$4 sm:$0xff]   ;;  %v15274_v29 = vld [vmem:[%s17822_s13 + $0x10c4] ss:$16 sps:$4 sm:$0xff]  }
 0x1a7   : > { %9910 = vmatprep.subr.bf16.mxu1 %v15207_v30  ;;  %v15277_v30 = vld [vmem:[%s17822_s13 + $0x12c4] ss:$16 sps:$4 sm:$0xff]  }
 0x1a9   : > { %9870 = vmatpush1.bf16.msra.mxu0 %v15202_v31 }
 0x1aa   : > { %9911 = vmatpush1.bf16.msra.mxu1 %v15205_v32  ;;  %9871 = vmatprep.subr.bf16.mxu0 %v15210_v33  ;;  %v15272_v33 = vld [vmem:[%s17822_s13 + $0x10c0] ss:$16 sps:$4 sm:$0xff]  }
 0x1ab   : > { %9912 = vmatprep.subr.bf16.mxu1 %v15213_v34  ;;  %v15275_v34 = vld [vmem:[%s17822_s13 + $0x12c0] ss:$16 sps:$4 sm:$0xff]  }
 0x1ad   : > { %9872 = vmatpush1.bf16.msra.mxu0 %v15208_v35 }
 0x1ae   : > { %9913 = vmatpush1.bf16.msra.mxu1 %v15211_v36  ;;  %9873 = vmatprep.subr.bf16.mxu0 %v15216_v43 }
 0x1af   : > { %9914 = vmatprep.subr.bf16.mxu1 %v15219_v44 }
 0x1b1   : > { %9874 = vmatpush1.bf16.msra.mxu0 %v15214_v45 }
 0x1b2   : > { %9915 = vmatpush1.bf16.msra.mxu1 %v15217_v46  ;;  %9875 = vmatprep.subr.bf16.mxu0 %v15222_v47 }
 0x1b3   : > { %9916 = vmatprep.subr.bf16.mxu1 %v15225_v49 }
 0x1b5   : > { %9876 = vmatpush1.bf16.msra.mxu0 %v15220_v50  ;;  %v15280_v50 = vld [vmem:[%s17822_s13 + $0x10e4] ss:$16 sps:$4 sm:$0xff]  }
 0x1b6   : > { %9917 = vmatpush1.bf16.msra.mxu1 %v15223_v51  ;;  %9877 = vmatprep.subr.bf16.mxu0 %v15228_v53  ;;  %v15283_v51 = vld [vmem:[%s17822_s13 + $0x12e4] ss:$16 sps:$4 sm:$0xff]   ;;  %v15278_v53 = vld [vmem:[%s17822_s13 + $0x10e0] ss:$16 sps:$4 sm:$0xff]  }
 0x1b7   : > { %9918 = vmatprep.subr.bf16.mxu1 %v15231_v54  ;;  %v15281_v54 = vld [vmem:[%s17822_s13 + $0x12e0] ss:$16 sps:$4 sm:$0xff]  }
 0x1b9   : > { %9878 = vmatpush1.bf16.msra.mxu0 %v15226_v55  ;;  %v15286_v55 = vld [vmem:[%s17822_s13 + $0x1104] ss:$16 sps:$4 sm:$0xff]  }
 0x1ba   : > { %9919 = vmatpush1.bf16.msra.mxu1 %v15229_v56  ;;  %9929 = vmatprep.subr.bf16.mxu0 %v15238_v57  ;;  %v15289_v56 = vld [vmem:[%s17822_s13 + $0x1304] ss:$16 sps:$4 sm:$0xff]   ;;  %v15284_v57 = vld [vmem:[%s17822_s13 + $0x1100] ss:$16 sps:$4 sm:$0xff]  }
 0x1bb   : > { %9970 = vmatprep.subr.bf16.mxu1 %v15241_v58  ;;  %v15287_v58 = vld [vmem:[%s17822_s13 + $0x1300] ss:$16 sps:$4 sm:$0xff]  }
 0x1bc   : > { %9880 = vmatmul.mubr.bf16.vlgmr.msra.gmra.mrb[12].mxu0 %v18193_v60 }
 0x1bd   : > { %9921 = vmatmul.mubr.bf16.vlgmr.msra.gmra.mrb[12].mxu1 %v18197_v61  ;;  %9930 = vmatpush1.bf16.msra.mxu0 %v15236_v63  ;;  %v15292_v63 = vld [vmem:[%s17822_s13 + $0x1124] ss:$16 sps:$4 sm:$0xff]  }
 0x1be   : > { %9971 = vmatpush1.bf16.msra.mxu1 %v15239_v0  ;;  %9931 = vmatprep.subr.bf16.mxu0 %v15244_v1  ;;  %v15295_v0 = vld [vmem:[%s17822_s13 + $0x1324] ss:$16 sps:$4 sm:$0xff]   ;;  %v15290_v1 = vld [vmem:[%s17822_s13 + $0x1120] ss:$16 sps:$4 sm:$0xff]  }
 0x1bf   : > { %9972 = vmatprep.subr.bf16.mxu1 %v15247_v2  ;;  %9961 = vmatprep.mubr.bf16.mxu0 %v18208_v41  ;;  %v15293_v2 = vld [vmem:[%s17822_s13 + $0x1320] ss:$16 sps:$4 sm:$0xff]  }
 0x1c0   : > { %10002 = vmatprep.mubr.bf16.mxu1 %v18212_v42 }
 0x1c1   : > { %9932 = vmatpush1.bf16.msra.mxu0 %v15242_v3  ;;  %v15298_v3 = vld [vmem:[%s17822_s13 + $0x1144] ss:$16 sps:$4 sm:$0xff]  }
 0x1c2   : > { %9973 = vmatpush1.bf16.msra.mxu1 %v15245_v4  ;;  %9933 = vmatprep.subr.bf16.mxu0 %v15250_v5  ;;  %v15301_v4 = vld [vmem:[%s17822_s13 + $0x1344] ss:$16 sps:$4 sm:$0xff]   ;;  %v15296_v5 = vld [vmem:[%s17822_s13 + $0x1140] ss:$16 sps:$4 sm:$0xff]  }
 0x1c3   : > { %9974 = vmatprep.subr.bf16.mxu1 %v15253_v6  ;;  %v15299_v6 = vld [vmem:[%s17822_s13 + $0x1340] ss:$16 sps:$4 sm:$0xff]  }
 0x1c5   : > { %9934 = vmatpush1.bf16.msra.mxu0 %v15248_v9  ;;  %v15304_v9 = vld [vmem:[%s17822_s13 + $0x1164] ss:$16 sps:$4 sm:$0xff]  }
 0x1c6   : > { %9975 = vmatpush1.bf16.msra.mxu1 %v15251_v10  ;;  %9935 = vmatprep.subr.bf16.mxu0 %v15256_v11  ;;  %v15307_v10 = vld [vmem:[%s17822_s13 + $0x1364] ss:$16 sps:$4 sm:$0xff]   ;;  %v15302_v11 = vld [vmem:[%s17822_s13 + $0x1160] ss:$16 sps:$4 sm:$0xff]  }
 0x1c7   : > { %9976 = vmatprep.subr.bf16.mxu1 %v15259_v12  ;;  %v15305_v12 = vld [vmem:[%s17822_s13 + $0x1360] ss:$16 sps:$4 sm:$0xff]  }
 0x1c9   : > { %9936 = vmatpush1.bf16.msra.mxu0 %v15254_v13  ;;  %v15310_v13 = vld [vmem:[%s17822_s13 + $0x1184] ss:$16 sps:$4 sm:$0xff]  }
 0x1ca   : > { %9977 = vmatpush1.bf16.msra.mxu1 %v15257_v14  ;;  %9937 = vmatprep.subr.bf16.mxu0 %v15262_v15  ;;  %v15313_v14 = vld [vmem:[%s17822_s13 + $0x1384] ss:$16 sps:$4 sm:$0xff]   ;;  %v15308_v15 = vld [vmem:[%s17822_s13 + $0x1180] ss:$16 sps:$4 sm:$0xff]  }
 0x1cb   : > { %9978 = vmatprep.subr.bf16.mxu1 %v15265_v16  ;;  %v15311_v16 = vld [vmem:[%s17822_s13 + $0x1380] ss:$16 sps:$4 sm:$0xff]  }
 0x1cd   : > { %9938 = vmatpush1.bf16.msra.mxu0 %v15260_v19  ;;  %v15316_v19 = vld [vmem:[%s17822_s13 + $0x11a4] ss:$16 sps:$4 sm:$0xff]  }
 0x1ce   : > { %9979 = vmatpush1.bf16.msra.mxu1 %v15263_v20  ;;  %9939 = vmatprep.subr.bf16.mxu0 %v15268_v21  ;;  %v15319_v20 = vld [vmem:[%s17822_s13 + $0x13a4] ss:$16 sps:$4 sm:$0xff]   ;;  %v15314_v21 = vld [vmem:[%s17822_s13 + $0x11a0] ss:$16 sps:$4 sm:$0xff]  }
 0x1cf   : > { %9980 = vmatprep.subr.bf16.mxu1 %v15271_v22  ;;  %v9635_v31 = vpop.f32.mrb[0].mxu0  ;;  %v15317_v22 = vld [vmem:[%s17822_s13 + $0x13a0] ss:$16 sps:$4 sm:$0xff]  }
 0x1d0   : > { %v9676_v32 = vpop.f32.mrb[0].mxu1  ;;  %v9637_v36 = vpop.f32.mrb[1].mxu0 }
 0x1d1   : > { %v18240_v35 = vadd.f32 %v9676_v32, %v9635_v31  ;;  %v9678_v43 = vpop.f32.mrb[1].mxu1  ;;  %v9639_v45 = vpop.f32.mrb[2].mxu0  ;;  %9940 = vmatpush1.bf16.msra.mxu0 %v15266_v27  ;;  %v15322_v27 = vld [vmem:[%s17822_s13 + $0x11c4] ss:$16 sps:$4 sm:$0xff]  }
 0x1d2   : > { %v18242_v44 = vadd.f32 %v9678_v43, %v9637_v36  ;;  %v9680_v46 = vpop.f32.mrb[2].mxu1  ;;  %9981 = vmatpush1.bf16.msra.mxu1 %v15269_v28  ;;  %v9640_v47 = vpop.f32.mrb[3].mxu0  ;;  %9941 = vmatprep.subr.bf16.mxu0 %v15274_v29  ;;  %v15325_v28 = vld [vmem:[%s17822_s13 + $0x13c4] ss:$16 sps:$4 sm:$0xff]   ;;  %v15320_v29 = vld [vmem:[%s17822_s13 + $0x11c0] ss:$16 sps:$4 sm:$0xff]  }
 0x1d3   : > { %v9681_v49 = vpop.f32.mrb[3].mxu1  ;;  %9982 = vmatprep.subr.bf16.mxu1 %v15277_v30  ;;  %v15323_v30 = vld [vmem:[%s17822_s13 + $0x13c0] ss:$16 sps:$4 sm:$0xff]   ;;  %v15328_v31 = vld [vmem:[%s17822_s13 + $0x11e4] ss:$16 sps:$4 sm:$0xff]   ;;  %v18286_v47 = vcombine.low %v18189_v59, %v18189_v59 }
 0x1d4   : > { %v15331_v32 = vld [vmem:[%s17822_s13 + $0x13e4] ss:$16 sps:$4 sm:$0xff]   ;;  %v15336_v45 = vld [vmem:[%s17822_s13 + $0x1400] ss:$16 sps:$4 sm:$0xff]   ;;  %v18290_v49 = vcombine.low %v18200_v62, %v18200_v62 }
 0x1d5   : > { %9942 = vmatpush1.bf16.msra.mxu0 %v15272_v33  ;;  %v15326_v33 = vld [vmem:[%s17822_s13 + $0x11e0] ss:$16 sps:$4 sm:$0xff]   ;;  %v15338_v36 = vld [vmem:[%s17822_s13 + $0x1404] ss:$16 sps:$4 sm:$0xff]  }
 0x1d6   : > { %9983 = vmatpush1.bf16.msra.mxu1 %v15275_v34  ;;  %9943 = vmatprep.subr.bf16.mxu0 %v15280_v50  ;;  %v15329_v34 = vld [vmem:[%s17822_s13 + $0x13e0] ss:$16 sps:$4 sm:$0xff]   ;;  %v15341_v43 = vld [vmem:[%s17822_s13 + $0x1604] ss:$16 sps:$4 sm:$0xff]  }
 0x1d7   : > { %9984 = vmatprep.subr.bf16.mxu1 %v15283_v51  ;;  %v15339_v46 = vld [vmem:[%s17822_s13 + $0x1600] ss:$16 sps:$4 sm:$0xff]   ;;  %v18296_v51 = vld [vmem:[%s17844_s24 + $0x58] sm:$0xff] }
 0x1d8   : > { %v18293_v50 = vld [vmem:[%s17844_s24 + $0x50] sm:$0xff]  ;;  %v18306_v62 = vcombine.high %v18296_v51, %v18296_v51 }
 0x1d9   : > { %9944 = vmatpush1.bf16.msra.mxu0 %v15278_v53  ;;  %v15344_v53 = vld [vmem:[%s17822_s13 + $0x1424] ss:$16 sps:$4 sm:$0xff]   ;;  %v18302_v59 = vcombine.high %v18293_v50, %v18293_v50 }
 0x1da   : > { %9985 = vmatpush1.bf16.msra.mxu1 %v15281_v54  ;;  %9945 = vmatprep.subr.bf16.mxu0 %v15286_v55  ;;  %v15347_v54 = vld [vmem:[%s17822_s13 + $0x1624] ss:$16 sps:$4 sm:$0xff]   ;;  %v15342_v55 = vld [vmem:[%s17822_s13 + $0x1420] ss:$16 sps:$4 sm:$0xff]  }
 0x1db   : > { %9986 = vmatprep.subr.bf16.mxu1 %v15289_v56  ;;  %v15345_v56 = vld [vmem:[%s17822_s13 + $0x1620] ss:$16 sps:$4 sm:$0xff]  }
 0x1dd   : > { %9946 = vmatpush1.bf16.msra.mxu0 %v15284_v57  ;;  %v15350_v57 = vld [vmem:[%s17822_s13 + $0x1444] ss:$16 sps:$4 sm:$0xff]  }
 0x1de   : > { %9987 = vmatpush1.bf16.msra.mxu1 %v15287_v58  ;;  %9947 = vmatprep.subr.bf16.mxu0 %v15292_v63  ;;  %v15353_v58 = vld [vmem:[%s17822_s13 + $0x1644] ss:$16 sps:$4 sm:$0xff]   ;;  %v15348_v63 = vld [vmem:[%s17822_s13 + $0x1440] ss:$16 sps:$4 sm:$0xff]  }
 0x1df   : > { %9988 = vmatprep.subr.bf16.mxu1 %v15295_v0  ;;  %v15351_v0 = vld [vmem:[%s17822_s13 + $0x1640] ss:$16 sps:$4 sm:$0xff]  }
 0x1e1   : > { %9948 = vmatpush1.bf16.msra.mxu0 %v15290_v1  ;;  %v15356_v1 = vld [vmem:[%s17822_s13 + $0x1464] ss:$16 sps:$4 sm:$0xff]  }
 0x1e2   : > { %9989 = vmatpush1.bf16.msra.mxu1 %v15293_v2  ;;  %9949 = vmatprep.subr.bf16.mxu0 %v15298_v3  ;;  %v15359_v2 = vld [vmem:[%s17822_s13 + $0x1664] ss:$16 sps:$4 sm:$0xff]   ;;  %v15354_v3 = vld [vmem:[%s17822_s13 + $0x1460] ss:$16 sps:$4 sm:$0xff]  }
 0x1e3   : > { %9990 = vmatprep.subr.bf16.mxu1 %v15301_v4  ;;  %v15357_v4 = vld [vmem:[%s17822_s13 + $0x1660] ss:$16 sps:$4 sm:$0xff]  }
 0x1e5   : > { %9950 = vmatpush1.bf16.msra.mxu0 %v15296_v5  ;;  %v15362_v5 = vld [vmem:[%s17822_s13 + $0x1484] ss:$16 sps:$4 sm:$0xff]  }
 0x1e6   : > { %9991 = vmatpush1.bf16.msra.mxu1 %v15299_v6  ;;  %9951 = vmatprep.subr.bf16.mxu0 %v15304_v9  ;;  %v15365_v6 = vld [vmem:[%s17822_s13 + $0x1684] ss:$16 sps:$4 sm:$0xff]   ;;  %v15360_v9 = vld [vmem:[%s17822_s13 + $0x1480] ss:$16 sps:$4 sm:$0xff]  }
 0x1e7   : > { %9992 = vmatprep.subr.bf16.mxu1 %v15307_v10  ;;  %v15363_v10 = vld [vmem:[%s17822_s13 + $0x1680] ss:$16 sps:$4 sm:$0xff]  }
 0x1e9   : > { %9952 = vmatpush1.bf16.msra.mxu0 %v15302_v11  ;;  %v15368_v11 = vld [vmem:[%s17822_s13 + $0x14a4] ss:$16 sps:$4 sm:$0xff]  }
 0x1ea   : > { %9993 = vmatpush1.bf16.msra.mxu1 %v15305_v12  ;;  %9953 = vmatprep.subr.bf16.mxu0 %v15310_v13  ;;  %v15371_v12 = vld [vmem:[%s17822_s13 + $0x16a4] ss:$16 sps:$4 sm:$0xff]   ;;  %v15366_v13 = vld [vmem:[%s17822_s13 + $0x14a0] ss:$16 sps:$4 sm:$0xff]  }
 0x1eb   : > { %9994 = vmatprep.subr.bf16.mxu1 %v15313_v14  ;;  %v15369_v14 = vld [vmem:[%s17822_s13 + $0x16a0] ss:$16 sps:$4 sm:$0xff]  }
 0x1ed   : > { %9954 = vmatpush1.bf16.msra.mxu0 %v15308_v15  ;;  %v15374_v15 = vld [vmem:[%s17822_s13 + $0x14c4] ss:$16 sps:$4 sm:$0xff]  }
 0x1ee   : > { %9995 = vmatpush1.bf16.msra.mxu1 %v15311_v16  ;;  %9955 = vmatprep.subr.bf16.mxu0 %v15316_v19  ;;  %v15377_v16 = vld [vmem:[%s17822_s13 + $0x16c4] ss:$16 sps:$4 sm:$0xff]  }
 0x1ef   : > { %9996 = vmatprep.subr.bf16.mxu1 %v15319_v20 }
 0x1f1   : > { %9956 = vmatpush1.bf16.msra.mxu0 %v15314_v21  ;;  %v15372_v21 = vld [vmem:[%s17822_s13 + $0x14c0] ss:$16 sps:$4 sm:$0xff]  }
 0x1f2   : > { %9997 = vmatpush1.bf16.msra.mxu1 %v15317_v22  ;;  %9957 = vmatprep.subr.bf16.mxu0 %v15322_v27  ;;  %v15375_v22 = vld [vmem:[%s17822_s13 + $0x16c0] ss:$16 sps:$4 sm:$0xff]  }
 0x1f3   : > { %9998 = vmatprep.subr.bf16.mxu1 %v15325_v28 }
 0x1f5   : > { %9958 = vmatpush1.bf16.msra.mxu0 %v15320_v29 }
 0x1f6   : > { %9999 = vmatpush1.bf16.msra.mxu1 %v15323_v30  ;;  %9959 = vmatprep.subr.bf16.mxu0 %v15328_v31 }
 0x1f7   : > { %10000 = vmatprep.subr.bf16.mxu1 %v15331_v32 }
 0x1f9   : > { %9960 = vmatpush1.bf16.msra.mxu0 %v15326_v33 }
 0x1fa   : > { %10001 = vmatpush1.bf16.msra.mxu1 %v15329_v34  ;;  %10011 = vmatprep.subr.bf16.mxu0 %v15338_v36 }
 0x1fb   : > { %10052 = vmatprep.subr.bf16.mxu1 %v15341_v43  ;;  %v15383_v43 = vld [vmem:[%s17822_s13 + $0x16e4] ss:$16 sps:$4 sm:$0xff]  }
 0x1fc   : > { %9962 = vmatmul.mubr.bf16.vlgmr.msra.gmra.mrb[16].mxu0 %v18286_v47 }
 0x1fd   : > { %10003 = vmatmul.mubr.bf16.vlgmr.msra.gmra.mrb[16].mxu1 %v18290_v49  ;;  %10012 = vmatpush1.bf16.msra.mxu0 %v15336_v45 }
 0x1fe   : > { %10053 = vmatpush1.bf16.msra.mxu1 %v15339_v46  ;;  %10013 = vmatprep.subr.bf16.mxu0 %v15344_v53  ;;  %v15381_v46 = vld [vmem:[%s17822_s13 + $0x16e0] ss:$16 sps:$4 sm:$0xff]   ;;  %v15386_v53 = vld [vmem:[%s17822_s13 + $0x1504] ss:$16 sps:$4 sm:$0xff]  }
 0x1ff   : > { %10054 = vmatprep.subr.bf16.mxu1 %v15347_v54  ;;  %10043 = vmatprep.mubr.bf16.mxu0 %v18302_v59  ;;  %v15389_v54 = vld [vmem:[%s17822_s13 + $0x1704] ss:$16 sps:$4 sm:$0xff]  }
 0x200   : > { %10084 = vmatprep.mubr.bf16.mxu1 %v18306_v62 }
 0x201   : > { %10014 = vmatpush1.bf16.msra.mxu0 %v15342_v55  ;;  %v15384_v55 = vld [vmem:[%s17822_s13 + $0x1500] ss:$16 sps:$4 sm:$0xff]  }
 0x202   : > { %10055 = vmatpush1.bf16.msra.mxu1 %v15345_v56  ;;  %10015 = vmatprep.subr.bf16.mxu0 %v15350_v57  ;;  %v15387_v56 = vld [vmem:[%s17822_s13 + $0x1700] ss:$16 sps:$4 sm:$0xff]   ;;  %v15392_v57 = vld [vmem:[%s17822_s13 + $0x1524] ss:$16 sps:$4 sm:$0xff]  }
 0x203   : > { %10056 = vmatprep.subr.bf16.mxu1 %v15353_v58  ;;  %v15395_v58 = vld [vmem:[%s17822_s13 + $0x1724] ss:$16 sps:$4 sm:$0xff]  }
 0x205   : > { %10016 = vmatpush1.bf16.msra.mxu0 %v15348_v63  ;;  %v15390_v63 = vld [vmem:[%s17822_s13 + $0x1520] ss:$16 sps:$4 sm:$0xff]  }
 0x206   : > { %10057 = vmatpush1.bf16.msra.mxu1 %v15351_v0  ;;  %10017 = vmatprep.subr.bf16.mxu0 %v15356_v1  ;;  %v15393_v0 = vld [vmem:[%s17822_s13 + $0x1720] ss:$16 sps:$4 sm:$0xff]   ;;  %v15398_v1 = vld [vmem:[%s17822_s13 + $0x1544] ss:$16 sps:$4 sm:$0xff]  }
 0x207   : > { %10058 = vmatprep.subr.bf16.mxu1 %v15359_v2  ;;  %v15401_v2 = vld [vmem:[%s17822_s13 + $0x1744] ss:$16 sps:$4 sm:$0xff]  }
 0x209   : > { %10018 = vmatpush1.bf16.msra.mxu0 %v15354_v3  ;;  %v15396_v3 = vld [vmem:[%s17822_s13 + $0x1540] ss:$16 sps:$4 sm:$0xff]  }
 0x20a   : > { %10059 = vmatpush1.bf16.msra.mxu1 %v15357_v4  ;;  %10019 = vmatprep.subr.bf16.mxu0 %v15362_v5  ;;  %v15399_v4 = vld [vmem:[%s17822_s13 + $0x1740] ss:$16 sps:$4 sm:$0xff]   ;;  %v15404_v5 = vld [vmem:[%s17822_s13 + $0x1564] ss:$16 sps:$4 sm:$0xff]  }
 0x20b   : > { %10060 = vmatprep.subr.bf16.mxu1 %v15365_v6  ;;  %v15407_v6 = vld [vmem:[%s17822_s13 + $0x1764] ss:$16 sps:$4 sm:$0xff]  }
 0x20d   : > { %10020 = vmatpush1.bf16.msra.mxu0 %v15360_v9  ;;  %v15402_v9 = vld [vmem:[%s17822_s13 + $0x1560] ss:$16 sps:$4 sm:$0xff]  }
 0x20e   : > { %10061 = vmatpush1.bf16.msra.mxu1 %v15363_v10  ;;  %10021 = vmatprep.subr.bf16.mxu0 %v15368_v11  ;;  %v15405_v10 = vld [vmem:[%s17822_s13 + $0x1760] ss:$16 sps:$4 sm:$0xff]   ;;  %v15410_v11 = vld [vmem:[%s17822_s13 + $0x1584] ss:$16 sps:$4 sm:$0xff]  }
 0x20f   : > { %10062 = vmatprep.subr.bf16.mxu1 %v15371_v12  ;;  %v9717_v19 = vpop.f32.mrb[4].mxu0  ;;  %v15413_v12 = vld [vmem:[%s17822_s13 + $0x1784] ss:$16 sps:$4 sm:$0xff]  }
 0x210   : > { %v9758_v20 = vpop.f32.mrb[4].mxu1  ;;  %v9718_v27 = vadd.f32 %v9717_v19, %v18240_v35  ;;  %v9719_v28 = vpop.f32.mrb[5].mxu0  ;;  %v15380_v35 = vld [vmem:[%s17822_s13 + $0x14e4] ss:$16 sps:$4 sm:$0xff]   ;;  %v15414_v19 = vld [vmem:[%s17822_s13 + $0x15a0] ss:$16 sps:$4 sm:$0xff]  }
 0x211   : > { %v9760_v29 = vpop.f32.mrb[5].mxu1  ;;  %v9720_v30 = vadd.f32 %v9719_v28, %v18242_v44  ;;  %v9721_v31 = vpop.f32.mrb[6].mxu0  ;;  %10022 = vmatpush1.bf16.msra.mxu0 %v15366_v13  ;;  %v15378_v44 = vld [vmem:[%s17822_s13 + $0x14e0] ss:$16 sps:$4 sm:$0xff]  }
 0x212   : > { %v9762_v32 = vpop.f32.mrb[6].mxu1  ;;  %10063 = vmatpush1.bf16.msra.mxu1 %v15369_v14  ;;  %v18336_v33 = vadd.f32 %v9758_v20, %v9718_v27  ;;  %v9722_v34 = vpop.f32.mrb[7].mxu0  ;;  %10023 = vmatprep.subr.bf16.mxu0 %v15374_v15  ;;  %v15408_v13 = vld [vmem:[%s17822_s13 + $0x1580] ss:$16 sps:$4 sm:$0xff]   ;;  %v15416_v15 = vld [vmem:[%s17822_s13 + $0x15a4] ss:$16 sps:$4 sm:$0xff]  }
 0x213   : > { %v9763_v36 = vpop.f32.mrb[7].mxu1  ;;  %10064 = vmatprep.subr.bf16.mxu1 %v15377_v16  ;;  %v18340_v45 = vadd.f32 %v9760_v29, %v9720_v30  ;;  %v15411_v14 = vld [vmem:[%s17822_s13 + $0x1780] ss:$16 sps:$4 sm:$0xff]   ;;  %v15419_v16 = vld [vmem:[%s17822_s13 + $0x17a4] ss:$16 sps:$4 sm:$0xff]  }
 0x214   : > { %v15417_v20 = vld [vmem:[%s17822_s13 + $0x17a0] ss:$16 sps:$4 sm:$0xff]   ;;  %v15428_v29 = vld [vmem:[%s17822_s13 + $0x15e4] ss:$16 sps:$4 sm:$0xff]  }
 0x215   : > { %10024 = vmatpush1.bf16.msra.mxu0 %v15372_v21  ;;  %v15422_v21 = vld [vmem:[%s17822_s13 + $0x15c4] ss:$16 sps:$4 sm:$0xff]   ;;  %v15420_v27 = vld [vmem:[%s17822_s13 + $0x15c0] ss:$16 sps:$4 sm:$0xff]  }
 0x216   : > { %10065 = vmatpush1.bf16.msra.mxu1 %v15375_v22  ;;  %10025 = vmatprep.subr.bf16.mxu0 %v15380_v35  ;;  %v15425_v22 = vld [vmem:[%s17822_s13 + $0x17c4] ss:$16 sps:$4 sm:$0xff]   ;;  %v15423_v28 = vld [vmem:[%s17822_s13 + $0x17c0] ss:$16 sps:$4 sm:$0xff]  }
 0x217   : > { %10066 = vmatprep.subr.bf16.mxu1 %v15383_v43  ;;  %v15431_v30 = vld [vmem:[%s17822_s13 + $0x17e4] ss:$16 sps:$4 sm:$0xff]   ;;  %v15426_v31 = vld [vmem:[%s17822_s13 + $0x15e0] ss:$16 sps:$4 sm:$0xff]  }
 0x218   : > { %v15429_v32 = vld [vmem:[%s17822_s13 + $0x17e0] ss:$16 sps:$4 sm:$0xff]   ;;  %v15438_v34 = vld [vmem:[%s17822_s13 + $0x1804] ss:$16 sps:$4 sm:$0xff]  }
 0x219   : > { %10026 = vmatpush1.bf16.msra.mxu0 %v15378_v44  ;;  %v15441_v36 = vld [vmem:[%s17822_s13 + $0x1a04] ss:$16 sps:$4 sm:$0xff]   ;;  %v15436_v35 = vld [vmem:[%s17822_s13 + $0x1800] ss:$16 sps:$4 sm:$0xff]   ;;  %v18382_v44 = vcombine.low %v18293_v50, %v18293_v50 }
 0x21a   : > { %10067 = vmatpush1.bf16.msra.mxu1 %v15381_v46  ;;  %10027 = vmatprep.subr.bf16.mxu0 %v15386_v53  ;;  %v15439_v43 = vld [vmem:[%s17822_s13 + $0x1a00] ss:$16 sps:$4 sm:$0xff]   ;;  %v18386_v46 = vcombine.low %v18296_v51, %v18296_v51 }
 0x21b   : > { %10068 = vmatprep.subr.bf16.mxu1 %v15389_v54  ;;  %v18389_v53 = vld [vmem:[%s17844_s24 + $0x60] sm:$0xff]  ;;  %v18392_v54 = vld [vmem:[%s17844_s24 + $0x68] sm:$0xff] }
 0x21c   : > { %v18398_v50 = vcombine.high %v18389_v53, %v18389_v53  ;;  %v18402_v51 = vcombine.high %v18392_v54, %v18392_v54 }
 0x21d   : > { %10028 = vmatpush1.bf16.msra.mxu0 %v15384_v55  ;;  %v15444_v55 = vld [vmem:[%s17822_s13 + $0x1824] ss:$16 sps:$4 sm:$0xff]  }
 0x21e   : > { %10069 = vmatpush1.bf16.msra.mxu1 %v15387_v56  ;;  %10029 = vmatprep.subr.bf16.mxu0 %v15392_v57  ;;  %v15447_v56 = vld [vmem:[%s17822_s13 + $0x1a24] ss:$16 sps:$4 sm:$0xff]   ;;  %v15442_v57 = vld [vmem:[%s17822_s13 + $0x1820] ss:$16 sps:$4 sm:$0xff]  }
 0x21f   : > { %10070 = vmatprep.subr.bf16.mxu1 %v15395_v58  ;;  %v15445_v58 = vld [vmem:[%s17822_s13 + $0x1a20] ss:$16 sps:$4 sm:$0xff]  }
 0x221   : > { %10030 = vmatpush1.bf16.msra.mxu0 %v15390_v63  ;;  %v15450_v63 = vld [vmem:[%s17822_s13 + $0x1844] ss:$16 sps:$4 sm:$0xff]  }
 0x222   : > { %10071 = vmatpush1.bf16.msra.mxu1 %v15393_v0  ;;  %10031 = vmatprep.subr.bf16.mxu0 %v15398_v1  ;;  %v15453_v0 = vld [vmem:[%s17822_s13 + $0x1a44] ss:$16 sps:$4 sm:$0xff]   ;;  %v15448_v1 = vld [vmem:[%s17822_s13 + $0x1840] ss:$16 sps:$4 sm:$0xff]  }
 0x223   : > { %10072 = vmatprep.subr.bf16.mxu1 %v15401_v2  ;;  %v15451_v2 = vld [vmem:[%s17822_s13 + $0x1a40] ss:$16 sps:$4 sm:$0xff]  }
 0x225   : > { %10032 = vmatpush1.bf16.msra.mxu0 %v15396_v3  ;;  %v15456_v3 = vld [vmem:[%s17822_s13 + $0x1864] ss:$16 sps:$4 sm:$0xff]  }
 0x226   : > { %10073 = vmatpush1.bf16.msra.mxu1 %v15399_v4  ;;  %10033 = vmatprep.subr.bf16.mxu0 %v15404_v5  ;;  %v15459_v4 = vld [vmem:[%s17822_s13 + $0x1a64] ss:$16 sps:$4 sm:$0xff]   ;;  %v15454_v5 = vld [vmem:[%s17822_s13 + $0x1860] ss:$16 sps:$4 sm:$0xff]  }
 0x227   : > { %10074 = vmatprep.subr.bf16.mxu1 %v15407_v6  ;;  %v15457_v6 = vld [vmem:[%s17822_s13 + $0x1a60] ss:$16 sps:$4 sm:$0xff]  }
 0x229   : > { %10034 = vmatpush1.bf16.msra.mxu0 %v15402_v9  ;;  %v15462_v9 = vld [vmem:[%s17822_s13 + $0x1884] ss:$16 sps:$4 sm:$0xff]  }
 0x22a   : > { %10075 = vmatpush1.bf16.msra.mxu1 %v15405_v10  ;;  %10035 = vmatprep.subr.bf16.mxu0 %v15410_v11  ;;  %v15465_v10 = vld [vmem:[%s17822_s13 + $0x1a84] ss:$16 sps:$4 sm:$0xff]   ;;  %v15460_v11 = vld [vmem:[%s17822_s13 + $0x1880] ss:$16 sps:$4 sm:$0xff]  }
 0x22b   : > { %10076 = vmatprep.subr.bf16.mxu1 %v15413_v12  ;;  %v15463_v12 = vld [vmem:[%s17822_s13 + $0x1a80] ss:$16 sps:$4 sm:$0xff]  }
 0x22d   : > { %10036 = vmatpush1.bf16.msra.mxu0 %v15408_v13  ;;  %v15468_v13 = vld [vmem:[%s17822_s13 + $0x18a4] ss:$16 sps:$4 sm:$0xff]  }
 0x22e   : > { %10077 = vmatpush1.bf16.msra.mxu1 %v15411_v14  ;;  %10037 = vmatprep.subr.bf16.mxu0 %v15416_v15  ;;  %v15471_v14 = vld [vmem:[%s17822_s13 + $0x1aa4] ss:$16 sps:$4 sm:$0xff]   ;;  %v15466_v15 = vld [vmem:[%s17822_s13 + $0x18a0] ss:$16 sps:$4 sm:$0xff]  }
 0x22f   : > { %10078 = vmatprep.subr.bf16.mxu1 %v15419_v16  ;;  %v15469_v16 = vld [vmem:[%s17822_s13 + $0x1aa0] ss:$16 sps:$4 sm:$0xff]  }
 0x231   : > { %10038 = vmatpush1.bf16.msra.mxu0 %v15414_v19  ;;  %v15474_v19 = vld [vmem:[%s17822_s13 + $0x18c4] ss:$16 sps:$4 sm:$0xff]  }
 0x232   : > { %10079 = vmatpush1.bf16.msra.mxu1 %v15417_v20  ;;  %10039 = vmatprep.subr.bf16.mxu0 %v15422_v21  ;;  %v15477_v20 = vld [vmem:[%s17822_s13 + $0x1ac4] ss:$16 sps:$4 sm:$0xff]  }
 0x233   : > { %10080 = vmatprep.subr.bf16.mxu1 %v15425_v22 }
 0x235   : > { %10040 = vmatpush1.bf16.msra.mxu0 %v15420_v27  ;;  %v15472_v27 = vld [vmem:[%s17822_s13 + $0x18c0] ss:$16 sps:$4 sm:$0xff]  }
 0x236   : > { %10081 = vmatpush1.bf16.msra.mxu1 %v15423_v28  ;;  %10041 = vmatprep.subr.bf16.mxu0 %v15428_v29  ;;  %v15475_v28 = vld [vmem:[%s17822_s13 + $0x1ac0] ss:$16 sps:$4 sm:$0xff]  }
 0x237   : > { %10082 = vmatprep.subr.bf16.mxu1 %v15431_v30 }
 0x239   : > { %10042 = vmatpush1.bf16.msra.mxu0 %v15426_v31 }
 0x23a   : > { %10083 = vmatpush1.bf16.msra.mxu1 %v15429_v32  ;;  %10093 = vmatprep.subr.bf16.mxu0 %v15438_v34 }
 0x23b   : > { %10134 = vmatprep.subr.bf16.mxu1 %v15441_v36 }
 0x23c   : > { %10044 = vmatmul.mubr.bf16.vlgmr.msra.gmra.mrb[20].mxu0 %v18382_v44 }
 0x23d   : > { %10085 = vmatmul.mubr.bf16.vlgmr.msra.gmra.mrb[20].mxu1 %v18386_v46  ;;  %10094 = vmatpush1.bf16.msra.mxu0 %v15436_v35 }
 0x23e   : > { %10135 = vmatpush1.bf16.msra.mxu1 %v15439_v43  ;;  %10095 = vmatprep.subr.bf16.mxu0 %v15444_v55 }
 0x23f   : > { %10136 = vmatprep.subr.bf16.mxu1 %v15447_v56  ;;  %10125 = vmatprep.mubr.bf16.mxu0 %v18398_v50  ;;  %v15483_v56 = vld [vmem:[%s17822_s13 + $0x1ae4] ss:$16 sps:$4 sm:$0xff]  }
 0x240   : > { %10166 = vmatprep.mubr.bf16.mxu1 %v18402_v51 }
 0x241   : > { %10096 = vmatpush1.bf16.msra.mxu0 %v15442_v57 }
 0x242   : > { %10137 = vmatpush1.bf16.msra.mxu1 %v15445_v58  ;;  %10097 = vmatprep.subr.bf16.mxu0 %v15450_v63  ;;  %v15481_v58 = vld [vmem:[%s17822_s13 + $0x1ae0] ss:$16 sps:$4 sm:$0xff]   ;;  %v15486_v63 = vld [vmem:[%s17822_s13 + $0x1904] ss:$16 sps:$4 sm:$0xff]  }
 0x243   : > { %10138 = vmatprep.subr.bf16.mxu1 %v15453_v0  ;;  %v15489_v0 = vld [vmem:[%s17822_s13 + $0x1b04] ss:$16 sps:$4 sm:$0xff]  }
 0x245   : > { %10098 = vmatpush1.bf16.msra.mxu0 %v15448_v1  ;;  %v15484_v1 = vld [vmem:[%s17822_s13 + $0x1900] ss:$16 sps:$4 sm:$0xff]  }
 0x246   : > { %10139 = vmatpush1.bf16.msra.mxu1 %v15451_v2  ;;  %10099 = vmatprep.subr.bf16.mxu0 %v15456_v3  ;;  %v15487_v2 = vld [vmem:[%s17822_s13 + $0x1b00] ss:$16 sps:$4 sm:$0xff]   ;;  %v15492_v3 = vld [vmem:[%s17822_s13 + $0x1924] ss:$16 sps:$4 sm:$0xff]  }
 0x247   : > { %10140 = vmatprep.subr.bf16.mxu1 %v15459_v4  ;;  %v15495_v4 = vld [vmem:[%s17822_s13 + $0x1b24] ss:$16 sps:$4 sm:$0xff]  }
 0x249   : > { %10100 = vmatpush1.bf16.msra.mxu0 %v15454_v5  ;;  %v15490_v5 = vld [vmem:[%s17822_s13 + $0x1920] ss:$16 sps:$4 sm:$0xff]  }
 0x24a   : > { %10141 = vmatpush1.bf16.msra.mxu1 %v15457_v6  ;;  %10101 = vmatprep.subr.bf16.mxu0 %v15462_v9  ;;  %v15493_v6 = vld [vmem:[%s17822_s13 + $0x1b20] ss:$16 sps:$4 sm:$0xff]   ;;  %v15498_v9 = vld [vmem:[%s17822_s13 + $0x1944] ss:$16 sps:$4 sm:$0xff]  }
 0x24b   : > { %10142 = vmatprep.subr.bf16.mxu1 %v15465_v10  ;;  %v15501_v10 = vld [vmem:[%s17822_s13 + $0x1b44] ss:$16 sps:$4 sm:$0xff]  }
 0x24d   : > { %10102 = vmatpush1.bf16.msra.mxu0 %v15460_v11  ;;  %v15496_v11 = vld [vmem:[%s17822_s13 + $0x1940] ss:$16 sps:$4 sm:$0xff]  }
 0x24e   : > { %10143 = vmatpush1.bf16.msra.mxu1 %v15463_v12  ;;  %10103 = vmatprep.subr.bf16.mxu0 %v15468_v13  ;;  %v15499_v12 = vld [vmem:[%s17822_s13 + $0x1b40] ss:$16 sps:$4 sm:$0xff]   ;;  %v15504_v13 = vld [vmem:[%s17822_s13 + $0x1964] ss:$16 sps:$4 sm:$0xff]  }
 0x24f   : > { %10144 = vmatprep.subr.bf16.mxu1 %v15471_v14  ;;  %v9799_v21 = vpop.f32.mrb[8].mxu0  ;;  %v15507_v14 = vld [vmem:[%s17822_s13 + $0x1b64] ss:$16 sps:$4 sm:$0xff]  }
 0x250   : > { %v9840_v22 = vpop.f32.mrb[8].mxu1  ;;  %v9800_v29 = vadd.f32 %v9799_v21, %v18336_v33  ;;  %v9801_v30 = vpop.f32.mrb[9].mxu0  ;;  %v15480_v33 = vld [vmem:[%s17822_s13 + $0x18e4] ss:$16 sps:$4 sm:$0xff]   ;;  %v15508_v21 = vld [vmem:[%s17822_s13 + $0x1980] ss:$16 sps:$4 sm:$0xff]  }
 0x251   : > { %v9842_v31 = vpop.f32.mrb[9].mxu1  ;;  %v9802_v32 = vadd.f32 %v9801_v30, %v18340_v45  ;;  %v9803_v34 = vpop.f32.mrb[10].mxu0  ;;  %10104 = vmatpush1.bf16.msra.mxu0 %v15466_v15  ;;  %v15478_v45 = vld [vmem:[%s17822_s13 + $0x18e0] ss:$16 sps:$4 sm:$0xff]  }
 0x252   : > { %v9844_v36 = vpop.f32.mrb[10].mxu1  ;;  %10145 = vmatpush1.bf16.msra.mxu1 %v15469_v16  ;;  %v18432_v35 = vadd.f32 %v9840_v22, %v9800_v29  ;;  %v9804_v43 = vpop.f32.mrb[11].mxu0  ;;  %10105 = vmatprep.subr.bf16.mxu0 %v15474_v19  ;;  %v15502_v15 = vld [vmem:[%s17822_s13 + $0x1960] ss:$16 sps:$4 sm:$0xff]   ;;  %v15510_v19 = vld [vmem:[%s17822_s13 + $0x1984] ss:$16 sps:$4 sm:$0xff]  }
 0x253   : > { %v9845_v55 = vpop.f32.mrb[11].mxu1  ;;  %10146 = vmatprep.subr.bf16.mxu1 %v15477_v20  ;;  %v18436_v57 = vadd.f32 %v9842_v31, %v9802_v32  ;;  %v15505_v16 = vld [vmem:[%s17822_s13 + $0x1b60] ss:$16 sps:$4 sm:$0xff]   ;;  %v15513_v20 = vld [vmem:[%s17822_s13 + $0x1b84] ss:$16 sps:$4 sm:$0xff]  }
 0x254   : > { %v15511_v22 = vld [vmem:[%s17822_s13 + $0x1b80] ss:$16 sps:$4 sm:$0xff]   ;;  %v15522_v31 = vld [vmem:[%s17822_s13 + $0x19c4] ss:$16 sps:$4 sm:$0xff]  }
 0x255   : > { %10106 = vmatpush1.bf16.msra.mxu0 %v15472_v27  ;;  %v15516_v27 = vld [vmem:[%s17822_s13 + $0x19a4] ss:$16 sps:$4 sm:$0xff]   ;;  %v15514_v29 = vld [vmem:[%s17822_s13 + $0x19a0] ss:$16 sps:$4 sm:$0xff]  }
 0x256   : > { %10147 = vmatpush1.bf16.msra.mxu1 %v15475_v28  ;;  %10107 = vmatprep.subr.bf16.mxu0 %v15480_v33  ;;  %v15519_v28 = vld [vmem:[%s17822_s13 + $0x1ba4] ss:$16 sps:$4 sm:$0xff]   ;;  %v15517_v30 = vld [vmem:[%s17822_s13 + $0x1ba0] ss:$16 sps:$4 sm:$0xff]  }
 0x257   : > { %10148 = vmatprep.subr.bf16.mxu1 %v15483_v56  ;;  %v15525_v32 = vld [vmem:[%s17822_s13 + $0x1bc4] ss:$16 sps:$4 sm:$0xff]   ;;  %v15520_v34 = vld [vmem:[%s17822_s13 + $0x19c0] ss:$16 sps:$4 sm:$0xff]  }
 0x258   : > { %v15523_v36 = vld [vmem:[%s17822_s13 + $0x1bc0] ss:$16 sps:$4 sm:$0xff]   ;;  %v15528_v43 = vld [vmem:[%s17822_s13 + $0x19e4] ss:$16 sps:$4 sm:$0xff]  }
 0x259   : > { %10108 = vmatpush1.bf16.msra.mxu0 %v15478_v45  ;;  %v15531_v55 = vld [vmem:[%s17822_s13 + $0x1be4] ss:$16 sps:$4 sm:$0xff]   ;;  %v15526_v33 = vld [vmem:[%s17822_s13 + $0x19e0] ss:$16 sps:$4 sm:$0xff]  }
 0x25a   : > { %10149 = vmatpush1.bf16.msra.mxu1 %v15481_v58  ;;  %10109 = vmatprep.subr.bf16.mxu0 %v15486_v63  ;;  %v15529_v56 = vld [vmem:[%s17822_s13 + $0x1be0] ss:$16 sps:$4 sm:$0xff]   ;;  %v15538_v45 = vld [vmem:[%s17822_s13 + $0x1c04] ss:$16 sps:$4 sm:$0xff]  }
 0x25b   : > { %10150 = vmatprep.subr.bf16.mxu1 %v15489_v0  ;;  %v15541_v58 = vld [vmem:[%s17822_s13 + $0x1e04] ss:$16 sps:$4 sm:$0xff]   ;;  %v15536_v63 = vld [vmem:[%s17822_s13 + $0x1c00] ss:$16 sps:$4 sm:$0xff]  }
 0x25c   : > { %v15539_v0 = vld [vmem:[%s17822_s13 + $0x1e00] ss:$16 sps:$4 sm:$0xff]  }
 0x25d   : > { %10110 = vmatpush1.bf16.msra.mxu0 %v15484_v1  ;;  %v18478_v1 = vcombine.low %v18389_v53, %v18389_v53 }
 0x25e   : > { %10151 = vmatpush1.bf16.msra.mxu1 %v15487_v2  ;;  %10111 = vmatprep.subr.bf16.mxu0 %v15492_v3  ;;  %v18482_v2 = vcombine.low %v18392_v54, %v18392_v54  ;;  %v18485_v3 = vld [vmem:[%s17844_s24 + $0x70] sm:$0xff] }
 0x25f   : > { %10152 = vmatprep.subr.bf16.mxu1 %v15495_v4  ;;  %v18488_v4 = vld [vmem:[%s17844_s24 + $0x78] sm:$0xff]  ;;  %v18494_v53 = vcombine.high %v18485_v3, %v18485_v3 }
 0x260   : > { %v18498_v54 = vcombine.high %v18488_v4, %v18488_v4 }
 0x261   : > { %10112 = vmatpush1.bf16.msra.mxu0 %v15490_v5  ;;  %v15544_v5 = vld [vmem:[%s17822_s13 + $0x1c24] ss:$16 sps:$4 sm:$0xff]  }
 0x262   : > { %10153 = vmatpush1.bf16.msra.mxu1 %v15493_v6  ;;  %10113 = vmatprep.subr.bf16.mxu0 %v15498_v9  ;;  %v15547_v6 = vld [vmem:[%s17822_s13 + $0x1e24] ss:$16 sps:$4 sm:$0xff]   ;;  %v15542_v9 = vld [vmem:[%s17822_s13 + $0x1c20] ss:$16 sps:$4 sm:$0xff]  }
 0x263   : > { %10154 = vmatprep.subr.bf16.mxu1 %v15501_v10  ;;  %v15545_v10 = vld [vmem:[%s17822_s13 + $0x1e20] ss:$16 sps:$4 sm:$0xff]  }
 0x265   : > { %10114 = vmatpush1.bf16.msra.mxu0 %v15496_v11  ;;  %v15550_v11 = vld [vmem:[%s17822_s13 + $0x1c44] ss:$16 sps:$4 sm:$0xff]  }
 0x266   : > { %10155 = vmatpush1.bf16.msra.mxu1 %v15499_v12  ;;  %10115 = vmatprep.subr.bf16.mxu0 %v15504_v13  ;;  %v15553_v12 = vld [vmem:[%s17822_s13 + $0x1e44] ss:$16 sps:$4 sm:$0xff]   ;;  %v15548_v13 = vld [vmem:[%s17822_s13 + $0x1c40] ss:$16 sps:$4 sm:$0xff]  }
 0x267   : > { %10156 = vmatprep.subr.bf16.mxu1 %v15507_v14  ;;  %v15551_v14 = vld [vmem:[%s17822_s13 + $0x1e40] ss:$16 sps:$4 sm:$0xff]  }
 0x269   : > { %10116 = vmatpush1.bf16.msra.mxu0 %v15502_v15  ;;  %v15556_v15 = vld [vmem:[%s17822_s13 + $0x1c64] ss:$16 sps:$4 sm:$0xff]  }
 0x26a   : > { %10157 = vmatpush1.bf16.msra.mxu1 %v15505_v16  ;;  %10117 = vmatprep.subr.bf16.mxu0 %v15510_v19  ;;  %v15559_v16 = vld [vmem:[%s17822_s13 + $0x1e64] ss:$16 sps:$4 sm:$0xff]   ;;  %v15554_v19 = vld [vmem:[%s17822_s13 + $0x1c60] ss:$16 sps:$4 sm:$0xff]  }
 0x26b   : > { %10158 = vmatprep.subr.bf16.mxu1 %v15513_v20  ;;  %v15557_v20 = vld [vmem:[%s17822_s13 + $0x1e60] ss:$16 sps:$4 sm:$0xff]  }
 0x26d   : > { %10118 = vmatpush1.bf16.msra.mxu0 %v15508_v21  ;;  %v15562_v21 = vld [vmem:[%s17822_s13 + $0x1c84] ss:$16 sps:$4 sm:$0xff]  }
 0x26e   : > { %10159 = vmatpush1.bf16.msra.mxu1 %v15511_v22  ;;  %10119 = vmatprep.subr.bf16.mxu0 %v15516_v27  ;;  %v15565_v22 = vld [vmem:[%s17822_s13 + $0x1e84] ss:$16 sps:$4 sm:$0xff]   ;;  %v15560_v27 = vld [vmem:[%s17822_s13 + $0x1c80] ss:$16 sps:$4 sm:$0xff]  }
 0x26f   : > { %10160 = vmatprep.subr.bf16.mxu1 %v15519_v28  ;;  %v15563_v28 = vld [vmem:[%s17822_s13 + $0x1e80] ss:$16 sps:$4 sm:$0xff]  }
 0x271   : > { %10120 = vmatpush1.bf16.msra.mxu0 %v15514_v29  ;;  %v15568_v29 = vld [vmem:[%s17822_s13 + $0x1ca4] ss:$16 sps:$4 sm:$0xff]  }
 0x272   : > { %10161 = vmatpush1.bf16.msra.mxu1 %v15517_v30  ;;  %10121 = vmatprep.subr.bf16.mxu0 %v15522_v31  ;;  %v15571_v30 = vld [vmem:[%s17822_s13 + $0x1ea4] ss:$16 sps:$4 sm:$0xff]   ;;  %v15566_v31 = vld [vmem:[%s17822_s13 + $0x1ca0] ss:$16 sps:$4 sm:$0xff]  }
 0x273   : > { %10162 = vmatprep.subr.bf16.mxu1 %v15525_v32  ;;  %v15569_v32 = vld [vmem:[%s17822_s13 + $0x1ea0] ss:$16 sps:$4 sm:$0xff]  }
 0x275   : > { %10122 = vmatpush1.bf16.msra.mxu0 %v15520_v34  ;;  %v15574_v34 = vld [vmem:[%s17822_s13 + $0x1cc4] ss:$16 sps:$4 sm:$0xff]  }
 0x276   : > { %10163 = vmatpush1.bf16.msra.mxu1 %v15523_v36  ;;  %10123 = vmatprep.subr.bf16.mxu0 %v15528_v43  ;;  %v15577_v36 = vld [vmem:[%s17822_s13 + $0x1ec4] ss:$16 sps:$4 sm:$0xff]  }
 0x277   : > { %10164 = vmatprep.subr.bf16.mxu1 %v15531_v55 }
 0x279   : > { %10124 = vmatpush1.bf16.msra.mxu0 %v15526_v33  ;;  %v15572_v33 = vld [vmem:[%s17822_s13 + $0x1cc0] ss:$16 sps:$4 sm:$0xff]  }
 0x27a   : > { %10165 = vmatpush1.bf16.msra.mxu1 %v15529_v56  ;;  %10175 = vmatprep.subr.bf16.mxu0 %v15538_v45  ;;  %v15575_v56 = vld [vmem:[%s17822_s13 + $0x1ec0] ss:$16 sps:$4 sm:$0xff]  }
 0x27b   : > { %10216 = vmatprep.subr.bf16.mxu1 %v15541_v58 }
 0x27c   : > { %10126 = vmatmul.mubr.bf16.vlgmr.msra.gmra.mrb[24].mxu0 %v18478_v1 }
 0x27d   : > { %10167 = vmatmul.mubr.bf16.vlgmr.msra.gmra.mrb[24].mxu1 %v18482_v2  ;;  %10176 = vmatpush1.bf16.msra.mxu0 %v15536_v63 }
 0x27e   : > { %10217 = vmatpush1.bf16.msra.mxu1 %v15539_v0  ;;  %10177 = vmatprep.subr.bf16.mxu0 %v15544_v5 }
 0x27f   : > { %10218 = vmatprep.subr.bf16.mxu1 %v15547_v6  ;;  %10207 = vmatprep.mubr.bf16.mxu0 %v18494_v53 }
 0x280   : > { %10248 = vmatprep.mubr.bf16.mxu1 %v18498_v54 }
 0x281   : > { %10178 = vmatpush1.bf16.msra.mxu0 %v15542_v9 }
 0x282   : > { %10219 = vmatpush1.bf16.msra.mxu1 %v15545_v10  ;;  %10179 = vmatprep.subr.bf16.mxu0 %v15550_v11 }
 0x283   : > { %10220 = vmatprep.subr.bf16.mxu1 %v15553_v12  ;;  %v15583_v12 = vld [vmem:[%s17822_s13 + $0x1ee4] ss:$16 sps:$4 sm:$0xff]  }
 0x285   : > { %10180 = vmatpush1.bf16.msra.mxu0 %v15548_v13 }
 0x286   : > { %10221 = vmatpush1.bf16.msra.mxu1 %v15551_v14  ;;  %10181 = vmatprep.subr.bf16.mxu0 %v15556_v15  ;;  %v15581_v14 = vld [vmem:[%s17822_s13 + $0x1ee0] ss:$16 sps:$4 sm:$0xff]   ;;  %v15586_v15 = vld [vmem:[%s17822_s13 + $0x1d04] ss:$16 sps:$4 sm:$0xff]  }
 0x287   : > { %10222 = vmatprep.subr.bf16.mxu1 %v15559_v16  ;;  %v15589_v16 = vld [vmem:[%s17822_s13 + $0x1f04] ss:$16 sps:$4 sm:$0xff]  }
 0x289   : > { %10182 = vmatpush1.bf16.msra.mxu0 %v15554_v19  ;;  %v15584_v19 = vld [vmem:[%s17822_s13 + $0x1d00] ss:$16 sps:$4 sm:$0xff]  }
 0x28a   : > { %10223 = vmatpush1.bf16.msra.mxu1 %v15557_v20  ;;  %10183 = vmatprep.subr.bf16.mxu0 %v15562_v21  ;;  %v15587_v20 = vld [vmem:[%s17822_s13 + $0x1f00] ss:$16 sps:$4 sm:$0xff]   ;;  %v15592_v21 = vld [vmem:[%s17822_s13 + $0x1d24] ss:$16 sps:$4 sm:$0xff]  }
 0x28b   : > { %10224 = vmatprep.subr.bf16.mxu1 %v15565_v22  ;;  %v15595_v22 = vld [vmem:[%s17822_s13 + $0x1f24] ss:$16 sps:$4 sm:$0xff]  }
 0x28d   : > { %10184 = vmatpush1.bf16.msra.mxu0 %v15560_v27  ;;  %v15590_v27 = vld [vmem:[%s17822_s13 + $0x1d20] ss:$16 sps:$4 sm:$0xff]  }
 0x28e   : > { %10225 = vmatpush1.bf16.msra.mxu1 %v15563_v28  ;;  %10185 = vmatprep.subr.bf16.mxu0 %v15568_v29  ;;  %v15593_v28 = vld [vmem:[%s17822_s13 + $0x1f20] ss:$16 sps:$4 sm:$0xff]   ;;  %v15598_v29 = vld [vmem:[%s17822_s13 + $0x1d44] ss:$16 sps:$4 sm:$0xff]  }
 0x28f   : > { %10226 = vmatprep.subr.bf16.mxu1 %v15571_v30  ;;  %v9881_v43 = vpop.f32.mrb[12].mxu0  ;;  %v15601_v30 = vld [vmem:[%s17822_s13 + $0x1f44] ss:$16 sps:$4 sm:$0xff]  }
 0x290   : > { %v9922_v55 = vpop.f32.mrb[12].mxu1  ;;  %v9882_v45 = vadd.f32 %v9881_v43, %v18432_v35  ;;  %v9883_v58 = vpop.f32.mrb[13].mxu0  ;;  %v15580_v35 = vld [vmem:[%s17822_s13 + $0x1ce4] ss:$16 sps:$4 sm:$0xff]   ;;  %v15602_v43 = vld [vmem:[%s17822_s13 + $0x1d60] ss:$16 sps:$4 sm:$0xff]  }
 0x291   : > { %v9924_v63 = vpop.f32.mrb[13].mxu1  ;;  %v9884_v0 = vadd.f32 %v9883_v58, %v18436_v57  ;;  %v9885_v5 = vpop.f32.mrb[14].mxu0  ;;  %10186 = vmatpush1.bf16.msra.mxu0 %v15566_v31  ;;  %v15578_v57 = vld [vmem:[%s17822_s13 + $0x1ce0] ss:$16 sps:$4 sm:$0xff]  }
 0x292   : > { %v9926_v6 = vpop.f32.mrb[14].mxu1  ;;  %10227 = vmatpush1.bf16.msra.mxu1 %v15569_v32  ;;  %v18528_v9 = vadd.f32 %v9922_v55, %v9882_v45  ;;  %v9886_v10 = vpop.f32.mrb[15].mxu0  ;;  %10187 = vmatprep.subr.bf16.mxu0 %v15574_v34  ;;  %v15596_v31 = vld [vmem:[%s17822_s13 + $0x1d40] ss:$16 sps:$4 sm:$0xff]   ;;  %v15604_v34 = vld [vmem:[%s17822_s13 + $0x1d64] ss:$16 sps:$4 sm:$0xff]  }
 0x293   : > { %v9927_v11 = vpop.f32.mrb[15].mxu1  ;;  %10228 = vmatprep.subr.bf16.mxu1 %v15577_v36  ;;  %v18532_v13 = vadd.f32 %v9924_v63, %v9884_v0  ;;  %v15599_v32 = vld [vmem:[%s17822_s13 + $0x1f40] ss:$16 sps:$4 sm:$0xff]   ;;  %v15607_v36 = vld [vmem:[%s17822_s13 + $0x1f64] ss:$16 sps:$4 sm:$0xff]  }
 0x294   : > { %v15605_v55 = vld [vmem:[%s17822_s13 + $0x1f60] ss:$16 sps:$4 sm:$0xff]   ;;  %v15616_v63 = vld [vmem:[%s17822_s13 + $0x1da4] ss:$16 sps:$4 sm:$0xff]  }
 0x295   : > { %10188 = vmatpush1.bf16.msra.mxu0 %v15572_v33  ;;  %v15610_v33 = vld [vmem:[%s17822_s13 + $0x1d84] ss:$16 sps:$4 sm:$0xff]   ;;  %v15608_v45 = vld [vmem:[%s17822_s13 + $0x1d80] ss:$16 sps:$4 sm:$0xff]  }
 0x296   : > { %10229 = vmatpush1.bf16.msra.mxu1 %v15575_v56  ;;  %10189 = vmatprep.subr.bf16.mxu0 %v15580_v35  ;;  %v15613_v56 = vld [vmem:[%s17822_s13 + $0x1f84] ss:$16 sps:$4 sm:$0xff]   ;;  %v15611_v58 = vld [vmem:[%s17822_s13 + $0x1f80] ss:$16 sps:$4 sm:$0xff]  }
 0x297   : > { %10230 = vmatprep.subr.bf16.mxu1 %v15583_v12  ;;  %v15619_v0 = vld [vmem:[%s17822_s13 + $0x1fa4] ss:$16 sps:$4 sm:$0xff]   ;;  %v15614_v5 = vld [vmem:[%s17822_s13 + $0x1da0] ss:$16 sps:$4 sm:$0xff]  }
 0x298   : > { %v15617_v6 = vld [vmem:[%s17822_s13 + $0x1fa0] ss:$16 sps:$4 sm:$0xff]   ;;  %v15622_v10 = vld [vmem:[%s17822_s13 + $0x1dc4] ss:$16 sps:$4 sm:$0xff]  }
 0x299   : > { %10190 = vmatpush1.bf16.msra.mxu0 %v15578_v57  ;;  %v15625_v11 = vld [vmem:[%s17822_s13 + $0x1fc4] ss:$16 sps:$4 sm:$0xff]   ;;  %v15620_v35 = vld [vmem:[%s17822_s13 + $0x1dc0] ss:$16 sps:$4 sm:$0xff]  }
 0x29a   : > { %10231 = vmatpush1.bf16.msra.mxu1 %v15581_v14  ;;  %10191 = vmatprep.subr.bf16.mxu0 %v15586_v15  ;;  %v15623_v12 = vld [vmem:[%s17822_s13 + $0x1fc0] ss:$16 sps:$4 sm:$0xff]   ;;  %v15628_v57 = vld [vmem:[%s17822_s13 + $0x1de4] ss:$16 sps:$4 sm:$0xff]  }
 0x29b   : > { %10232 = vmatprep.subr.bf16.mxu1 %v15589_v16  ;;  %v15631_v14 = vld [vmem:[%s17822_s13 + $0x1fe4] ss:$16 sps:$4 sm:$0xff]   ;;  %v15626_v15 = vld [vmem:[%s17822_s13 + $0x1de0] ss:$16 sps:$4 sm:$0xff]  }
 0x29c   : > { %v15629_v16 = vld [vmem:[%s17822_s13 + $0x1fe0] ss:$16 sps:$4 sm:$0xff]  }
 0x29d   : > { %10192 = vmatpush1.bf16.msra.mxu0 %v15584_v19  ;;  %v15638_v19 = vld [vmem:[%s17822_s13 + $0x2004] ss:$16 sps:$4 sm:$0xff]  }
 0x29e   : > { %10233 = vmatpush1.bf16.msra.mxu1 %v15587_v20  ;;  %10193 = vmatprep.subr.bf16.mxu0 %v15592_v21  ;;  %v15641_v20 = vld [vmem:[%s17822_s13 + $0x2204] ss:$16 sps:$4 sm:$0xff]   ;;  %v15636_v21 = vld [vmem:[%s17822_s13 + $0x2000] ss:$16 sps:$4 sm:$0xff]  }
 0x29f   : > { %10234 = vmatprep.subr.bf16.mxu1 %v15595_v22  ;;  %v15639_v22 = vld [vmem:[%s17822_s13 + $0x2200] ss:$16 sps:$4 sm:$0xff]  }
 0x2a1   : > { %10194 = vmatpush1.bf16.msra.mxu0 %v15590_v27  ;;  %v18574_v27 = vcombine.low %v18485_v3, %v18485_v3 }
 0x2a2   : > { %10235 = vmatpush1.bf16.msra.mxu1 %v15593_v28  ;;  %10195 = vmatprep.subr.bf16.mxu0 %v15598_v29  ;;  %v18578_v28 = vcombine.low %v18488_v4, %v18488_v4  ;;  %v18581_v29 = vld [vmem:[%s17844_s24 + $0x80] sm:$0xff] }
 0x2a3   : > { %10236 = vmatprep.subr.bf16.mxu1 %v15601_v30  ;;  %v18584_v30 = vld [vmem:[%s17844_s24 + $0x88] sm:$0xff]  ;;  %v18590_v3 = vcombine.high %v18581_v29, %v18581_v29 }
 0x2a4   : > { %v18594_v4 = vcombine.high %v18584_v30, %v18584_v30 }
 0x2a5   : > { %10196 = vmatpush1.bf16.msra.mxu0 %v15596_v31  ;;  %v15644_v31 = vld [vmem:[%s17822_s13 + $0x2024] ss:$16 sps:$4 sm:$0xff]  }
 0x2a6   : > { %10237 = vmatpush1.bf16.msra.mxu1 %v15599_v32  ;;  %10197 = vmatprep.subr.bf16.mxu0 %v15604_v34  ;;  %v15647_v32 = vld [vmem:[%s17822_s13 + $0x2224] ss:$16 sps:$4 sm:$0xff]   ;;  %v15642_v34 = vld [vmem:[%s17822_s13 + $0x2020] ss:$16 sps:$4 sm:$0xff]  }
 0x2a7   : > { %10238 = vmatprep.subr.bf16.mxu1 %v15607_v36  ;;  %v15645_v36 = vld [vmem:[%s17822_s13 + $0x2220] ss:$16 sps:$4 sm:$0xff]  }
 0x2a9   : > { %10198 = vmatpush1.bf16.msra.mxu0 %v15602_v43  ;;  %v15650_v43 = vld [vmem:[%s17822_s13 + $0x2044] ss:$16 sps:$4 sm:$0xff]  }
 0x2aa   : > { %10239 = vmatpush1.bf16.msra.mxu1 %v15605_v55  ;;  %10199 = vmatprep.subr.bf16.mxu0 %v15610_v33  ;;  %v15653_v55 = vld [vmem:[%s17822_s13 + $0x2244] ss:$16 sps:$4 sm:$0xff]   ;;  %v15648_v33 = vld [vmem:[%s17822_s13 + $0x2040] ss:$16 sps:$4 sm:$0xff]  }
 0x2ab   : > { %10240 = vmatprep.subr.bf16.mxu1 %v15613_v56  ;;  %v15651_v56 = vld [vmem:[%s17822_s13 + $0x2240] ss:$16 sps:$4 sm:$0xff]  }
 0x2ad   : > { %10200 = vmatpush1.bf16.msra.mxu0 %v15608_v45  ;;  %v15656_v45 = vld [vmem:[%s17822_s13 + $0x2064] ss:$16 sps:$4 sm:$0xff]  }
 0x2ae   : > { %10241 = vmatpush1.bf16.msra.mxu1 %v15611_v58  ;;  %10201 = vmatprep.subr.bf16.mxu0 %v15616_v63  ;;  %v15659_v58 = vld [vmem:[%s17822_s13 + $0x2264] ss:$16 sps:$4 sm:$0xff]   ;;  %v15654_v63 = vld [vmem:[%s17822_s13 + $0x2060] ss:$16 sps:$4 sm:$0xff]  }
 0x2af   : > { %10242 = vmatprep.subr.bf16.mxu1 %v15619_v0  ;;  %v15657_v0 = vld [vmem:[%s17822_s13 + $0x2260] ss:$16 sps:$4 sm:$0xff]  }
 0x2b1   : > { %10202 = vmatpush1.bf16.msra.mxu0 %v15614_v5  ;;  %v15662_v5 = vld [vmem:[%s17822_s13 + $0x2084] ss:$16 sps:$4 sm:$0xff]  }
 0x2b2   : > { %10243 = vmatpush1.bf16.msra.mxu1 %v15617_v6  ;;  %10203 = vmatprep.subr.bf16.mxu0 %v15622_v10  ;;  %v15665_v6 = vld [vmem:[%s17822_s13 + $0x2284] ss:$16 sps:$4 sm:$0xff]   ;;  %v15660_v10 = vld [vmem:[%s17822_s13 + $0x2080] ss:$16 sps:$4 sm:$0xff]  }
 0x2b3   : > { %10244 = vmatprep.subr.bf16.mxu1 %v15625_v11  ;;  %v15663_v11 = vld [vmem:[%s17822_s13 + $0x2280] ss:$16 sps:$4 sm:$0xff]  }
 0x2b5   : > { %10204 = vmatpush1.bf16.msra.mxu0 %v15620_v35  ;;  %v15668_v35 = vld [vmem:[%s17822_s13 + $0x20a4] ss:$16 sps:$4 sm:$0xff]  }
 0x2b6   : > { %10245 = vmatpush1.bf16.msra.mxu1 %v15623_v12  ;;  %10205 = vmatprep.subr.bf16.mxu0 %v15628_v57  ;;  %v15671_v12 = vld [vmem:[%s17822_s13 + $0x22a4] ss:$16 sps:$4 sm:$0xff]   ;;  %v15666_v57 = vld [vmem:[%s17822_s13 + $0x20a0] ss:$16 sps:$4 sm:$0xff]  }
 0x2b7   : > { %10246 = vmatprep.subr.bf16.mxu1 %v15631_v14  ;;  %v15669_v14 = vld [vmem:[%s17822_s13 + $0x22a0] ss:$16 sps:$4 sm:$0xff]  }
 0x2b9   : > { %10206 = vmatpush1.bf16.msra.mxu0 %v15626_v15  ;;  %v15674_v15 = vld [vmem:[%s17822_s13 + $0x20c4] ss:$16 sps:$4 sm:$0xff]  }
 0x2ba   : > { %10247 = vmatpush1.bf16.msra.mxu1 %v15629_v16  ;;  %10257 = vmatprep.subr.bf16.mxu0 %v15638_v19  ;;  %v15677_v16 = vld [vmem:[%s17822_s13 + $0x22c4] ss:$16 sps:$4 sm:$0xff]  }
 0x2bb   : > { %10298 = vmatprep.subr.bf16.mxu1 %v15641_v20 }
 0x2bc   : > { %10208 = vmatmul.mubr.bf16.vlgmr.msra.gmra.mrb[28].mxu0 %v18574_v27 }
 0x2bd   : > { %10249 = vmatmul.mubr.bf16.vlgmr.msra.gmra.mrb[28].mxu1 %v18578_v28  ;;  %10258 = vmatpush1.bf16.msra.mxu0 %v15636_v21  ;;  %v15672_v21 = vld [vmem:[%s17822_s13 + $0x20c0] ss:$16 sps:$4 sm:$0xff]  }
 0x2be   : > { %10299 = vmatpush1.bf16.msra.mxu1 %v15639_v22  ;;  %10259 = vmatprep.subr.bf16.mxu0 %v15644_v31  ;;  %v15675_v22 = vld [vmem:[%s17822_s13 + $0x22c0] ss:$16 sps:$4 sm:$0xff]  }
 0x2bf   : > { %10300 = vmatprep.subr.bf16.mxu1 %v15647_v32  ;;  %10289 = vmatprep.mubr.bf16.mxu0 %v18590_v3 }
 0x2c0   : > { %10330 = vmatprep.mubr.bf16.mxu1 %v18594_v4 }
 0x2c1   : > { %10260 = vmatpush1.bf16.msra.mxu0 %v15642_v34 }
 0x2c2   : > { %10301 = vmatpush1.bf16.msra.mxu1 %v15645_v36  ;;  %10261 = vmatprep.subr.bf16.mxu0 %v15650_v43 }
 0x2c3   : > { %10302 = vmatprep.subr.bf16.mxu1 %v15653_v55 }
 0x2c5   : > { %10262 = vmatpush1.bf16.msra.mxu0 %v15648_v33 }
 0x2c6   : > { %10303 = vmatpush1.bf16.msra.mxu1 %v15651_v56  ;;  %10263 = vmatprep.subr.bf16.mxu0 %v15656_v45 }
 0x2c7   : > { %10304 = vmatprep.subr.bf16.mxu1 %v15659_v58  ;;  %v15683_v58 = vld [vmem:[%s17822_s13 + $0x22e4] ss:$16 sps:$4 sm:$0xff]  }
 0x2c9   : > { %10264 = vmatpush1.bf16.msra.mxu0 %v15654_v63 }
 0x2ca   : > { %10305 = vmatpush1.bf16.msra.mxu1 %v15657_v0  ;;  %10265 = vmatprep.subr.bf16.mxu0 %v15662_v5  ;;  %v15681_v0 = vld [vmem:[%s17822_s13 + $0x22e0] ss:$16 sps:$4 sm:$0xff]   ;;  %v15686_v5 = vld [vmem:[%s17822_s13 + $0x2104] ss:$16 sps:$4 sm:$0xff]  }
 0x2cb   : > { %10306 = vmatprep.subr.bf16.mxu1 %v15665_v6  ;;  %v15689_v6 = vld [vmem:[%s17822_s13 + $0x2304] ss:$16 sps:$4 sm:$0xff]  }
 0x2cd   : > { %10266 = vmatpush1.bf16.msra.mxu0 %v15660_v10  ;;  %v15684_v10 = vld [vmem:[%s17822_s13 + $0x2100] ss:$16 sps:$4 sm:$0xff]  }
 0x2ce   : > { %10307 = vmatpush1.bf16.msra.mxu1 %v15663_v11  ;;  %10267 = vmatprep.subr.bf16.mxu0 %v15668_v35  ;;  %v15687_v11 = vld [vmem:[%s17822_s13 + $0x2300] ss:$16 sps:$4 sm:$0xff]   ;;  %v15692_v35 = vld [vmem:[%s17822_s13 + $0x2124] ss:$16 sps:$4 sm:$0xff]  }
 0x2cf   : > { %10308 = vmatprep.subr.bf16.mxu1 %v15671_v12  ;;  %v9963_v19 = vpop.f32.mrb[16].mxu0  ;;  %v15695_v12 = vld [vmem:[%s17822_s13 + $0x2324] ss:$16 sps:$4 sm:$0xff]  }
 0x2d0   : > { %v10004_v20 = vpop.f32.mrb[16].mxu1  ;;  %v9964_v31 = vadd.f32 %v9963_v19, %v18528_v9  ;;  %v9965_v32 = vpop.f32.mrb[17].mxu0  ;;  %v15680_v9 = vld [vmem:[%s17822_s13 + $0x20e4] ss:$16 sps:$4 sm:$0xff]   ;;  %v15696_v19 = vld [vmem:[%s17822_s13 + $0x2140] ss:$16 sps:$4 sm:$0xff]  }
 0x2d1   : > { %v10006_v34 = vpop.f32.mrb[17].mxu1  ;;  %v9966_v36 = vadd.f32 %v9965_v32, %v18532_v13  ;;  %v9967_v43 = vpop.f32.mrb[18].mxu0  ;;  %10268 = vmatpush1.bf16.msra.mxu0 %v15666_v57  ;;  %v15678_v13 = vld [vmem:[%s17822_s13 + $0x20e0] ss:$16 sps:$4 sm:$0xff]  }
 0x2d2   : > { %v10008_v55 = vpop.f32.mrb[18].mxu1  ;;  %10309 = vmatpush1.bf16.msra.mxu1 %v15669_v14  ;;  %v18624_v33 = vadd.f32 %v10004_v20, %v9964_v31  ;;  %v9968_v56 = vpop.f32.mrb[19].mxu0  ;;  %10269 = vmatprep.subr.bf16.mxu0 %v15674_v15  ;;  %v15690_v57 = vld [vmem:[%s17822_s13 + $0x2120] ss:$16 sps:$4 sm:$0xff]   ;;  %v15698_v15 = vld [vmem:[%s17822_s13 + $0x2144] ss:$16 sps:$4 sm:$0xff]  }
 0x2d3   : > { %v10009_v45 = vpop.f32.mrb[19].mxu1  ;;  %10310 = vmatprep.subr.bf16.mxu1 %v15677_v16  ;;  %v18628_v63 = vadd.f32 %v10006_v34, %v9966_v36  ;;  %v15693_v14 = vld [vmem:[%s17822_s13 + $0x2320] ss:$16 sps:$4 sm:$0xff]   ;;  %v15701_v16 = vld [vmem:[%s17822_s13 + $0x2344] ss:$16 sps:$4 sm:$0xff]  }
 0x2d4   : > { %v15699_v20 = vld [vmem:[%s17822_s13 + $0x2340] ss:$16 sps:$4 sm:$0xff]   ;;  %v15710_v34 = vld [vmem:[%s17822_s13 + $0x2184] ss:$16 sps:$4 sm:$0xff]  }
 0x2d5   : > { %10270 = vmatpush1.bf16.msra.mxu0 %v15672_v21  ;;  %v15704_v21 = vld [vmem:[%s17822_s13 + $0x2164] ss:$16 sps:$4 sm:$0xff]   ;;  %v15702_v31 = vld [vmem:[%s17822_s13 + $0x2160] ss:$16 sps:$4 sm:$0xff]  }
 0x2d6   : > { %10311 = vmatpush1.bf16.msra.mxu1 %v15675_v22  ;;  %10271 = vmatprep.subr.bf16.mxu0 %v15680_v9  ;;  %v15707_v22 = vld [vmem:[%s17822_s13 + $0x2364] ss:$16 sps:$4 sm:$0xff]   ;;  %v15705_v32 = vld [vmem:[%s17822_s13 + $0x2360] ss:$16 sps:$4 sm:$0xff]  }
 0x2d7   : > { %10312 = vmatprep.subr.bf16.mxu1 %v15683_v58  ;;  %v15713_v36 = vld [vmem:[%s17822_s13 + $0x2384] ss:$16 sps:$4 sm:$0xff]   ;;  %v15708_v43 = vld [vmem:[%s17822_s13 + $0x2180] ss:$16 sps:$4 sm:$0xff]  }
 0x2d8   : > { %v15711_v55 = vld [vmem:[%s17822_s13 + $0x2380] ss:$16 sps:$4 sm:$0xff]   ;;  %v15716_v56 = vld [vmem:[%s17822_s13 + $0x21a4] ss:$16 sps:$4 sm:$0xff]  }
 0x2d9   : > { %10272 = vmatpush1.bf16.msra.mxu0 %v15678_v13  ;;  %v15719_v45 = vld [vmem:[%s17822_s13 + $0x23a4] ss:$16 sps:$4 sm:$0xff]   ;;  %v15714_v9 = vld [vmem:[%s17822_s13 + $0x21a0] ss:$16 sps:$4 sm:$0xff]  }
 0x2da   : > { %10313 = vmatpush1.bf16.msra.mxu1 %v15681_v0  ;;  %10273 = vmatprep.subr.bf16.mxu0 %v15686_v5  ;;  %v15717_v58 = vld [vmem:[%s17822_s13 + $0x23a0] ss:$16 sps:$4 sm:$0xff]   ;;  %v15722_v13 = vld [vmem:[%s17822_s13 + $0x21c4] ss:$16 sps:$4 sm:$0xff]  }
 0x2db   : > { %10314 = vmatprep.subr.bf16.mxu1 %v15689_v6  ;;  %v15725_v0 = vld [vmem:[%s17822_s13 + $0x23c4] ss:$16 sps:$4 sm:$0xff]   ;;  %v15720_v5 = vld [vmem:[%s17822_s13 + $0x21c0] ss:$16 sps:$4 sm:$0xff]  }
 0x2dc   : > { %v15723_v6 = vld [vmem:[%s17822_s13 + $0x23c0] ss:$16 sps:$4 sm:$0xff]  }
 0x2dd   : > { %10274 = vmatpush1.bf16.msra.mxu0 %v15684_v10  ;;  %v15728_v10 = vld [vmem:[%s17822_s13 + $0x21e4] ss:$16 sps:$4 sm:$0xff]  }
 0x2de   : > { %10315 = vmatpush1.bf16.msra.mxu1 %v15687_v11  ;;  %10275 = vmatprep.subr.bf16.mxu0 %v15692_v35  ;;  %v15731_v11 = vld [vmem:[%s17822_s13 + $0x23e4] ss:$16 sps:$4 sm:$0xff]   ;;  %v15726_v35 = vld [vmem:[%s17822_s13 + $0x21e0] ss:$16 sps:$4 sm:$0xff]  }
 0x2df   : > { %10316 = vmatprep.subr.bf16.mxu1 %v15695_v12  ;;  %v15729_v12 = vld [vmem:[%s17822_s13 + $0x23e0] ss:$16 sps:$4 sm:$0xff]  }
 0x2e1   : > { %10276 = vmatpush1.bf16.msra.mxu0 %v15690_v57  ;;  %v15738_v57 = vld [vmem:[%s17822_s13 + $0x2404] ss:$16 sps:$4 sm:$0xff]  }
 0x2e2   : > { %10317 = vmatpush1.bf16.msra.mxu1 %v15693_v14  ;;  %10277 = vmatprep.subr.bf16.mxu0 %v15698_v15  ;;  %v15741_v14 = vld [vmem:[%s17822_s13 + $0x2604] ss:$16 sps:$4 sm:$0xff]   ;;  %v15736_v15 = vld [vmem:[%s17822_s13 + $0x2400] ss:$16 sps:$4 sm:$0xff]  }
 0x2e3   : > { %10318 = vmatprep.subr.bf16.mxu1 %v15701_v16  ;;  %v15739_v16 = vld [vmem:[%s17822_s13 + $0x2600] ss:$16 sps:$4 sm:$0xff]  }
 0x2e5   : > { %10278 = vmatpush1.bf16.msra.mxu0 %v15696_v19  ;;  %v18670_v19 = vcombine.low %v18581_v29, %v18581_v29 }
 0x2e6   : > { %10319 = vmatpush1.bf16.msra.mxu1 %v15699_v20  ;;  %10279 = vmatprep.subr.bf16.mxu0 %v15704_v21  ;;  %v18674_v20 = vcombine.low %v18584_v30, %v18584_v30  ;;  %v18677_v21 = vld [vmem:[%s17844_s24 + $0x90] sm:$0xff] }
 0x2e7   : > { %10320 = vmatprep.subr.bf16.mxu1 %v15707_v22  ;;  %v18680_v22 = vld [vmem:[%s17844_s24 + $0x98] sm:$0xff]  ;;  %v18686_v29 = vcombine.high %v18677_v21, %v18677_v21 }
 0x2e8   : > { %v18690_v30 = vcombine.high %v18680_v22, %v18680_v22 }
 0x2e9   : > { %10280 = vmatpush1.bf16.msra.mxu0 %v15702_v31  ;;  %v15744_v31 = vld [vmem:[%s17822_s13 + $0x2424] ss:$16 sps:$4 sm:$0xff]  }
 0x2ea   : > { %10321 = vmatpush1.bf16.msra.mxu1 %v15705_v32  ;;  %10281 = vmatprep.subr.bf16.mxu0 %v15710_v34  ;;  %v15747_v32 = vld [vmem:[%s17822_s13 + $0x2624] ss:$16 sps:$4 sm:$0xff]   ;;  %v15742_v34 = vld [vmem:[%s17822_s13 + $0x2420] ss:$16 sps:$4 sm:$0xff]  }
 0x2eb   : > { %10322 = vmatprep.subr.bf16.mxu1 %v15713_v36  ;;  %v15745_v36 = vld [vmem:[%s17822_s13 + $0x2620] ss:$16 sps:$4 sm:$0xff]  }
 0x2ed   : > { %10282 = vmatpush1.bf16.msra.mxu0 %v15708_v43  ;;  %v15750_v43 = vld [vmem:[%s17822_s13 + $0x2444] ss:$16 sps:$4 sm:$0xff]  }
 0x2ee   : > { %10323 = vmatpush1.bf16.msra.mxu1 %v15711_v55  ;;  %10283 = vmatprep.subr.bf16.mxu0 %v15716_v56  ;;  %v15753_v55 = vld [vmem:[%s17822_s13 + $0x2644] ss:$16 sps:$4 sm:$0xff]   ;;  %v15748_v56 = vld [vmem:[%s17822_s13 + $0x2440] ss:$16 sps:$4 sm:$0xff]  }
 0x2ef   : > { %10324 = vmatprep.subr.bf16.mxu1 %v15719_v45  ;;  %v15751_v45 = vld [vmem:[%s17822_s13 + $0x2640] ss:$16 sps:$4 sm:$0xff]  }
 0x2f1   : > { %10284 = vmatpush1.bf16.msra.mxu0 %v15714_v9  ;;  %v15756_v9 = vld [vmem:[%s17822_s13 + $0x2464] ss:$16 sps:$4 sm:$0xff]  }
 0x2f2   : > { %10325 = vmatpush1.bf16.msra.mxu1 %v15717_v58  ;;  %10285 = vmatprep.subr.bf16.mxu0 %v15722_v13  ;;  %v15759_v58 = vld [vmem:[%s17822_s13 + $0x2664] ss:$16 sps:$4 sm:$0xff]   ;;  %v15754_v13 = vld [vmem:[%s17822_s13 + $0x2460] ss:$16 sps:$4 sm:$0xff]  }
 0x2f3   : > { %10326 = vmatprep.subr.bf16.mxu1 %v15725_v0  ;;  %v15757_v0 = vld [vmem:[%s17822_s13 + $0x2660] ss:$16 sps:$4 sm:$0xff]  }
 0x2f5   : > { %10286 = vmatpush1.bf16.msra.mxu0 %v15720_v5  ;;  %v15762_v5 = vld [vmem:[%s17822_s13 + $0x2484] ss:$16 sps:$4 sm:$0xff]  }
 0x2f6   : > { %10327 = vmatpush1.bf16.msra.mxu1 %v15723_v6  ;;  %10287 = vmatprep.subr.bf16.mxu0 %v15728_v10  ;;  %v15765_v6 = vld [vmem:[%s17822_s13 + $0x2684] ss:$16 sps:$4 sm:$0xff]   ;;  %v15760_v10 = vld [vmem:[%s17822_s13 + $0x2480] ss:$16 sps:$4 sm:$0xff]  }
 0x2f7   : > { %10328 = vmatprep.subr.bf16.mxu1 %v15731_v11  ;;  %v15763_v11 = vld [vmem:[%s17822_s13 + $0x2680] ss:$16 sps:$4 sm:$0xff]  }
 0x2f9   : > { %10288 = vmatpush1.bf16.msra.mxu0 %v15726_v35  ;;  %v15768_v35 = vld [vmem:[%s17822_s13 + $0x24a4] ss:$16 sps:$4 sm:$0xff]  }
 0x2fa   : > { %10329 = vmatpush1.bf16.msra.mxu1 %v15729_v12  ;;  %10339 = vmatprep.subr.bf16.mxu0 %v15738_v57  ;;  %v15771_v12 = vld [vmem:[%s17822_s13 + $0x26a4] ss:$16 sps:$4 sm:$0xff]   ;;  %v15766_v57 = vld [vmem:[%s17822_s13 + $0x24a0] ss:$16 sps:$4 sm:$0xff]  }
 0x2fb   : > { %10380 = vmatprep.subr.bf16.mxu1 %v15741_v14  ;;  %v15769_v14 = vld [vmem:[%s17822_s13 + $0x26a0] ss:$16 sps:$4 sm:$0xff]  }
 0x2fc   : > { %10290 = vmatmul.mubr.bf16.vlgmr.msra.gmra.mrb[32].mxu0 %v18670_v19 }
 0x2fd   : > { %10331 = vmatmul.mubr.bf16.vlgmr.msra.gmra.mrb[32].mxu1 %v18674_v20  ;;  %10340 = vmatpush1.bf16.msra.mxu0 %v15736_v15  ;;  %v15774_v15 = vld [vmem:[%s17822_s13 + $0x24c4] ss:$16 sps:$4 sm:$0xff]  }
 0x2fe   : > { %10381 = vmatpush1.bf16.msra.mxu1 %v15739_v16  ;;  %10341 = vmatprep.subr.bf16.mxu0 %v15744_v31  ;;  %v15777_v16 = vld [vmem:[%s17822_s13 + $0x26c4] ss:$16 sps:$4 sm:$0xff]  }
 0x2ff   : > { %10382 = vmatprep.subr.bf16.mxu1 %v15747_v32  ;;  %10371 = vmatprep.mubr.bf16.mxu0 %v18686_v29 }
 0x300   : > { %10412 = vmatprep.mubr.bf16.mxu1 %v18690_v30 }
 0x301   : > { %10342 = vmatpush1.bf16.msra.mxu0 %v15742_v34  ;;  %v15772_v34 = vld [vmem:[%s17822_s13 + $0x24c0] ss:$16 sps:$4 sm:$0xff]  }
 0x302   : > { %10383 = vmatpush1.bf16.msra.mxu1 %v15745_v36  ;;  %10343 = vmatprep.subr.bf16.mxu0 %v15750_v43  ;;  %v15775_v36 = vld [vmem:[%s17822_s13 + $0x26c0] ss:$16 sps:$4 sm:$0xff]  }
 0x303   : > { %10384 = vmatprep.subr.bf16.mxu1 %v15753_v55 }
 0x305   : > { %10344 = vmatpush1.bf16.msra.mxu0 %v15748_v56 }
 0x306   : > { %10385 = vmatpush1.bf16.msra.mxu1 %v15751_v45  ;;  %10345 = vmatprep.subr.bf16.mxu0 %v15756_v9 }
 0x307   : > { %10386 = vmatprep.subr.bf16.mxu1 %v15759_v58 }
 0x309   : > { %10346 = vmatpush1.bf16.msra.mxu0 %v15754_v13 }
 0x30a   : > { %10387 = vmatpush1.bf16.msra.mxu1 %v15757_v0  ;;  %10347 = vmatprep.subr.bf16.mxu0 %v15762_v5 }
 0x30b   : > { %10388 = vmatprep.subr.bf16.mxu1 %v15765_v6  ;;  %v15783_v6 = vld [vmem:[%s17822_s13 + $0x26e4] ss:$16 sps:$4 sm:$0xff]  }
 0x30d   : > { %10348 = vmatpush1.bf16.msra.mxu0 %v15760_v10 }
 0x30e   : > { %10389 = vmatpush1.bf16.msra.mxu1 %v15763_v11  ;;  %10349 = vmatprep.subr.bf16.mxu0 %v15768_v35  ;;  %v15781_v11 = vld [vmem:[%s17822_s13 + $0x26e0] ss:$16 sps:$4 sm:$0xff]   ;;  %v15786_v35 = vld [vmem:[%s17822_s13 + $0x2504] ss:$16 sps:$4 sm:$0xff]  }
 0x30f   : > { %10390 = vmatprep.subr.bf16.mxu1 %v15771_v12  ;;  %v10045_v31 = vpop.f32.mrb[20].mxu0  ;;  %v15789_v12 = vld [vmem:[%s17822_s13 + $0x2704] ss:$16 sps:$4 sm:$0xff]  }
 0x310   : > { %v10086_v32 = vpop.f32.mrb[20].mxu1  ;;  %v10046_v43 = vadd.f32 %v10045_v31, %v18624_v33  ;;  %v10047_v55 = vpop.f32.mrb[21].mxu0  ;;  %v15780_v33 = vld [vmem:[%s17822_s13 + $0x24e4] ss:$16 sps:$4 sm:$0xff]   ;;  %v15790_v31 = vld [vmem:[%s17822_s13 + $0x2520] ss:$16 sps:$4 sm:$0xff]  }
 0x311   : > { %v10088_v56 = vpop.f32.mrb[21].mxu1  ;;  %v10048_v45 = vadd.f32 %v10047_v55, %v18628_v63  ;;  %v10049_v9 = vpop.f32.mrb[22].mxu0  ;;  %10350 = vmatpush1.bf16.msra.mxu0 %v15766_v57  ;;  %v15778_v63 = vld [vmem:[%s17822_s13 + $0x24e0] ss:$16 sps:$4 sm:$0xff]  }
 0x312   : > { %v10090_v58 = vpop.f32.mrb[22].mxu1  ;;  %10391 = vmatpush1.bf16.msra.mxu1 %v15769_v14  ;;  %v18720_v13 = vadd.f32 %v10086_v32, %v10046_v43  ;;  %v10050_v0 = vpop.f32.mrb[23].mxu0  ;;  %10351 = vmatprep.subr.bf16.mxu0 %v15774_v15  ;;  %v15784_v57 = vld [vmem:[%s17822_s13 + $0x2500] ss:$16 sps:$4 sm:$0xff]   ;;  %v15792_v15 = vld [vmem:[%s17822_s13 + $0x2524] ss:$16 sps:$4 sm:$0xff]  }
 0x313   : > { %v10091_v5 = vpop.f32.mrb[23].mxu1  ;;  %10392 = vmatprep.subr.bf16.mxu1 %v15777_v16  ;;  %v18724_v10 = vadd.f32 %v10088_v56, %v10048_v45  ;;  %v15787_v14 = vld [vmem:[%s17822_s13 + $0x2700] ss:$16 sps:$4 sm:$0xff]   ;;  %v15795_v16 = vld [vmem:[%s17822_s13 + $0x2724] ss:$16 sps:$4 sm:$0xff]  }
 0x314   : > { %v15793_v32 = vld [vmem:[%s17822_s13 + $0x2720] ss:$16 sps:$4 sm:$0xff]   ;;  %v15804_v56 = vld [vmem:[%s17822_s13 + $0x2564] ss:$16 sps:$4 sm:$0xff]  }
 0x315   : > { %10352 = vmatpush1.bf16.msra.mxu0 %v15772_v34  ;;  %v15798_v34 = vld [vmem:[%s17822_s13 + $0x2544] ss:$16 sps:$4 sm:$0xff]   ;;  %v15796_v43 = vld [vmem:[%s17822_s13 + $0x2540] ss:$16 sps:$4 sm:$0xff]  }
 0x316   : > { %10393 = vmatpush1.bf16.msra.mxu1 %v15775_v36  ;;  %10353 = vmatprep.subr.bf16.mxu0 %v15780_v33  ;;  %v15801_v36 = vld [vmem:[%s17822_s13 + $0x2744] ss:$16 sps:$4 sm:$0xff]   ;;  %v15799_v55 = vld [vmem:[%s17822_s13 + $0x2740] ss:$16 sps:$4 sm:$0xff]  }
 0x317   : > { %10394 = vmatprep.subr.bf16.mxu1 %v15783_v6  ;;  %v15807_v45 = vld [vmem:[%s17822_s13 + $0x2764] ss:$16 sps:$4 sm:$0xff]   ;;  %v15802_v9 = vld [vmem:[%s17822_s13 + $0x2560] ss:$16 sps:$4 sm:$0xff]  }
 0x318   : > { %v15805_v58 = vld [vmem:[%s17822_s13 + $0x2760] ss:$16 sps:$4 sm:$0xff]   ;;  %v15810_v0 = vld [vmem:[%s17822_s13 + $0x2584] ss:$16 sps:$4 sm:$0xff]  }
 0x319   : > { %10354 = vmatpush1.bf16.msra.mxu0 %v15778_v63  ;;  %v15813_v5 = vld [vmem:[%s17822_s13 + $0x2784] ss:$16 sps:$4 sm:$0xff]   ;;  %v15808_v33 = vld [vmem:[%s17822_s13 + $0x2580] ss:$16 sps:$4 sm:$0xff]  }
 0x31a   : > { %10395 = vmatpush1.bf16.msra.mxu1 %v15781_v11  ;;  %10355 = vmatprep.subr.bf16.mxu0 %v15786_v35  ;;  %v15811_v6 = vld [vmem:[%s17822_s13 + $0x2780] ss:$16 sps:$4 sm:$0xff]   ;;  %v15816_v63 = vld [vmem:[%s17822_s13 + $0x25a4] ss:$16 sps:$4 sm:$0xff]  }
 0x31b   : > { %10396 = vmatprep.subr.bf16.mxu1 %v15789_v12  ;;  %v15819_v11 = vld [vmem:[%s17822_s13 + $0x27a4] ss:$16 sps:$4 sm:$0xff]   ;;  %v15814_v35 = vld [vmem:[%s17822_s13 + $0x25a0] ss:$16 sps:$4 sm:$0xff]  }
 0x31c   : > { %v15817_v12 = vld [vmem:[%s17822_s13 + $0x27a0] ss:$16 sps:$4 sm:$0xff]  }
 0x31d   : > { %10356 = vmatpush1.bf16.msra.mxu0 %v15784_v57  ;;  %v15822_v57 = vld [vmem:[%s17822_s13 + $0x25c4] ss:$16 sps:$4 sm:$0xff]  }
 0x31e   : > { %10397 = vmatpush1.bf16.msra.mxu1 %v15787_v14  ;;  %10357 = vmatprep.subr.bf16.mxu0 %v15792_v15  ;;  %v15825_v14 = vld [vmem:[%s17822_s13 + $0x27c4] ss:$16 sps:$4 sm:$0xff]   ;;  %v15820_v15 = vld [vmem:[%s17822_s13 + $0x25c0] ss:$16 sps:$4 sm:$0xff]  }
 0x31f   : > { %10398 = vmatprep.subr.bf16.mxu1 %v15795_v16  ;;  %v15823_v16 = vld [vmem:[%s17822_s13 + $0x27c0] ss:$16 sps:$4 sm:$0xff]  }
 0x321   : > { %10358 = vmatpush1.bf16.msra.mxu0 %v15790_v31  ;;  %v15828_v31 = vld [vmem:[%s17822_s13 + $0x25e4] ss:$16 sps:$4 sm:$0xff]  }
 0x322   : > { %10399 = vmatpush1.bf16.msra.mxu1 %v15793_v32  ;;  %10359 = vmatprep.subr.bf16.mxu0 %v15798_v34  ;;  %v15831_v32 = vld [vmem:[%s17822_s13 + $0x27e4] ss:$16 sps:$4 sm:$0xff]   ;;  %v15826_v34 = vld [vmem:[%s17822_s13 + $0x25e0] ss:$16 sps:$4 sm:$0xff]  }
 0x323   : > { %10400 = vmatprep.subr.bf16.mxu1 %v15801_v36  ;;  %v15829_v36 = vld [vmem:[%s17822_s13 + $0x27e0] ss:$16 sps:$4 sm:$0xff]  }
 0x325   : > { %10360 = vmatpush1.bf16.msra.mxu0 %v15796_v43  ;;  %v15838_v43 = vld [vmem:[%s17822_s13 + $0x2804] ss:$16 sps:$4 sm:$0xff]  }
 0x326   : > { %10401 = vmatpush1.bf16.msra.mxu1 %v15799_v55  ;;  %10361 = vmatprep.subr.bf16.mxu0 %v15804_v56  ;;  %v15841_v55 = vld [vmem:[%s17822_s13 + $0x2a04] ss:$16 sps:$4 sm:$0xff]  }
 0x327   : > { %10402 = vmatprep.subr.bf16.mxu1 %v15807_v45  ;;  %v18763_v56 = vld [vmem:[%s17844_s24 + $0xa0] sm:$0xff] }
 0x328   : > { %v15836_v45 = vld [vmem:[%s17822_s13 + $0x2800] ss:$16 sps:$4 sm:$0xff]  }
 0x329   : > { %10362 = vmatpush1.bf16.msra.mxu0 %v15802_v9  ;;  %v15839_v9 = vld [vmem:[%s17822_s13 + $0x2a00] ss:$16 sps:$4 sm:$0xff]  }
 0x32a   : > { %10403 = vmatpush1.bf16.msra.mxu1 %v15805_v58  ;;  %10363 = vmatprep.subr.bf16.mxu0 %v15810_v0  ;;  %v18769_v58 = vcombine.low %v18677_v21, %v18677_v21  ;;  %v18773_v0 = vcombine.low %v18680_v22, %v18680_v22  ;;  %v15842_v22 = vld [vmem:[%s17822_s13 + $0x2820] ss:$16 sps:$4 sm:$0xff]  }
 0x32b   : > { %10404 = vmatprep.subr.bf16.mxu1 %v15813_v5  ;;  %v18776_v5 = vld [vmem:[%s17844_s24 + $0xa8] sm:$0xff] }
 0x32c   : > { %v18786_v21 = vcombine.high %v18776_v5, %v18776_v5 }
 0x32d   : > { %10364 = vmatpush1.bf16.msra.mxu0 %v15808_v33  ;;  %v15844_v33 = vld [vmem:[%s17822_s13 + $0x2824] ss:$16 sps:$4 sm:$0xff]  }
 0x32e   : > { %10405 = vmatpush1.bf16.msra.mxu1 %v15811_v6  ;;  %10365 = vmatprep.subr.bf16.mxu0 %v15816_v63  ;;  %v15847_v6 = vld [vmem:[%s17822_s13 + $0x2a24] ss:$16 sps:$4 sm:$0xff]   ;;  %v18782_v63 = vcombine.high %v18763_v56, %v18763_v56 }
 0x32f   : > { %10406 = vmatprep.subr.bf16.mxu1 %v15819_v11  ;;  %v15845_v11 = vld [vmem:[%s17822_s13 + $0x2a20] ss:$16 sps:$4 sm:$0xff]  }
 0x331   : > { %10366 = vmatpush1.bf16.msra.mxu0 %v15814_v35  ;;  %v15850_v35 = vld [vmem:[%s17822_s13 + $0x2844] ss:$16 sps:$4 sm:$0xff]  }
 0x332   : > { %10407 = vmatpush1.bf16.msra.mxu1 %v15817_v12  ;;  %10367 = vmatprep.subr.bf16.mxu0 %v15822_v57  ;;  %v15853_v12 = vld [vmem:[%s17822_s13 + $0x2a44] ss:$16 sps:$4 sm:$0xff]   ;;  %v15848_v57 = vld [vmem:[%s17822_s13 + $0x2840] ss:$16 sps:$4 sm:$0xff]  }
 0x333   : > { %10408 = vmatprep.subr.bf16.mxu1 %v15825_v14  ;;  %v15851_v14 = vld [vmem:[%s17822_s13 + $0x2a40] ss:$16 sps:$4 sm:$0xff]  }
 0x335   : > { %10368 = vmatpush1.bf16.msra.mxu0 %v15820_v15  ;;  %v15856_v15 = vld [vmem:[%s17822_s13 + $0x2864] ss:$16 sps:$4 sm:$0xff]  }
 0x336   : > { %10409 = vmatpush1.bf16.msra.mxu1 %v15823_v16  ;;  %10369 = vmatprep.subr.bf16.mxu0 %v15828_v31  ;;  %v15859_v16 = vld [vmem:[%s17822_s13 + $0x2a64] ss:$16 sps:$4 sm:$0xff]   ;;  %v15854_v31 = vld [vmem:[%s17822_s13 + $0x2860] ss:$16 sps:$4 sm:$0xff]  }
 0x337   : > { %10410 = vmatprep.subr.bf16.mxu1 %v15831_v32  ;;  %v15857_v32 = vld [vmem:[%s17822_s13 + $0x2a60] ss:$16 sps:$4 sm:$0xff]  }
 0x339   : > { %10370 = vmatpush1.bf16.msra.mxu0 %v15826_v34  ;;  %v15862_v34 = vld [vmem:[%s17822_s13 + $0x2884] ss:$16 sps:$4 sm:$0xff]  }
 0x33a   : > { %10411 = vmatpush1.bf16.msra.mxu1 %v15829_v36  ;;  %10421 = vmatprep.subr.bf16.mxu0 %v15838_v43  ;;  %v15865_v36 = vld [vmem:[%s17822_s13 + $0x2a84] ss:$16 sps:$4 sm:$0xff]   ;;  %v15860_v43 = vld [vmem:[%s17822_s13 + $0x2880] ss:$16 sps:$4 sm:$0xff]  }
 0x33b   : > { %10462 = vmatprep.subr.bf16.mxu1 %v15841_v55  ;;  %v15863_v55 = vld [vmem:[%s17822_s13 + $0x2a80] ss:$16 sps:$4 sm:$0xff]  }
 0x33c   : > { %10372 = vmatmul.mubr.bf16.vlgmr.msra.gmra.mrb[36].mxu0 %v18769_v58 }
 0x33d   : > { %10413 = vmatmul.mubr.bf16.vlgmr.msra.gmra.mrb[36].mxu1 %v18773_v0  ;;  %10422 = vmatpush1.bf16.msra.mxu0 %v15836_v45  ;;  %v15868_v45 = vld [vmem:[%s17822_s13 + $0x28a4] ss:$16 sps:$4 sm:$0xff]  }
 0x33e   : > { %10463 = vmatpush1.bf16.msra.mxu1 %v15839_v9  ;;  %10423 = vmatprep.subr.bf16.mxu0 %v15844_v33  ;;  %v15871_v9 = vld [vmem:[%s17822_s13 + $0x2aa4] ss:$16 sps:$4 sm:$0xff]   ;;  %v15866_v33 = vld [vmem:[%s17822_s13 + $0x28a0] ss:$16 sps:$4 sm:$0xff]  }
 0x33f   : > { %10464 = vmatprep.subr.bf16.mxu1 %v15847_v6  ;;  %10453 = vmatprep.mubr.bf16.mxu0 %v18782_v63  ;;  %v15869_v6 = vld [vmem:[%s17822_s13 + $0x2aa0] ss:$16 sps:$4 sm:$0xff]  }
 0x340   : > { %10494 = vmatprep.mubr.bf16.mxu1 %v18786_v21 }
 0x341   : > { %10424 = vmatpush1.bf16.msra.mxu0 %v15842_v22  ;;  %v15874_v22 = vld [vmem:[%s17822_s13 + $0x28c4] ss:$16 sps:$4 sm:$0xff]  }
 0x342   : > { %10465 = vmatpush1.bf16.msra.mxu1 %v15845_v11  ;;  %10425 = vmatprep.subr.bf16.mxu0 %v15850_v35  ;;  %v15877_v11 = vld [vmem:[%s17822_s13 + $0x2ac4] ss:$16 sps:$4 sm:$0xff]  }
 0x343   : > { %10466 = vmatprep.subr.bf16.mxu1 %v15853_v12 }
 0x345   : > { %10426 = vmatpush1.bf16.msra.mxu0 %v15848_v57  ;;  %v15872_v57 = vld [vmem:[%s17822_s13 + $0x28c0] ss:$16 sps:$4 sm:$0xff]  }
 0x346   : > { %10467 = vmatpush1.bf16.msra.mxu1 %v15851_v14  ;;  %10427 = vmatprep.subr.bf16.mxu0 %v15856_v15  ;;  %v15875_v14 = vld [vmem:[%s17822_s13 + $0x2ac0] ss:$16 sps:$4 sm:$0xff]  }
 0x347   : > { %10468 = vmatprep.subr.bf16.mxu1 %v15859_v16 }
 0x349   : > { %10428 = vmatpush1.bf16.msra.mxu0 %v15854_v31 }
 0x34a   : > { %10469 = vmatpush1.bf16.msra.mxu1 %v15857_v32  ;;  %10429 = vmatprep.subr.bf16.mxu0 %v15862_v34 }
 0x34b   : > { %10470 = vmatprep.subr.bf16.mxu1 %v15865_v36 }
 0x34d   : > { %10430 = vmatpush1.bf16.msra.mxu0 %v15860_v43 }
 0x34e   : > { %10471 = vmatpush1.bf16.msra.mxu1 %v15863_v55  ;;  %10431 = vmatprep.subr.bf16.mxu0 %v15868_v45 }
 0x34f   : > { %10472 = vmatprep.subr.bf16.mxu1 %v15871_v9  ;;  %v10127_v35 = vpop.f32.mrb[24].mxu0  ;;  %v15883_v9 = vld [vmem:[%s17822_s13 + $0x2ae4] ss:$16 sps:$4 sm:$0xff]  }
 0x350   : > { %v10168_v12 = vpop.f32.mrb[24].mxu1  ;;  %v10128_v15 = vadd.f32 %v10127_v35, %v18720_v13  ;;  %v10129_v16 = vpop.f32.mrb[25].mxu0  ;;  %v15880_v13 = vld [vmem:[%s17822_s13 + $0x28e4] ss:$16 sps:$4 sm:$0xff]  }
 0x351   : > { %v10170_v31 = vpop.f32.mrb[25].mxu1  ;;  %v10130_v32 = vadd.f32 %v10129_v16, %v18724_v10  ;;  %v10131_v34 = vpop.f32.mrb[26].mxu0  ;;  %10432 = vmatpush1.bf16.msra.mxu0 %v15866_v33  ;;  %v15878_v10 = vld [vmem:[%s17822_s13 + $0x28e0] ss:$16 sps:$4 sm:$0xff]  }
 0x352   : > { %v10172_v36 = vpop.f32.mrb[26].mxu1  ;;  %10473 = vmatpush1.bf16.msra.mxu1 %v15869_v6  ;;  %v18816_v43 = vadd.f32 %v10168_v12, %v10128_v15  ;;  %v10132_v55 = vpop.f32.mrb[27].mxu0  ;;  %10433 = vmatprep.subr.bf16.mxu0 %v15874_v22  ;;  %v15881_v33 = vld [vmem:[%s17822_s13 + $0x2ae0] ss:$16 sps:$4 sm:$0xff]   ;;  %v15886_v6 = vld [vmem:[%s17822_s13 + $0x2904] ss:$16 sps:$4 sm:$0xff]  }
 0x353   : > { %v10173_v45 = vpop.f32.mrb[27].mxu1  ;;  %10474 = vmatprep.subr.bf16.mxu1 %v15877_v11  ;;  %v18820_v35 = vadd.f32 %v10170_v31, %v10130_v32  ;;  %v15889_v12 = vld [vmem:[%s17822_s13 + $0x2b04] ss:$16 sps:$4 sm:$0xff]   ;;  %v15884_v22 = vld [vmem:[%s17822_s13 + $0x2900] ss:$16 sps:$4 sm:$0xff]  }
 0x354   : > { %v15887_v11 = vld [vmem:[%s17822_s13 + $0x2b00] ss:$16 sps:$4 sm:$0xff]   ;;  %v15898_v31 = vld [vmem:[%s17822_s13 + $0x2944] ss:$16 sps:$4 sm:$0xff]  }
 0x355   : > { %10434 = vmatpush1.bf16.msra.mxu0 %v15872_v57  ;;  %v15892_v57 = vld [vmem:[%s17822_s13 + $0x2924] ss:$16 sps:$4 sm:$0xff]   ;;  %v15890_v15 = vld [vmem:[%s17822_s13 + $0x2920] ss:$16 sps:$4 sm:$0xff]  }
 0x356   : > { %10475 = vmatpush1.bf16.msra.mxu1 %v15875_v14  ;;  %10435 = vmatprep.subr.bf16.mxu0 %v15880_v13  ;;  %v15895_v14 = vld [vmem:[%s17822_s13 + $0x2b24] ss:$16 sps:$4 sm:$0xff]   ;;  %v15893_v16 = vld [vmem:[%s17822_s13 + $0x2b20] ss:$16 sps:$4 sm:$0xff]  }
 0x357   : > { %10476 = vmatprep.subr.bf16.mxu1 %v15883_v9  ;;  %v15901_v32 = vld [vmem:[%s17822_s13 + $0x2b44] ss:$16 sps:$4 sm:$0xff]   ;;  %v15896_v34 = vld [vmem:[%s17822_s13 + $0x2940] ss:$16 sps:$4 sm:$0xff]  }
 0x358   : > { %v15899_v36 = vld [vmem:[%s17822_s13 + $0x2b40] ss:$16 sps:$4 sm:$0xff]   ;;  %v15904_v55 = vld [vmem:[%s17822_s13 + $0x2964] ss:$16 sps:$4 sm:$0xff]  }
 0x359   : > { %10436 = vmatpush1.bf16.msra.mxu0 %v15878_v10  ;;  %v15907_v45 = vld [vmem:[%s17822_s13 + $0x2b64] ss:$16 sps:$4 sm:$0xff]   ;;  %v15902_v13 = vld [vmem:[%s17822_s13 + $0x2960] ss:$16 sps:$4 sm:$0xff]  }
 0x35a   : > { %10477 = vmatpush1.bf16.msra.mxu1 %v15881_v33  ;;  %10437 = vmatprep.subr.bf16.mxu0 %v15886_v6  ;;  %v15905_v9 = vld [vmem:[%s17822_s13 + $0x2b60] ss:$16 sps:$4 sm:$0xff]   ;;  %v15910_v10 = vld [vmem:[%s17822_s13 + $0x2984] ss:$16 sps:$4 sm:$0xff]  }
 0x35b   : > { %10478 = vmatprep.subr.bf16.mxu1 %v15889_v12  ;;  %v15913_v33 = vld [vmem:[%s17822_s13 + $0x2b84] ss:$16 sps:$4 sm:$0xff]   ;;  %v15908_v6 = vld [vmem:[%s17822_s13 + $0x2980] ss:$16 sps:$4 sm:$0xff]  }
 0x35c   : > { %v15911_v12 = vld [vmem:[%s17822_s13 + $0x2b80] ss:$16 sps:$4 sm:$0xff]  }
 0x35d   : > { %10438 = vmatpush1.bf16.msra.mxu0 %v15884_v22  ;;  %v15916_v22 = vld [vmem:[%s17822_s13 + $0x29a4] ss:$16 sps:$4 sm:$0xff]  }
 0x35e   : > { %10479 = vmatpush1.bf16.msra.mxu1 %v15887_v11  ;;  %10439 = vmatprep.subr.bf16.mxu0 %v15892_v57  ;;  %v15919_v11 = vld [vmem:[%s17822_s13 + $0x2ba4] ss:$16 sps:$4 sm:$0xff]   ;;  %v15914_v57 = vld [vmem:[%s17822_s13 + $0x29a0] ss:$16 sps:$4 sm:$0xff]  }
 0x35f   : > { %10480 = vmatprep.subr.bf16.mxu1 %v15895_v14  ;;  %v15917_v14 = vld [vmem:[%s17822_s13 + $0x2ba0] ss:$16 sps:$4 sm:$0xff]  }
 0x361   : > { %10440 = vmatpush1.bf16.msra.mxu0 %v15890_v15  ;;  %v15922_v15 = vld [vmem:[%s17822_s13 + $0x29c4] ss:$16 sps:$4 sm:$0xff]  }
 0x362   : > { %10481 = vmatpush1.bf16.msra.mxu1 %v15893_v16  ;;  %10441 = vmatprep.subr.bf16.mxu0 %v15898_v31  ;;  %v15925_v16 = vld [vmem:[%s17822_s13 + $0x2bc4] ss:$16 sps:$4 sm:$0xff]   ;;  %v15920_v31 = vld [vmem:[%s17822_s13 + $0x29c0] ss:$16 sps:$4 sm:$0xff]  }
 0x363   : > { %10482 = vmatprep.subr.bf16.mxu1 %v15901_v32  ;;  %v15923_v32 = vld [vmem:[%s17822_s13 + $0x2bc0] ss:$16 sps:$4 sm:$0xff]  }
 0x365   : > { %10442 = vmatpush1.bf16.msra.mxu0 %v15896_v34  ;;  %v15928_v34 = vld [vmem:[%s17822_s13 + $0x29e4] ss:$16 sps:$4 sm:$0xff]  }
 0x366   : > { %10483 = vmatpush1.bf16.msra.mxu1 %v15899_v36  ;;  %10443 = vmatprep.subr.bf16.mxu0 %v15904_v55  ;;  %v15931_v36 = vld [vmem:[%s17822_s13 + $0x2be4] ss:$16 sps:$4 sm:$0xff]   ;;  %v15926_v55 = vld [vmem:[%s17822_s13 + $0x29e0] ss:$16 sps:$4 sm:$0xff]  }
 0x367   : > { %10484 = vmatprep.subr.bf16.mxu1 %v15907_v45  ;;  %v15929_v45 = vld [vmem:[%s17822_s13 + $0x2be0] ss:$16 sps:$4 sm:$0xff]  }
 0x369   : > { %10444 = vmatpush1.bf16.msra.mxu0 %v15902_v13  ;;  %v15938_v13 = vld [vmem:[%s17822_s13 + $0x2c04] ss:$16 sps:$4 sm:$0xff]  }
 0x36a   : > { %10485 = vmatpush1.bf16.msra.mxu1 %v15905_v9  ;;  %10445 = vmatprep.subr.bf16.mxu0 %v15910_v10  ;;  %v15941_v9 = vld [vmem:[%s17822_s13 + $0x2e04] ss:$16 sps:$4 sm:$0xff]  }
 0x36b   : > { %10486 = vmatprep.subr.bf16.mxu1 %v15913_v33  ;;  %v18859_v10 = vld [vmem:[%s17844_s24 + $0xb0] sm:$0xff] }
 0x36c   : > { %v15936_v33 = vld [vmem:[%s17822_s13 + $0x2c00] ss:$16 sps:$4 sm:$0xff]  }
 0x36d   : > { %10446 = vmatpush1.bf16.msra.mxu0 %v15908_v6  ;;  %v15939_v6 = vld [vmem:[%s17822_s13 + $0x2e00] ss:$16 sps:$4 sm:$0xff]  }
 0x36e   : > { %10487 = vmatpush1.bf16.msra.mxu1 %v15911_v12  ;;  %10447 = vmatprep.subr.bf16.mxu0 %v15916_v22  ;;  %v18865_v12 = vcombine.low %v18763_v56, %v18763_v56  ;;  %v18869_v22 = vcombine.low %v18776_v5, %v18776_v5  ;;  %v15942_v56 = vld [vmem:[%s17822_s13 + $0x2c20] ss:$16 sps:$4 sm:$0xff]  }
 0x36f   : > { %10488 = vmatprep.subr.bf16.mxu1 %v15919_v11  ;;  %v15944_v11 = vld [vmem:[%s17822_s13 + $0x2c24] ss:$16 sps:$4 sm:$0xff]   ;;  %v15945_v5 = vld [vmem:[%s17822_s13 + $0x2e20] ss:$16 sps:$4 sm:$0xff]  }
 0x370   : > { %19925 = vst [vmem:[#allocation17_spill] sm:$0xff] %v18869_v22 }
 0x371   : > { %10448 = vmatpush1.bf16.msra.mxu0 %v15914_v57  ;;  %v15947_v57 = vld [vmem:[%s17822_s13 + $0x2e24] ss:$16 sps:$4 sm:$0xff]  }
 0x372   : > { %10489 = vmatpush1.bf16.msra.mxu1 %v15917_v14  ;;  %10449 = vmatprep.subr.bf16.mxu0 %v15922_v15  ;;  %v18875_v14 = vcombine.high %v18859_v10, %v18859_v10  ;;  %v15950_v15 = vld [vmem:[%s17822_s13 + $0x2c44] ss:$16 sps:$4 sm:$0xff]  }
 0x373   : > { %10490 = vmatprep.subr.bf16.mxu1 %v15925_v16  ;;  %v15953_v16 = vld [vmem:[%s17822_s13 + $0x2e44] ss:$16 sps:$4 sm:$0xff]  }
 0x374   : > { %19926 = vst [vmem:[#allocation18_spill] sm:$0xff] %v18875_v14 }
 0x375   : > { %10450 = vmatpush1.bf16.msra.mxu0 %v15920_v31  ;;  %v19907_v31 = vmov 0  }
 0x376   : > { %10491 = vmatpush1.bf16.msra.mxu1 %v15923_v32  ;;  %10451 = vmatprep.subr.bf16.mxu0 %v15928_v34  ;;  %v15948_v32 = vld [vmem:[%s17822_s13 + $0x2c40] ss:$16 sps:$4 sm:$0xff]  }
 0x377   : > { %10492 = vmatprep.subr.bf16.mxu1 %v15931_v36  ;;  %v15951_v34 = vld [vmem:[%s17822_s13 + $0x2e40] ss:$16 sps:$4 sm:$0xff]   ;;  %v15956_v36 = vld [vmem:[%s17822_s13 + $0x2c64] ss:$16 sps:$4 sm:$0xff]  }
 0x379   : > { %10452 = vmatpush1.bf16.msra.mxu0 %v15926_v55  ;;  %v15959_v55 = vld [vmem:[%s17822_s13 + $0x2e64] ss:$16 sps:$4 sm:$0xff]  }
 0x37a   : > { %10493 = vmatpush1.bf16.msra.mxu1 %v15929_v45  ;;  %10503 = vmatprep.subr.bf16.mxu0 %v15938_v13  ;;  %v15954_v45 = vld [vmem:[%s17822_s13 + $0x2c60] ss:$16 sps:$4 sm:$0xff]  }
 0x37b   : > { %10544 = vmatprep.subr.bf16.mxu1 %v15941_v9  ;;  %v15957_v13 = vld [vmem:[%s17822_s13 + $0x2e60] ss:$16 sps:$4 sm:$0xff]   ;;  %v15962_v9 = vld [vmem:[%s17822_s13 + $0x2c84] ss:$16 sps:$4 sm:$0xff]  }
 0x37c   : > { %10454 = vmatmul.mubr.bf16.vlgmr.msra.gmra.mrb[40].mxu0 %v18865_v12 }
 0x37d   : > { %10495 = vmatmul.mubr.bf16.vlgmr.msra.gmra.mrb[40].mxu1 %v18869_v22  ;;  %10504 = vmatpush1.bf16.msra.mxu0 %v15936_v33  ;;  %v15965_v33 = vld [vmem:[%s17822_s13 + $0x2e84] ss:$16 sps:$4 sm:$0xff]  }
 0x37e   : > { %10545 = vmatpush1.bf16.msra.mxu1 %v15939_v6  ;;  %10505 = vmatprep.subr.bf16.mxu0 %v15944_v11  ;;  %v15960_v6 = vld [vmem:[%s17822_s13 + $0x2c80] ss:$16 sps:$4 sm:$0xff]  }
 0x37f   : > { %10546 = vmatprep.subr.bf16.mxu1 %v15947_v57  ;;  %10576 = vmatprep.mubr.bf16.mxu1 %v19907_v31  ;;  %v15963_v11 = vld [vmem:[%s17822_s13 + $0x2e80] ss:$16 sps:$4 sm:$0xff]   ;;  %v15968_v57 = vld [vmem:[%s17822_s13 + $0x2ca4] ss:$16 sps:$4 sm:$0xff]  }
 0x380   : > { %10535 = vmatprep.mubr.bf16.mxu0 %v18875_v14 }
 0x381   : > { %10506 = vmatpush1.bf16.msra.mxu0 %v15942_v56  ;;  %v15971_v56 = vld [vmem:[%s17822_s13 + $0x2ea4] ss:$16 sps:$4 sm:$0xff]  }
 0x382   : > { %10547 = vmatpush1.bf16.msra.mxu1 %v15945_v5  ;;  %10507 = vmatprep.subr.bf16.mxu0 %v15950_v15  ;;  %v15966_v5 = vld [vmem:[%s17822_s13 + $0x2ca0] ss:$16 sps:$4 sm:$0xff]  }
 0x383   : > { %10548 = vmatprep.subr.bf16.mxu1 %v15953_v16  ;;  %v15969_v15 = vld [vmem:[%s17822_s13 + $0x2ea0] ss:$16 sps:$4 sm:$0xff]   ;;  %v15974_v16 = vld [vmem:[%s17822_s13 + $0x2cc4] ss:$16 sps:$4 sm:$0xff]  }
 0x385   : > { %10508 = vmatpush1.bf16.msra.mxu0 %v15948_v32  ;;  %v15977_v32 = vld [vmem:[%s17822_s13 + $0x2ec4] ss:$16 sps:$4 sm:$0xff]  }
 0x386   : > { %10549 = vmatpush1.bf16.msra.mxu1 %v15951_v34  ;;  %10509 = vmatprep.subr.bf16.mxu0 %v15956_v36 }
 0x387   : > { %10550 = vmatprep.subr.bf16.mxu1 %v15959_v55  ;;  %v15972_v55 = vld [vmem:[%s17822_s13 + $0x2cc0] ss:$16 sps:$4 sm:$0xff]  }
 0x389   : > { %10510 = vmatpush1.bf16.msra.mxu0 %v15954_v45  ;;  %v15975_v45 = vld [vmem:[%s17822_s13 + $0x2ec0] ss:$16 sps:$4 sm:$0xff]  }
 0x38a   : > { %10551 = vmatpush1.bf16.msra.mxu1 %v15957_v13  ;;  %10511 = vmatprep.subr.bf16.mxu0 %v15962_v9 }
 0x38b   : > { %10552 = vmatprep.subr.bf16.mxu1 %v15965_v33 }
 0x38d   : > { %10512 = vmatpush1.bf16.msra.mxu0 %v15960_v6 }
 0x38e   : > { %10553 = vmatpush1.bf16.msra.mxu1 %v15963_v11  ;;  %10513 = vmatprep.subr.bf16.mxu0 %v15968_v57 }
 0x38f   : > { %10554 = vmatprep.subr.bf16.mxu1 %v15971_v56  ;;  %v10209_v34 = vpop.f32.mrb[28].mxu0 }
 0x390   : > { %v10250_v36 = vpop.f32.mrb[28].mxu1  ;;  %v10210_v13 = vadd.f32 %v10209_v34, %v18816_v43  ;;  %v10211_v9 = vpop.f32.mrb[29].mxu0  ;;  %v15980_v43 = vld [vmem:[%s17822_s13 + $0x2ce4] ss:$16 sps:$4 sm:$0xff]  }
 0x391   : > { %v10252_v33 = vpop.f32.mrb[29].mxu1  ;;  %v10212_v31 = vadd.f32 %v10211_v9, %v18820_v35  ;;  %v10213_v6 = vpop.f32.mrb[30].mxu0  ;;  %10514 = vmatpush1.bf16.msra.mxu0 %v15966_v5  ;;  %v15983_v34 = vld [vmem:[%s17822_s13 + $0x2ee4] ss:$16 sps:$4 sm:$0xff]   ;;  %v15978_v35 = vld [vmem:[%s17822_s13 + $0x2ce0] ss:$16 sps:$4 sm:$0xff]  }
 0x392   : > { %v10254_v11 = vpop.f32.mrb[30].mxu1  ;;  %10555 = vmatpush1.bf16.msra.mxu1 %v15969_v15  ;;  %v18905_v57 = vadd.f32 %v10250_v36, %v10210_v13  ;;  %v10214_v56 = vpop.f32.mrb[31].mxu0  ;;  %10515 = vmatprep.subr.bf16.mxu0 %v15974_v16  ;;  %v15981_v5 = vld [vmem:[%s17822_s13 + $0x2ee0] ss:$16 sps:$4 sm:$0xff]   ;;  %v15986_v15 = vld [vmem:[%s17822_s13 + $0x2d04] ss:$16 sps:$4 sm:$0xff]  }
 0x393   : > { %v10255_v22 = vpop.f32.mrb[31].mxu1  ;;  %10556 = vmatprep.subr.bf16.mxu1 %v15977_v32  ;;  %v18909_v14 = vadd.f32 %v10252_v33, %v10212_v31  ;;  %v15987_v36 = vld [vmem:[%s17844_s24 + $0xb8] ss:$0 sps:$4 sm:$0xff]   ;;  %v15984_v16 = vld [vmem:[%s17822_s13 + $0x2d00] ss:$16 sps:$4 sm:$0xff]  }
 0x394   : > { %v15990_v22 = vld [vmem:[%s17822_s13 + $0xc] ss:$16 sps:$4 sm:$0xff]   ;;  %v15988_v32 = vld [vmem:[%s17822_s13 + $0x8] ss:$16 sps:$4 sm:$0xff]   ;;  %v15993_v31 = vld [vmem:[%s17822_s13 + $0x2d24] ss:$16 sps:$4 sm:$0xff]  }
 0x395   : > { %10516 = vmatpush1.bf16.msra.mxu0 %v15972_v55  ;;  %v15996_v55 = vld [vmem:[%s17822_s13 + $0x2c] ss:$16 sps:$4 sm:$0xff]   ;;  %v15994_v13 = vld [vmem:[%s17822_s13 + $0x28] ss:$16 sps:$4 sm:$0xff]   ;;  %v15999_v9 = vld [vmem:[%s17822_s13 + $0x2d44] ss:$16 sps:$4 sm:$0xff]  }
 0x396   : > { %10557 = vmatpush1.bf16.msra.mxu1 %v15975_v45  ;;  %10517 = vmatprep.subr.bf16.mxu0 %v15980_v43  ;;  %v15991_v45 = vld [vmem:[%s17822_s13 + $0x2d20] ss:$16 sps:$4 sm:$0xff]   ;;  %v16002_v33 = vld [vmem:[%s17822_s13 + $0x4c] ss:$16 sps:$4 sm:$0xff]   ;;  %v16000_v11 = vld [vmem:[%s17822_s13 + $0x48] ss:$16 sps:$4 sm:$0xff]  }
 0x397   : > { %10558 = vmatprep.subr.bf16.mxu1 %v15983_v34  ;;  %v15997_v6 = vld [vmem:[%s17822_s13 + $0x2d40] ss:$16 sps:$4 sm:$0xff]   ;;  %v16005_v56 = vld [vmem:[%s17822_s13 + $0x2d64] ss:$16 sps:$4 sm:$0xff]   ;;  %v16008_v43 = vld [vmem:[%s17822_s13 + $0x6c] ss:$16 sps:$4 sm:$0xff]  }
 0x398   : > { %v16003_v34 = vld [vmem:[%s17822_s13 + $0x2d60] ss:$16 sps:$4 sm:$0xff]  }
 0x399   : > { %10518 = vmatpush1.bf16.msra.mxu0 %v15978_v35  ;;  %v16006_v35 = vld [vmem:[%s17822_s13 + $0x68] ss:$16 sps:$4 sm:$0xff]  }
 0x39a   : > { %10559 = vmatpush1.bf16.msra.mxu1 %v15981_v5  ;;  %10519 = vmatprep.subr.bf16.mxu0 %v15986_v15  ;;  %v16014_v5 = vld [vmem:[%s17822_s13 + $0x8c] ss:$16 sps:$4 sm:$0xff]   ;;  %v16009_v15 = vld [vmem:[%s17822_s13 + $0x2d80] ss:$16 sps:$4 sm:$0xff]  }
 0x39b   : > { %10585 = vmatprep.subr.bf16.mxu1 %v15990_v22  ;;  %v16017_v22 = vld [vmem:[%s17822_s13 + $0x2da4] ss:$16 sps:$4 sm:$0xff]  }
 0x39d   : > { %10577 = vmatmul.mubr.bf16.vlgmr.msra.gmra.mrb[44].mxu1 %v15987_v36  ;;  %10520 = vmatpush1.bf16.msra.mxu0 %v15984_v16  ;;  %v16012_v36 = vld [vmem:[%s17822_s13 + $0x88] ss:$16 sps:$4 sm:$0xff]   ;;  %v16020_v16 = vld [vmem:[%s17822_s13 + $0xac] ss:$16 sps:$4 sm:$0xff]  }
 0x39e   : > { %10586 = vmatpush1.bf16.msra.mxu1 %v15988_v32  ;;  %10521 = vmatprep.subr.bf16.mxu0 %v15993_v31  ;;  %v16015_v32 = vld [vmem:[%s17822_s13 + $0x2da0] ss:$16 sps:$4 sm:$0xff]   ;;  %v16018_v31 = vld [vmem:[%s17822_s13 + $0xa8] ss:$16 sps:$4 sm:$0xff]  }
 0x39f   : > { %10587 = vmatprep.subr.bf16.mxu1 %v15996_v55  ;;  %10617 = vmatprep.mubr.bf16.mxu1 %v17895_v48  ;;  %v16011_v48 = vld [vmem:[%s17822_s13 + $0x2d84] ss:$16 sps:$4 sm:$0xff]  }
 0x3a0   : > { %v16023_v55 = vld [vmem:[%s17822_s13 + $0x2dc4] ss:$16 sps:$4 sm:$0xff]  }
 0x3a1   : > { %10522 = vmatpush1.bf16.msra.mxu0 %v15991_v45  ;;  %v16026_v45 = vld [vmem:[%s17822_s13 + $0xcc] ss:$16 sps:$4 sm:$0xff]  }
 0x3a2   : > { %10588 = vmatpush1.bf16.msra.mxu1 %v15994_v13  ;;  %10523 = vmatprep.subr.bf16.mxu0 %v15999_v9  ;;  %v16021_v13 = vld [vmem:[%s17822_s13 + $0x2dc0] ss:$16 sps:$4 sm:$0xff]   ;;  %v16024_v9 = vld [vmem:[%s17822_s13 + $0xc8] ss:$16 sps:$4 sm:$0xff]  }
 0x3a3   : > { %10589 = vmatprep.subr.bf16.mxu1 %v16002_v33  ;;  %v16029_v33 = vld [vmem:[%s17822_s13 + $0x2de4] ss:$16 sps:$4 sm:$0xff]  }
 0x3a5   : > { %10524 = vmatpush1.bf16.msra.mxu0 %v15997_v6  ;;  %v16032_v6 = vld [vmem:[%s17822_s13 + $0xec] ss:$16 sps:$4 sm:$0xff]  }
 0x3a6   : > { %10590 = vmatpush1.bf16.msra.mxu1 %v16000_v11  ;;  %10525 = vmatprep.subr.bf16.mxu0 %v16005_v56  ;;  %v16027_v11 = vld [vmem:[%s17822_s13 + $0x2de0] ss:$16 sps:$4 sm:$0xff]   ;;  %v16030_v56 = vld [vmem:[%s17822_s13 + $0xe8] ss:$16 sps:$4 sm:$0xff]  }
 0x3a7   : > { %10591 = vmatprep.subr.bf16.mxu1 %v16008_v43  ;;  %v16037_v43 = vld [vmem:[%s17822_s13 + $0x10c] ss:$16 sps:$4 sm:$0xff]  }
 0x3a9   : > { %10526 = vmatpush1.bf16.msra.mxu0 %v16003_v34  ;;  %v16040_v34 = vld [vmem:[%s17822_s13 + $0x20c] ss:$16 sps:$4 sm:$0xff]  }
 0x3aa   : > { %10592 = vmatpush1.bf16.msra.mxu1 %v16006_v35  ;;  %10527 = vmatprep.subr.bf16.mxu0 %v16011_v48  ;;  %v16035_v35 = vld [vmem:[%s17822_s13 + $0x108] ss:$16 sps:$4 sm:$0xff]  }
 0x3ab   : > { %10593 = vmatprep.subr.bf16.mxu1 %v16014_v5  ;;  %v16038_v48 = vld [vmem:[%s17822_s13 + $0x208] ss:$16 sps:$4 sm:$0xff]   ;;  %v18953_v5 = vcombine.low %v18859_v10, %v18859_v10  ;;  %v16049_v10 = vld [vmem:[%s17822_s13 + $0x14c] ss:$16 sps:$4 sm:$0xff]  }
 0x3ad   : > { %10528 = vmatpush1.bf16.msra.mxu0 %v16009_v15  ;;  %v16043_v15 = vld [vmem:[%s17822_s13 + $0x12c] ss:$16 sps:$4 sm:$0xff]  }
 0x3ae   : > { %10594 = vmatpush1.bf16.msra.mxu1 %v16012_v36  ;;  %10529 = vmatprep.subr.bf16.mxu0 %v16017_v22  ;;  %v16046_v36 = vld [vmem:[%s17822_s13 + $0x22c] ss:$16 sps:$4 sm:$0xff]   ;;  %v16041_v22 = vld [vmem:[%s17822_s13 + $0x128] ss:$16 sps:$4 sm:$0xff]  }
 0x3af   : > { %10595 = vmatprep.subr.bf16.mxu1 %v16020_v16  ;;  %v16044_v16 = vld [vmem:[%s17822_s13 + $0x228] ss:$16 sps:$4 sm:$0xff]  }
 0x3b1   : > { %10530 = vmatpush1.bf16.msra.mxu0 %v16015_v32  ;;  %v16052_v32 = vld [vmem:[%s17822_s13 + $0x24c] ss:$16 sps:$4 sm:$0xff]  }
 0x3b2   : > { %10596 = vmatpush1.bf16.msra.mxu1 %v16018_v31  ;;  %10531 = vmatprep.subr.bf16.mxu0 %v16023_v55  ;;  %v16047_v31 = vld [vmem:[%s17822_s13 + $0x148] ss:$16 sps:$4 sm:$0xff]  }
 0x3b3   : > { %10597 = vmatprep.subr.bf16.mxu1 %v16026_v45  ;;  %v16050_v55 = vld [vmem:[%s17822_s13 + $0x248] ss:$16 sps:$4 sm:$0xff]   ;;  %v16055_v45 = vld [vmem:[%s17822_s13 + $0x16c] ss:$16 sps:$4 sm:$0xff]  }
 0x3b5   : > { %10532 = vmatpush1.bf16.msra.mxu0 %v16021_v13  ;;  %v16058_v13 = vld [vmem:[%s17822_s13 + $0x26c] ss:$16 sps:$4 sm:$0xff]  }
 0x3b6   : > { %10598 = vmatpush1.bf16.msra.mxu1 %v16024_v9  ;;  %10533 = vmatprep.subr.bf16.mxu0 %v16029_v33  ;;  %v16053_v9 = vld [vmem:[%s17822_s13 + $0x168] ss:$16 sps:$4 sm:$0xff]  }
 0x3b7   : > { %10599 = vmatprep.subr.bf16.mxu1 %v16032_v6  ;;  %v16056_v33 = vld [vmem:[%s17822_s13 + $0x268] ss:$16 sps:$4 sm:$0xff]   ;;  %v16064_v6 = vld [vmem:[%s17822_s13 + $0x28c] ss:$16 sps:$4 sm:$0xff]  }
 0x3b9   : > { %10534 = vmatpush1.bf16.msra.mxu0 %v16027_v11  ;;  %v16059_v11 = vld [vmem:[%s17822_s13 + $0x188] ss:$16 sps:$4 sm:$0xff]  }
 0x3ba   : > { %10600 = vmatpush1.bf16.msra.mxu1 %v16030_v56  ;;  %10626 = vmatprep.subr.bf16.mxu0 %v16040_v34  ;;  %v16062_v56 = vld [vmem:[%s17822_s13 + $0x288] ss:$16 sps:$4 sm:$0xff]   ;;  %v16070_v34 = vld [vmem:[%s17822_s13 + $0x2ac] ss:$16 sps:$4 sm:$0xff]  }
 0x3bb   : > { %10601 = vmatprep.subr.bf16.mxu1 %v16037_v43  ;;  %v16067_v43 = vld [vmem:[%s17822_s13 + $0x1ac] ss:$16 sps:$4 sm:$0xff]  }
 0x3bc   : > { %10536 = vmatmul.mubr.bf16.vlgmr.msra.gmra.mrb[44].mxu0 %v18953_v5 }
 0x3bd   : > { %10627 = vmatpush1.bf16.msra.mxu0 %v16038_v48  ;;  %10658 = vmatprep.mubr.bf16.mxu0 %v17900_v52  ;;  %v16061_v52 = vld [vmem:[%s17822_s13 + $0x18c] ss:$16 sps:$4 sm:$0xff]   ;;  %v16068_v48 = vld [vmem:[%s17822_s13 + $0x2a8] ss:$16 sps:$4 sm:$0xff]  }
 0x3be   : > { %10602 = vmatpush1.bf16.msra.mxu1 %v16035_v35  ;;  %10628 = vmatprep.subr.bf16.mxu0 %v16046_v36  ;;  %v16065_v35 = vld [vmem:[%s17822_s13 + $0x1a8] ss:$16 sps:$4 sm:$0xff]   ;;  %v16076_v36 = vld [vmem:[%s17822_s13 + $0x2cc] ss:$16 sps:$4 sm:$0xff]  }
 0x3bf   : > { %10603 = vmatprep.subr.bf16.mxu1 %v16043_v15  ;;  %v16073_v15 = vld [vmem:[%s17822_s13 + $0x1cc] ss:$16 sps:$4 sm:$0xff]  }
 0x3c1   : > { %10629 = vmatpush1.bf16.msra.mxu0 %v16044_v16 }
 0x3c2   : > { %10604 = vmatpush1.bf16.msra.mxu1 %v16041_v22  ;;  %10630 = vmatprep.subr.bf16.mxu0 %v16052_v32  ;;  %v16074_v32 = vld [vmem:[%s17822_s13 + $0x2c8] ss:$16 sps:$4 sm:$0xff]  }
 0x3c3   : > { %10605 = vmatprep.subr.bf16.mxu1 %v16049_v10  ;;  %v16071_v10 = vld [vmem:[%s17822_s13 + $0x1c8] ss:$16 sps:$4 sm:$0xff]  }
 0x3c5   : > { %10631 = vmatpush1.bf16.msra.mxu0 %v16050_v55 }
 0x3c6   : > { %10606 = vmatpush1.bf16.msra.mxu1 %v16047_v31  ;;  %10632 = vmatprep.subr.bf16.mxu0 %v16058_v13 }
 0x3c7   : > { %10607 = vmatprep.subr.bf16.mxu1 %v16055_v45 }
 0x3c9   : > { %10633 = vmatpush1.bf16.msra.mxu0 %v16056_v33 }
 0x3ca   : > { %10608 = vmatpush1.bf16.msra.mxu1 %v16053_v9  ;;  %10634 = vmatprep.subr.bf16.mxu0 %v16064_v6 }
 0x3cb   : > { %10609 = vmatprep.subr.bf16.mxu1 %v16061_v52 }
 0x3cd   : > { %10635 = vmatpush1.bf16.msra.mxu0 %v16062_v56  ;;  %v16082_v56 = vld [vmem:[%s17822_s13 + $0x2ec] ss:$16 sps:$4 sm:$0xff]  }
 0x3ce   : > { %10610 = vmatpush1.bf16.msra.mxu1 %v16059_v11  ;;  %10636 = vmatprep.subr.bf16.mxu0 %v16070_v34  ;;  %v16080_v34 = vld [vmem:[%s17822_s13 + $0x2e8] ss:$16 sps:$4 sm:$0xff]  }
 0x3cf   : > { %10611 = vmatprep.subr.bf16.mxu1 %v16067_v43  ;;  %v10291_v22 = vpop.f32.mrb[32].mxu0 }
 0x3d0   : > { %v10332_v16 = vpop.f32.mrb[32].mxu1  ;;  %v10292_v31 = vadd.f32 %v10291_v22, %v18905_v57  ;;  %v10293_v55 = vpop.f32.mrb[33].mxu0  ;;  %v16079_v57 = vld [vmem:[%s17822_s13 + $0x1ec] ss:$16 sps:$4 sm:$0xff]   ;;  %v16083_v22 = vld [vmem:[%s17822_s13 + $0x308] ss:$16 sps:$4 sm:$0xff]  }
 0x3d1   : > { %v10334_v45 = vpop.f32.mrb[33].mxu1  ;;  %v10294_v13 = vadd.f32 %v10293_v55, %v18909_v14  ;;  %v10295_v9 = vpop.f32.mrb[34].mxu0  ;;  %10637 = vmatpush1.bf16.msra.mxu0 %v16068_v48  ;;  %v16077_v14 = vld [vmem:[%s17822_s13 + $0x1e8] ss:$16 sps:$4 sm:$0xff]   ;;  %v16088_v48 = vld [vmem:[%s17822_s13 + $0x40c] ss:$16 sps:$4 sm:$0xff]  }
 0x3d2   : > { %v10336_v33 = vpop.f32.mrb[34].mxu1  ;;  %10612 = vmatpush1.bf16.msra.mxu1 %v16065_v35  ;;  %v18983_v52 = vadd.f32 %v10332_v16, %v10292_v31  ;;  %v10296_v6 = vpop.f32.mrb[35].mxu0  ;;  %10638 = vmatprep.subr.bf16.mxu0 %v16076_v36  ;;  %v16085_v35 = vld [vmem:[%s17822_s13 + $0x30c] ss:$16 sps:$4 sm:$0xff]  }
 0x3d3   : > { %v10337_v11 = vpop.f32.mrb[35].mxu1  ;;  %10613 = vmatprep.subr.bf16.mxu1 %v16073_v15  ;;  %v18987_v43 = vadd.f32 %v10334_v45, %v10294_v13  ;;  %v16086_v15 = vld [vmem:[%s17822_s13 + $0x408] ss:$16 sps:$4 sm:$0xff]   ;;  %v16091_v36 = vld [vmem:[%s17822_s13 + $0x32c] ss:$16 sps:$4 sm:$0xff]  }
 0x3d4   : > { %v16094_v16 = vld [vmem:[%s17822_s13 + $0x42c] ss:$16 sps:$4 sm:$0xff]   ;;  %v16095_v45 = vld [vmem:[%s17822_s13 + $0x348] ss:$16 sps:$4 sm:$0xff]  }
 0x3d5   : > { %10639 = vmatpush1.bf16.msra.mxu0 %v16074_v32  ;;  %v16092_v32 = vld [vmem:[%s17822_s13 + $0x428] ss:$16 sps:$4 sm:$0xff]   ;;  %v16097_v31 = vld [vmem:[%s17822_s13 + $0x34c] ss:$16 sps:$4 sm:$0xff]  }
 0x3d6   : > { %10614 = vmatpush1.bf16.msra.mxu1 %v16071_v10  ;;  %10640 = vmatprep.subr.bf16.mxu0 %v16082_v56  ;;  %v16089_v10 = vld [vmem:[%s17822_s13 + $0x328] ss:$16 sps:$4 sm:$0xff]   ;;  %v16100_v55 = vld [vmem:[%s17822_s13 + $0x44c] ss:$16 sps:$4 sm:$0xff]  }
 0x3d7   : > { %10615 = vmatprep.subr.bf16.mxu1 %v16079_v57  ;;  %v16103_v13 = vld [vmem:[%s17822_s13 + $0x36c] ss:$16 sps:$4 sm:$0xff]   ;;  %v16101_v33 = vld [vmem:[%s17822_s13 + $0x368] ss:$16 sps:$4 sm:$0xff]  }
 0x3d8   : > { %v16106_v9 = vld [vmem:[%s17822_s13 + $0x46c] ss:$16 sps:$4 sm:$0xff]   ;;  %v16104_v6 = vld [vmem:[%s17822_s13 + $0x468] ss:$16 sps:$4 sm:$0xff]  }
 0x3d9   : > { %10641 = vmatpush1.bf16.msra.mxu0 %v16080_v34  ;;  %v16112_v11 = vld [vmem:[%s17822_s13 + $0x48c] ss:$16 sps:$4 sm:$0xff]   ;;  %v16107_v57 = vld [vmem:[%s17822_s13 + $0x388] ss:$16 sps:$4 sm:$0xff]  }
 0x3da   : > { %10616 = vmatpush1.bf16.msra.mxu1 %v16077_v14  ;;  %10642 = vmatprep.subr.bf16.mxu0 %v16085_v35  ;;  %v16110_v56 = vld [vmem:[%s17822_s13 + $0x488] ss:$16 sps:$4 sm:$0xff]   ;;  %v16115_v14 = vld [vmem:[%s17822_s13 + $0x3ac] ss:$16 sps:$4 sm:$0xff]  }
 0x3db   : > { %10667 = vmatprep.subr.bf16.mxu1 %v16088_v48  ;;  %v16118_v34 = vld [vmem:[%s17822_s13 + $0x4ac] ss:$16 sps:$4 sm:$0xff]   ;;  %v16113_v35 = vld [vmem:[%s17822_s13 + $0x3a8] ss:$16 sps:$4 sm:$0xff]  }
 0x3dc   : > { %v16116_v48 = vld [vmem:[%s17822_s13 + $0x4a8] ss:$16 sps:$4 sm:$0xff]  }
 0x3dd   : > { %10618 = vmatmul.mubr.bf16.vlgmr.msra.gmra.mrb[48].mxu1 %v17922_v7  ;;  %10643 = vmatpush1.bf16.msra.mxu0 %v16083_v22  ;;  %v16098_v7 = vld [vmem:[%s17822_s13 + $0x448] ss:$16 sps:$4 sm:$0xff]   ;;  %v16121_v22 = vld [vmem:[%s17822_s13 + $0x3cc] ss:$16 sps:$4 sm:$0xff]  }
 0x3de   : > { %10668 = vmatpush1.bf16.msra.mxu1 %v16086_v15  ;;  %10644 = vmatprep.subr.bf16.mxu0 %v16091_v36  ;;  %v16124_v15 = vld [vmem:[%s17822_s13 + $0x4cc] ss:$16 sps:$4 sm:$0xff]   ;;  %v16119_v36 = vld [vmem:[%s17822_s13 + $0x3c8] ss:$16 sps:$4 sm:$0xff]  }
 0x3df   : > { %10669 = vmatprep.subr.bf16.mxu1 %v16094_v16  ;;  %10699 = vmatprep.mubr.bf16.mxu1 %v17962_v37  ;;  %v16109_v37 = vld [vmem:[%s17822_s13 + $0x38c] ss:$16 sps:$4 sm:$0xff]   ;;  %v16122_v16 = vld [vmem:[%s17822_s13 + $0x4c8] ss:$16 sps:$4 sm:$0xff]  }
 0x3e1   : > { %10645 = vmatpush1.bf16.msra.mxu0 %v16089_v10  ;;  %v16127_v10 = vld [vmem:[%s17822_s13 + $0x3ec] ss:$16 sps:$4 sm:$0xff]  }
 0x3e2   : > { %10670 = vmatpush1.bf16.msra.mxu1 %v16092_v32  ;;  %10646 = vmatprep.subr.bf16.mxu0 %v16097_v31  ;;  %v16130_v32 = vld [vmem:[%s17822_s13 + $0x4ec] ss:$16 sps:$4 sm:$0xff]   ;;  %v16125_v31 = vld [vmem:[%s17822_s13 + $0x3e8] ss:$16 sps:$4 sm:$0xff]  }
 0x3e3   : > { %10671 = vmatprep.subr.bf16.mxu1 %v16100_v55  ;;  %v16128_v55 = vld [vmem:[%s17822_s13 + $0x4e8] ss:$16 sps:$4 sm:$0xff]  }
 0x3e5   : > { %10647 = vmatpush1.bf16.msra.mxu0 %v16095_v45  ;;  %v16133_v45 = vld [vmem:[%s17822_s13 + $0x50c] ss:$16 sps:$4 sm:$0xff]  }
 0x3e6   : > { %10672 = vmatpush1.bf16.msra.mxu1 %v16098_v7  ;;  %10648 = vmatprep.subr.bf16.mxu0 %v16103_v13  ;;  %v16136_v7 = vld [vmem:[%s17822_s13 + $0x60c] ss:$16 sps:$4 sm:$0xff]   ;;  %v16131_v13 = vld [vmem:[%s17822_s13 + $0x508] ss:$16 sps:$4 sm:$0xff]  }
 0x3e7   : > { %10673 = vmatprep.subr.bf16.mxu1 %v16106_v9  ;;  %v16134_v9 = vld [vmem:[%s17822_s13 + $0x608] ss:$16 sps:$4 sm:$0xff]  }
 0x3e9   : > { %10649 = vmatpush1.bf16.msra.mxu0 %v16101_v33  ;;  %v16139_v33 = vld [vmem:[%s17822_s13 + $0x52c] ss:$16 sps:$4 sm:$0xff]  }
 0x3ea   : > { %10674 = vmatpush1.bf16.msra.mxu1 %v16104_v6  ;;  %10650 = vmatprep.subr.bf16.mxu0 %v16109_v37  ;;  %v16142_v6 = vld [vmem:[%s17822_s13 + $0x62c] ss:$16 sps:$4 sm:$0xff]   ;;  %v16137_v37 = vld [vmem:[%s17822_s13 + $0x528] ss:$16 sps:$4 sm:$0xff]  }
 0x3eb   : > { %10675 = vmatprep.subr.bf16.mxu1 %v16112_v11  ;;  %v16140_v11 = vld [vmem:[%s17822_s13 + $0x628] ss:$16 sps:$4 sm:$0xff]  }
 0x3ed   : > { %10651 = vmatpush1.bf16.msra.mxu0 %v16107_v57  ;;  %v16145_v57 = vld [vmem:[%s17822_s13 + $0x54c] ss:$16 sps:$4 sm:$0xff]  }
 0x3ee   : > { %10676 = vmatpush1.bf16.msra.mxu1 %v16110_v56  ;;  %10652 = vmatprep.subr.bf16.mxu0 %v16115_v14  ;;  %v16148_v56 = vld [vmem:[%s17822_s13 + $0x64c] ss:$16 sps:$4 sm:$0xff]   ;;  %v16143_v14 = vld [vmem:[%s17822_s13 + $0x548] ss:$16 sps:$4 sm:$0xff]  }
 0x3ef   : > { %10677 = vmatprep.subr.bf16.mxu1 %v16118_v34  ;;  %v16151_v34 = vld [vmem:[%s17822_s13 + $0x56c] ss:$16 sps:$4 sm:$0xff]  }
 0x3f1   : > { %10653 = vmatpush1.bf16.msra.mxu0 %v16113_v35  ;;  %v16154_v35 = vld [vmem:[%s17822_s13 + $0x66c] ss:$16 sps:$4 sm:$0xff]  }
 0x3f2   : > { %10678 = vmatpush1.bf16.msra.mxu1 %v16116_v48  ;;  %10654 = vmatprep.subr.bf16.mxu0 %v16121_v22  ;;  %v16149_v48 = vld [vmem:[%s17822_s13 + $0x568] ss:$16 sps:$4 sm:$0xff]  }
 0x3f3   : > { %10679 = vmatprep.subr.bf16.mxu1 %v16124_v15  ;;  %v16152_v22 = vld [vmem:[%s17822_s13 + $0x668] ss:$16 sps:$4 sm:$0xff]   ;;  %v16160_v15 = vld [vmem:[%s17822_s13 + $0x68c] ss:$16 sps:$4 sm:$0xff]  }
 0x3f5   : > { %10655 = vmatpush1.bf16.msra.mxu0 %v16119_v36  ;;  %v16155_v36 = vld [vmem:[%s17822_s13 + $0x588] ss:$16 sps:$4 sm:$0xff]  }
 0x3f6   : > { %10680 = vmatpush1.bf16.msra.mxu1 %v16122_v16  ;;  %10656 = vmatprep.subr.bf16.mxu0 %v16127_v10  ;;  %v16158_v16 = vld [vmem:[%s17822_s13 + $0x688] ss:$16 sps:$4 sm:$0xff]   ;;  %v16163_v10 = vld [vmem:[%s17822_s13 + $0x5ac] ss:$16 sps:$4 sm:$0xff]  }
 0x3f7   : > { %10681 = vmatprep.subr.bf16.mxu1 %v16130_v32  ;;  %v16166_v32 = vld [vmem:[%s17822_s13 + $0x6ac] ss:$16 sps:$4 sm:$0xff]  }
 0x3f9   : > { %10657 = vmatpush1.bf16.msra.mxu0 %v16125_v31  ;;  %v16161_v31 = vld [vmem:[%s17822_s13 + $0x5a8] ss:$16 sps:$4 sm:$0xff]  }
 0x3fa   : > { %10682 = vmatpush1.bf16.msra.mxu1 %v16128_v55  ;;  %10708 = vmatprep.subr.bf16.mxu0 %v16136_v7  ;;  %v16164_v55 = vld [vmem:[%s17822_s13 + $0x6a8] ss:$16 sps:$4 sm:$0xff]   ;;  %v16172_v7 = vld [vmem:[%s17822_s13 + $0x6cc] ss:$16 sps:$4 sm:$0xff]  }
 0x3fb   : > { %10683 = vmatprep.subr.bf16.mxu1 %v16133_v45  ;;  %v16169_v45 = vld [vmem:[%s17822_s13 + $0x5cc] ss:$16 sps:$4 sm:$0xff]  }
 0x3fc   : > { %10659 = vmatmul.mubr.bf16.vlgmr.msra.gmra.mrb[48].mxu0 %v17924_v8  ;;  %v16146_v8 = vld [vmem:[%s17822_s13 + $0x648] ss:$16 sps:$4 sm:$0xff]  }
 0x3fd   : > { %10709 = vmatpush1.bf16.msra.mxu0 %v16134_v9  ;;  %10740 = vmatprep.mubr.bf16.mxu0 %v17966_v38  ;;  %v16157_v38 = vld [vmem:[%s17822_s13 + $0x58c] ss:$16 sps:$4 sm:$0xff]  }
 0x3fe   : > { %10684 = vmatpush1.bf16.msra.mxu1 %v16131_v13  ;;  %10710 = vmatprep.subr.bf16.mxu0 %v16142_v6 }
 0x3ff   : > { %10685 = vmatprep.subr.bf16.mxu1 %v16139_v33 }
 0x401   : > { %10711 = vmatpush1.bf16.msra.mxu0 %v16140_v11 }
 0x402   : > { %10686 = vmatpush1.bf16.msra.mxu1 %v16137_v37  ;;  %10712 = vmatprep.subr.bf16.mxu0 %v16148_v56 }
 0x403   : > { %10687 = vmatprep.subr.bf16.mxu1 %v16145_v57 }
 0x405   : > { %10713 = vmatpush1.bf16.msra.mxu0 %v16146_v8  ;;  %v16170_v8 = vld [vmem:[%s17822_s13 + $0x6c8] ss:$16 sps:$4 sm:$0xff]  }
 0x406   : > { %10688 = vmatpush1.bf16.msra.mxu1 %v16143_v14  ;;  %10714 = vmatprep.subr.bf16.mxu0 %v16154_v35  ;;  %v16167_v14 = vld [vmem:[%s17822_s13 + $0x5c8] ss:$16 sps:$4 sm:$0xff]  }
 0x407   : > { %10689 = vmatprep.subr.bf16.mxu1 %v16151_v34 }
 0x409   : > { %10715 = vmatpush1.bf16.msra.mxu0 %v16152_v22 }
 0x40a   : > { %10690 = vmatpush1.bf16.msra.mxu1 %v16149_v48  ;;  %10716 = vmatprep.subr.bf16.mxu0 %v16160_v15  ;;  %v16176_v15 = vld [vmem:[%s17822_s13 + $0x6e8] ss:$16 sps:$4 sm:$0xff]  }
 0x40b   : > { %10691 = vmatprep.subr.bf16.mxu1 %v16157_v38  ;;  %v16173_v38 = vld [vmem:[%s17822_s13 + $0x5e8] ss:$16 sps:$4 sm:$0xff]  }
 0x40d   : > { %10717 = vmatpush1.bf16.msra.mxu0 %v16158_v16  ;;  %v16184_v16 = vld [vmem:[%s17822_s13 + $0x80c] ss:$16 sps:$4 sm:$0xff]  }
 0x40e   : > { %10692 = vmatpush1.bf16.msra.mxu1 %v16155_v36  ;;  %10718 = vmatprep.subr.bf16.mxu0 %v16166_v32  ;;  %v16181_v36 = vld [vmem:[%s17822_s13 + $0x70c] ss:$16 sps:$4 sm:$0xff]   ;;  %v16182_v32 = vld [vmem:[%s17822_s13 + $0x808] ss:$16 sps:$4 sm:$0xff]  }
 0x40f   : > { %10693 = vmatprep.subr.bf16.mxu1 %v16163_v10  ;;  %v10373_v13 = vpop.f32.mrb[36].mxu0  ;;  %v16179_v10 = vld [vmem:[%s17822_s13 + $0x708] ss:$16 sps:$4 sm:$0xff]  }
 0x410   : > { %v10414_v9 = vpop.f32.mrb[36].mxu1  ;;  %v10374_v33 = vadd.f32 %v10373_v13, %v18983_v52  ;;  %v10375_v6 = vpop.f32.mrb[37].mxu0  ;;  %v16175_v52 = vld [vmem:[%s17822_s13 + $0x5ec] ss:$16 sps:$4 sm:$0xff]  }
 0x411   : > { %v10416_v37 = vpop.f32.mrb[37].mxu1  ;;  %v10376_v11 = vadd.f32 %v10375_v6, %v18987_v43  ;;  %v10377_v57 = vpop.f32.mrb[38].mxu0  ;;  %10719 = vmatpush1.bf16.msra.mxu0 %v16164_v55  ;;  %v16178_v43 = vld [vmem:[%s17822_s13 + $0x6ec] ss:$16 sps:$4 sm:$0xff]  }
 0x412   : > { %v10418_v56 = vpop.f32.mrb[38].mxu1  ;;  %10694 = vmatpush1.bf16.msra.mxu1 %v16161_v31  ;;  %v19057_v34 = vadd.f32 %v10414_v9, %v10374_v33  ;;  %v10378_v35 = vpop.f32.mrb[39].mxu0  ;;  %10720 = vmatprep.subr.bf16.mxu0 %v16172_v7  ;;  %v16187_v31 = vld [vmem:[%s17822_s13 + $0x72c] ss:$16 sps:$4 sm:$0xff]   ;;  %v16188_v7 = vld [vmem:[%s17822_s13 + $0x828] ss:$16 sps:$4 sm:$0xff]  }
 0x413   : > { %v10419_v48 = vpop.f32.mrb[39].mxu1  ;;  %10695 = vmatprep.subr.bf16.mxu1 %v16169_v45  ;;  %v19061_v22 = vadd.f32 %v10416_v37, %v10376_v11  ;;  %v16190_v55 = vld [vmem:[%s17822_s13 + $0x82c] ss:$16 sps:$4 sm:$0xff]   ;;  %v16185_v45 = vld [vmem:[%s17822_s13 + $0x728] ss:$16 sps:$4 sm:$0xff]  }
 0x414   : > { %v16193_v13 = vld [vmem:[%s17822_s13 + $0x74c] ss:$16 sps:$4 sm:$0xff]   ;;  %v16191_v33 = vld [vmem:[%s17822_s13 + $0x748] ss:$16 sps:$4 sm:$0xff]  }
 0x415   : > { %10721 = vmatpush1.bf16.msra.mxu0 %v16170_v8  ;;  %v16196_v9 = vld [vmem:[%s17822_s13 + $0x84c] ss:$16 sps:$4 sm:$0xff]   ;;  %v16197_v11 = vld [vmem:[%s17822_s13 + $0x768] ss:$16 sps:$4 sm:$0xff]  }
 0x416   : > { %10696 = vmatpush1.bf16.msra.mxu1 %v16167_v14  ;;  %10722 = vmatprep.subr.bf16.mxu0 %v16178_v43  ;;  %v16199_v6 = vld [vmem:[%s17822_s13 + $0x76c] ss:$16 sps:$4 sm:$0xff]   ;;  %v16200_v57 = vld [vmem:[%s17822_s13 + $0x868] ss:$16 sps:$4 sm:$0xff]  }
 0x417   : > { %10697 = vmatprep.subr.bf16.mxu1 %v16175_v52  ;;  %v16202_v37 = vld [vmem:[%s17822_s13 + $0x86c] ss:$16 sps:$4 sm:$0xff]   ;;  %v16203_v14 = vld [vmem:[%s17822_s13 + $0x788] ss:$16 sps:$4 sm:$0xff]  }
 0x418   : > { %v16208_v56 = vld [vmem:[%s17822_s13 + $0x88c] ss:$16 sps:$4 sm:$0xff]   ;;  %v16206_v8 = vld [vmem:[%s17822_s13 + $0x888] ss:$16 sps:$4 sm:$0xff]  }
 0x419   : > { %10723 = vmatpush1.bf16.msra.mxu0 %v16176_v15  ;;  %v16211_v35 = vld [vmem:[%s17822_s13 + $0x7ac] ss:$16 sps:$4 sm:$0xff]   ;;  %v16209_v52 = vld [vmem:[%s17822_s13 + $0x7a8] ss:$16 sps:$4 sm:$0xff]  }
 0x41a   : > { %10698 = vmatpush1.bf16.msra.mxu1 %v16173_v38  ;;  %10724 = vmatprep.subr.bf16.mxu0 %v16181_v36  ;;  %v16214_v48 = vld [vmem:[%s17822_s13 + $0x8ac] ss:$16 sps:$4 sm:$0xff]   ;;  %v16212_v43 = vld [vmem:[%s17822_s13 + $0x8a8] ss:$16 sps:$4 sm:$0xff]  }
 0x41b   : > { %10749 = vmatprep.subr.bf16.mxu1 %v16184_v16  ;;  %v16217_v38 = vld [vmem:[%s17822_s13 + $0x7cc] ss:$16 sps:$4 sm:$0xff]   ;;  %v16215_v36 = vld [vmem:[%s17822_s13 + $0x7c8] ss:$16 sps:$4 sm:$0xff]  }
 0x41c   : > { %v16220_v15 = vld [vmem:[%s17822_s13 + $0x8cc] ss:$16 sps:$4 sm:$0xff]   ;;  %v16218_v16 = vld [vmem:[%s17822_s13 + $0x8c8] ss:$16 sps:$4 sm:$0xff]  }
 0x41d   : > { %10700 = vmatmul.mubr.bf16.vlgmr.msra.gmra.mrb[52].mxu1 %v18010_v17  ;;  %10725 = vmatpush1.bf16.msra.mxu0 %v16179_v10  ;;  %v16194_v17 = vld [vmem:[%s17822_s13 + $0x848] ss:$16 sps:$4 sm:$0xff]   ;;  %v16223_v10 = vld [vmem:[%s17822_s13 + $0x7ec] ss:$16 sps:$4 sm:$0xff]  }
 0x41e   : > { %10750 = vmatpush1.bf16.msra.mxu1 %v16182_v32  ;;  %10726 = vmatprep.subr.bf16.mxu0 %v16187_v31  ;;  %v16226_v32 = vld [vmem:[%s17822_s13 + $0x8ec] ss:$16 sps:$4 sm:$0xff]   ;;  %v16221_v31 = vld [vmem:[%s17822_s13 + $0x7e8] ss:$16 sps:$4 sm:$0xff]  }
 0x41f   : > { %10751 = vmatprep.subr.bf16.mxu1 %v16190_v55  ;;  %10781 = vmatprep.mubr.bf16.mxu1 %v18028_v25  ;;  %v16205_v25 = vld [vmem:[%s17822_s13 + $0x78c] ss:$16 sps:$4 sm:$0xff]   ;;  %v16224_v55 = vld [vmem:[%s17822_s13 + $0x8e8] ss:$16 sps:$4 sm:$0xff]  }
 0x421   : > { %10727 = vmatpush1.bf16.msra.mxu0 %v16185_v45  ;;  %v16229_v45 = vld [vmem:[%s17822_s13 + $0x90c] ss:$16 sps:$4 sm:$0xff]  }
 0x422   : > { %10752 = vmatpush1.bf16.msra.mxu1 %v16188_v7  ;;  %10728 = vmatprep.subr.bf16.mxu0 %v16193_v13  ;;  %v16232_v7 = vld [vmem:[%s17822_s13 + $0xa0c] ss:$16 sps:$4 sm:$0xff]   ;;  %v16227_v13 = vld [vmem:[%s17822_s13 + $0x908] ss:$16 sps:$4 sm:$0xff]  }
 0x423   : > { %10753 = vmatprep.subr.bf16.mxu1 %v16196_v9  ;;  %v16230_v9 = vld [vmem:[%s17822_s13 + $0xa08] ss:$16 sps:$4 sm:$0xff]  }
 0x425   : > { %10729 = vmatpush1.bf16.msra.mxu0 %v16191_v33  ;;  %v16235_v33 = vld [vmem:[%s17822_s13 + $0x92c] ss:$16 sps:$4 sm:$0xff]  }
 0x426   : > { %10754 = vmatpush1.bf16.msra.mxu1 %v16194_v17  ;;  %10730 = vmatprep.subr.bf16.mxu0 %v16199_v6  ;;  %v16238_v17 = vld [vmem:[%s17822_s13 + $0xa2c] ss:$16 sps:$4 sm:$0xff]   ;;  %v16233_v6 = vld [vmem:[%s17822_s13 + $0x928] ss:$16 sps:$4 sm:$0xff]  }
 0x427   : > { %10755 = vmatprep.subr.bf16.mxu1 %v16202_v37  ;;  %v16236_v37 = vld [vmem:[%s17822_s13 + $0xa28] ss:$16 sps:$4 sm:$0xff]  }
 0x429   : > { %10731 = vmatpush1.bf16.msra.mxu0 %v16197_v11  ;;  %v16241_v11 = vld [vmem:[%s17822_s13 + $0x94c] ss:$16 sps:$4 sm:$0xff]  }
 0x42a   : > { %10756 = vmatpush1.bf16.msra.mxu1 %v16200_v57  ;;  %10732 = vmatprep.subr.bf16.mxu0 %v16205_v25  ;;  %v16244_v57 = vld [vmem:[%s17822_s13 + $0xa4c] ss:$16 sps:$4 sm:$0xff]   ;;  %v16239_v25 = vld [vmem:[%s17822_s13 + $0x948] ss:$16 sps:$4 sm:$0xff]  }
 0x42b   : > { %10757 = vmatprep.subr.bf16.mxu1 %v16208_v56  ;;  %v16247_v56 = vld [vmem:[%s17822_s13 + $0x96c] ss:$16 sps:$4 sm:$0xff]  }
 0x42d   : > { %10733 = vmatpush1.bf16.msra.mxu0 %v16203_v14  ;;  %v16250_v14 = vld [vmem:[%s17822_s13 + $0xa6c] ss:$16 sps:$4 sm:$0xff]  }
 0x42e   : > { %10758 = vmatpush1.bf16.msra.mxu1 %v16206_v8  ;;  %10734 = vmatprep.subr.bf16.mxu0 %v16211_v35  ;;  %v16245_v8 = vld [vmem:[%s17822_s13 + $0x968] ss:$16 sps:$4 sm:$0xff]  }
 0x42f   : > { %10759 = vmatprep.subr.bf16.mxu1 %v16214_v48  ;;  %v16248_v35 = vld [vmem:[%s17822_s13 + $0xa68] ss:$16 sps:$4 sm:$0xff]   ;;  %v16256_v48 = vld [vmem:[%s17822_s13 + $0xa8c] ss:$16 sps:$4 sm:$0xff]  }
 0x431   : > { %10735 = vmatpush1.bf16.msra.mxu0 %v16209_v52  ;;  %v16251_v52 = vld [vmem:[%s17822_s13 + $0x988] ss:$16 sps:$4 sm:$0xff]  }
 0x432   : > { %10760 = vmatpush1.bf16.msra.mxu1 %v16212_v43  ;;  %10736 = vmatprep.subr.bf16.mxu0 %v16217_v38  ;;  %v16254_v43 = vld [vmem:[%s17822_s13 + $0xa88] ss:$16 sps:$4 sm:$0xff]   ;;  %v16259_v38 = vld [vmem:[%s17822_s13 + $0x9ac] ss:$16 sps:$4 sm:$0xff]  }
 0x433   : > { %10761 = vmatprep.subr.bf16.mxu1 %v16220_v15  ;;  %v16262_v15 = vld [vmem:[%s17822_s13 + $0xaac] ss:$16 sps:$4 sm:$0xff]  }
 0x435   : > { %10737 = vmatpush1.bf16.msra.mxu0 %v16215_v36  ;;  %v16257_v36 = vld [vmem:[%s17822_s13 + $0x9a8] ss:$16 sps:$4 sm:$0xff]  }
 0x436   : > { %10762 = vmatpush1.bf16.msra.mxu1 %v16218_v16  ;;  %10738 = vmatprep.subr.bf16.mxu0 %v16223_v10  ;;  %v16260_v16 = vld [vmem:[%s17822_s13 + $0xaa8] ss:$16 sps:$4 sm:$0xff]   ;;  %v16265_v10 = vld [vmem:[%s17822_s13 + $0x9cc] ss:$16 sps:$4 sm:$0xff]  }
 0x437   : > { %10763 = vmatprep.subr.bf16.mxu1 %v16226_v32  ;;  %v16268_v32 = vld [vmem:[%s17822_s13 + $0xacc] ss:$16 sps:$4 sm:$0xff]  }
 0x439   : > { %10739 = vmatpush1.bf16.msra.mxu0 %v16221_v31 }
 0x43a   : > { %10764 = vmatpush1.bf16.msra.mxu1 %v16224_v55  ;;  %10790 = vmatprep.subr.bf16.mxu0 %v16232_v7 }
 0x43b   : > { %10765 = vmatprep.subr.bf16.mxu1 %v16229_v45 }
 0x43c   : > { %10741 = vmatmul.mubr.bf16.vlgmr.msra.gmra.mrb[52].mxu0 %v18014_v18  ;;  %v16242_v18 = vld [vmem:[%s17822_s13 + $0xa48] ss:$16 sps:$4 sm:$0xff]  }
 0x43d   : > { %10791 = vmatpush1.bf16.msra.mxu0 %v16230_v9  ;;  %10822 = vmatprep.mubr.bf16.mxu0 %v18032_v26  ;;  %v16253_v26 = vld [vmem:[%s17822_s13 + $0x98c] ss:$16 sps:$4 sm:$0xff]  }
 0x43e   : > { %10766 = vmatpush1.bf16.msra.mxu1 %v16227_v13  ;;  %10792 = vmatprep.subr.bf16.mxu0 %v16238_v17 }
 0x43f   : > { %10767 = vmatprep.subr.bf16.mxu1 %v16235_v33 }
 0x441   : > { %10793 = vmatpush1.bf16.msra.mxu0 %v16236_v37  ;;  %v16266_v37 = vld [vmem:[%s17822_s13 + $0xac8] ss:$16 sps:$4 sm:$0xff]  }
 0x442   : > { %10768 = vmatpush1.bf16.msra.mxu1 %v16233_v6  ;;  %10794 = vmatprep.subr.bf16.mxu0 %v16244_v57  ;;  %v16263_v6 = vld [vmem:[%s17822_s13 + $0x9c8] ss:$16 sps:$4 sm:$0xff]  }
 0x443   : > { %10769 = vmatprep.subr.bf16.mxu1 %v16241_v11 }
 0x445   : > { %10795 = vmatpush1.bf16.msra.mxu0 %v16242_v18 }
 0x446   : > { %10770 = vmatpush1.bf16.msra.mxu1 %v16239_v25  ;;  %10796 = vmatprep.subr.bf16.mxu0 %v16250_v14  ;;  %v16272_v14 = vld [vmem:[%s17822_s13 + $0xae8] ss:$16 sps:$4 sm:$0xff]  }
 0x447   : > { %10771 = vmatprep.subr.bf16.mxu1 %v16247_v56  ;;  %v16269_v56 = vld [vmem:[%s17822_s13 + $0x9e8] ss:$16 sps:$4 sm:$0xff]  }
 0x449   : > { %10797 = vmatpush1.bf16.msra.mxu0 %v16248_v35  ;;  %v16280_v35 = vld [vmem:[%s17822_s13 + $0xc0c] ss:$16 sps:$4 sm:$0xff]  }
 0x44a   : > { %10772 = vmatpush1.bf16.msra.mxu1 %v16245_v8  ;;  %10798 = vmatprep.subr.bf16.mxu0 %v16256_v48  ;;  %v16277_v8 = vld [vmem:[%s17822_s13 + $0xb0c] ss:$16 sps:$4 sm:$0xff]   ;;  %v16278_v48 = vld [vmem:[%s17822_s13 + $0xc08] ss:$16 sps:$4 sm:$0xff]  }
 0x44b   : > { %10773 = vmatprep.subr.bf16.mxu1 %v16253_v26  ;;  %v16275_v26 = vld [vmem:[%s17822_s13 + $0xb08] ss:$16 sps:$4 sm:$0xff]  }
 0x44d   : > { %10799 = vmatpush1.bf16.msra.mxu0 %v16254_v43  ;;  %v16286_v43 = vld [vmem:[%s17822_s13 + $0xc2c] ss:$16 sps:$4 sm:$0xff]  }
 0x44e   : > { %10774 = vmatpush1.bf16.msra.mxu1 %v16251_v52  ;;  %10800 = vmatprep.subr.bf16.mxu0 %v16262_v15  ;;  %v16283_v52 = vld [vmem:[%s17822_s13 + $0xb2c] ss:$16 sps:$4 sm:$0xff]   ;;  %v16284_v15 = vld [vmem:[%s17822_s13 + $0xc28] ss:$16 sps:$4 sm:$0xff]  }
 0x44f   : > { %10775 = vmatprep.subr.bf16.mxu1 %v16259_v38  ;;  %v10455_v31 = vpop.f32.mrb[40].mxu0  ;;  %v16281_v38 = vld [vmem:[%s17822_s13 + $0xb28] ss:$16 sps:$4 sm:$0xff]  }
 0x450   : > { %v10496_v55 = vpop.f32.mrb[40].mxu1  ;;  %v10456_v45 = vadd.f32 %v10455_v31, %v19057_v34  ;;  %v10457_v7 = vpop.f32.mrb[41].mxu0  ;;  %v16271_v34 = vld [vmem:[%s17822_s13 + $0x9ec] ss:$16 sps:$4 sm:$0xff]  }
 0x451   : > { %v10498_v13 = vpop.f32.mrb[41].mxu1  ;;  %v10458_v9 = vadd.f32 %v10457_v7, %v19061_v22  ;;  %v10459_v33 = vpop.f32.mrb[42].mxu0  ;;  %10801 = vmatpush1.bf16.msra.mxu0 %v16260_v16  ;;  %v16274_v22 = vld [vmem:[%s17822_s13 + $0xaec] ss:$16 sps:$4 sm:$0xff]  }
 0x452   : > { %v10500_v17 = vpop.f32.mrb[42].mxu1  ;;  %10776 = vmatpush1.bf16.msra.mxu1 %v16257_v36  ;;  %v19131_v11 = vadd.f32 %v10496_v55, %v10456_v45  ;;  %v10460_v57 = vpop.f32.mrb[43].mxu0  ;;  %10802 = vmatprep.subr.bf16.mxu0 %v16268_v32  ;;  %v16289_v36 = vld [vmem:[%s17822_s13 + $0xb4c] ss:$16 sps:$4 sm:$0xff]   ;;  %v16293_v55 = vld [vmem:[%s17822_s13 + $0xb68] ss:$16 sps:$4 sm:$0xff]  }
 0x453   : > { %v10501_v25 = vpop.f32.mrb[43].mxu1  ;;  %10777 = vmatprep.subr.bf16.mxu1 %v16265_v10  ;;  %v19135_v18 = vadd.f32 %v10498_v13, %v10458_v9  ;;  %v16292_v16 = vld [vmem:[%s17822_s13 + $0xc4c] ss:$16 sps:$4 sm:$0xff]   ;;  %v16287_v10 = vld [vmem:[%s17822_s13 + $0xb48] ss:$16 sps:$4 sm:$0xff]  }
 0x454   : > { %v16295_v32 = vld [vmem:[%s17822_s13 + $0xb6c] ss:$16 sps:$4 sm:$0xff]   ;;  %v16296_v45 = vld [vmem:[%s17822_s13 + $0xc68] ss:$16 sps:$4 sm:$0xff]  }
 0x455   : > { %10803 = vmatpush1.bf16.msra.mxu0 %v16266_v37  ;;  %v16298_v31 = vld [vmem:[%s17822_s13 + $0xc6c] ss:$16 sps:$4 sm:$0xff]   ;;  %v16299_v13 = vld [vmem:[%s17822_s13 + $0xb88] ss:$16 sps:$4 sm:$0xff]  }
 0x456   : > { %10778 = vmatpush1.bf16.msra.mxu1 %v16263_v6  ;;  %10804 = vmatprep.subr.bf16.mxu0 %v16274_v22  ;;  %v16304_v7 = vld [vmem:[%s17822_s13 + $0xc8c] ss:$16 sps:$4 sm:$0xff]   ;;  %v16302_v9 = vld [vmem:[%s17822_s13 + $0xc88] ss:$16 sps:$4 sm:$0xff]  }
 0x457   : > { %10779 = vmatprep.subr.bf16.mxu1 %v16271_v34  ;;  %v16307_v33 = vld [vmem:[%s17822_s13 + $0xbac] ss:$16 sps:$4 sm:$0xff]   ;;  %v16305_v6 = vld [vmem:[%s17822_s13 + $0xba8] ss:$16 sps:$4 sm:$0xff]  }
 0x458   : > { %v16310_v17 = vld [vmem:[%s17822_s13 + $0xcac] ss:$16 sps:$4 sm:$0xff]   ;;  %v16308_v37 = vld [vmem:[%s17822_s13 + $0xca8] ss:$16 sps:$4 sm:$0xff]  }
 0x459   : > { %10805 = vmatpush1.bf16.msra.mxu0 %v16272_v14  ;;  %v16313_v57 = vld [vmem:[%s17822_s13 + $0xbcc] ss:$16 sps:$4 sm:$0xff]   ;;  %v16311_v14 = vld [vmem:[%s17822_s13 + $0xbc8] ss:$16 sps:$4 sm:$0xff]  }
 0x45a   : > { %10780 = vmatpush1.bf16.msra.mxu1 %v16269_v56  ;;  %10806 = vmatprep.subr.bf16.mxu0 %v16277_v8  ;;  %v16316_v25 = vld [vmem:[%s17822_s13 + $0xccc] ss:$16 sps:$4 sm:$0xff]   ;;  %v16314_v8 = vld [vmem:[%s17822_s13 + $0xcc8] ss:$16 sps:$4 sm:$0xff]  }
 0x45b   : > { %10831 = vmatprep.subr.bf16.mxu1 %v16280_v35 }
 0x45d   : > { %10782 = vmatmul.mubr.bf16.vlgmr.msra.gmra.mrb[56].mxu1 %v18102_v39  ;;  %10807 = vmatpush1.bf16.msra.mxu0 %v16275_v26  ;;  %v16290_v39 = vld [vmem:[%s17822_s13 + $0xc48] ss:$16 sps:$4 sm:$0xff]   ;;  %v16319_v26 = vld [vmem:[%s17822_s13 + $0xbec] ss:$16 sps:$4 sm:$0xff]  }
 0x45e   : > { %10832 = vmatpush1.bf16.msra.mxu1 %v16278_v48  ;;  %10808 = vmatprep.subr.bf16.mxu0 %v16283_v52  ;;  %v16322_v48 = vld [vmem:[%s17822_s13 + $0xcec] ss:$16 sps:$4 sm:$0xff]   ;;  %v16317_v52 = vld [vmem:[%s17822_s13 + $0xbe8] ss:$16 sps:$4 sm:$0xff]  }
 0x45f   : > { %10833 = vmatprep.subr.bf16.mxu1 %v16286_v43  ;;  %10863 = vmatprep.mubr.bf16.mxu1 %v18118_v23  ;;  %v16301_v23 = vld [vmem:[%s17822_s13 + $0xb8c] ss:$16 sps:$4 sm:$0xff]   ;;  %v16320_v43 = vld [vmem:[%s17822_s13 + $0xce8] ss:$16 sps:$4 sm:$0xff]  }
 0x461   : > { %10809 = vmatpush1.bf16.msra.mxu0 %v16281_v38  ;;  %v16325_v38 = vld [vmem:[%s17822_s13 + $0xd0c] ss:$16 sps:$4 sm:$0xff]  }
 0x462   : > { %10834 = vmatpush1.bf16.msra.mxu1 %v16284_v15  ;;  %10810 = vmatprep.subr.bf16.mxu0 %v16289_v36  ;;  %v16328_v15 = vld [vmem:[%s17822_s13 + $0xe0c] ss:$16 sps:$4 sm:$0xff]   ;;  %v16323_v36 = vld [vmem:[%s17822_s13 + $0xd08] ss:$16 sps:$4 sm:$0xff]  }
 0x463   : > { %10835 = vmatprep.subr.bf16.mxu1 %v16292_v16  ;;  %v16326_v16 = vld [vmem:[%s17822_s13 + $0xe08] ss:$16 sps:$4 sm:$0xff]  }
 0x465   : > { %10811 = vmatpush1.bf16.msra.mxu0 %v16287_v10  ;;  %v16331_v10 = vld [vmem:[%s17822_s13 + $0xd2c] ss:$16 sps:$4 sm:$0xff]  }
 0x466   : > { %10836 = vmatpush1.bf16.msra.mxu1 %v16290_v39  ;;  %10812 = vmatprep.subr.bf16.mxu0 %v16295_v32  ;;  %v16334_v39 = vld [vmem:[%s17822_s13 + $0xe2c] ss:$16 sps:$4 sm:$0xff]   ;;  %v16329_v32 = vld [vmem:[%s17822_s13 + $0xd28] ss:$16 sps:$4 sm:$0xff]  }
 0x467   : > { %10837 = vmatprep.subr.bf16.mxu1 %v16298_v31  ;;  %v16332_v31 = vld [vmem:[%s17822_s13 + $0xe28] ss:$16 sps:$4 sm:$0xff]  }
 0x469   : > { %10813 = vmatpush1.bf16.msra.mxu0 %v16293_v55  ;;  %v16337_v55 = vld [vmem:[%s17822_s13 + $0xd4c] ss:$16 sps:$4 sm:$0xff]  }
 0x46a   : > { %10838 = vmatpush1.bf16.msra.mxu1 %v16296_v45  ;;  %10814 = vmatprep.subr.bf16.mxu0 %v16301_v23  ;;  %v16340_v45 = vld [vmem:[%s17822_s13 + $0xe4c] ss:$16 sps:$4 sm:$0xff]   ;;  %v16335_v23 = vld [vmem:[%s17822_s13 + $0xd48] ss:$16 sps:$4 sm:$0xff]  }
 0x46b   : > { %10839 = vmatprep.subr.bf16.mxu1 %v16304_v7  ;;  %v16343_v7 = vld [vmem:[%s17822_s13 + $0xd6c] ss:$16 sps:$4 sm:$0xff]  }
 0x46d   : > { %10815 = vmatpush1.bf16.msra.mxu0 %v16299_v13  ;;  %v16346_v13 = vld [vmem:[%s17822_s13 + $0xe6c] ss:$16 sps:$4 sm:$0xff]  }
 0x46e   : > { %10840 = vmatpush1.bf16.msra.mxu1 %v16302_v9  ;;  %10816 = vmatprep.subr.bf16.mxu0 %v16307_v33  ;;  %v16341_v9 = vld [vmem:[%s17822_s13 + $0xd68] ss:$16 sps:$4 sm:$0xff]  }
 0x46f   : > { %10841 = vmatprep.subr.bf16.mxu1 %v16310_v17  ;;  %v16344_v33 = vld [vmem:[%s17822_s13 + $0xe68] ss:$16 sps:$4 sm:$0xff]   ;;  %v16352_v17 = vld [vmem:[%s17822_s13 + $0xe8c] ss:$16 sps:$4 sm:$0xff]  }
 0x470   : > { %v19167_v34 = vpop.f32.mrb[44].mxu1 }
 0x471   : > { %v19169_v22 = vpop.f32.mrb[45].mxu1  ;;  %10817 = vmatpush1.bf16.msra.mxu0 %v16305_v6  ;;  %v16347_v6 = vld [vmem:[%s17822_s13 + $0xd88] ss:$16 sps:$4 sm:$0xff]  }
 0x472   : > { %v10582_v56 = vpop.f32.mrb[46].mxu1  ;;  %10842 = vmatpush1.bf16.msra.mxu1 %v16308_v37  ;;  %10818 = vmatprep.subr.bf16.mxu0 %v16313_v57  ;;  %v16350_v37 = vld [vmem:[%s17822_s13 + $0xe88] ss:$16 sps:$4 sm:$0xff]   ;;  %v16355_v57 = vld [vmem:[%s17822_s13 + $0xdac] ss:$16 sps:$4 sm:$0xff]  }
 0x473   : > { %v10583_v35 = vpop.f32.mrb[47].mxu1  ;;  %10843 = vmatprep.subr.bf16.mxu1 %v16316_v25  ;;  %v16358_v25 = vld [vmem:[%s17822_s13 + $0xeac] ss:$16 sps:$4 sm:$0xff]   ;;  %v16353_v56 = vld [vmem:[%s17822_s13 + $0xda8] ss:$16 sps:$4 sm:$0xff]  }
 0x474   : > { %v16364_v35 = vld [vmem:[%s17822_s13 + $0xecc] ss:$16 sps:$4 sm:$0xff]  }
 0x475   : > { %10819 = vmatpush1.bf16.msra.mxu0 %v16311_v14  ;;  %v16356_v14 = vld [vmem:[%s17822_s13 + $0xea8] ss:$16 sps:$4 sm:$0xff]  }
 0x476   : > { %10844 = vmatpush1.bf16.msra.mxu1 %v16314_v8  ;;  %10820 = vmatprep.subr.bf16.mxu0 %v16319_v26  ;;  %v16361_v8 = vld [vmem:[%s17822_s13 + $0xdcc] ss:$16 sps:$4 sm:$0xff]  }
 0x477   : > { %10845 = vmatprep.subr.bf16.mxu1 %v16322_v48 }
 0x479   : > { %10821 = vmatpush1.bf16.msra.mxu0 %v16317_v52 }
 0x47a   : > { %10846 = vmatpush1.bf16.msra.mxu1 %v16320_v43  ;;  %10872 = vmatprep.subr.bf16.mxu0 %v16328_v15  ;;  %v384_v43 = vld [vmem:[#allocation2] sm:$0xff] }
 0x47b   : > { %10847 = vmatprep.subr.bf16.mxu1 %v16325_v38 }
 0x47c   : > { %10823 = vmatmul.mubr.bf16.vlgmr.msra.gmra.mrb[56].mxu0 %v18106_v40  ;;  %v16338_v40 = vld [vmem:[%s17822_s13 + $0xe48] ss:$16 sps:$4 sm:$0xff]  }
 0x47d   : > { %10873 = vmatpush1.bf16.msra.mxu0 %v16326_v16  ;;  %10904 = vmatprep.mubr.bf16.mxu0 %v18122_v24  ;;  %v16349_v24 = vld [vmem:[%s17822_s13 + $0xd8c] ss:$16 sps:$4 sm:$0xff]   ;;  %v16362_v16 = vld [vmem:[%s17822_s13 + $0xec8] ss:$16 sps:$4 sm:$0xff]  }
 0x47e   : > { %10848 = vmatpush1.bf16.msra.mxu1 %v16323_v36  ;;  %10874 = vmatprep.subr.bf16.mxu0 %v16334_v39  ;;  %v16359_v36 = vld [vmem:[%s17822_s13 + $0xdc8] ss:$16 sps:$4 sm:$0xff]  }
 0x47f   : > { %10849 = vmatprep.subr.bf16.mxu1 %v16331_v10  ;;  %v385_v39 = vld [vmem:[#allocation2 + $0x8] sm:$0xff] }
 0x481   : > { %10875 = vmatpush1.bf16.msra.mxu0 %v16332_v31  ;;  %v16370_v31 = vld [vmem:[%s17822_s13 + $0xeec] ss:$16 sps:$4 sm:$0xff]  }
 0x482   : > { %10850 = vmatpush1.bf16.msra.mxu1 %v16329_v32  ;;  %10876 = vmatprep.subr.bf16.mxu0 %v16340_v45 }
 0x483   : > { %10851 = vmatprep.subr.bf16.mxu1 %v16337_v55 }
 0x485   : > { %10877 = vmatpush1.bf16.msra.mxu0 %v16338_v40  ;;  %v16373_v40 = vld [vmem:[%s17822_s13 + $0xf0c] ss:$16 sps:$4 sm:$0xff]  }
 0x486   : > { %10852 = vmatpush1.bf16.msra.mxu1 %v16335_v23  ;;  %10878 = vmatprep.subr.bf16.mxu0 %v16346_v13  ;;  %v16365_v23 = vld [vmem:[%s17822_s13 + $0xde8] ss:$16 sps:$4 sm:$0xff]  }
 0x487   : > { %10853 = vmatprep.subr.bf16.mxu1 %v16343_v7  ;;  %v16376_v7 = vld [vmem:[%s17822_s13 + $0x100c] ss:$16 sps:$4 sm:$0xff]   ;;  %v16374_v13 = vld [vmem:[%s17822_s13 + $0x1008] ss:$16 sps:$4 sm:$0xff]  }
 0x489   : > { %10879 = vmatpush1.bf16.msra.mxu0 %v16344_v33  ;;  %v16382_v33 = vld [vmem:[%s17822_s13 + $0x102c] ss:$16 sps:$4 sm:$0xff]  }
 0x48a   : > { %10854 = vmatpush1.bf16.msra.mxu1 %v16341_v9  ;;  %10880 = vmatprep.subr.bf16.mxu0 %v16352_v17  ;;  %v16379_v9 = vld [vmem:[%s17822_s13 + $0xf2c] ss:$16 sps:$4 sm:$0xff]   ;;  %v16380_v17 = vld [vmem:[%s17822_s13 + $0x1028] ss:$16 sps:$4 sm:$0xff]  }
 0x48b   : > { %10855 = vmatprep.subr.bf16.mxu1 %v16349_v24  ;;  %v16377_v24 = vld [vmem:[%s17822_s13 + $0xf28] ss:$16 sps:$4 sm:$0xff]  }
 0x48d   : > { %10881 = vmatpush1.bf16.msra.mxu0 %v16350_v37  ;;  %v16388_v37 = vld [vmem:[%s17822_s13 + $0x104c] ss:$16 sps:$4 sm:$0xff]  }
 0x48e   : > { %10856 = vmatpush1.bf16.msra.mxu1 %v16347_v6  ;;  %10882 = vmatprep.subr.bf16.mxu0 %v16358_v25  ;;  %v16385_v6 = vld [vmem:[%s17822_s13 + $0xf4c] ss:$16 sps:$4 sm:$0xff]  }
 0x48f   : > { %10857 = vmatprep.subr.bf16.mxu1 %v16355_v57  ;;  %v10537_v26 = vpop.f32.mrb[44].mxu0  ;;  %v16383_v57 = vld [vmem:[%s17822_s13 + $0xf48] ss:$16 sps:$4 sm:$0xff]   ;;  %v16391_v25 = vld [vmem:[%s17822_s13 + $0xf6c] ss:$16 sps:$4 sm:$0xff]  }
 0x490   : > { %v10538_v48 = vadd.f32 %v10537_v26, %v19131_v11  ;;  %v10539_v52 = vpop.f32.mrb[45].mxu0  ;;  %v16367_v11 = vld [vmem:[%s17822_s13 + $0xdec] ss:$16 sps:$4 sm:$0xff]   ;;  %v16395_v26 = vld [vmem:[%s17822_s13 + $0xf88] ss:$16 sps:$4 sm:$0xff]  }
 0x491   : > { %v10540_v38 = vadd.f32 %v10539_v52, %v19135_v18  ;;  %v10541_v15 = vpop.f32.mrb[46].mxu0  ;;  %10883 = vmatpush1.bf16.msra.mxu0 %v16356_v14  ;;  %v16389_v14 = vld [vmem:[%s17822_s13 + $0xf68] ss:$16 sps:$4 sm:$0xff]   ;;  %v16403_v52 = vld [vmem:[%s17822_s13 + $0xfac] ss:$16 sps:$4 sm:$0xff]  }
 0x492   : > { %10858 = vmatpush1.bf16.msra.mxu1 %v16353_v56  ;;  %v10579_v10 = vadd.f32 %v19167_v34, %v10538_v48  ;;  %v10542_v32 = vpop.f32.mrb[47].mxu0  ;;  %10884 = vmatprep.subr.bf16.mxu0 %v16364_v35  ;;  %v16368_v34 = vld [vmem:[%s17822_s13 + $0xee8] ss:$16 sps:$4 sm:$0xff]   ;;  %v16394_v56 = vld [vmem:[%s17822_s13 + $0x106c] ss:$16 sps:$4 sm:$0xff]  }
 0x493   : > { %10859 = vmatprep.subr.bf16.mxu1 %v16361_v8  ;;  %v10581_v18 = vadd.f32 %v19169_v22, %v10540_v38  ;;  %v16371_v22 = vld [vmem:[%s17822_s13 + $0xf08] ss:$16 sps:$4 sm:$0xff]   ;;  %v16400_v35 = vld [vmem:[%s17822_s13 + $0x108c] ss:$16 sps:$4 sm:$0xff]  }
 0x494   : > { %v11569_v55 = vadd.f32 %v10579_v10, %v384_v43  ;;  %v16392_v8 = vld [vmem:[%s17822_s13 + $0x1068] ss:$16 sps:$4 sm:$0xff]   ;;  %v16406_v43 = vld [vmem:[%s17822_s13 + $0x10ac] ss:$16 sps:$4 sm:$0xff]  }
 0x495   : > { %v11570_v45 = vadd.f32 %v10581_v18, %v385_v39  ;;  %10885 = vmatpush1.bf16.msra.mxu0 %v16362_v16  ;;  %v16398_v48 = vld [vmem:[%s17822_s13 + $0x1088] ss:$16 sps:$4 sm:$0xff]   ;;  %v16412_v16 = vld [vmem:[%s17822_s13 + $0x10cc] ss:$16 sps:$4 sm:$0xff]  }
 0x496   : > { %10860 = vmatpush1.bf16.msra.mxu1 %v16359_v36  ;;  %11573 = vst [vmem:[#allocation2] sm:$0xff] %v11569_v55  ;;  %10886 = vmatprep.subr.bf16.mxu0 %v16370_v31  ;;  %v16401_v38 = vld [vmem:[%s17822_s13 + $0xfa8] ss:$16 sps:$4 sm:$0xff]   ;;  %v16409_v36 = vld [vmem:[%s17822_s13 + $0xfcc] ss:$16 sps:$4 sm:$0xff]  }
 0x497   : > { %10861 = vmatprep.subr.bf16.mxu1 %v16367_v11  ;;  %11574 = vst [vmem:[#allocation2 + $0x8] sm:$0xff] %v11570_v45  ;;  %v16404_v15 = vld [vmem:[%s17822_s13 + $0x10a8] ss:$16 sps:$4 sm:$0xff]   ;;  %v16415_v55 = vld [vmem:[%s17822_s13 + $0xfec] ss:$16 sps:$4 sm:$0xff]  }
 0x498   : > { %v16407_v11 = vld [vmem:[%s17822_s13 + $0xfc8] ss:$16 sps:$4 sm:$0xff]   ;;  %v16418_v45 = vld [vmem:[%s17822_s13 + $0x10ec] ss:$16 sps:$4 sm:$0xff]  }
 0x499   : > { %10887 = vmatpush1.bf16.msra.mxu0 %v16368_v34  ;;  %v16410_v31 = vld [vmem:[%s17822_s13 + $0x10c8] ss:$16 sps:$4 sm:$0xff]  }
 0x49a   : > { %10862 = vmatpush1.bf16.msra.mxu1 %v16365_v23  ;;  %10888 = vmatprep.subr.bf16.mxu0 %v16373_v40  ;;  %v16413_v23 = vld [vmem:[%s17822_s13 + $0xfe8] ss:$16 sps:$4 sm:$0xff]   ;;  %v16421_v40 = vld [vmem:[%s17822_s13 + $0x110c] ss:$16 sps:$4 sm:$0xff]  }
 0x49b   : > { %10913 = vmatprep.subr.bf16.mxu1 %v16376_v7  ;;  %v16416_v34 = vld [vmem:[%s17822_s13 + $0x10e8] ss:$16 sps:$4 sm:$0xff]   ;;  %v16424_v7 = vld [vmem:[%s17822_s13 + $0x120c] ss:$16 sps:$4 sm:$0xff]  }
 0x49d   : > { %10864 = vmatmul.mubr.bf16.vlgmr.msra.gmra.mrb[60].mxu1 %v18193_v60  ;;  %10889 = vmatpush1.bf16.msra.mxu0 %v16371_v22  ;;  %v16386_v60 = vld [vmem:[%s17822_s13 + $0x1048] ss:$16 sps:$4 sm:$0xff]  }
 0x49e   : > { %10914 = vmatpush1.bf16.msra.mxu1 %v16374_v13  ;;  %10890 = vmatprep.subr.bf16.mxu0 %v16379_v9  ;;  %v16419_v22 = vld [vmem:[%s17822_s13 + $0x1108] ss:$16 sps:$4 sm:$0xff]   ;;  %v16427_v9 = vld [vmem:[%s17822_s13 + $0x112c] ss:$16 sps:$4 sm:$0xff]  }
 0x49f   : > { %10915 = vmatprep.subr.bf16.mxu1 %v16382_v33  ;;  %10945 = vmatprep.mubr.bf16.mxu1 %v18208_v41  ;;  %v16397_v41 = vld [vmem:[%s17822_s13 + $0xf8c] ss:$16 sps:$4 sm:$0xff]   ;;  %v16422_v13 = vld [vmem:[%s17822_s13 + $0x1208] ss:$16 sps:$4 sm:$0xff]  }
 0x4a0   : > { %v16430_v33 = vld [vmem:[%s17822_s13 + $0x122c] ss:$16 sps:$4 sm:$0xff]  }
 0x4a1   : > { %10891 = vmatpush1.bf16.msra.mxu0 %v16377_v24  ;;  %v16425_v24 = vld [vmem:[%s17822_s13 + $0x1128] ss:$16 sps:$4 sm:$0xff]  }
 0x4a2   : > { %10916 = vmatpush1.bf16.msra.mxu1 %v16380_v17  ;;  %10892 = vmatprep.subr.bf16.mxu0 %v16385_v6  ;;  %v16428_v17 = vld [vmem:[%s17822_s13 + $0x1228] ss:$16 sps:$4 sm:$0xff]   ;;  %v16433_v6 = vld [vmem:[%s17822_s13 + $0x114c] ss:$16 sps:$4 sm:$0xff]  }
 0x4a3   : > { %10917 = vmatprep.subr.bf16.mxu1 %v16388_v37  ;;  %v16436_v37 = vld [vmem:[%s17822_s13 + $0x124c] ss:$16 sps:$4 sm:$0xff]  }
 0x4a5   : > { %10893 = vmatpush1.bf16.msra.mxu0 %v16383_v57  ;;  %v16431_v57 = vld [vmem:[%s17822_s13 + $0x1148] ss:$16 sps:$4 sm:$0xff]  }
 0x4a6   : > { %10918 = vmatpush1.bf16.msra.mxu1 %v16386_v60  ;;  %10894 = vmatprep.subr.bf16.mxu0 %v16391_v25  ;;  %v16439_v60 = vld [vmem:[%s17822_s13 + $0x116c] ss:$16 sps:$4 sm:$0xff]  }
 0x4a7   : > { %10919 = vmatprep.subr.bf16.mxu1 %v16394_v56  ;;  %v16442_v25 = vld [vmem:[%s17822_s13 + $0x126c] ss:$16 sps:$4 sm:$0xff]   ;;  %v16437_v56 = vld [vmem:[%s17822_s13 + $0x1168] ss:$16 sps:$4 sm:$0xff]  }
 0x4a9   : > { %10895 = vmatpush1.bf16.msra.mxu0 %v16389_v14  ;;  %v16440_v14 = vld [vmem:[%s17822_s13 + $0x1268] ss:$16 sps:$4 sm:$0xff]  }
 0x4aa   : > { %10920 = vmatpush1.bf16.msra.mxu1 %v16392_v8  ;;  %10896 = vmatprep.subr.bf16.mxu0 %v16397_v41  ;;  %v16448_v8 = vld [vmem:[%s17822_s13 + $0x128c] ss:$16 sps:$4 sm:$0xff]   ;;  %v16443_v41 = vld [vmem:[%s17822_s13 + $0x1188] ss:$16 sps:$4 sm:$0xff]  }
 0x4ab   : > { %10921 = vmatprep.subr.bf16.mxu1 %v16400_v35  ;;  %v16446_v35 = vld [vmem:[%s17822_s13 + $0x1288] ss:$16 sps:$4 sm:$0xff]  }
 0x4ad   : > { %10897 = vmatpush1.bf16.msra.mxu0 %v16395_v26  ;;  %v16451_v26 = vld [vmem:[%s17822_s13 + $0x11ac] ss:$16 sps:$4 sm:$0xff]  }
 0x4ae   : > { %10922 = vmatpush1.bf16.msra.mxu1 %v16398_v48  ;;  %10898 = vmatprep.subr.bf16.mxu0 %v16403_v52  ;;  %v16454_v48 = vld [vmem:[%s17822_s13 + $0x12ac] ss:$16 sps:$4 sm:$0xff]   ;;  %v16449_v52 = vld [vmem:[%s17822_s13 + $0x11a8] ss:$16 sps:$4 sm:$0xff]  }
 0x4af   : > { %10923 = vmatprep.subr.bf16.mxu1 %v16406_v43  ;;  %v16452_v43 = vld [vmem:[%s17822_s13 + $0x12a8] ss:$16 sps:$4 sm:$0xff]  }
 0x4b0   : > { %v19243_v10 = vpop.f32.mrb[48].mxu1 }
 0x4b1   : > { %v19245_v39 = vpop.f32.mrb[49].mxu1  ;;  %10899 = vmatpush1.bf16.msra.mxu0 %v16401_v38  ;;  %v16457_v38 = vld [vmem:[%s17822_s13 + $0x11cc] ss:$16 sps:$4 sm:$0xff]  }
 0x4b2   : > { %v10623_v32 = vpop.f32.mrb[50].mxu1  ;;  %10924 = vmatpush1.bf16.msra.mxu1 %v16404_v15  ;;  %10900 = vmatprep.subr.bf16.mxu0 %v16409_v36  ;;  %v16460_v15 = vld [vmem:[%s17822_s13 + $0x12cc] ss:$16 sps:$4 sm:$0xff]  }
 0x4b3   : > { %v10624_v18 = vpop.f32.mrb[51].mxu1  ;;  %10925 = vmatprep.subr.bf16.mxu1 %v16412_v16 }
 0x4b4   : > { %v16455_v18 = vld [vmem:[%s17822_s13 + $0x11c8] ss:$16 sps:$4 sm:$0xff]  }
 0x4b5   : > { %10901 = vmatpush1.bf16.msra.mxu0 %v16407_v11 }
 0x4b6   : > { %10926 = vmatpush1.bf16.msra.mxu1 %v16410_v31  ;;  %10902 = vmatprep.subr.bf16.mxu0 %v16415_v55  ;;  %v16458_v55 = vld [vmem:[%s17822_s13 + $0x12c8] ss:$16 sps:$4 sm:$0xff]  }
 0x4b7   : > { %10927 = vmatprep.subr.bf16.mxu1 %v16418_v45 }
 0x4b9   : > { %10903 = vmatpush1.bf16.msra.mxu0 %v16413_v23  ;;  %v16463_v23 = vld [vmem:[%s17822_s13 + $0x11ec] ss:$16 sps:$4 sm:$0xff]  }
 0x4ba   : > { %10928 = vmatpush1.bf16.msra.mxu1 %v16416_v34  ;;  %10954 = vmatprep.subr.bf16.mxu0 %v16424_v7  ;;  %v16464_v34 = vld [vmem:[%s17822_s13 + $0x12e8] ss:$16 sps:$4 sm:$0xff]   ;;  %v16472_v7 = vld [vmem:[%s17822_s13 + $0x140c] ss:$16 sps:$4 sm:$0xff]  }
 0x4bb   : > { %10929 = vmatprep.subr.bf16.mxu1 %v16421_v40  ;;  %v16469_v40 = vld [vmem:[%s17822_s13 + $0x130c] ss:$16 sps:$4 sm:$0xff]  }
 0x4bc   : > { %10905 = vmatmul.mubr.bf16.vlgmr.msra.gmra.mrb[60].mxu0 %v18197_v61  ;;  %v16434_v61 = vld [vmem:[%s17822_s13 + $0x1248] ss:$16 sps:$4 sm:$0xff]  }
 0x4bd   : > { %10955 = vmatpush1.bf16.msra.mxu0 %v16422_v13  ;;  %10986 = vmatprep.mubr.bf16.mxu0 %v18212_v42  ;;  %v16445_v42 = vld [vmem:[%s17822_s13 + $0x118c] ss:$16 sps:$4 sm:$0xff]   ;;  %v16470_v13 = vld [vmem:[%s17822_s13 + $0x1408] ss:$16 sps:$4 sm:$0xff]  }
 0x4be   : > { %10930 = vmatpush1.bf16.msra.mxu1 %v16419_v22  ;;  %10956 = vmatprep.subr.bf16.mxu0 %v16430_v33  ;;  %v16467_v22 = vld [vmem:[%s17822_s13 + $0x1308] ss:$16 sps:$4 sm:$0xff]   ;;  %v16478_v33 = vld [vmem:[%s17822_s13 + $0x142c] ss:$16 sps:$4 sm:$0xff]  }
 0x4bf   : > { %10931 = vmatprep.subr.bf16.mxu1 %v16427_v9  ;;  %v16475_v9 = vld [vmem:[%s17822_s13 + $0x132c] ss:$16 sps:$4 sm:$0xff]  }
 0x4c1   : > { %10957 = vmatpush1.bf16.msra.mxu0 %v16428_v17  ;;  %v16476_v17 = vld [vmem:[%s17822_s13 + $0x1428] ss:$16 sps:$4 sm:$0xff]  }
 0x4c2   : > { %10932 = vmatpush1.bf16.msra.mxu1 %v16425_v24  ;;  %10958 = vmatprep.subr.bf16.mxu0 %v16436_v37  ;;  %v16473_v24 = vld [vmem:[%s17822_s13 + $0x1328] ss:$16 sps:$4 sm:$0xff]   ;;  %v16484_v37 = vld [vmem:[%s17822_s13 + $0x144c] ss:$16 sps:$4 sm:$0xff]  }
 0x4c3   : > { %10933 = vmatprep.subr.bf16.mxu1 %v16433_v6  ;;  %v16481_v6 = vld [vmem:[%s17822_s13 + $0x134c] ss:$16 sps:$4 sm:$0xff]  }
 0x4c5   : > { %10959 = vmatpush1.bf16.msra.mxu0 %v16434_v61  ;;  %v16487_v61 = vld [vmem:[%s17822_s13 + $0x136c] ss:$16 sps:$4 sm:$0xff]  }
 0x4c6   : > { %10934 = vmatpush1.bf16.msra.mxu1 %v16431_v57  ;;  %10960 = vmatprep.subr.bf16.mxu0 %v16442_v25  ;;  %v16479_v57 = vld [vmem:[%s17822_s13 + $0x1348] ss:$16 sps:$4 sm:$0xff]  }
 0x4c7   : > { %10935 = vmatprep.subr.bf16.mxu1 %v16439_v60  ;;  %v16490_v60 = vld [vmem:[%s17822_s13 + $0x146c] ss:$16 sps:$4 sm:$0xff]   ;;  %v16485_v25 = vld [vmem:[%s17822_s13 + $0x1368] ss:$16 sps:$4 sm:$0xff]  }
 0x4c9   : > { %10961 = vmatpush1.bf16.msra.mxu0 %v16440_v14  ;;  %v16496_v14 = vld [vmem:[%s17822_s13 + $0x148c] ss:$16 sps:$4 sm:$0xff]  }
 0x4ca   : > { %10936 = vmatpush1.bf16.msra.mxu1 %v16437_v56  ;;  %10962 = vmatprep.subr.bf16.mxu0 %v16448_v8  ;;  %v16488_v56 = vld [vmem:[%s17822_s13 + $0x1468] ss:$16 sps:$4 sm:$0xff]  }
 0x4cb   : > { %10937 = vmatprep.subr.bf16.mxu1 %v16445_v42  ;;  %v16491_v42 = vld [vmem:[%s17822_s13 + $0x1388] ss:$16 sps:$4 sm:$0xff]  }
 0x4cc   : > { %v16494_v8 = vld [vmem:[%s17822_s13 + $0x1488] ss:$16 sps:$4 sm:$0xff]  }
 0x4cd   : > { %10963 = vmatpush1.bf16.msra.mxu0 %v16446_v35  ;;  %v16502_v35 = vld [vmem:[%s17822_s13 + $0x14ac] ss:$16 sps:$4 sm:$0xff]  }
 0x4ce   : > { %10938 = vmatpush1.bf16.msra.mxu1 %v16443_v41  ;;  %10964 = vmatprep.subr.bf16.mxu0 %v16454_v48  ;;  %v16499_v41 = vld [vmem:[%s17822_s13 + $0x13ac] ss:$16 sps:$4 sm:$0xff]   ;;  %v16500_v48 = vld [vmem:[%s17822_s13 + $0x14a8] ss:$16 sps:$4 sm:$0xff]  }
 0x4cf   : > { %10939 = vmatprep.subr.bf16.mxu1 %v16451_v26  ;;  %v10660_v36 = vpop.f32.mrb[48].mxu0  ;;  %v16497_v26 = vld [vmem:[%s17822_s13 + $0x13a8] ss:$16 sps:$4 sm:$0xff]  }
 0x4d0   : > { %v19282_v16 = vadd.f32 %v10660_v36, %v19243_v10  ;;  %v10662_v32 = vpop.f32.mrb[49].mxu0  ;;  %v16466_v10 = vld [vmem:[%s17822_s13 + $0x12ec] ss:$16 sps:$4 sm:$0xff]  }
 0x4d1   : > { %v19285_v11 = vadd.f32 %v10662_v32, %v19245_v39  ;;  %v10664_v31 = vpop.f32.mrb[50].mxu0  ;;  %10965 = vmatpush1.bf16.msra.mxu0 %v16452_v43  ;;  %v16461_v39 = vld [vmem:[%s17822_s13 + $0x11e8] ss:$16 sps:$4 sm:$0xff]   ;;  %v16508_v43 = vld [vmem:[%s17822_s13 + $0x14cc] ss:$16 sps:$4 sm:$0xff]  }
 0x4d2   : > { %10940 = vmatpush1.bf16.msra.mxu1 %v16449_v52  ;;  %v10665_v45 = vpop.f32.mrb[51].mxu0  ;;  %10966 = vmatprep.subr.bf16.mxu0 %v16460_v15  ;;  %v16505_v52 = vld [vmem:[%s17822_s13 + $0x13cc] ss:$16 sps:$4 sm:$0xff]  }
 0x4d3   : > { %10941 = vmatprep.subr.bf16.mxu1 %v16457_v38 }
 0x4d5   : > { %10967 = vmatpush1.bf16.msra.mxu0 %v16458_v55  ;;  %v16506_v55 = vld [vmem:[%s17822_s13 + $0x14c8] ss:$16 sps:$4 sm:$0xff]  }
 0x4d6   : > { %10942 = vmatpush1.bf16.msra.mxu1 %v16455_v18  ;;  %10968 = vmatprep.subr.bf16.mxu0 %v16466_v10  ;;  %v16503_v18 = vld [vmem:[%s17822_s13 + $0x13c8] ss:$16 sps:$4 sm:$0xff]  }
 0x4d7   : > { %10943 = vmatprep.subr.bf16.mxu1 %v16463_v23  ;;  %v16511_v23 = vld [vmem:[%s17822_s13 + $0x13ec] ss:$16 sps:$4 sm:$0xff]   ;;  %v16512_v10 = vld [vmem:[%s17822_s13 + $0x14e8] ss:$16 sps:$4 sm:$0xff]  }
 0x4d9   : > { %10969 = vmatpush1.bf16.msra.mxu0 %v16464_v34  ;;  %v16520_v34 = vld [vmem:[%s17822_s13 + $0x160c] ss:$16 sps:$4 sm:$0xff]  }
 0x4da   : > { %10944 = vmatpush1.bf16.msra.mxu1 %v16461_v39  ;;  %10970 = vmatprep.subr.bf16.mxu0 %v16469_v40  ;;  %v16517_v39 = vld [vmem:[%s17822_s13 + $0x150c] ss:$16 sps:$4 sm:$0xff]   ;;  %v16515_v40 = vld [vmem:[%s17822_s13 + $0x1508] ss:$16 sps:$4 sm:$0xff]  }
 0x4db   : > { %10995 = vmatprep.subr.bf16.mxu1 %v16472_v7  ;;  %v16518_v7 = vld [vmem:[%s17822_s13 + $0x1608] ss:$16 sps:$4 sm:$0xff]  }
 0x4dd   : > { %10946 = vmatmul.mubr.bf16.vlgmr.msra.gmra.mrb[64].mxu1 %v18286_v47  ;;  %10971 = vmatpush1.bf16.msra.mxu0 %v16467_v22  ;;  %v16482_v47 = vld [vmem:[%s17822_s13 + $0x1448] ss:$16 sps:$4 sm:$0xff]   ;;  %v16523_v22 = vld [vmem:[%s17822_s13 + $0x152c] ss:$16 sps:$4 sm:$0xff]  }
 0x4de   : > { %10996 = vmatpush1.bf16.msra.mxu1 %v16470_v13  ;;  %10972 = vmatprep.subr.bf16.mxu0 %v16475_v9  ;;  %v16526_v13 = vld [vmem:[%s17822_s13 + $0x162c] ss:$16 sps:$4 sm:$0xff]   ;;  %v16521_v9 = vld [vmem:[%s17822_s13 + $0x1528] ss:$16 sps:$4 sm:$0xff]  }
 0x4df   : > { %10997 = vmatprep.subr.bf16.mxu1 %v16478_v33  ;;  %11027 = vmatprep.mubr.bf16.mxu1 %v18302_v59  ;;  %v16493_v59 = vld [vmem:[%s17822_s13 + $0x138c] ss:$16 sps:$4 sm:$0xff]   ;;  %v16524_v33 = vld [vmem:[%s17822_s13 + $0x1628] ss:$16 sps:$4 sm:$0xff]  }
 0x4e1   : > { %10973 = vmatpush1.bf16.msra.mxu0 %v16473_v24  ;;  %v16529_v24 = vld [vmem:[%s17822_s13 + $0x154c] ss:$16 sps:$4 sm:$0xff]  }
 0x4e2   : > { %10998 = vmatpush1.bf16.msra.mxu1 %v16476_v17  ;;  %10974 = vmatprep.subr.bf16.mxu0 %v16481_v6  ;;  %v16532_v17 = vld [vmem:[%s17822_s13 + $0x164c] ss:$16 sps:$4 sm:$0xff]   ;;  %v16527_v6 = vld [vmem:[%s17822_s13 + $0x1548] ss:$16 sps:$4 sm:$0xff]  }
 0x4e3   : > { %10999 = vmatprep.subr.bf16.mxu1 %v16484_v37  ;;  %v16535_v37 = vld [vmem:[%s17822_s13 + $0x156c] ss:$16 sps:$4 sm:$0xff]  }
 0x4e5   : > { %10975 = vmatpush1.bf16.msra.mxu0 %v16479_v57  ;;  %v16538_v57 = vld [vmem:[%s17822_s13 + $0x166c] ss:$16 sps:$4 sm:$0xff]  }
 0x4e6   : > { %11000 = vmatpush1.bf16.msra.mxu1 %v16482_v47  ;;  %10976 = vmatprep.subr.bf16.mxu0 %v16487_v61  ;;  %v16533_v47 = vld [vmem:[%s17822_s13 + $0x1568] ss:$16 sps:$4 sm:$0xff]  }
 0x4e7   : > { %11001 = vmatprep.subr.bf16.mxu1 %v16490_v60  ;;  %v16536_v61 = vld [vmem:[%s17822_s13 + $0x1668] ss:$16 sps:$4 sm:$0xff]   ;;  %v16544_v60 = vld [vmem:[%s17822_s13 + $0x168c] ss:$16 sps:$4 sm:$0xff]  }
 0x4e9   : > { %10977 = vmatpush1.bf16.msra.mxu0 %v16485_v25  ;;  %v16539_v25 = vld [vmem:[%s17822_s13 + $0x1588] ss:$16 sps:$4 sm:$0xff]  }
 0x4ea   : > { %11002 = vmatpush1.bf16.msra.mxu1 %v16488_v56  ;;  %10978 = vmatprep.subr.bf16.mxu0 %v16493_v59  ;;  %v16542_v56 = vld [vmem:[%s17822_s13 + $0x1688] ss:$16 sps:$4 sm:$0xff]   ;;  %v16547_v59 = vld [vmem:[%s17822_s13 + $0x15ac] ss:$16 sps:$4 sm:$0xff]  }
 0x4eb   : > { %11003 = vmatprep.subr.bf16.mxu1 %v16496_v14  ;;  %v16550_v14 = vld [vmem:[%s17822_s13 + $0x16ac] ss:$16 sps:$4 sm:$0xff]  }
 0x4ed   : > { %10979 = vmatpush1.bf16.msra.mxu0 %v16491_v42  ;;  %v16545_v42 = vld [vmem:[%s17822_s13 + $0x15a8] ss:$16 sps:$4 sm:$0xff]  }
 0x4ee   : > { %11004 = vmatpush1.bf16.msra.mxu1 %v16494_v8  ;;  %10980 = vmatprep.subr.bf16.mxu0 %v16499_v41  ;;  %v16548_v8 = vld [vmem:[%s17822_s13 + $0x16a8] ss:$16 sps:$4 sm:$0xff]   ;;  %v16553_v41 = vld [vmem:[%s17822_s13 + $0x15cc] ss:$16 sps:$4 sm:$0xff]  }
 0x4ef   : > { %11005 = vmatprep.subr.bf16.mxu1 %v16502_v35  ;;  %v16556_v35 = vld [vmem:[%s17822_s13 + $0x16cc] ss:$16 sps:$4 sm:$0xff]  }
 0x4f0   : > { %v10701_v38 = vpop.f32.mrb[52].mxu1 }
 0x4f1   : > { %v19322_v15 = vadd.f32 %v10701_v38, %v19282_v16  ;;  %v10703_v36 = vpop.f32.mrb[53].mxu1  ;;  %10981 = vmatpush1.bf16.msra.mxu0 %v16497_v26  ;;  %v16514_v16 = vld [vmem:[%s17822_s13 + $0x14ec] ss:$16 sps:$4 sm:$0xff]  }
 0x4f2   : > { %v19325_v32 = vadd.f32 %v10703_v36, %v19285_v11  ;;  %v10705_v31 = vpop.f32.mrb[54].mxu1  ;;  %11006 = vmatpush1.bf16.msra.mxu1 %v16500_v48  ;;  %10982 = vmatprep.subr.bf16.mxu0 %v16505_v52  ;;  %v16509_v11 = vld [vmem:[%s17822_s13 + $0x13e8] ss:$16 sps:$4 sm:$0xff]  }
 0x4f3   : > { %v10706_v45 = vpop.f32.mrb[55].mxu1  ;;  %11007 = vmatprep.subr.bf16.mxu1 %v16508_v43  ;;  %v16551_v36 = vld [vmem:[%s17822_s13 + $0x15c8] ss:$16 sps:$4 sm:$0xff]  }
 0x4f4   : > { %v16554_v31 = vld [vmem:[%s17822_s13 + $0x16c8] ss:$16 sps:$4 sm:$0xff]  }
 0x4f5   : > { %10983 = vmatpush1.bf16.msra.mxu0 %v16503_v18  ;;  %v16560_v45 = vld [vmem:[%s17822_s13 + $0x16e8] ss:$16 sps:$4 sm:$0xff]  }
 0x4f6   : > { %11008 = vmatpush1.bf16.msra.mxu1 %v16506_v55  ;;  %10984 = vmatprep.subr.bf16.mxu0 %v16511_v23  ;;  %v16559_v55 = vld [vmem:[%s17822_s13 + $0x15ec] ss:$16 sps:$4 sm:$0xff]  }
 0x4f7   : > { %11009 = vmatprep.subr.bf16.mxu1 %v16514_v16  ;;  %v16565_v23 = vld [vmem:[%s17822_s13 + $0x170c] ss:$16 sps:$4 sm:$0xff]  }
 0x4f8   : > { %v16568_v16 = vld [vmem:[%s17822_s13 + $0x180c] ss:$16 sps:$4 sm:$0xff]  }
 0x4f9   : > { %10985 = vmatpush1.bf16.msra.mxu0 %v16509_v11  ;;  %v16563_v11 = vld [vmem:[%s17822_s13 + $0x1708] ss:$16 sps:$4 sm:$0xff]  }
 0x4fa   : > { %11010 = vmatpush1.bf16.msra.mxu1 %v16512_v10  ;;  %11036 = vmatprep.subr.bf16.mxu0 %v16520_v34  ;;  %v16566_v10 = vld [vmem:[%s17822_s13 + $0x1808] ss:$16 sps:$4 sm:$0xff]   ;;  %v16574_v34 = vld [vmem:[%s17822_s13 + $0x182c] ss:$16 sps:$4 sm:$0xff]  }
 0x4fb   : > { %11011 = vmatprep.subr.bf16.mxu1 %v16517_v39  ;;  %v16571_v39 = vld [vmem:[%s17822_s13 + $0x172c] ss:$16 sps:$4 sm:$0xff]  }
 0x4fc   : > { %10987 = vmatmul.mubr.bf16.vlgmr.msra.gmra.mrb[64].mxu0 %v18290_v49  ;;  %v16530_v49 = vld [vmem:[%s17822_s13 + $0x1648] ss:$16 sps:$4 sm:$0xff]  }
 0x4fd   : > { %11037 = vmatpush1.bf16.msra.mxu0 %v16518_v7  ;;  %11068 = vmatprep.mubr.bf16.mxu0 %v18306_v62  ;;  %v16541_v62 = vld [vmem:[%s17822_s13 + $0x158c] ss:$16 sps:$4 sm:$0xff]   ;;  %v16572_v7 = vld [vmem:[%s17822_s13 + $0x1828] ss:$16 sps:$4 sm:$0xff]  }
 0x4fe   : > { %11012 = vmatpush1.bf16.msra.mxu1 %v16515_v40  ;;  %11038 = vmatprep.subr.bf16.mxu0 %v16526_v13  ;;  %v16569_v40 = vld [vmem:[%s17822_s13 + $0x1728] ss:$16 sps:$4 sm:$0xff]   ;;  %v16580_v13 = vld [vmem:[%s17822_s13 + $0x184c] ss:$16 sps:$4 sm:$0xff]  }
 0x4ff   : > { %11013 = vmatprep.subr.bf16.mxu1 %v16523_v22  ;;  %v16577_v22 = vld [vmem:[%s17822_s13 + $0x174c] ss:$16 sps:$4 sm:$0xff]  }
 0x501   : > { %11039 = vmatpush1.bf16.msra.mxu0 %v16524_v33  ;;  %v16583_v33 = vld [vmem:[%s17822_s13 + $0x176c] ss:$16 sps:$4 sm:$0xff]  }
 0x502   : > { %11014 = vmatpush1.bf16.msra.mxu1 %v16521_v9  ;;  %11040 = vmatprep.subr.bf16.mxu0 %v16532_v17  ;;  %v16575_v9 = vld [vmem:[%s17822_s13 + $0x1748] ss:$16 sps:$4 sm:$0xff]  }
 0x503   : > { %11015 = vmatprep.subr.bf16.mxu1 %v16529_v24  ;;  %v16586_v24 = vld [vmem:[%s17822_s13 + $0x186c] ss:$16 sps:$4 sm:$0xff]   ;;  %v16581_v17 = vld [vmem:[%s17822_s13 + $0x1768] ss:$16 sps:$4 sm:$0xff]  }
 0x505   : > { %11041 = vmatpush1.bf16.msra.mxu0 %v16530_v49  ;;  %v16592_v49 = vld [vmem:[%s17822_s13 + $0x188c] ss:$16 sps:$4 sm:$0xff]  }
 0x506   : > { %11016 = vmatpush1.bf16.msra.mxu1 %v16527_v6  ;;  %11042 = vmatprep.subr.bf16.mxu0 %v16538_v57  ;;  %v16584_v6 = vld [vmem:[%s17822_s13 + $0x1868] ss:$16 sps:$4 sm:$0xff]  }
 0x507   : > { %11017 = vmatprep.subr.bf16.mxu1 %v16535_v37  ;;  %v16587_v37 = vld [vmem:[%s17822_s13 + $0x1788] ss:$16 sps:$4 sm:$0xff]  }
 0x508   : > { %v16590_v57 = vld [vmem:[%s17822_s13 + $0x1888] ss:$16 sps:$4 sm:$0xff]  }
 0x509   : > { %11043 = vmatpush1.bf16.msra.mxu0 %v16536_v61  ;;  %v16598_v61 = vld [vmem:[%s17822_s13 + $0x18ac] ss:$16 sps:$4 sm:$0xff]  }
 0x50a   : > { %11018 = vmatpush1.bf16.msra.mxu1 %v16533_v47  ;;  %11044 = vmatprep.subr.bf16.mxu0 %v16544_v60  ;;  %v16595_v47 = vld [vmem:[%s17822_s13 + $0x17ac] ss:$16 sps:$4 sm:$0xff]   ;;  %v16596_v60 = vld [vmem:[%s17822_s13 + $0x18a8] ss:$16 sps:$4 sm:$0xff]  }
 0x50b   : > { %11019 = vmatprep.subr.bf16.mxu1 %v16541_v62  ;;  %v16593_v62 = vld [vmem:[%s17822_s13 + $0x17a8] ss:$16 sps:$4 sm:$0xff]  }
 0x50d   : > { %11045 = vmatpush1.bf16.msra.mxu0 %v16542_v56  ;;  %v16604_v56 = vld [vmem:[%s17822_s13 + $0x18cc] ss:$16 sps:$4 sm:$0xff]  }
 0x50e   : > { %11020 = vmatpush1.bf16.msra.mxu1 %v16539_v25  ;;  %11046 = vmatprep.subr.bf16.mxu0 %v16550_v14  ;;  %v16601_v25 = vld [vmem:[%s17822_s13 + $0x17cc] ss:$16 sps:$4 sm:$0xff]  }
 0x50f   : > { %11021 = vmatprep.subr.bf16.mxu1 %v16547_v59  ;;  %v10742_v26 = vpop.f32.mrb[52].mxu0 }
 0x510   : > { %v19362_v48 = vadd.f32 %v10742_v26, %v19322_v15  ;;  %v10744_v52 = vpop.f32.mrb[53].mxu0  ;;  %v16562_v15 = vld [vmem:[%s17822_s13 + $0x16ec] ss:$16 sps:$4 sm:$0xff]   ;;  %v16602_v26 = vld [vmem:[%s17822_s13 + $0x18c8] ss:$16 sps:$4 sm:$0xff]  }
 0x511   : > { %v19365_v43 = vadd.f32 %v10744_v52, %v19325_v32  ;;  %v10746_v38 = vpop.f32.mrb[54].mxu0  ;;  %11047 = vmatpush1.bf16.msra.mxu0 %v16548_v8  ;;  %v16557_v32 = vld [vmem:[%s17822_s13 + $0x15e8] ss:$16 sps:$4 sm:$0xff]  }
 0x512   : > { %11022 = vmatpush1.bf16.msra.mxu1 %v16545_v42  ;;  %v10747_v18 = vpop.f32.mrb[55].mxu0  ;;  %11048 = vmatprep.subr.bf16.mxu0 %v16556_v35  ;;  %v16599_v35 = vld [vmem:[%s17822_s13 + $0x17c8] ss:$16 sps:$4 sm:$0xff]   ;;  %v16607_v38 = vld [vmem:[%s17822_s13 + $0x17ec] ss:$16 sps:$4 sm:$0xff]  }
 0x513   : > { %11023 = vmatprep.subr.bf16.mxu1 %v16553_v41  ;;  %v16616_v18 = vld [vmem:[%s17822_s13 + $0x1a0c] ss:$16 sps:$4 sm:$0xff]  }
 0x515   : > { %11049 = vmatpush1.bf16.msra.mxu0 %v16554_v31  ;;  %v16613_v31 = vld [vmem:[%s17822_s13 + $0x190c] ss:$16 sps:$4 sm:$0xff]  }
 0x516   : > { %11024 = vmatpush1.bf16.msra.mxu1 %v16551_v36  ;;  %11050 = vmatprep.subr.bf16.mxu0 %v16562_v15  ;;  %v16608_v36 = vld [vmem:[%s17822_s13 + $0x18e8] ss:$16 sps:$4 sm:$0xff]  }
 0x517   : > { %11025 = vmatprep.subr.bf16.mxu1 %v16559_v55  ;;  %v16611_v55 = vld [vmem:[%s17822_s13 + $0x1908] ss:$16 sps:$4 sm:$0xff]  }
 0x518   : > { %v16614_v15 = vld [vmem:[%s17822_s13 + $0x1a08] ss:$16 sps:$4 sm:$0xff]  }
 0x519   : > { %11051 = vmatpush1.bf16.msra.mxu0 %v16560_v45  ;;  %v16622_v45 = vld [vmem:[%s17822_s13 + $0x1a2c] ss:$16 sps:$4 sm:$0xff]  }
 0x51a   : > { %11026 = vmatpush1.bf16.msra.mxu1 %v16557_v32  ;;  %11052 = vmatprep.subr.bf16.mxu0 %v16565_v23  ;;  %v16619_v32 = vld [vmem:[%s17822_s13 + $0x192c] ss:$16 sps:$4 sm:$0xff]   ;;  %v16617_v23 = vld [vmem:[%s17822_s13 + $0x1928] ss:$16 sps:$4 sm:$0xff]  }
 0x51b   : > { %11077 = vmatprep.subr.bf16.mxu1 %v16568_v16  ;;  %v16620_v16 = vld [vmem:[%s17822_s13 + $0x1a28] ss:$16 sps:$4 sm:$0xff]  }
 0x51d   : > { %11028 = vmatmul.mubr.bf16.vlgmr.msra.gmra.mrb[68].mxu1 %v18382_v44  ;;  %11053 = vmatpush1.bf16.msra.mxu0 %v16563_v11  ;;  %v16578_v44 = vld [vmem:[%s17822_s13 + $0x1848] ss:$16 sps:$4 sm:$0xff]   ;;  %v16625_v11 = vld [vmem:[%s17822_s13 + $0x194c] ss:$16 sps:$4 sm:$0xff]  }
 0x51e   : > { %11078 = vmatpush1.bf16.msra.mxu1 %v16566_v10  ;;  %11054 = vmatprep.subr.bf16.mxu0 %v16571_v39  ;;  %v16628_v10 = vld [vmem:[%s17822_s13 + $0x1a4c] ss:$16 sps:$4 sm:$0xff]   ;;  %v16623_v39 = vld [vmem:[%s17822_s13 + $0x1948] ss:$16 sps:$4 sm:$0xff]  }
 0x51f   : > { %11079 = vmatprep.subr.bf16.mxu1 %v16574_v34  ;;  %11109 = vmatprep.mubr.bf16.mxu1 %v18398_v50  ;;  %v16589_v50 = vld [vmem:[%s17822_s13 + $0x178c] ss:$16 sps:$4 sm:$0xff]  }
 0x520   : > { %v16631_v34 = vld [vmem:[%s17822_s13 + $0x196c] ss:$16 sps:$4 sm:$0xff]  }
 0x521   : > { %11055 = vmatpush1.bf16.msra.mxu0 %v16569_v40  ;;  %v16634_v40 = vld [vmem:[%s17822_s13 + $0x1a6c] ss:$16 sps:$4 sm:$0xff]  }
 0x522   : > { %11080 = vmatpush1.bf16.msra.mxu1 %v16572_v7  ;;  %11056 = vmatprep.subr.bf16.mxu0 %v16577_v22  ;;  %v16629_v7 = vld [vmem:[%s17822_s13 + $0x1968] ss:$16 sps:$4 sm:$0xff]  }
 0x523   : > { %11081 = vmatprep.subr.bf16.mxu1 %v16580_v13  ;;  %v16632_v22 = vld [vmem:[%s17822_s13 + $0x1a68] ss:$16 sps:$4 sm:$0xff]   ;;  %v16640_v13 = vld [vmem:[%s17822_s13 + $0x1a8c] ss:$16 sps:$4 sm:$0xff]  }
 0x525   : > { %11057 = vmatpush1.bf16.msra.mxu0 %v16575_v9  ;;  %v16635_v9 = vld [vmem:[%s17822_s13 + $0x1988] ss:$16 sps:$4 sm:$0xff]  }
 0x526   : > { %11082 = vmatpush1.bf16.msra.mxu1 %v16578_v44  ;;  %11058 = vmatprep.subr.bf16.mxu0 %v16583_v33  ;;  %v16638_v44 = vld [vmem:[%s17822_s13 + $0x1a88] ss:$16 sps:$4 sm:$0xff]   ;;  %v16643_v33 = vld [vmem:[%s17822_s13 + $0x19ac] ss:$16 sps:$4 sm:$0xff]  }
 0x527   : > { %11083 = vmatprep.subr.bf16.mxu1 %v16586_v24  ;;  %v16646_v24 = vld [vmem:[%s17822_s13 + $0x1aac] ss:$16 sps:$4 sm:$0xff]  }
 0x529   : > { %11059 = vmatpush1.bf16.msra.mxu0 %v16581_v17  ;;  %v16641_v17 = vld [vmem:[%s17822_s13 + $0x19a8] ss:$16 sps:$4 sm:$0xff]  }
 0x52a   : > { %11084 = vmatpush1.bf16.msra.mxu1 %v16584_v6  ;;  %11060 = vmatprep.subr.bf16.mxu0 %v16589_v50  ;;  %v16644_v6 = vld [vmem:[%s17822_s13 + $0x1aa8] ss:$16 sps:$4 sm:$0xff]   ;;  %v16649_v50 = vld [vmem:[%s17822_s13 + $0x19cc] ss:$16 sps:$4 sm:$0xff]  }
 0x52b   : > { %11085 = vmatprep.subr.bf16.mxu1 %v16592_v49  ;;  %v16652_v49 = vld [vmem:[%s17822_s13 + $0x1acc] ss:$16 sps:$4 sm:$0xff]  }
 0x52d   : > { %11061 = vmatpush1.bf16.msra.mxu0 %v16587_v37 }
 0x52e   : > { %11086 = vmatpush1.bf16.msra.mxu1 %v16590_v57  ;;  %11062 = vmatprep.subr.bf16.mxu0 %v16595_v47 }
 0x52f   : > { %11087 = vmatprep.subr.bf16.mxu1 %v16598_v61 }
 0x530   : > { %v10783_v59 = vpop.f32.mrb[56].mxu1 }
 0x531   : > { %v19402_v14 = vadd.f32 %v10783_v59, %v19362_v48  ;;  %v10785_v42 = vpop.f32.mrb[57].mxu1  ;;  %11063 = vmatpush1.bf16.msra.mxu0 %v16593_v62  ;;  %v16610_v48 = vld [vmem:[%s17822_s13 + $0x18ec] ss:$16 sps:$4 sm:$0xff]  }
 0x532   : > { %v19405_v8 = vadd.f32 %v10785_v42, %v19365_v43  ;;  %v10787_v41 = vpop.f32.mrb[58].mxu1  ;;  %11088 = vmatpush1.bf16.msra.mxu1 %v16596_v60  ;;  %11064 = vmatprep.subr.bf16.mxu0 %v16601_v25  ;;  %v16605_v43 = vld [vmem:[%s17822_s13 + $0x17e8] ss:$16 sps:$4 sm:$0xff]   ;;  %v16655_v59 = vld [vmem:[%s17822_s13 + $0x19ec] ss:$16 sps:$4 sm:$0xff]  }
 0x533   : > { %v10788_v52 = vpop.f32.mrb[59].mxu1  ;;  %11089 = vmatprep.subr.bf16.mxu1 %v16604_v56  ;;  %v16647_v60 = vld [vmem:[%s17822_s13 + $0x19c8] ss:$16 sps:$4 sm:$0xff]   ;;  %v16661_v41 = vld [vmem:[%s17822_s13 + $0x1b0c] ss:$16 sps:$4 sm:$0xff]  }
 0x534   : > { %v16650_v25 = vld [vmem:[%s17822_s13 + $0x1ac8] ss:$16 sps:$4 sm:$0xff]  }
 0x535   : > { %11065 = vmatpush1.bf16.msra.mxu0 %v16599_v35  ;;  %v16653_v42 = vld [vmem:[%s17822_s13 + $0x19e8] ss:$16 sps:$4 sm:$0xff]   ;;  %v16664_v35 = vld [vmem:[%s17822_s13 + $0x1c0c] ss:$16 sps:$4 sm:$0xff]  }
 0x536   : > { %11090 = vmatpush1.bf16.msra.mxu1 %v16602_v26  ;;  %11066 = vmatprep.subr.bf16.mxu0 %v16607_v38  ;;  %v16659_v26 = vld [vmem:[%s17822_s13 + $0x1b08] ss:$16 sps:$4 sm:$0xff]   ;;  %v16667_v38 = vld [vmem:[%s17822_s13 + $0x1b2c] ss:$16 sps:$4 sm:$0xff]  }
 0x537   : > { %11091 = vmatprep.subr.bf16.mxu1 %v16610_v48  ;;  %v16662_v52 = vld [vmem:[%s17822_s13 + $0x1c08] ss:$16 sps:$4 sm:$0xff]   ;;  %v16670_v48 = vld [vmem:[%s17822_s13 + $0x1c2c] ss:$16 sps:$4 sm:$0xff]  }
 0x539   : > { %11067 = vmatpush1.bf16.msra.mxu0 %v16605_v43  ;;  %v16665_v43 = vld [vmem:[%s17822_s13 + $0x1b28] ss:$16 sps:$4 sm:$0xff]  }
 0x53a   : > { %11092 = vmatpush1.bf16.msra.mxu1 %v16608_v36  ;;  %11118 = vmatprep.subr.bf16.mxu0 %v16616_v18  ;;  %v16668_v36 = vld [vmem:[%s17822_s13 + $0x1c28] ss:$16 sps:$4 sm:$0xff]   ;;  %v16676_v18 = vld [vmem:[%s17822_s13 + $0x1c4c] ss:$16 sps:$4 sm:$0xff]  }
 0x53b   : > { %11093 = vmatprep.subr.bf16.mxu1 %v16613_v31  ;;  %v16673_v31 = vld [vmem:[%s17822_s13 + $0x1b4c] ss:$16 sps:$4 sm:$0xff]  }
 0x53c   : > { %11069 = vmatmul.mubr.bf16.vlgmr.msra.gmra.mrb[68].mxu0 %v18386_v46  ;;  %v16626_v46 = vld [vmem:[%s17822_s13 + $0x1a48] ss:$16 sps:$4 sm:$0xff]  }
 0x53d   : > { %11119 = vmatpush1.bf16.msra.mxu0 %v16614_v15  ;;  %11150 = vmatprep.mubr.bf16.mxu0 %v18402_v51  ;;  %v16637_v51 = vld [vmem:[%s17822_s13 + $0x198c] ss:$16 sps:$4 sm:$0xff]  }
 0x53e   : > { %11094 = vmatpush1.bf16.msra.mxu1 %v16611_v55  ;;  %11120 = vmatprep.subr.bf16.mxu0 %v16622_v45  ;;  %v16671_v55 = vld [vmem:[%s17822_s13 + $0x1b48] ss:$16 sps:$4 sm:$0xff]   ;;  %v16679_v15 = vld [vmem:[%s17822_s13 + $0x1b6c] ss:$16 sps:$4 sm:$0xff]  }
 0x53f   : > { %11095 = vmatprep.subr.bf16.mxu1 %v16619_v32  ;;  %v16682_v32 = vld [vmem:[%s17822_s13 + $0x1c6c] ss:$16 sps:$4 sm:$0xff]   ;;  %v16677_v45 = vld [vmem:[%s17822_s13 + $0x1b68] ss:$16 sps:$4 sm:$0xff]  }
 0x541   : > { %11121 = vmatpush1.bf16.msra.mxu0 %v16620_v16  ;;  %v16688_v16 = vld [vmem:[%s17822_s13 + $0x1c8c] ss:$16 sps:$4 sm:$0xff]  }
 0x542   : > { %11096 = vmatpush1.bf16.msra.mxu1 %v16617_v23  ;;  %11122 = vmatprep.subr.bf16.mxu0 %v16628_v10  ;;  %v16680_v23 = vld [vmem:[%s17822_s13 + $0x1c68] ss:$16 sps:$4 sm:$0xff]  }
 0x543   : > { %11097 = vmatprep.subr.bf16.mxu1 %v16625_v11  ;;  %v16683_v11 = vld [vmem:[%s17822_s13 + $0x1b88] ss:$16 sps:$4 sm:$0xff]  }
 0x544   : > { %v16686_v10 = vld [vmem:[%s17822_s13 + $0x1c88] ss:$16 sps:$4 sm:$0xff]  }
 0x545   : > { %11123 = vmatpush1.bf16.msra.mxu0 %v16626_v46  ;;  %v16694_v46 = vld [vmem:[%s17822_s13 + $0x1cac] ss:$16 sps:$4 sm:$0xff]  }
 0x546   : > { %11098 = vmatpush1.bf16.msra.mxu1 %v16623_v39  ;;  %11124 = vmatprep.subr.bf16.mxu0 %v16634_v40  ;;  %v16691_v39 = vld [vmem:[%s17822_s13 + $0x1bac] ss:$16 sps:$4 sm:$0xff]   ;;  %v16692_v40 = vld [vmem:[%s17822_s13 + $0x1ca8] ss:$16 sps:$4 sm:$0xff]  }
 0x547   : > { %11099 = vmatprep.subr.bf16.mxu1 %v16631_v34  ;;  %v16689_v34 = vld [vmem:[%s17822_s13 + $0x1ba8] ss:$16 sps:$4 sm:$0xff]  }
 0x549   : > { %11125 = vmatpush1.bf16.msra.mxu0 %v16632_v22  ;;  %v16700_v22 = vld [vmem:[%s17822_s13 + $0x1ccc] ss:$16 sps:$4 sm:$0xff]  }
 0x54a   : > { %11100 = vmatpush1.bf16.msra.mxu1 %v16629_v7  ;;  %11126 = vmatprep.subr.bf16.mxu0 %v16640_v13  ;;  %v16697_v7 = vld [vmem:[%s17822_s13 + $0x1bcc] ss:$16 sps:$4 sm:$0xff]  }
 0x54b   : > { %11101 = vmatprep.subr.bf16.mxu1 %v16637_v51 }
 0x54d   : > { %11127 = vmatpush1.bf16.msra.mxu0 %v16638_v44 }
 0x54e   : > { %11102 = vmatpush1.bf16.msra.mxu1 %v16635_v9  ;;  %11128 = vmatprep.subr.bf16.mxu0 %v16646_v24  ;;  %v16695_v24 = vld [vmem:[%s17822_s13 + $0x1bc8] ss:$16 sps:$4 sm:$0xff]  }
 0x54f   : > { %11103 = vmatprep.subr.bf16.mxu1 %v16643_v33  ;;  %v10824_v37 = vpop.f32.mrb[56].mxu0 }
 0x550   : > { %v19442_v57 = vadd.f32 %v10824_v37, %v19402_v14  ;;  %v10826_v47 = vpop.f32.mrb[57].mxu0  ;;  %v16658_v14 = vld [vmem:[%s17822_s13 + $0x1aec] ss:$16 sps:$4 sm:$0xff]   ;;  %v16701_v37 = vld [vmem:[%s17822_s13 + $0x1be8] ss:$16 sps:$4 sm:$0xff]  }
 0x551   : > { %v19445_v61 = vadd.f32 %v10826_v47, %v19405_v8  ;;  %v10828_v62 = vpop.f32.mrb[58].mxu0  ;;  %11129 = vmatpush1.bf16.msra.mxu0 %v16644_v6  ;;  %v16656_v8 = vld [vmem:[%s17822_s13 + $0x1ae8] ss:$16 sps:$4 sm:$0xff]   ;;  %v16709_v47 = vld [vmem:[%s17822_s13 + $0x1d0c] ss:$16 sps:$4 sm:$0xff]  }
 0x552   : > { %11104 = vmatpush1.bf16.msra.mxu1 %v16641_v17  ;;  %v10829_v56 = vpop.f32.mrb[59].mxu0  ;;  %11130 = vmatprep.subr.bf16.mxu0 %v16652_v49  ;;  %v16698_v17 = vld [vmem:[%s17822_s13 + $0x1cc8] ss:$16 sps:$4 sm:$0xff]   ;;  %v16706_v49 = vld [vmem:[%s17822_s13 + $0x1cec] ss:$16 sps:$4 sm:$0xff]  }
 0x553   : > { %11105 = vmatprep.subr.bf16.mxu1 %v16649_v50  ;;  %v16703_v50 = vld [vmem:[%s17822_s13 + $0x1bec] ss:$16 sps:$4 sm:$0xff]   ;;  %v16707_v62 = vld [vmem:[%s17822_s13 + $0x1d08] ss:$16 sps:$4 sm:$0xff]  }
 0x554   : > { %v16718_v56 = vld [vmem:[%s17822_s13 + $0x1e2c] ss:$16 sps:$4 sm:$0xff]  }
 0x555   : > { %11131 = vmatpush1.bf16.msra.mxu0 %v16650_v25  ;;  %v16715_v25 = vld [vmem:[%s17822_s13 + $0x1d2c] ss:$16 sps:$4 sm:$0xff]  }
 0x556   : > { %11106 = vmatpush1.bf16.msra.mxu1 %v16647_v60  ;;  %11132 = vmatprep.subr.bf16.mxu0 %v16658_v14  ;;  %v16710_v60 = vld [vmem:[%s17822_s13 + $0x1e08] ss:$16 sps:$4 sm:$0xff]  }
 0x557   : > { %11107 = vmatprep.subr.bf16.mxu1 %v16655_v59  ;;  %v16713_v59 = vld [vmem:[%s17822_s13 + $0x1d28] ss:$16 sps:$4 sm:$0xff]  }
 0x558   : > { %v16716_v14 = vld [vmem:[%s17822_s13 + $0x1e28] ss:$16 sps:$4 sm:$0xff]  }
 0x559   : > { %11133 = vmatpush1.bf16.msra.mxu0 %v16656_v8  ;;  %v16724_v8 = vld [vmem:[%s17822_s13 + $0x1e4c] ss:$16 sps:$4 sm:$0xff]  }
 0x55a   : > { %11108 = vmatpush1.bf16.msra.mxu1 %v16653_v42  ;;  %11134 = vmatprep.subr.bf16.mxu0 %v16661_v41  ;;  %v16721_v42 = vld [vmem:[%s17822_s13 + $0x1d4c] ss:$16 sps:$4 sm:$0xff]   ;;  %v16719_v41 = vld [vmem:[%s17822_s13 + $0x1d48] ss:$16 sps:$4 sm:$0xff]  }
 0x55b   : > { %11159 = vmatprep.subr.bf16.mxu1 %v16664_v35  ;;  %v16727_v35 = vld [vmem:[%s17822_s13 + $0x1d6c] ss:$16 sps:$4 sm:$0xff]  }
 0x55d   : > { %11110 = vmatmul.mubr.bf16.vlgmr.msra.gmra.mrb[72].mxu1 %v18478_v1  ;;  %11135 = vmatpush1.bf16.msra.mxu0 %v16659_v26  ;;  %v16674_v1 = vld [vmem:[%s17822_s13 + $0x1c48] ss:$16 sps:$4 sm:$0xff]   ;;  %v16730_v26 = vld [vmem:[%s17822_s13 + $0x1e6c] ss:$16 sps:$4 sm:$0xff]  }
 0x55e   : > { %11160 = vmatpush1.bf16.msra.mxu1 %v16662_v52  ;;  %11136 = vmatprep.subr.bf16.mxu0 %v16667_v38  ;;  %v16725_v52 = vld [vmem:[%s17822_s13 + $0x1d68] ss:$16 sps:$4 sm:$0xff]  }
 0x55f   : > { %11161 = vmatprep.subr.bf16.mxu1 %v16670_v48  ;;  %11191 = vmatprep.mubr.bf16.mxu1 %v18494_v53  ;;  %v16685_v53 = vld [vmem:[%s17822_s13 + $0x1b8c] ss:$16 sps:$4 sm:$0xff]   ;;  %v16728_v38 = vld [vmem:[%s17822_s13 + $0x1e68] ss:$16 sps:$4 sm:$0xff]  }
 0x560   : > { %v16736_v48 = vld [vmem:[%s17822_s13 + $0x1e8c] ss:$16 sps:$4 sm:$0xff]  }
 0x561   : > { %11137 = vmatpush1.bf16.msra.mxu0 %v16665_v43  ;;  %v16731_v43 = vld [vmem:[%s17822_s13 + $0x1d88] ss:$16 sps:$4 sm:$0xff]  }
 0x562   : > { %11162 = vmatpush1.bf16.msra.mxu1 %v16668_v36  ;;  %11138 = vmatprep.subr.bf16.mxu0 %v16673_v31  ;;  %v16734_v36 = vld [vmem:[%s17822_s13 + $0x1e88] ss:$16 sps:$4 sm:$0xff]   ;;  %v16739_v31 = vld [vmem:[%s17822_s13 + $0x1dac] ss:$16 sps:$4 sm:$0xff]  }
 0x563   : > { %11163 = vmatprep.subr.bf16.mxu1 %v16676_v18  ;;  %v16742_v18 = vld [vmem:[%s17822_s13 + $0x1eac] ss:$16 sps:$4 sm:$0xff]  }
 0x565   : > { %11139 = vmatpush1.bf16.msra.mxu0 %v16671_v55  ;;  %v16737_v55 = vld [vmem:[%s17822_s13 + $0x1da8] ss:$16 sps:$4 sm:$0xff]  }
 0x566   : > { %11164 = vmatpush1.bf16.msra.mxu1 %v16674_v1  ;;  %11140 = vmatprep.subr.bf16.mxu0 %v16679_v15  ;;  %v16740_v1 = vld [vmem:[%s17822_s13 + $0x1ea8] ss:$16 sps:$4 sm:$0xff]   ;;  %v16745_v15 = vld [vmem:[%s17822_s13 + $0x1dcc] ss:$16 sps:$4 sm:$0xff]  }
 0x567   : > { %11165 = vmatprep.subr.bf16.mxu1 %v16682_v32  ;;  %v16748_v32 = vld [vmem:[%s17822_s13 + $0x1ecc] ss:$16 sps:$4 sm:$0xff]  }
 0x569   : > { %11141 = vmatpush1.bf16.msra.mxu0 %v16677_v45 }
 0x56a   : > { %11166 = vmatpush1.bf16.msra.mxu1 %v16680_v23  ;;  %11142 = vmatprep.subr.bf16.mxu0 %v16685_v53 }
 0x56b   : > { %11167 = vmatprep.subr.bf16.mxu1 %v16688_v16 }
 0x56d   : > { %11143 = vmatpush1.bf16.msra.mxu0 %v16683_v11 }
 0x56e   : > { %11168 = vmatpush1.bf16.msra.mxu1 %v16686_v10  ;;  %11144 = vmatprep.subr.bf16.mxu0 %v16691_v39  ;;  %v16743_v10 = vld [vmem:[%s17822_s13 + $0x1dc8] ss:$16 sps:$4 sm:$0xff]  }
 0x56f   : > { %11169 = vmatprep.subr.bf16.mxu1 %v16694_v46  ;;  %v16746_v39 = vld [vmem:[%s17822_s13 + $0x1ec8] ss:$16 sps:$4 sm:$0xff]  }
 0x570   : > { %v10865_v51 = vpop.f32.mrb[60].mxu1 }
 0x571   : > { %v19482_v13 = vadd.f32 %v10865_v51, %v19442_v57  ;;  %v10867_v9 = vpop.f32.mrb[61].mxu1  ;;  %11145 = vmatpush1.bf16.msra.mxu0 %v16689_v34  ;;  %v16704_v57 = vld [vmem:[%s17822_s13 + $0x1ce8] ss:$16 sps:$4 sm:$0xff]   ;;  %v16751_v34 = vld [vmem:[%s17822_s13 + $0x1dec] ss:$16 sps:$4 sm:$0xff]  }
 0x572   : > { %v19485_v44 = vadd.f32 %v10867_v9, %v19445_v61  ;;  %v10869_v33 = vpop.f32.mrb[62].mxu1  ;;  %11170 = vmatpush1.bf16.msra.mxu1 %v16692_v40  ;;  %11146 = vmatprep.subr.bf16.mxu0 %v16697_v7  ;;  %v16712_v61 = vld [vmem:[%s17822_s13 + $0x1e0c] ss:$16 sps:$4 sm:$0xff]   ;;  %v16749_v7 = vld [vmem:[%s17822_s13 + $0x1de8] ss:$16 sps:$4 sm:$0xff]  }
 0x573   : > { %v10870_v6 = vpop.f32.mrb[63].mxu1  ;;  %11171 = vmatprep.subr.bf16.mxu1 %v16700_v22  ;;  %v16754_v40 = vld [vmem:[%s17822_s13 + $0x1eec] ss:$16 sps:$4 sm:$0xff]   ;;  %v16752_v22 = vld [vmem:[%s17822_s13 + $0x1ee8] ss:$16 sps:$4 sm:$0xff]  }
 0x574   : > { %v16757_v51 = vld [vmem:[%s17822_s13 + $0x1f0c] ss:$16 sps:$4 sm:$0xff]   ;;  %v16755_v9 = vld [vmem:[%s17822_s13 + $0x1f08] ss:$16 sps:$4 sm:$0xff]  }
 0x575   : > { %11147 = vmatpush1.bf16.msra.mxu0 %v16695_v24  ;;  %v16763_v33 = vld [vmem:[%s17822_s13 + $0x1f2c] ss:$16 sps:$4 sm:$0xff]   ;;  %v16764_v6 = vld [vmem:[%s17822_s13 + $0x2028] ss:$16 sps:$4 sm:$0xff]  }
 0x576   : > { %11172 = vmatpush1.bf16.msra.mxu1 %v16698_v17  ;;  %11148 = vmatprep.subr.bf16.mxu0 %v16703_v50  ;;  %v16766_v24 = vld [vmem:[%s17822_s13 + $0x202c] ss:$16 sps:$4 sm:$0xff]   ;;  %v16761_v17 = vld [vmem:[%s17822_s13 + $0x1f28] ss:$16 sps:$4 sm:$0xff]  }
 0x577   : > { %11173 = vmatprep.subr.bf16.mxu1 %v16706_v49  ;;  %v16769_v50 = vld [vmem:[%s17822_s13 + $0x1f4c] ss:$16 sps:$4 sm:$0xff]  }
 0x578   : > { %v16772_v49 = vld [vmem:[%s17822_s13 + $0x204c] ss:$16 sps:$4 sm:$0xff]  }
 0x579   : > { %11149 = vmatpush1.bf16.msra.mxu0 %v16701_v37  ;;  %v16767_v37 = vld [vmem:[%s17822_s13 + $0x1f48] ss:$16 sps:$4 sm:$0xff]  }
 0x57a   : > { %11174 = vmatpush1.bf16.msra.mxu1 %v16704_v57  ;;  %11200 = vmatprep.subr.bf16.mxu0 %v16712_v61  ;;  %v16775_v57 = vld [vmem:[%s17822_s13 + $0x1f6c] ss:$16 sps:$4 sm:$0xff]   ;;  %v16773_v61 = vld [vmem:[%s17822_s13 + $0x1f68] ss:$16 sps:$4 sm:$0xff]  }
 0x57b   : > { %11175 = vmatprep.subr.bf16.mxu1 %v16709_v47  ;;  %v16778_v47 = vld [vmem:[%s17822_s13 + $0x206c] ss:$16 sps:$4 sm:$0xff]  }
 0x57c   : > { %11151 = vmatmul.mubr.bf16.vlgmr.msra.gmra.mrb[72].mxu0 %v18482_v2  ;;  %v16722_v2 = vld [vmem:[%s17822_s13 + $0x1e48] ss:$16 sps:$4 sm:$0xff]  }
 0x57d   : > { %11201 = vmatpush1.bf16.msra.mxu0 %v16710_v60  ;;  %11232 = vmatprep.mubr.bf16.mxu0 %v18498_v54  ;;  %v16733_v54 = vld [vmem:[%s17822_s13 + $0x1d8c] ss:$16 sps:$4 sm:$0xff]  }
 0x57e   : > { %11176 = vmatpush1.bf16.msra.mxu1 %v16707_v62  ;;  %11202 = vmatprep.subr.bf16.mxu0 %v16718_v56  ;;  %v16776_v62 = vld [vmem:[%s17822_s13 + $0x2068] ss:$16 sps:$4 sm:$0xff]   ;;  %v16784_v60 = vld [vmem:[%s17822_s13 + $0x208c] ss:$16 sps:$4 sm:$0xff]  }
 0x57f   : > { %11177 = vmatprep.subr.bf16.mxu1 %v16715_v25  ;;  %v16779_v25 = vld [vmem:[%s17822_s13 + $0x1f88] ss:$16 sps:$4 sm:$0xff]  }
 0x580   : > { %v16782_v56 = vld [vmem:[%s17822_s13 + $0x2088] ss:$16 sps:$4 sm:$0xff]  }
 0x581   : > { %11203 = vmatpush1.bf16.msra.mxu0 %v16716_v14  ;;  %v16790_v14 = vld [vmem:[%s17822_s13 + $0x20ac] ss:$16 sps:$4 sm:$0xff]  }
 0x582   : > { %11178 = vmatpush1.bf16.msra.mxu1 %v16713_v59  ;;  %11204 = vmatprep.subr.bf16.mxu0 %v16724_v8  ;;  %v16787_v59 = vld [vmem:[%s17822_s13 + $0x1fac] ss:$16 sps:$4 sm:$0xff]   ;;  %v16788_v8 = vld [vmem:[%s17822_s13 + $0x20a8] ss:$16 sps:$4 sm:$0xff]  }
 0x583   : > { %11179 = vmatprep.subr.bf16.mxu1 %v16721_v42  ;;  %v16785_v42 = vld [vmem:[%s17822_s13 + $0x1fa8] ss:$16 sps:$4 sm:$0xff]  }
 0x585   : > { %11205 = vmatpush1.bf16.msra.mxu0 %v16722_v2  ;;  %v16796_v2 = vld [vmem:[%s17822_s13 + $0x20cc] ss:$16 sps:$4 sm:$0xff]  }
 0x586   : > { %11180 = vmatpush1.bf16.msra.mxu1 %v16719_v41  ;;  %11206 = vmatprep.subr.bf16.mxu0 %v16730_v26  ;;  %v16793_v41 = vld [vmem:[%s17822_s13 + $0x1fcc] ss:$16 sps:$4 sm:$0xff]  }
 0x587   : > { %11181 = vmatprep.subr.bf16.mxu1 %v16727_v35 }
 0x589   : > { %11207 = vmatpush1.bf16.msra.mxu0 %v16728_v38 }
 0x58a   : > { %11182 = vmatpush1.bf16.msra.mxu1 %v16725_v52  ;;  %11208 = vmatprep.subr.bf16.mxu0 %v16736_v48  ;;  %v16791_v48 = vld [vmem:[%s17822_s13 + $0x1fc8] ss:$16 sps:$4 sm:$0xff]  }
 0x58b   : > { %11183 = vmatprep.subr.bf16.mxu1 %v16733_v54 }
 0x58d   : > { %11209 = vmatpush1.bf16.msra.mxu0 %v16734_v36 }
 0x58e   : > { %11184 = vmatpush1.bf16.msra.mxu1 %v16731_v43  ;;  %11210 = vmatprep.subr.bf16.mxu0 %v16742_v18  ;;  %v16794_v43 = vld [vmem:[%s17822_s13 + $0x20c8] ss:$16 sps:$4 sm:$0xff]   ;;  %v16802_v18 = vld [vmem:[%s17822_s13 + $0x20ec] ss:$16 sps:$4 sm:$0xff]  }
 0x58f   : > { %11185 = vmatprep.subr.bf16.mxu1 %v16739_v31  ;;  %v10906_v45 = vpop.f32.mrb[60].mxu0  ;;  %v16799_v31 = vld [vmem:[%s17822_s13 + $0x1fec] ss:$16 sps:$4 sm:$0xff]  }
 0x590   : > { %v19522_v23 = vadd.f32 %v10906_v45, %v19482_v13  ;;  %v10908_v53 = vpop.f32.mrb[61].mxu0  ;;  %v16760_v13 = vld [vmem:[%s17822_s13 + $0x200c] ss:$16 sps:$4 sm:$0xff]   ;;  %v16803_v45 = vld [vmem:[%s17822_s13 + $0x2108] ss:$16 sps:$4 sm:$0xff]  }
 0x591   : > { %v19525_v16 = vadd.f32 %v10908_v53, %v19485_v44  ;;  %v10910_v11 = vpop.f32.mrb[62].mxu0  ;;  %11211 = vmatpush1.bf16.msra.mxu0 %v16740_v1  ;;  %v16758_v44 = vld [vmem:[%s17822_s13 + $0x2008] ss:$16 sps:$4 sm:$0xff]   ;;  %v16811_v53 = vld [vmem:[%s17822_s13 + $0x212c] ss:$16 sps:$4 sm:$0xff]  }
 0x592   : > { %11186 = vmatpush1.bf16.msra.mxu1 %v16737_v55  ;;  %v10911_v46 = vpop.f32.mrb[63].mxu0  ;;  %11212 = vmatprep.subr.bf16.mxu0 %v16748_v32  ;;  %v16797_v55 = vld [vmem:[%s17822_s13 + $0x1fe8] ss:$16 sps:$4 sm:$0xff]   ;;  %v16808_v32 = vld [vmem:[%s17822_s13 + $0x220c] ss:$16 sps:$4 sm:$0xff]  }
 0x593   : > { %11187 = vmatprep.subr.bf16.mxu1 %v16745_v15  ;;  %v16800_v1 = vld [vmem:[%s17822_s13 + $0x20e8] ss:$16 sps:$4 sm:$0xff]   ;;  %v16805_v15 = vld [vmem:[%s17822_s13 + $0x210c] ss:$16 sps:$4 sm:$0xff]  }
 0x594   : > { %v16809_v11 = vld [vmem:[%s17822_s13 + $0x2128] ss:$16 sps:$4 sm:$0xff]   ;;  %v16820_v46 = vld [vmem:[%s17822_s13 + $0x224c] ss:$16 sps:$4 sm:$0xff]  }
 0x595   : > { %11213 = vmatpush1.bf16.msra.mxu0 %v16746_v39  ;;  %v16817_v39 = vld [vmem:[%s17822_s13 + $0x214c] ss:$16 sps:$4 sm:$0xff]  }
 0x596   : > { %11188 = vmatpush1.bf16.msra.mxu1 %v16743_v10  ;;  %11214 = vmatprep.subr.bf16.mxu0 %v16754_v40  ;;  %v16812_v10 = vld [vmem:[%s17822_s13 + $0x2228] ss:$16 sps:$4 sm:$0xff]   ;;  %v16823_v40 = vld [vmem:[%s17822_s13 + $0x216c] ss:$16 sps:$4 sm:$0xff]  }
 0x597   : > { %11189 = vmatprep.subr.bf16.mxu1 %v16751_v34  ;;  %v16815_v34 = vld [vmem:[%s17822_s13 + $0x2148] ss:$16 sps:$4 sm:$0xff]  }
 0x599   : > { %11215 = vmatpush1.bf16.msra.mxu0 %v16752_v22  ;;  %v16821_v22 = vld [vmem:[%s17822_s13 + $0x2168] ss:$16 sps:$4 sm:$0xff]  }
 0x59a   : > { %11190 = vmatpush1.bf16.msra.mxu1 %v16749_v7  ;;  %11216 = vmatprep.subr.bf16.mxu0 %v16757_v51  ;;  %v16826_v7 = vld [vmem:[%s17822_s13 + $0x226c] ss:$16 sps:$4 sm:$0xff]   ;;  %v16824_v51 = vld [vmem:[%s17822_s13 + $0x2268] ss:$16 sps:$4 sm:$0xff]  }
 0x59b   : > { %11241 = vmatprep.subr.bf16.mxu1 %v16760_v13  ;;  %v16832_v13 = vld [vmem:[%s17822_s13 + $0x228c] ss:$16 sps:$4 sm:$0xff]  }
 0x59d   : > { %11192 = vmatmul.mubr.bf16.vlgmr.msra.gmra.mrb[76].mxu1 %v18574_v27  ;;  %11217 = vmatpush1.bf16.msra.mxu0 %v16755_v9  ;;  %v16770_v27 = vld [vmem:[%s17822_s13 + $0x2048] ss:$16 sps:$4 sm:$0xff]  }
 0x59e   : > { %11242 = vmatpush1.bf16.msra.mxu1 %v16758_v44  ;;  %11218 = vmatprep.subr.bf16.mxu0 %v16763_v33  ;;  %v16827_v9 = vld [vmem:[%s17822_s13 + $0x2188] ss:$16 sps:$4 sm:$0xff]   ;;  %v16835_v33 = vld [vmem:[%s17822_s13 + $0x21ac] ss:$16 sps:$4 sm:$0xff]  }
 0x59f   : > { %11243 = vmatprep.subr.bf16.mxu1 %v16766_v24  ;;  %11273 = vmatprep.mubr.bf16.mxu1 %v18590_v3  ;;  %v16781_v3 = vld [vmem:[%s17822_s13 + $0x1f8c] ss:$16 sps:$4 sm:$0xff]   ;;  %v16830_v44 = vld [vmem:[%s17822_s13 + $0x2288] ss:$16 sps:$4 sm:$0xff]  }
 0x5a0   : > { %v16838_v24 = vld [vmem:[%s17822_s13 + $0x22ac] ss:$16 sps:$4 sm:$0xff]  }
 0x5a1   : > { %11219 = vmatpush1.bf16.msra.mxu0 %v16761_v17  ;;  %v16833_v17 = vld [vmem:[%s17822_s13 + $0x21a8] ss:$16 sps:$4 sm:$0xff]  }
 0x5a2   : > { %11244 = vmatpush1.bf16.msra.mxu1 %v16764_v6  ;;  %11220 = vmatprep.subr.bf16.mxu0 %v16769_v50  ;;  %v16836_v6 = vld [vmem:[%s17822_s13 + $0x22a8] ss:$16 sps:$4 sm:$0xff]   ;;  %v16841_v50 = vld [vmem:[%s17822_s13 + $0x21cc] ss:$16 sps:$4 sm:$0xff]  }
 0x5a3   : > { %11245 = vmatprep.subr.bf16.mxu1 %v16772_v49  ;;  %v16844_v49 = vld [vmem:[%s17822_s13 + $0x22cc] ss:$16 sps:$4 sm:$0xff]  }
 0x5a5   : > { %11221 = vmatpush1.bf16.msra.mxu0 %v16767_v37 }
 0x5a6   : > { %11246 = vmatpush1.bf16.msra.mxu1 %v16770_v27  ;;  %11222 = vmatprep.subr.bf16.mxu0 %v16775_v57 }
 0x5a7   : > { %11247 = vmatprep.subr.bf16.mxu1 %v16778_v47 }
 0x5a9   : > { %11223 = vmatpush1.bf16.msra.mxu0 %v16773_v61 }
 0x5aa   : > { %11248 = vmatpush1.bf16.msra.mxu1 %v16776_v62  ;;  %11224 = vmatprep.subr.bf16.mxu0 %v16781_v3  ;;  %v16839_v62 = vld [vmem:[%s17822_s13 + $0x21c8] ss:$16 sps:$4 sm:$0xff]  }
 0x5ab   : > { %11249 = vmatprep.subr.bf16.mxu1 %v16784_v60  ;;  %v16842_v3 = vld [vmem:[%s17822_s13 + $0x22c8] ss:$16 sps:$4 sm:$0xff]  }
 0x5ad   : > { %11225 = vmatpush1.bf16.msra.mxu0 %v16779_v25  ;;  %v16847_v25 = vld [vmem:[%s17822_s13 + $0x21ec] ss:$16 sps:$4 sm:$0xff]  }
 0x5ae   : > { %11250 = vmatpush1.bf16.msra.mxu1 %v16782_v56  ;;  %11226 = vmatprep.subr.bf16.mxu0 %v16787_v59  ;;  %v16850_v56 = vld [vmem:[%s17822_s13 + $0x22ec] ss:$16 sps:$4 sm:$0xff]   ;;  %v16845_v59 = vld [vmem:[%s17822_s13 + $0x21e8] ss:$16 sps:$4 sm:$0xff]  }
 0x5af   : > { %11251 = vmatprep.subr.bf16.mxu1 %v16790_v14  ;;  %v16848_v14 = vld [vmem:[%s17822_s13 + $0x22e8] ss:$16 sps:$4 sm:$0xff]  }
 0x5b0   : > { %v10947_v35 = vpop.f32.mrb[64].mxu1 }
 0x5b1   : > { %v19562_v26 = vadd.f32 %v10947_v35, %v19522_v23  ;;  %v10949_v52 = vpop.f32.mrb[65].mxu1  ;;  %11227 = vmatpush1.bf16.msra.mxu0 %v16785_v42  ;;  %v16806_v23 = vld [vmem:[%s17822_s13 + $0x2208] ss:$16 sps:$4 sm:$0xff]   ;;  %v16853_v42 = vld [vmem:[%s17822_s13 + $0x230c] ss:$16 sps:$4 sm:$0xff]  }
 0x5b2   : > { %v19565_v38 = vadd.f32 %v10949_v52, %v19525_v16  ;;  %v10951_v54 = vpop.f32.mrb[66].mxu1  ;;  %11252 = vmatpush1.bf16.msra.mxu1 %v16788_v8  ;;  %11228 = vmatprep.subr.bf16.mxu0 %v16793_v41  ;;  %v16814_v16 = vld [vmem:[%s17822_s13 + $0x222c] ss:$16 sps:$4 sm:$0xff]   ;;  %v16851_v41 = vld [vmem:[%s17822_s13 + $0x2308] ss:$16 sps:$4 sm:$0xff]  }
 0x5b3   : > { %v10952_v36 = vpop.f32.mrb[67].mxu1  ;;  %11253 = vmatprep.subr.bf16.mxu1 %v16796_v2  ;;  %v16856_v8 = vld [vmem:[%s17822_s13 + $0x240c] ss:$16 sps:$4 sm:$0xff]   ;;  %v16854_v2 = vld [vmem:[%s17822_s13 + $0x2408] ss:$16 sps:$4 sm:$0xff]  }
 0x5b4   : > { %v16859_v35 = vld [vmem:[%s17822_s13 + $0x232c] ss:$16 sps:$4 sm:$0xff]   ;;  %v16857_v52 = vld [vmem:[%s17822_s13 + $0x2328] ss:$16 sps:$4 sm:$0xff]  }
 0x5b5   : > { %11229 = vmatpush1.bf16.msra.mxu0 %v16791_v48  ;;  %v16865_v54 = vld [vmem:[%s17822_s13 + $0x234c] ss:$16 sps:$4 sm:$0xff]  }
 0x5b6   : > { %11254 = vmatpush1.bf16.msra.mxu1 %v16794_v43  ;;  %11230 = vmatprep.subr.bf16.mxu0 %v16799_v31  ;;  %v16868_v48 = vld [vmem:[%s17822_s13 + $0x244c] ss:$16 sps:$4 sm:$0xff]   ;;  %v16863_v43 = vld [vmem:[%s17822_s13 + $0x2348] ss:$16 sps:$4 sm:$0xff]  }
 0x5b7   : > { %11255 = vmatprep.subr.bf16.mxu1 %v16802_v18  ;;  %v16871_v36 = vld [vmem:[%s17822_s13 + $0x236c] ss:$16 sps:$4 sm:$0xff]   ;;  %v16869_v18 = vld [vmem:[%s17822_s13 + $0x2368] ss:$16 sps:$4 sm:$0xff]  }
 0x5b8   : > { %v16874_v31 = vld [vmem:[%s17822_s13 + $0x246c] ss:$16 sps:$4 sm:$0xff]  }
 0x5b9   : > { %11231 = vmatpush1.bf16.msra.mxu0 %v16797_v55  ;;  %v16872_v55 = vld [vmem:[%s17822_s13 + $0x2468] ss:$16 sps:$4 sm:$0xff]  }
 0x5ba   : > { %11256 = vmatpush1.bf16.msra.mxu1 %v16800_v1  ;;  %11282 = vmatprep.subr.bf16.mxu0 %v16808_v32  ;;  %v16880_v1 = vld [vmem:[%s17822_s13 + $0x248c] ss:$16 sps:$4 sm:$0xff]   ;;  %v16878_v32 = vld [vmem:[%s17822_s13 + $0x2488] ss:$16 sps:$4 sm:$0xff]  }
 0x5bb   : > { %11257 = vmatprep.subr.bf16.mxu1 %v16805_v15  ;;  %v16875_v15 = vld [vmem:[%s17822_s13 + $0x2388] ss:$16 sps:$4 sm:$0xff]  }
 0x5bc   : > { %11233 = vmatmul.mubr.bf16.vlgmr.msra.gmra.mrb[76].mxu0 %v18578_v28  ;;  %v16818_v28 = vld [vmem:[%s17822_s13 + $0x2248] ss:$16 sps:$4 sm:$0xff]  }
 0x5bd   : > { %11283 = vmatpush1.bf16.msra.mxu0 %v16806_v23  ;;  %11314 = vmatprep.mubr.bf16.mxu0 %v18594_v4  ;;  %v16829_v4 = vld [vmem:[%s17822_s13 + $0x218c] ss:$16 sps:$4 sm:$0xff]  }
 0x5be   : > { %11258 = vmatpush1.bf16.msra.mxu1 %v16803_v45  ;;  %11284 = vmatprep.subr.bf16.mxu0 %v16814_v16  ;;  %v16883_v45 = vld [vmem:[%s17822_s13 + $0x23ac] ss:$16 sps:$4 sm:$0xff]   ;;  %v16884_v16 = vld [vmem:[%s17822_s13 + $0x24a8] ss:$16 sps:$4 sm:$0xff]  }
 0x5bf   : > { %11259 = vmatprep.subr.bf16.mxu1 %v16811_v53  ;;  %v16886_v23 = vld [vmem:[%s17822_s13 + $0x24ac] ss:$16 sps:$4 sm:$0xff]   ;;  %v16881_v53 = vld [vmem:[%s17822_s13 + $0x23a8] ss:$16 sps:$4 sm:$0xff]  }
 0x5c1   : > { %11285 = vmatpush1.bf16.msra.mxu0 %v16812_v10  ;;  %v16892_v10 = vld [vmem:[%s17822_s13 + $0x24cc] ss:$16 sps:$4 sm:$0xff]  }
 0x5c2   : > { %11260 = vmatpush1.bf16.msra.mxu1 %v16809_v11  ;;  %11286 = vmatprep.subr.bf16.mxu0 %v16820_v46  ;;  %v16889_v11 = vld [vmem:[%s17822_s13 + $0x23cc] ss:$16 sps:$4 sm:$0xff]  }
 0x5c3   : > { %11261 = vmatprep.subr.bf16.mxu1 %v16817_v39 }
 0x5c5   : > { %11287 = vmatpush1.bf16.msra.mxu0 %v16818_v28 }
 0x5c6   : > { %11262 = vmatpush1.bf16.msra.mxu1 %v16815_v34  ;;  %11288 = vmatprep.subr.bf16.mxu0 %v16826_v7  ;;  %v16887_v7 = vld [vmem:[%s17822_s13 + $0x23c8] ss:$16 sps:$4 sm:$0xff]  }
 0x5c7   : > { %11263 = vmatprep.subr.bf16.mxu1 %v16823_v40 }
 0x5c9   : > { %11289 = vmatpush1.bf16.msra.mxu0 %v16824_v51 }
 0x5ca   : > { %11264 = vmatpush1.bf16.msra.mxu1 %v16821_v22  ;;  %11290 = vmatprep.subr.bf16.mxu0 %v16832_v13  ;;  %v16890_v22 = vld [vmem:[%s17822_s13 + $0x24c8] ss:$16 sps:$4 sm:$0xff]   ;;  %v16898_v13 = vld [vmem:[%s17822_s13 + $0x24ec] ss:$16 sps:$4 sm:$0xff]  }
 0x5cb   : > { %11265 = vmatprep.subr.bf16.mxu1 %v16829_v4  ;;  %v16895_v4 = vld [vmem:[%s17822_s13 + $0x23ec] ss:$16 sps:$4 sm:$0xff]  }
 0x5cd   : > { %11291 = vmatpush1.bf16.msra.mxu0 %v16830_v44  ;;  %v16896_v44 = vld [vmem:[%s17822_s13 + $0x24e8] ss:$16 sps:$4 sm:$0xff]  }
 0x5ce   : > { %11266 = vmatpush1.bf16.msra.mxu1 %v16827_v9  ;;  %11292 = vmatprep.subr.bf16.mxu0 %v16838_v24  ;;  %v16893_v9 = vld [vmem:[%s17822_s13 + $0x23e8] ss:$16 sps:$4 sm:$0xff]   ;;  %v16904_v24 = vld [vmem:[%s17822_s13 + $0x260c] ss:$16 sps:$4 sm:$0xff]  }
 0x5cf   : > { %11267 = vmatprep.subr.bf16.mxu1 %v16835_v33  ;;  %v10988_v37 = vpop.f32.mrb[64].mxu0  ;;  %v16901_v33 = vld [vmem:[%s17822_s13 + $0x250c] ss:$16 sps:$4 sm:$0xff]  }
 0x5d0   : > { %v19602_v27 = vadd.f32 %v10988_v37, %v19562_v26  ;;  %v10990_v57 = vpop.f32.mrb[65].mxu0  ;;  %v16862_v26 = vld [vmem:[%s17822_s13 + $0x242c] ss:$16 sps:$4 sm:$0xff]   ;;  %v16905_v37 = vld [vmem:[%s17822_s13 + $0x2528] ss:$16 sps:$4 sm:$0xff]  }
 0x5d1   : > { %v19605_v47 = vadd.f32 %v10990_v57, %v19565_v38  ;;  %v10992_v61 = vpop.f32.mrb[66].mxu0  ;;  %11293 = vmatpush1.bf16.msra.mxu0 %v16836_v6  ;;  %v16860_v38 = vld [vmem:[%s17822_s13 + $0x2428] ss:$16 sps:$4 sm:$0xff]   ;;  %v16913_v57 = vld [vmem:[%s17822_s13 + $0x254c] ss:$16 sps:$4 sm:$0xff]  }
 0x5d2   : > { %11268 = vmatpush1.bf16.msra.mxu1 %v16833_v17  ;;  %v10993_v60 = vpop.f32.mrb[67].mxu0  ;;  %11294 = vmatprep.subr.bf16.mxu0 %v16844_v49  ;;  %v16899_v17 = vld [vmem:[%s17822_s13 + $0x2508] ss:$16 sps:$4 sm:$0xff]   ;;  %v16910_v49 = vld [vmem:[%s17822_s13 + $0x262c] ss:$16 sps:$4 sm:$0xff]  }
 0x5d3   : > { %11269 = vmatprep.subr.bf16.mxu1 %v16841_v50  ;;  %v16902_v6 = vld [vmem:[%s17822_s13 + $0x2608] ss:$16 sps:$4 sm:$0xff]   ;;  %v16907_v50 = vld [vmem:[%s17822_s13 + $0x252c] ss:$16 sps:$4 sm:$0xff]  }
 0x5d4   : > { %v16911_v61 = vld [vmem:[%s17822_s13 + $0x2548] ss:$16 sps:$4 sm:$0xff]  }
 0x5d5   : > { %11295 = vmatpush1.bf16.msra.mxu0 %v16842_v3  ;;  %v16922_v3 = vld [vmem:[%s17822_s13 + $0x266c] ss:$16 sps:$4 sm:$0xff]   ;;  %v16917_v60 = vld [vmem:[%s17822_s13 + $0x2568] ss:$16 sps:$4 sm:$0xff]  }
 0x5d6   : > { %11270 = vmatpush1.bf16.msra.mxu1 %v16839_v62  ;;  %11296 = vmatprep.subr.bf16.mxu0 %v16850_v56  ;;  %v16919_v62 = vld [vmem:[%s17822_s13 + $0x256c] ss:$16 sps:$4 sm:$0xff]  }
 0x5d7   : > { %11271 = vmatprep.subr.bf16.mxu1 %v16847_v25  ;;  %v16920_v25 = vld [vmem:[%s17822_s13 + $0x2668] ss:$16 sps:$4 sm:$0xff]   ;;  %v16928_v56 = vld [vmem:[%s17822_s13 + $0x268c] ss:$16 sps:$4 sm:$0xff]  }
 0x5d9   : > { %11297 = vmatpush1.bf16.msra.mxu0 %v16848_v14  ;;  %v16926_v14 = vld [vmem:[%s17822_s13 + $0x2688] ss:$16 sps:$4 sm:$0xff]  }
 0x5da   : > { %11272 = vmatpush1.bf16.msra.mxu1 %v16845_v59  ;;  %11298 = vmatprep.subr.bf16.mxu0 %v16853_v42  ;;  %v16923_v59 = vld [vmem:[%s17822_s13 + $0x2588] ss:$16 sps:$4 sm:$0xff]   ;;  %v16931_v42 = vld [vmem:[%s17822_s13 + $0x25ac] ss:$16 sps:$4 sm:$0xff]  }
 0x5db   : > { %11323 = vmatprep.subr.bf16.mxu1 %v16856_v8  ;;  %v16934_v8 = vld [vmem:[%s17822_s13 + $0x26ac] ss:$16 sps:$4 sm:$0xff]  }
 0x5dd   : > { %11274 = vmatmul.mubr.bf16.vlgmr.msra.gmra.mrb[80].mxu1 %v18670_v19  ;;  %11299 = vmatpush1.bf16.msra.mxu0 %v16851_v41  ;;  %v16866_v19 = vld [vmem:[%s17822_s13 + $0x2448] ss:$16 sps:$4 sm:$0xff]  }
 0x5de   : > { %11324 = vmatpush1.bf16.msra.mxu1 %v16854_v2  ;;  %11300 = vmatprep.subr.bf16.mxu0 %v16859_v35  ;;  %v16929_v41 = vld [vmem:[%s17822_s13 + $0x25a8] ss:$16 sps:$4 sm:$0xff]   ;;  %v16937_v35 = vld [vmem:[%s17822_s13 + $0x25cc] ss:$16 sps:$4 sm:$0xff]  }
 0x5df   : > { %11325 = vmatprep.subr.bf16.mxu1 %v16862_v26  ;;  %11355 = vmatprep.mubr.bf16.mxu1 %v18686_v29  ;;  %v16877_v29 = vld [vmem:[%s17822_s13 + $0x238c] ss:$16 sps:$4 sm:$0xff]   ;;  %v16932_v2 = vld [vmem:[%s17822_s13 + $0x26a8] ss:$16 sps:$4 sm:$0xff]  }
 0x5e0   : > { %v16940_v26 = vld [vmem:[%s17822_s13 + $0x26cc] ss:$16 sps:$4 sm:$0xff]  }
 0x5e1   : > { %11301 = vmatpush1.bf16.msra.mxu0 %v16857_v52 }
 0x5e2   : > { %11326 = vmatpush1.bf16.msra.mxu1 %v16860_v38  ;;  %11302 = vmatprep.subr.bf16.mxu0 %v16865_v54 }
 0x5e3   : > { %11327 = vmatprep.subr.bf16.mxu1 %v16868_v48 }
 0x5e5   : > { %11303 = vmatpush1.bf16.msra.mxu0 %v16863_v43 }
 0x5e6   : > { %11328 = vmatpush1.bf16.msra.mxu1 %v16866_v19  ;;  %11304 = vmatprep.subr.bf16.mxu0 %v16871_v36  ;;  %v16935_v19 = vld [vmem:[%s17822_s13 + $0x25c8] ss:$16 sps:$4 sm:$0xff]  }
 0x5e7   : > { %11329 = vmatprep.subr.bf16.mxu1 %v16874_v31  ;;  %v16938_v36 = vld [vmem:[%s17822_s13 + $0x26c8] ss:$16 sps:$4 sm:$0xff]  }
 0x5e9   : > { %11305 = vmatpush1.bf16.msra.mxu0 %v16869_v18  ;;  %v16943_v18 = vld [vmem:[%s17822_s13 + $0x25ec] ss:$16 sps:$4 sm:$0xff]  }
 0x5ea   : > { %11330 = vmatpush1.bf16.msra.mxu1 %v16872_v55  ;;  %11306 = vmatprep.subr.bf16.mxu0 %v16877_v29  ;;  %v16946_v55 = vld [vmem:[%s17822_s13 + $0x26ec] ss:$16 sps:$4 sm:$0xff]   ;;  %v16941_v29 = vld [vmem:[%s17822_s13 + $0x25e8] ss:$16 sps:$4 sm:$0xff]  }
 0x5eb   : > { %11331 = vmatprep.subr.bf16.mxu1 %v16880_v1  ;;  %v16944_v1 = vld [vmem:[%s17822_s13 + $0x26e8] ss:$16 sps:$4 sm:$0xff]  }
 0x5ed   : > { %11307 = vmatpush1.bf16.msra.mxu0 %v16875_v15  ;;  %v16949_v15 = vld [vmem:[%s17822_s13 + $0x270c] ss:$16 sps:$4 sm:$0xff]  }
 0x5ee   : > { %11332 = vmatpush1.bf16.msra.mxu1 %v16878_v32  ;;  %11308 = vmatprep.subr.bf16.mxu0 %v16883_v45  ;;  %v16952_v32 = vld [vmem:[%s17822_s13 + $0x280c] ss:$16 sps:$4 sm:$0xff]   ;;  %v16947_v45 = vld [vmem:[%s17822_s13 + $0x2708] ss:$16 sps:$4 sm:$0xff]  }
 0x5ef   : > { %11333 = vmatprep.subr.bf16.mxu1 %v16886_v23  ;;  %v16950_v23 = vld [vmem:[%s17822_s13 + $0x2808] ss:$16 sps:$4 sm:$0xff]  }
 0x5f0   : > { %v11029_v39 = vpop.f32.mrb[68].mxu1 }
 0x5f1   : > { %v19642_v46 = vadd.f32 %v11029_v39, %v19602_v27  ;;  %v11031_v34 = vpop.f32.mrb[69].mxu1  ;;  %11309 = vmatpush1.bf16.msra.mxu0 %v16881_v53  ;;  %v16908_v27 = vld [vmem:[%s17822_s13 + $0x2628] ss:$16 sps:$4 sm:$0xff]   ;;  %v16955_v53 = vld [vmem:[%s17822_s13 + $0x272c] ss:$16 sps:$4 sm:$0xff]  }
 0x5f2   : > { %v19645_v28 = vadd.f32 %v11031_v34, %v19605_v47  ;;  %v11033_v40 = vpop.f32.mrb[70].mxu1  ;;  %11334 = vmatpush1.bf16.msra.mxu1 %v16884_v16  ;;  %11310 = vmatprep.subr.bf16.mxu0 %v16889_v11  ;;  %v16916_v47 = vld [vmem:[%s17822_s13 + $0x264c] ss:$16 sps:$4 sm:$0xff]   ;;  %v16953_v11 = vld [vmem:[%s17822_s13 + $0x2728] ss:$16 sps:$4 sm:$0xff]  }
 0x5f3   : > { %v11034_v51 = vpop.f32.mrb[71].mxu1  ;;  %11335 = vmatprep.subr.bf16.mxu1 %v16892_v10  ;;  %v16958_v16 = vld [vmem:[%s17822_s13 + $0x282c] ss:$16 sps:$4 sm:$0xff]   ;;  %v16956_v10 = vld [vmem:[%s17822_s13 + $0x2828] ss:$16 sps:$4 sm:$0xff]  }
 0x5f4   : > { %v16961_v39 = vld [vmem:[%s17822_s13 + $0x274c] ss:$16 sps:$4 sm:$0xff]   ;;  %v16959_v34 = vld [vmem:[%s17822_s13 + $0x2748] ss:$16 sps:$4 sm:$0xff]  }
 0x5f5   : > { %11311 = vmatpush1.bf16.msra.mxu0 %v16887_v7  ;;  %v16970_v40 = vld [vmem:[%s17822_s13 + $0x286c] ss:$16 sps:$4 sm:$0xff]   ;;  %v16965_v7 = vld [vmem:[%s17822_s13 + $0x2768] ss:$16 sps:$4 sm:$0xff]  }
 0x5f6   : > { %11336 = vmatpush1.bf16.msra.mxu1 %v16890_v22  ;;  %11312 = vmatprep.subr.bf16.mxu0 %v16895_v4  ;;  %v16968_v22 = vld [vmem:[%s17822_s13 + $0x2868] ss:$16 sps:$4 sm:$0xff]   ;;  %v16976_v51 = vld [vmem:[%s17822_s13 + $0x288c] ss:$16 sps:$4 sm:$0xff]  }
 0x5f7   : > { %11337 = vmatprep.subr.bf16.mxu1 %v16898_v13  ;;  %v16971_v4 = vld [vmem:[%s17822_s13 + $0x2788] ss:$16 sps:$4 sm:$0xff]  }
 0x5f8   : > { %v16974_v13 = vld [vmem:[%s17822_s13 + $0x2888] ss:$16 sps:$4 sm:$0xff]  }
 0x5f9   : > { %11313 = vmatpush1.bf16.msra.mxu0 %v16893_v9  ;;  %v16979_v9 = vld [vmem:[%s17822_s13 + $0x27ac] ss:$16 sps:$4 sm:$0xff]  }
 0x5fa   : > { %11338 = vmatpush1.bf16.msra.mxu1 %v16896_v44  ;;  %11364 = vmatprep.subr.bf16.mxu0 %v16904_v24  ;;  %v16982_v44 = vld [vmem:[%s17822_s13 + $0x28ac] ss:$16 sps:$4 sm:$0xff]   ;;  %v16980_v24 = vld [vmem:[%s17822_s13 + $0x28a8] ss:$16 sps:$4 sm:$0xff]  }
 0x5fb   : > { %11339 = vmatprep.subr.bf16.mxu1 %v16901_v33  ;;  %v16977_v33 = vld [vmem:[%s17822_s13 + $0x27a8] ss:$16 sps:$4 sm:$0xff]  }
 0x5fc   : > { %11315 = vmatmul.mubr.bf16.vlgmr.msra.gmra.mrb[80].mxu0 %v18674_v20  ;;  %v16914_v20 = vld [vmem:[%s17822_s13 + $0x2648] ss:$16 sps:$4 sm:$0xff]  }
 0x5fd   : > { %11365 = vmatpush1.bf16.msra.mxu0 %v16902_v6  ;;  %11396 = vmatprep.mubr.bf16.mxu0 %v18690_v30  ;;  %v16925_v30 = vld [vmem:[%s17822_s13 + $0x258c] ss:$16 sps:$4 sm:$0xff]  }
 0x5fe   : > { %11340 = vmatpush1.bf16.msra.mxu1 %v16899_v17  ;;  %11366 = vmatprep.subr.bf16.mxu0 %v16910_v49  ;;  %v16985_v17 = vld [vmem:[%s17822_s13 + $0x27cc] ss:$16 sps:$4 sm:$0xff]  }
 0x5ff   : > { %11341 = vmatprep.subr.bf16.mxu1 %v16907_v50  ;;  %v16988_v6 = vld [vmem:[%s17822_s13 + $0x28cc] ss:$16 sps:$4 sm:$0xff]  }
 0x601   : > { %11367 = vmatpush1.bf16.msra.mxu0 %v16908_v27 }
 0x602   : > { %11342 = vmatpush1.bf16.msra.mxu1 %v16905_v37  ;;  %11368 = vmatprep.subr.bf16.mxu0 %v16916_v47  ;;  %v16983_v47 = vld [vmem:[%s17822_s13 + $0x27c8] ss:$16 sps:$4 sm:$0xff]  }
 0x603   : > { %11343 = vmatprep.subr.bf16.mxu1 %v16913_v57 }
 0x605   : > { %11369 = vmatpush1.bf16.msra.mxu0 %v16914_v20 }
 0x606   : > { %11344 = vmatpush1.bf16.msra.mxu1 %v16911_v61  ;;  %11370 = vmatprep.subr.bf16.mxu0 %v16922_v3  ;;  %v16986_v61 = vld [vmem:[%s17822_s13 + $0x28c8] ss:$16 sps:$4 sm:$0xff]   ;;  %v16994_v3 = vld [vmem:[%s17822_s13 + $0x28ec] ss:$16 sps:$4 sm:$0xff]  }
 0x607   : > { %11345 = vmatprep.subr.bf16.mxu1 %v16919_v62  ;;  %v16991_v62 = vld [vmem:[%s17822_s13 + $0x27ec] ss:$16 sps:$4 sm:$0xff]  }
 0x609   : > { %11371 = vmatpush1.bf16.msra.mxu0 %v16920_v25  ;;  %v16992_v25 = vld [vmem:[%s17822_s13 + $0x28e8] ss:$16 sps:$4 sm:$0xff]  }
 0x60a   : > { %11346 = vmatpush1.bf16.msra.mxu1 %v16917_v60  ;;  %11372 = vmatprep.subr.bf16.mxu0 %v16928_v56  ;;  %v16989_v60 = vld [vmem:[%s17822_s13 + $0x27e8] ss:$16 sps:$4 sm:$0xff]   ;;  %v17000_v56 = vld [vmem:[%s17822_s13 + $0x2a0c] ss:$16 sps:$4 sm:$0xff]  }
 0x60b   : > { %11347 = vmatprep.subr.bf16.mxu1 %v16925_v30  ;;  %v16997_v30 = vld [vmem:[%s17822_s13 + $0x290c] ss:$16 sps:$4 sm:$0xff]  }
 0x60d   : > { %11373 = vmatpush1.bf16.msra.mxu0 %v16926_v14  ;;  %v16998_v14 = vld [vmem:[%s17822_s13 + $0x2a08] ss:$16 sps:$4 sm:$0xff]  }
 0x60e   : > { %11348 = vmatpush1.bf16.msra.mxu1 %v16923_v59  ;;  %11374 = vmatprep.subr.bf16.mxu0 %v16934_v8  ;;  %v16995_v59 = vld [vmem:[%s17822_s13 + $0x2908] ss:$16 sps:$4 sm:$0xff]   ;;  %v17006_v8 = vld [vmem:[%s17822_s13 + $0x2a2c] ss:$16 sps:$4 sm:$0xff]  }
 0x60f   : > { %11349 = vmatprep.subr.bf16.mxu1 %v16931_v42  ;;  %v11070_v52 = vpop.f32.mrb[68].mxu0  ;;  %v17003_v42 = vld [vmem:[%s17822_s13 + $0x292c] ss:$16 sps:$4 sm:$0xff]  }
 0x610   : > { %v19682_v38 = vadd.f32 %v11070_v52, %v19642_v46  ;;  %v11072_v54 = vpop.f32.mrb[69].mxu0  ;;  %v16964_v46 = vld [vmem:[%s17822_s13 + $0x284c] ss:$16 sps:$4 sm:$0xff]   ;;  %v17007_v52 = vld [vmem:[%s17822_s13 + $0x2948] ss:$16 sps:$4 sm:$0xff]  }
 0x611   : > { %v19685_v48 = vadd.f32 %v11072_v54, %v19645_v28  ;;  %v11074_v43 = vpop.f32.mrb[70].mxu0  ;;  %11375 = vmatpush1.bf16.msra.mxu0 %v16932_v2  ;;  %v16967_v28 = vld [vmem:[%s17822_s13 + $0x276c] ss:$16 sps:$4 sm:$0xff]   ;;  %v17004_v2 = vld [vmem:[%s17822_s13 + $0x2a28] ss:$16 sps:$4 sm:$0xff]  }
 0x612   : > { %11350 = vmatpush1.bf16.msra.mxu1 %v16929_v41  ;;  %v11075_v31 = vpop.f32.mrb[71].mxu0  ;;  %11376 = vmatprep.subr.bf16.mxu0 %v16940_v26  ;;  %v17001_v41 = vld [vmem:[%s17822_s13 + $0x2928] ss:$16 sps:$4 sm:$0xff]   ;;  %v17012_v26 = vld [vmem:[%s17822_s13 + $0x2a4c] ss:$16 sps:$4 sm:$0xff]  }
 0x613   : > { %11351 = vmatprep.subr.bf16.mxu1 %v16937_v35  ;;  %v17009_v35 = vld [vmem:[%s17822_s13 + $0x294c] ss:$16 sps:$4 sm:$0xff]   ;;  %v17016_v43 = vld [vmem:[%s17822_s13 + $0x2a68] ss:$16 sps:$4 sm:$0xff]  }
 0x614   : > { %v17018_v54 = vld [vmem:[%s17822_s13 + $0x2a6c] ss:$16 sps:$4 sm:$0xff]   ;;  %v17022_v31 = vld [vmem:[%s17822_s13 + $0x2a88] ss:$16 sps:$4 sm:$0xff]  }
 0x615   : > { %11377 = vmatpush1.bf16.msra.mxu0 %v16938_v36  ;;  %v17019_v36 = vld [vmem:[%s17822_s13 + $0x2988] ss:$16 sps:$4 sm:$0xff]  }
 0x616   : > { %11352 = vmatpush1.bf16.msra.mxu1 %v16935_v19  ;;  %11378 = vmatprep.subr.bf16.mxu0 %v16946_v55  ;;  %v17024_v19 = vld [vmem:[%s17822_s13 + $0x2a8c] ss:$16 sps:$4 sm:$0xff]  }
 0x617   : > { %11353 = vmatprep.subr.bf16.mxu1 %v16943_v18  ;;  %v17027_v18 = vld [vmem:[%s17822_s13 + $0x29ac] ss:$16 sps:$4 sm:$0xff]  }
 0x618   : > { %v17030_v55 = vld [vmem:[%s17822_s13 + $0x2aac] ss:$16 sps:$4 sm:$0xff]  }
 0x619   : > { %11379 = vmatpush1.bf16.msra.mxu0 %v16944_v1  ;;  %v17028_v1 = vld [vmem:[%s17822_s13 + $0x2aa8] ss:$16 sps:$4 sm:$0xff]  }
 0x61a   : > { %11354 = vmatpush1.bf16.msra.mxu1 %v16941_v29  ;;  %11380 = vmatprep.subr.bf16.mxu0 %v16949_v15  ;;  %v17025_v29 = vld [vmem:[%s17822_s13 + $0x29a8] ss:$16 sps:$4 sm:$0xff]   ;;  %v17033_v15 = vld [vmem:[%s17822_s13 + $0x29cc] ss:$16 sps:$4 sm:$0xff]  }
 0x61b   : > { %11405 = vmatprep.subr.bf16.mxu1 %v16952_v32  ;;  %v17036_v32 = vld [vmem:[%s17822_s13 + $0x2acc] ss:$16 sps:$4 sm:$0xff]  }
 0x61d   : > { %11356 = vmatmul.mubr.bf16.vlgmr.msra.gmra.mrb[84].mxu1 %v18769_v58  ;;  %11381 = vmatpush1.bf16.msra.mxu0 %v16947_v45  ;;  %v16962_v58 = vld [vmem:[%s17822_s13 + $0x2848] ss:$16 sps:$4 sm:$0xff]  }
 0x61e   : > { %11406 = vmatpush1.bf16.msra.mxu1 %v16950_v23  ;;  %11382 = vmatprep.subr.bf16.mxu0 %v16955_v53 }
 0x61f   : > { %11407 = vmatprep.subr.bf16.mxu1 %v16958_v16  ;;  %11437 = vmatprep.mubr.bf16.mxu1 %v18782_v63  ;;  %v16973_v63 = vld [vmem:[%s17822_s13 + $0x278c] ss:$16 sps:$4 sm:$0xff]  }
 0x621   : > { %11383 = vmatpush1.bf16.msra.mxu0 %v16953_v11 }
 0x622   : > { %11408 = vmatpush1.bf16.msra.mxu1 %v16956_v10  ;;  %11384 = vmatprep.subr.bf16.mxu0 %v16961_v39  ;;  %v17031_v10 = vld [vmem:[%s17822_s13 + $0x29c8] ss:$16 sps:$4 sm:$0xff]  }
 0x623   : > { %11409 = vmatprep.subr.bf16.mxu1 %v16964_v46  ;;  %v17034_v39 = vld [vmem:[%s17822_s13 + $0x2ac8] ss:$16 sps:$4 sm:$0xff]  }
 0x625   : > { %11385 = vmatpush1.bf16.msra.mxu0 %v16959_v34  ;;  %v17039_v34 = vld [vmem:[%s17822_s13 + $0x29ec] ss:$16 sps:$4 sm:$0xff]  }
 0x626   : > { %11410 = vmatpush1.bf16.msra.mxu1 %v16962_v58  ;;  %11386 = vmatprep.subr.bf16.mxu0 %v16967_v28  ;;  %v17042_v58 = vld [vmem:[%s17822_s13 + $0x2aec] ss:$16 sps:$4 sm:$0xff]   ;;  %v17037_v28 = vld [vmem:[%s17822_s13 + $0x29e8] ss:$16 sps:$4 sm:$0xff]  }
 0x627   : > { %11411 = vmatprep.subr.bf16.mxu1 %v16970_v40  ;;  %v17040_v40 = vld [vmem:[%s17822_s13 + $0x2ae8] ss:$16 sps:$4 sm:$0xff]  }
 0x629   : > { %11387 = vmatpush1.bf16.msra.mxu0 %v16965_v7  ;;  %v17045_v7 = vld [vmem:[%s17822_s13 + $0x2b0c] ss:$16 sps:$4 sm:$0xff]  }
 0x62a   : > { %11412 = vmatpush1.bf16.msra.mxu1 %v16968_v22  ;;  %11388 = vmatprep.subr.bf16.mxu0 %v16973_v63  ;;  %v17048_v22 = vld [vmem:[%s17822_s13 + $0x2c0c] ss:$16 sps:$4 sm:$0xff]   ;;  %v17043_v63 = vld [vmem:[%s17822_s13 + $0x2b08] ss:$16 sps:$4 sm:$0xff]  }
 0x62b   : > { %11413 = vmatprep.subr.bf16.mxu1 %v16976_v51  ;;  %v17046_v51 = vld [vmem:[%s17822_s13 + $0x2c08] ss:$16 sps:$4 sm:$0xff]  }
 0x62d   : > { %11389 = vmatpush1.bf16.msra.mxu0 %v16971_v4  ;;  %v17051_v4 = vld [vmem:[%s17822_s13 + $0x2b2c] ss:$16 sps:$4 sm:$0xff]  }
 0x62e   : > { %11414 = vmatpush1.bf16.msra.mxu1 %v16974_v13  ;;  %11390 = vmatprep.subr.bf16.mxu0 %v16979_v9  ;;  %v17054_v13 = vld [vmem:[%s17822_s13 + $0x2c2c] ss:$16 sps:$4 sm:$0xff]   ;;  %v17049_v9 = vld [vmem:[%s17822_s13 + $0x2b28] ss:$16 sps:$4 sm:$0xff]  }
 0x62f   : > { %11415 = vmatprep.subr.bf16.mxu1 %v16982_v44  ;;  %v17052_v44 = vld [vmem:[%s17822_s13 + $0x2c28] ss:$16 sps:$4 sm:$0xff]  }
 0x630   : > { %v11111_v50 = vpop.f32.mrb[72].mxu1 }
 0x631   : > { %v19722_v49 = vadd.f32 %v11111_v50, %v19682_v38  ;;  %v11113_v37 = vpop.f32.mrb[73].mxu1  ;;  %11391 = vmatpush1.bf16.msra.mxu0 %v16977_v33  ;;  %v17015_v38 = vld [vmem:[%s17822_s13 + $0x296c] ss:$16 sps:$4 sm:$0xff]  }
 0x632   : > { %v19725_v27 = vadd.f32 %v11113_v37, %v19685_v48  ;;  %v11115_v57 = vpop.f32.mrb[74].mxu1  ;;  %11416 = vmatpush1.bf16.msra.mxu1 %v16980_v24  ;;  %11392 = vmatprep.subr.bf16.mxu0 %v16985_v17  ;;  %v17013_v48 = vld [vmem:[%s17822_s13 + $0x2968] ss:$16 sps:$4 sm:$0xff]   ;;  %v17057_v33 = vld [vmem:[%s17822_s13 + $0x2b4c] ss:$16 sps:$4 sm:$0xff]  }
 0x633   : > { %v11116_v20 = vpop.f32.mrb[75].mxu1  ;;  %11417 = vmatprep.subr.bf16.mxu1 %v16988_v6  ;;  %v17060_v24 = vld [vmem:[%s17822_s13 + $0x2c4c] ss:$16 sps:$4 sm:$0xff]   ;;  %v19927_v17 = vld [vmem:[#allocation18_spill] sm:$0xff] }
 0x634   : > { %v17055_v6 = vld [vmem:[%s17822_s13 + $0x2b48] ss:$16 sps:$4 sm:$0xff]   ;;  %v17063_v50 = vld [vmem:[%s17822_s13 + $0x2b6c] ss:$16 sps:$4 sm:$0xff]  }
 0x635   : > { %11393 = vmatpush1.bf16.msra.mxu0 %v16983_v47  ;;  %v17061_v37 = vld [vmem:[%s17822_s13 + $0x2b68] ss:$16 sps:$4 sm:$0xff]   ;;  %v17069_v57 = vld [vmem:[%s17822_s13 + $0x2b8c] ss:$16 sps:$4 sm:$0xff]  }
 0x636   : > { %11418 = vmatpush1.bf16.msra.mxu1 %v16986_v61  ;;  %11394 = vmatprep.subr.bf16.mxu0 %v16991_v62  ;;  %v17072_v47 = vld [vmem:[%s17822_s13 + $0x2c8c] ss:$16 sps:$4 sm:$0xff]   ;;  %v17067_v61 = vld [vmem:[%s17822_s13 + $0x2b88] ss:$16 sps:$4 sm:$0xff]  }
 0x637   : > { %11419 = vmatprep.subr.bf16.mxu1 %v16994_v3  ;;  %v17070_v20 = vld [vmem:[%s17822_s13 + $0x2c88] ss:$16 sps:$4 sm:$0xff]   ;;  %v17075_v62 = vld [vmem:[%s17822_s13 + $0x2bac] ss:$16 sps:$4 sm:$0xff]  }
 0x638   : > { %v17078_v3 = vld [vmem:[%s17822_s13 + $0x2cac] ss:$16 sps:$4 sm:$0xff]  }
 0x639   : > { %11395 = vmatpush1.bf16.msra.mxu0 %v16989_v60  ;;  %v17073_v60 = vld [vmem:[%s17822_s13 + $0x2ba8] ss:$16 sps:$4 sm:$0xff]  }
 0x63a   : > { %11420 = vmatpush1.bf16.msra.mxu1 %v16992_v25  ;;  %11446 = vmatprep.subr.bf16.mxu0 %v17000_v56  ;;  %v17076_v25 = vld [vmem:[%s17822_s13 + $0x2ca8] ss:$16 sps:$4 sm:$0xff]   ;;  %v17084_v56 = vld [vmem:[%s17822_s13 + $0x2ccc] ss:$16 sps:$4 sm:$0xff]  }
 0x63b   : > { %11421 = vmatprep.subr.bf16.mxu1 %v16997_v30  ;;  %v17081_v30 = vld [vmem:[%s17822_s13 + $0x2bcc] ss:$16 sps:$4 sm:$0xff]  }
 0x63c   : > { %11397 = vmatmul.mubr.bf16.vlgmr.msra.gmra.mrb[84].mxu0 %v18773_v0  ;;  %v17010_v0 = vld [vmem:[%s17822_s13 + $0x2a48] ss:$16 sps:$4 sm:$0xff]  }
 0x63d   : > { %11447 = vmatpush1.bf16.msra.mxu0 %v16998_v14  ;;  %11478 = vmatprep.mubr.bf16.mxu0 %v18786_v21  ;;  %v17021_v21 = vld [vmem:[%s17822_s13 + $0x298c] ss:$16 sps:$4 sm:$0xff]  }
 0x63e   : > { %11422 = vmatpush1.bf16.msra.mxu1 %v16995_v59  ;;  %11448 = vmatprep.subr.bf16.mxu0 %v17006_v8 }
 0x63f   : > { %11423 = vmatprep.subr.bf16.mxu1 %v17003_v42 }
 0x641   : > { %11449 = vmatpush1.bf16.msra.mxu0 %v17004_v2  ;;  %v17079_v2 = vld [vmem:[%s17822_s13 + $0x2bc8] ss:$16 sps:$4 sm:$0xff]  }
 0x642   : > { %11424 = vmatpush1.bf16.msra.mxu1 %v17001_v41  ;;  %11450 = vmatprep.subr.bf16.mxu0 %v17012_v26 }
 0x643   : > { %11425 = vmatprep.subr.bf16.mxu1 %v17009_v35  ;;  %v17082_v35 = vld [vmem:[%s17822_s13 + $0x2cc8] ss:$16 sps:$4 sm:$0xff]  }
 0x645   : > { %11451 = vmatpush1.bf16.msra.mxu0 %v17010_v0  ;;  %v17090_v0 = vld [vmem:[%s17822_s13 + $0x2cec] ss:$16 sps:$4 sm:$0xff]  }
 0x646   : > { %11426 = vmatpush1.bf16.msra.mxu1 %v17007_v52  ;;  %11452 = vmatprep.subr.bf16.mxu0 %v17018_v54  ;;  %v17087_v52 = vld [vmem:[%s17822_s13 + $0x2bec] ss:$16 sps:$4 sm:$0xff]   ;;  %v17088_v54 = vld [vmem:[%s17822_s13 + $0x2ce8] ss:$16 sps:$4 sm:$0xff]  }
 0x647   : > { %11427 = vmatprep.subr.bf16.mxu1 %v17015_v38  ;;  %v17085_v38 = vld [vmem:[%s17822_s13 + $0x2be8] ss:$16 sps:$4 sm:$0xff]  }
 0x649   : > { %11453 = vmatpush1.bf16.msra.mxu0 %v17016_v43  ;;  %v17096_v43 = vld [vmem:[%s17822_s13 + $0x2e0c] ss:$16 sps:$4 sm:$0xff]  }
 0x64a   : > { %11428 = vmatpush1.bf16.msra.mxu1 %v17013_v48  ;;  %11454 = vmatprep.subr.bf16.mxu0 %v17024_v19  ;;  %v17093_v48 = vld [vmem:[%s17822_s13 + $0x2d0c] ss:$16 sps:$4 sm:$0xff]   ;;  %v17094_v19 = vld [vmem:[%s17822_s13 + $0x2e08] ss:$16 sps:$4 sm:$0xff]  }
 0x64b   : > { %11429 = vmatprep.subr.bf16.mxu1 %v17021_v21  ;;  %v17091_v21 = vld [vmem:[%s17822_s13 + $0x2d08] ss:$16 sps:$4 sm:$0xff]  }
 0x64d   : > { %11455 = vmatpush1.bf16.msra.mxu0 %v17022_v31  ;;  %v17102_v31 = vld [vmem:[%s17822_s13 + $0x2e2c] ss:$16 sps:$4 sm:$0xff]  }
 0x64e   : > { %11430 = vmatpush1.bf16.msra.mxu1 %v17019_v36  ;;  %11456 = vmatprep.subr.bf16.mxu0 %v17030_v55  ;;  %v17099_v36 = vld [vmem:[%s17822_s13 + $0x2d2c] ss:$16 sps:$4 sm:$0xff]   ;;  %v17097_v55 = vld [vmem:[%s17822_s13 + $0x2d28] ss:$16 sps:$4 sm:$0xff]  }
 0x64f   : > { %11431 = vmatprep.subr.bf16.mxu1 %v17027_v18  ;;  %v11152_v45 = vpop.f32.mrb[72].mxu0  ;;  %v19928_v18 = vld [vmem:[#allocation17_spill] sm:$0xff] }
 0x650   : > { %v19762_v23 = vadd.f32 %v11152_v45, %v19722_v49  ;;  %v11154_v53 = vpop.f32.mrb[73].mxu0  ;;  %v17066_v49 = vld [vmem:[%s17822_s13 + $0x2c6c] ss:$16 sps:$4 sm:$0xff]   ;;  %v17103_v45 = vld [vmem:[%s17822_s13 + $0x2d48] ss:$16 sps:$4 sm:$0xff]  }
 0x651   : > { %v19765_v16 = vadd.f32 %v11154_v53, %v19725_v27  ;;  %v11156_v11 = vpop.f32.mrb[74].mxu0  ;;  %11457 = vmatpush1.bf16.msra.mxu0 %v17028_v1  ;;  %v17064_v27 = vld [vmem:[%s17822_s13 + $0x2c68] ss:$16 sps:$4 sm:$0xff]   ;;  %v17105_v1 = vld [vmem:[%s17822_s13 + $0x2d4c] ss:$16 sps:$4 sm:$0xff]  }
 0x652   : > { %11432 = vmatpush1.bf16.msra.mxu1 %v17025_v29  ;;  %v11157_v46 = vpop.f32.mrb[75].mxu0  ;;  %11458 = vmatprep.subr.bf16.mxu0 %v17036_v32  ;;  %v17100_v29 = vld [vmem:[%s17822_s13 + $0x2e28] ss:$16 sps:$4 sm:$0xff]   ;;  %v19929_v32 = vmov 0   ;;  %v17111_v53 = vld [vmem:[%s17822_s13 + $0x2d6c] ss:$16 sps:$4 sm:$0xff]  }
 0x653   : > { %11433 = vmatprep.subr.bf16.mxu1 %v17033_v15  ;;  %v17108_v15 = vld [vmem:[%s17822_s13 + $0x2e4c] ss:$16 sps:$4 sm:$0xff]   ;;  %v17109_v11 = vld [vmem:[%s17822_s13 + $0x2d68] ss:$16 sps:$4 sm:$0xff]  }
 0x654   : > { %v17120_v46 = vld [vmem:[%s17822_s13 + $0x2e8c] ss:$16 sps:$4 sm:$0xff]  }
 0x655   : > { %11459 = vmatpush1.bf16.msra.mxu0 %v17034_v39  ;;  %v17117_v39 = vld [vmem:[%s17822_s13 + $0x2d8c] ss:$16 sps:$4 sm:$0xff]  }
 0x656   : > { %11434 = vmatpush1.bf16.msra.mxu1 %v17031_v10  ;;  %11460 = vmatprep.subr.bf16.mxu0 %v17042_v58  ;;  %v17112_v10 = vld [vmem:[%s17822_s13 + $0x2e68] ss:$16 sps:$4 sm:$0xff]  }
 0x657   : > { %11435 = vmatprep.subr.bf16.mxu1 %v17039_v34  ;;  %v17115_v34 = vld [vmem:[%s17822_s13 + $0x2d88] ss:$16 sps:$4 sm:$0xff]  }
 0x658   : > { %v17118_v58 = vld [vmem:[%s17822_s13 + $0x2e88] ss:$16 sps:$4 sm:$0xff]  }
 0x659   : > { %11461 = vmatpush1.bf16.msra.mxu0 %v17040_v40  ;;  %v17126_v40 = vld [vmem:[%s17822_s13 + $0x2eac] ss:$16 sps:$4 sm:$0xff]  }
 0x65a   : > { %11436 = vmatpush1.bf16.msra.mxu1 %v17037_v28  ;;  %11462 = vmatprep.subr.bf16.mxu0 %v17045_v7  ;;  %v17123_v28 = vld [vmem:[%s17822_s13 + $0x2dac] ss:$16 sps:$4 sm:$0xff]   ;;  %v17121_v7 = vld [vmem:[%s17822_s13 + $0x2da8] ss:$16 sps:$4 sm:$0xff]  }
 0x65b   : > { %11487 = vmatprep.subr.bf16.mxu1 %v17048_v22  ;;  %v17124_v22 = vld [vmem:[%s17822_s13 + $0x2ea8] ss:$16 sps:$4 sm:$0xff]  }
 0x65d   : > { %11438 = vmatmul.mubr.bf16.vlgmr.msra.gmra.mrb[88].mxu1 %v18865_v12  ;;  %11463 = vmatpush1.bf16.msra.mxu0 %v17043_v63  ;;  %v17058_v12 = vld [vmem:[%s17822_s13 + $0x2c48] ss:$16 sps:$4 sm:$0xff]   ;;  %v17129_v63 = vld [vmem:[%s17822_s13 + $0x2dcc] ss:$16 sps:$4 sm:$0xff]  }
 0x65e   : > { %11488 = vmatpush1.bf16.msra.mxu1 %v17046_v51  ;;  %11464 = vmatprep.subr.bf16.mxu0 %v17051_v4  ;;  %v17132_v51 = vld [vmem:[%s17822_s13 + $0x2ecc] ss:$16 sps:$4 sm:$0xff]  }
 0x65f   : > { %11489 = vmatprep.subr.bf16.mxu1 %v17054_v13  ;;  %11519 = vmatprep.mubr.bf16.mxu1 %v19927_v17  ;;  %v17130_v17 = vld [vmem:[%s17822_s13 + $0x2ec8] ss:$16 sps:$4 sm:$0xff]  }
 0x661   : > { %11465 = vmatpush1.bf16.msra.mxu0 %v17049_v9 }
 0x662   : > { %11490 = vmatpush1.bf16.msra.mxu1 %v17052_v44  ;;  %11466 = vmatprep.subr.bf16.mxu0 %v17057_v33 }
 0x663   : > { %11491 = vmatprep.subr.bf16.mxu1 %v17060_v24  ;;  %v17127_v24 = vld [vmem:[%s17822_s13 + $0x2dc8] ss:$16 sps:$4 sm:$0xff]  }
 0x665   : > { %11467 = vmatpush1.bf16.msra.mxu0 %v17055_v6 }
 0x666   : > { %11492 = vmatpush1.bf16.msra.mxu1 %v17058_v12  ;;  %11468 = vmatprep.subr.bf16.mxu0 %v17063_v50  ;;  %v17135_v12 = vld [vmem:[%s17822_s13 + $0x2dec] ss:$16 sps:$4 sm:$0xff]  }
 0x667   : > { %11493 = vmatprep.subr.bf16.mxu1 %v17066_v49  ;;  %v17138_v50 = vld [vmem:[%s17822_s13 + $0x2eec] ss:$16 sps:$4 sm:$0xff]   ;;  %v17133_v49 = vld [vmem:[%s17822_s13 + $0x2de8] ss:$16 sps:$4 sm:$0xff]  }
 0x669   : > { %11469 = vmatpush1.bf16.msra.mxu0 %v17061_v37  ;;  %v17136_v37 = vld [vmem:[%s17822_s13 + $0x2ee8] ss:$16 sps:$4 sm:$0xff]  }
 0x66a   : > { %11494 = vmatpush1.bf16.msra.mxu1 %v17064_v27  ;;  %11470 = vmatprep.subr.bf16.mxu0 %v17069_v57  ;;  %v17139_v27 = vld [vmem:[%s17844_s24 + $0xb8] ss:$0 sps:$4 sm:$0xff]  }
 0x66b   : > { %11495 = vmatprep.subr.bf16.mxu1 %v17072_v47 }
 0x66d   : > { %11471 = vmatpush1.bf16.msra.mxu0 %v17067_v61 }
 0x66e   : > { %11496 = vmatpush1.bf16.msra.mxu1 %v17070_v20  ;;  %11472 = vmatprep.subr.bf16.mxu0 %v17075_v62 }
 0x66f   : > { %11497 = vmatprep.subr.bf16.mxu1 %v17078_v3 }
 0x670   : > { %v11193_v59 = vpop.f32.mrb[76].mxu1 }
 0x671   : > { %v19802_v14 = vadd.f32 %v11193_v59, %v19762_v23  ;;  %v11195_v42 = vpop.f32.mrb[77].mxu1  ;;  %11473 = vmatpush1.bf16.msra.mxu0 %v17073_v60  ;;  %v17106_v23 = vld [vmem:[%s17822_s13 + $0x2e48] ss:$16 sps:$4 sm:$0xff]  }
 0x672   : > { %v19805_v8 = vadd.f32 %v11195_v42, %v19765_v16  ;;  %v11197_v41 = vpop.f32.mrb[78].mxu1  ;;  %11498 = vmatpush1.bf16.msra.mxu1 %v17076_v25  ;;  %11474 = vmatprep.subr.bf16.mxu0 %v17081_v30  ;;  %v17114_v16 = vld [vmem:[%s17822_s13 + $0x2e6c] ss:$16 sps:$4 sm:$0xff]  }
 0x673   : > { %v11198_v26 = vpop.f32.mrb[79].mxu1  ;;  %11499 = vmatprep.subr.bf16.mxu1 %v17084_v56 }
 0x675   : > { %11475 = vmatpush1.bf16.msra.mxu0 %v17079_v2 }
 0x676   : > { %11500 = vmatpush1.bf16.msra.mxu1 %v17082_v35  ;;  %11476 = vmatprep.subr.bf16.mxu0 %v17087_v52 }
 0x677   : > { %11501 = vmatprep.subr.bf16.mxu1 %v17090_v0 }
 0x679   : > { %11477 = vmatpush1.bf16.msra.mxu0 %v17085_v38 }
 0x67a   : > { %11502 = vmatpush1.bf16.msra.mxu1 %v17088_v54  ;;  %11528 = vmatprep.subr.bf16.mxu0 %v17096_v43 }
 0x67b   : > { %11503 = vmatprep.subr.bf16.mxu1 %v17093_v48 }
 0x67c   : > { %11479 = vmatmul.mubr.bf16.vlgmr.msra.gmra.mrb[88].mxu0 %v19928_v18 }
 0x67d   : > { %11529 = vmatpush1.bf16.msra.mxu0 %v17094_v19  ;;  %11560 = vmatprep.mubr.bf16.mxu0 %v19929_v32 }
 0x67e   : > { %11504 = vmatpush1.bf16.msra.mxu1 %v17091_v21  ;;  %11530 = vmatprep.subr.bf16.mxu0 %v17102_v31 }
 0x67f   : > { %11505 = vmatprep.subr.bf16.mxu1 %v17099_v36 }
 0x681   : > { %11531 = vmatpush1.bf16.msra.mxu0 %v17100_v29 }
 0x682   : > { %11506 = vmatpush1.bf16.msra.mxu1 %v17097_v55  ;;  %11532 = vmatprep.subr.bf16.mxu0 %v17108_v15 }
 0x683   : > { %11507 = vmatprep.subr.bf16.mxu1 %v17105_v1 }
 0x685   : > { %11533 = vmatpush1.bf16.msra.mxu0 %v17106_v23 }
 0x686   : > { %11508 = vmatpush1.bf16.msra.mxu1 %v17103_v45  ;;  %11534 = vmatprep.subr.bf16.mxu0 %v17114_v16 }
 0x687   : > { %11509 = vmatprep.subr.bf16.mxu1 %v17111_v53 }
 0x689   : > { %11535 = vmatpush1.bf16.msra.mxu0 %v17112_v10 }
 0x68a   : > { %11510 = vmatpush1.bf16.msra.mxu1 %v17109_v11  ;;  %11536 = vmatprep.subr.bf16.mxu0 %v17120_v46 }
 0x68b   : > { %11511 = vmatprep.subr.bf16.mxu1 %v17117_v39  ;;  %v386_v39 = vld [vmem:[#allocation2 + $0x10] sm:$0xff] }
 0x68d   : > { %11537 = vmatpush1.bf16.msra.mxu0 %v17118_v58 }
 0x68e   : > { %11512 = vmatpush1.bf16.msra.mxu1 %v17115_v34  ;;  %11538 = vmatprep.subr.bf16.mxu0 %v17126_v40  ;;  %v387_v40 = vld [vmem:[#allocation2 + $0x18] sm:$0xff] }
 0x68f   : > { %11513 = vmatprep.subr.bf16.mxu1 %v17123_v28  ;;  %v11234_v4 = vpop.f32.mrb[76].mxu0 }
 0x690   : > { %v11235_v13 = vadd.f32 %v11234_v4, %v19802_v14  ;;  %v11236_v9 = vpop.f32.mrb[77].mxu0 }
 0x691   : > { %v11237_v44 = vadd.f32 %v11236_v9, %v19805_v8  ;;  %v11238_v33 = vpop.f32.mrb[78].mxu0  ;;  %11539 = vmatpush1.bf16.msra.mxu0 %v17124_v22  ;;  %v17142_v9 = vld [vmem:[#allocation7 + $0xc] ss:$16 sps:$4 sm:$0xff] (!%p14457_p12)  }
 0x692   : > { %11514 = vmatpush1.bf16.msra.mxu1 %v17121_v7  ;;  %v11239_v6 = vpop.f32.mrb[79].mxu0  ;;  %11540 = vmatprep.subr.bf16.mxu0 %v17132_v51  ;;  %v17145_v33 = vld [vmem:[#allocation7 + $0x8] ss:$16 sps:$4 sm:$0xff] (!%p14457_p12)  }
 0x693   : > { %11515 = vmatprep.subr.bf16.mxu1 %v17129_v63  ;;  %v17150_v6 = vld [vmem:[#allocation7 + $0x20] ss:$16 sps:$4 sm:$0xff] (!%p14457_p12)  }
 0x695   : > { %11541 = vmatpush1.bf16.msra.mxu0 %v17130_v17  ;;  %v17148_v17 = vld [vmem:[#allocation7 + $0x2c] ss:$16 sps:$4 sm:$0xff] (!%p14457_p12)  }
 0x696   : > { %11516 = vmatpush1.bf16.msra.mxu1 %v17127_v24  ;;  %11542 = vmatprep.subr.bf16.mxu0 %v17138_v50  ;;  %v17146_v24 = vld [vmem:[#allocation7 + $0x24] ss:$16 sps:$4 sm:$0xff] (!%p14457_p12)  }
 0x697   : > { %11517 = vmatprep.subr.bf16.mxu1 %v17135_v12  ;;  %v17151_v12 = vld [vmem:[#allocation7 + $0x28] ss:$16 sps:$4 sm:$0xff] (!%p14457_p12)   ;;  %v17152_v50 = vld [vmem:[#allocation7 + $0x44] ss:$16 sps:$4 sm:$0xff] (!%p14457_p12)  }
 0x699   : > { %11543 = vmatpush1.bf16.msra.mxu0 %v17136_v37  ;;  %v17156_v37 = vld [vmem:[#allocation7 + $0x40] ss:$16 sps:$4 sm:$0xff] (!%p14457_p12)  }
 0x69a   : > { %11518 = vmatpush1.bf16.msra.mxu1 %v17133_v49  ;;  %v17154_v49 = vld [vmem:[#allocation7 + $0x4c] ss:$16 sps:$4 sm:$0xff] (!%p14457_p12)  }
 0x69b   : > { %12491 = vmatprep.subr.bf16.mxu1 (!%p14457_p12), %v17142_v9  ;;  %v17223_v9 = vld [vmem:[#allocation7 + $0x1a8] ss:$16 sps:$4 sm:$0xff] (!%p14457_p12)  }
 0x69c   : > { %11561 = vmatmul.mubr.bf16.vlgmr.msra.gmra.mrb[92].mxu0 %v17139_v27  ;;  %v17157_v27 = vld [vmem:[#allocation7 + $0x48] ss:$16 sps:$4 sm:$0xff] (!%p14457_p12)  }
 0x69d   : > { %11520 = vmatmul.mubr.bf16.vlgmr.msra.gmra.mrb[92].mxu1 %v18953_v5 }
 0x69e   : > { %12492 = vmatpush1.bf16.msra.mxu1 (!%p14457_p12), %v17145_v33  ;;  %v17224_v33 = vld [vmem:[#allocation7 + $0x1c4] ss:$16 sps:$4 sm:$0xff] (!%p14457_p12)  }
 0x69f   : > { %12493 = vmatprep.subr.bf16.mxu1 (!%p14457_p12), %v17148_v17  ;;  %v17226_v17 = vld [vmem:[#allocation7 + $0x1cc] ss:$16 sps:$4 sm:$0xff] (!%p14457_p12)  }
 0x6a2   : > { %12494 = vmatpush1.bf16.msra.mxu1 (!%p14457_p12), %v17151_v12 }
 0x6a3   : > { %12495 = vmatprep.subr.bf16.mxu1 (!%p14457_p12), %v17154_v49  ;;  %v17230_v49 = vld [vmem:[#allocation7 + $0x1e4] ss:$16 sps:$4 sm:$0xff] (!%p14457_p12)  }
 0x6a6   : > { %12496 = vmatpush1.bf16.msra.mxu1 (!%p14457_p12), %v17157_v27  ;;  %v17234_v27 = vld [vmem:[#allocation7 + $0x1e0] ss:$16 sps:$4 sm:$0xff] (!%p14457_p12)  }
 0x6b0   : > { %v11275_v57 = vpop.f32.mrb[80].mxu1 }
 0x6b1   : > { %v11276_v47 = vadd.f32 %v11275_v57, %v11235_v13  ;;  %v11277_v61 = vpop.f32.mrb[81].mxu1  ;;  %v17140_v13 = vld [vmem:[#allocation7 + $0x4] ss:$16 sps:$4 sm:$0xff] (!%p14457_p12)  }
 0x6b2   : > { %v11278_v20 = vadd.f32 %v11277_v61, %v11237_v44  ;;  %v11279_v62 = vpop.f32.mrb[82].mxu1  ;;  %12409 = vmatprep.subr.bf16.mxu0 (!%p14457_p12), %v17140_v13  ;;  %v17144_v44 = vld [vmem:[#allocation7] ss:$16 sps:$4 sm:$0xff] (!%p14457_p12)   ;;  %v17158_v57 = vld [vmem:[#allocation7 + $0x64] ss:$16 sps:$4 sm:$0xff] (!%p14457_p12)  }
 0x6b3   : > { %v11280_v3 = vpop.f32.mrb[83].mxu1  ;;  %12410 = vmatpush1.bf16.msra.mxu0 (!%p14457_p12), %v17144_v44  ;;  %v17162_v61 = vld [vmem:[#allocation7 + $0x60] ss:$16 sps:$4 sm:$0xff] (!%p14457_p12)   ;;  %v17164_v62 = vld [vmem:[#allocation7 + $0x84] ss:$16 sps:$4 sm:$0xff] (!%p14457_p12)  }
 0x6b4   : > { %12411 = vmatprep.subr.bf16.mxu0 (!%p14457_p12), %v17146_v24  ;;  %v17166_v3 = vld [vmem:[#allocation7 + $0x8c] ss:$16 sps:$4 sm:$0xff] (!%p14457_p12)   ;;  %v17222_v13 = vld [vmem:[#allocation7 + $0x1a0] ss:$16 sps:$4 sm:$0xff] (!%p14457_p12)  }
 0x6b5   : > { %v11581_v24 = vld [vmem:[#allocation2] sm:$0xff] (!%p14457_p12) }
 0x6b7   : > { %12412 = vmatpush1.bf16.msra.mxu0 (!%p14457_p12), %v17150_v6  ;;  %v17228_v6 = vld [vmem:[#allocation7 + $0x1c0] ss:$16 sps:$4 sm:$0xff] (!%p14457_p12)  }
 0x6b8   : > { %12413 = vmatprep.subr.bf16.mxu0 (!%p14457_p12), %v17152_v50  ;;  %v17229_v50 = vld [vmem:[#allocation7 + $0x1c8] ss:$16 sps:$4 sm:$0xff] (!%p14457_p12)  }
 0x6bb   : > { %12414 = vmatpush1.bf16.msra.mxu0 (!%p14457_p12), %v17156_v37  ;;  %v17232_v37 = vld [vmem:[#allocation7 + $0x1ec] ss:$16 sps:$4 sm:$0xff] (!%p14457_p12)  }
 0x6bc   : > { %12415 = vmatprep.subr.bf16.mxu0 (!%p14457_p12), %v17158_v57 }
 0x6bf   : > { %12416 = vmatpush1.bf16.msra.mxu0 (!%p14457_p12), %v17162_v61  ;;  %v17238_v61 = vld [vmem:[#allocation7 + $0x204] ss:$16 sps:$4 sm:$0xff] (!%p14457_p12)  }
 0x6c0   : > { %12417 = vmatprep.subr.bf16.mxu0 (!%p14457_p12), %v17164_v62  ;;  %v17236_v62 = vld [vmem:[#allocation7 + $0x200] ss:$16 sps:$4 sm:$0xff] (!%p14457_p12)  }
 0x6cf   : > { %v11316_v60 = vpop.f32.mrb[80].mxu0 }
 0x6d0   : > { %v11317_v25 = vadd.f32 %v11316_v60, %v11276_v47  ;;  %v11318_v30 = vpop.f32.mrb[81].mxu0  ;;  %v17160_v47 = vld [vmem:[#allocation7 + $0x6c] ss:$16 sps:$4 sm:$0xff] (!%p14457_p12)   ;;  %v17168_v60 = vld [vmem:[#allocation7 + $0x80] ss:$16 sps:$4 sm:$0xff] (!%p14457_p12)  }
 0x6d1   : > { %v11319_v56 = vadd.f32 %v11318_v30, %v11278_v20  ;;  %v11320_v59 = vpop.f32.mrb[82].mxu0  ;;  %v17163_v20 = vld [vmem:[#allocation7 + $0x68] ss:$16 sps:$4 sm:$0xff] (!%p14457_p12)   ;;  %12497 = vmatprep.subr.bf16.mxu1 (!%p14457_p12), %v17160_v47  ;;  %v17170_v30 = vld [vmem:[#allocation7 + $0xa4] ss:$16 sps:$4 sm:$0xff] (!%p14457_p12)   ;;  %12418 = vmatpush1.bf16.msra.mxu0 (!%p14457_p12), %v17168_v60 }
 0x6d2   : > { %v11321_v14 = vpop.f32.mrb[83].mxu0  ;;  %12498 = vmatpush1.bf16.msra.mxu1 (!%p14457_p12), %v17163_v20  ;;  %v17174_v59 = vld [vmem:[#allocation7 + $0xa0] ss:$16 sps:$4 sm:$0xff] (!%p14457_p12)   ;;  %12419 = vmatprep.subr.bf16.mxu0 (!%p14457_p12), %v17170_v30  ;;  %v17235_v47 = vld [vmem:[#allocation7 + $0x1e8] ss:$16 sps:$4 sm:$0xff] (!%p14457_p12)  }
 0x6d3   : > { %12499 = vmatprep.subr.bf16.mxu1 (!%p14457_p12), %v17166_v3  ;;  %v17175_v14 = vld [vmem:[#allocation7 + $0xa8] ss:$16 sps:$4 sm:$0xff] (!%p14457_p12)   ;;  %v17241_v20 = vld [vmem:[#allocation7 + $0x20c] ss:$16 sps:$4 sm:$0xff] (!%p14457_p12)  }
 0x6d4   : > { %v17239_v60 = vld [vmem:[#allocation7 + $0x208] ss:$16 sps:$4 sm:$0xff] (!%p14457_p12)   ;;  %v17247_v30 = vld [vmem:[#allocation7 + $0x22c] ss:$16 sps:$4 sm:$0xff] (!%p14457_p12)  }
 0x6d5   : > { %12420 = vmatpush1.bf16.msra.mxu0 (!%p14457_p12), %v17174_v59  ;;  %v17245_v59 = vld [vmem:[#allocation7 + $0x228] ss:$16 sps:$4 sm:$0xff] (!%p14457_p12)  }
 0x6f0   : > { %v11357_v42 = vpop.f32.mrb[84].mxu1 }
 0x6f1   : > { %v11358_v8 = vadd.f32 %v11357_v42, %v11317_v25  ;;  %v11359_v41 = vpop.f32.mrb[85].mxu1  ;;  %v17169_v25 = vld [vmem:[#allocation7 + $0x88] ss:$16 sps:$4 sm:$0xff] (!%p14457_p12)   ;;  %v17176_v42 = vld [vmem:[#allocation7 + $0xc4] ss:$16 sps:$4 sm:$0xff] (!%p14457_p12)  }
 0x6f2   : > { %v11360_v2 = vadd.f32 %v11359_v41, %v11319_v56  ;;  %v11361_v35 = vpop.f32.mrb[86].mxu1  ;;  %v17172_v56 = vld [vmem:[#allocation7 + $0xac] ss:$16 sps:$4 sm:$0xff] (!%p14457_p12)   ;;  %12500 = vmatpush1.bf16.msra.mxu1 (!%p14457_p12), %v17169_v25  ;;  %v17180_v41 = vld [vmem:[#allocation7 + $0xc0] ss:$16 sps:$4 sm:$0xff] (!%p14457_p12)   ;;  %12421 = vmatprep.subr.bf16.mxu0 (!%p14457_p12), %v17176_v42 }
 0x6f3   : > { %v11362_v5 = vpop.f32.mrb[87].mxu1  ;;  %12501 = vmatprep.subr.bf16.mxu1 (!%p14457_p12), %v17172_v56  ;;  %v17182_v35 = vld [vmem:[#allocation7 + $0xe4] ss:$16 sps:$4 sm:$0xff] (!%p14457_p12)   ;;  %12422 = vmatpush1.bf16.msra.mxu0 (!%p14457_p12), %v17180_v41  ;;  %v17242_v56 = vld [vmem:[#allocation7 + $0x220] ss:$16 sps:$4 sm:$0xff] (!%p14457_p12)  }
 0x6f4   : > { %v17184_v5 = vld [vmem:[#allocation7 + $0xec] ss:$16 sps:$4 sm:$0xff] (!%p14457_p12)   ;;  %12423 = vmatprep.subr.bf16.mxu0 (!%p14457_p12), %v17182_v35  ;;  %v17244_v25 = vld [vmem:[#allocation7 + $0x224] ss:$16 sps:$4 sm:$0xff] (!%p14457_p12)   ;;  %v17251_v41 = vld [vmem:[#allocation7 + $0x248] ss:$16 sps:$4 sm:$0xff] (!%p14457_p12)  }
 0x6f5   : > { %v17253_v42 = vld [vmem:[#allocation7 + $0x24c] ss:$16 sps:$4 sm:$0xff] (!%p14457_p12)  }
 0x6f6   : > { %12502 = vmatpush1.bf16.msra.mxu1 (!%p14457_p12), %v17175_v14  ;;  %v17250_v14 = vld [vmem:[#allocation7 + $0x244] ss:$16 sps:$4 sm:$0xff] (!%p14457_p12)   ;;  %v17259_v35 = vld [vmem:[#allocation7 + $0x26c] ss:$16 sps:$4 sm:$0xff] (!%p14457_p12)  }
 0x70f   : > { %v11398_v26 = vpop.f32.mrb[84].mxu0 }
 0x710   : > { %v11399_v52 = vadd.f32 %v11398_v26, %v11358_v8  ;;  %v11400_v0 = vpop.f32.mrb[85].mxu0  ;;  %v17178_v8 = vld [vmem:[#allocation7 + $0xcc] ss:$16 sps:$4 sm:$0xff] (!%p14457_p12)   ;;  %v17186_v26 = vld [vmem:[#allocation7 + $0xe0] ss:$16 sps:$4 sm:$0xff] (!%p14457_p12)  }
 0x711   : > { %v11401_v38 = vadd.f32 %v11400_v0, %v11360_v2  ;;  %v11402_v54 = vpop.f32.mrb[86].mxu0  ;;  %v17181_v2 = vld [vmem:[#allocation7 + $0xc8] ss:$16 sps:$4 sm:$0xff] (!%p14457_p12)   ;;  %12503 = vmatprep.subr.bf16.mxu1 (!%p14457_p12), %v17178_v8  ;;  %v17188_v0 = vld [vmem:[#allocation7 + $0x104] ss:$16 sps:$4 sm:$0xff] (!%p14457_p12)   ;;  %12424 = vmatpush1.bf16.msra.mxu0 (!%p14457_p12), %v17186_v26 }
 0x712   : > { %v11403_v48 = vpop.f32.mrb[87].mxu0  ;;  %12504 = vmatpush1.bf16.msra.mxu1 (!%p14457_p12), %v17181_v2  ;;  %v17192_v54 = vld [vmem:[#allocation7 + $0x100] ss:$16 sps:$4 sm:$0xff] (!%p14457_p12)   ;;  %12425 = vmatprep.subr.bf16.mxu0 (!%p14457_p12), %v17188_v0  ;;  %v17256_v2 = vld [vmem:[#allocation7 + $0x264] ss:$16 sps:$4 sm:$0xff] (!%p14457_p12)  }
 0x713   : > { %12505 = vmatprep.subr.bf16.mxu1 (!%p14457_p12), %v17184_v5  ;;  %v17193_v48 = vld [vmem:[#allocation7 + $0x108] ss:$16 sps:$4 sm:$0xff] (!%p14457_p12)   ;;  %v17248_v8 = vld [vmem:[#allocation7 + $0x240] ss:$16 sps:$4 sm:$0xff] (!%p14457_p12)   ;;  %v17265_v0 = vld [vmem:[#allocation7 + $0x28c] ss:$16 sps:$4 sm:$0xff] (!%p14457_p12)  }
 0x714   : > { %v17254_v5 = vld [vmem:[#allocation7 + $0x260] ss:$16 sps:$4 sm:$0xff] (!%p14457_p12)   ;;  %v17257_v26 = vld [vmem:[#allocation7 + $0x268] ss:$16 sps:$4 sm:$0xff] (!%p14457_p12)  }
 0x715   : > { %12426 = vmatpush1.bf16.msra.mxu0 (!%p14457_p12), %v17192_v54 }
 0x730   : > { %v11439_v43 = vpop.f32.mrb[88].mxu1 }
 0x731   : > { %v11440_v21 = vadd.f32 %v11439_v43, %v11399_v52  ;;  %v11441_v19 = vpop.f32.mrb[89].mxu1  ;;  %v17187_v52 = vld [vmem:[#allocation7 + $0xe8] ss:$16 sps:$4 sm:$0xff] (!%p14457_p12)   ;;  %v17194_v43 = vld [vmem:[#allocation7 + $0x124] ss:$16 sps:$4 sm:$0xff] (!%p14457_p12)  }
 0x732   : > { %v11442_v36 = vadd.f32 %v11441_v19, %v11401_v38  ;;  %v11443_v31 = vpop.f32.mrb[90].mxu1  ;;  %v17190_v38 = vld [vmem:[#allocation7 + $0x10c] ss:$16 sps:$4 sm:$0xff] (!%p14457_p12)   ;;  %12506 = vmatpush1.bf16.msra.mxu1 (!%p14457_p12), %v17187_v52  ;;  %12427 = vmatprep.subr.bf16.mxu0 (!%p14457_p12), %v17194_v43  ;;  %v17262_v52 = vld [vmem:[#allocation7 + $0x284] ss:$16 sps:$4 sm:$0xff] (!%p14457_p12)  }
 0x733   : > { %v11444_v18 = vpop.f32.mrb[91].mxu1  ;;  %12507 = vmatprep.subr.bf16.mxu1 (!%p14457_p12), %v17190_v38  ;;  %v17196_v19 = vld [vmem:[#allocation7 + $0x12c] ss:$16 sps:$4 sm:$0xff] (!%p14457_p12)   ;;  %v17199_v31 = vld [vmem:[#allocation7 + $0x128] ss:$16 sps:$4 sm:$0xff] (!%p14457_p12)  }
 0x734   : > { %v17200_v18 = vld [vmem:[#allocation7 + $0x144] ss:$16 sps:$4 sm:$0xff] (!%p14457_p12)   ;;  %v17260_v38 = vld [vmem:[#allocation7 + $0x280] ss:$16 sps:$4 sm:$0xff] (!%p14457_p12)  }
 0x735   : > { %v17268_v43 = vld [vmem:[#allocation7 + $0x2a4] ss:$16 sps:$4 sm:$0xff] (!%p14457_p12)  }
 0x736   : > { %12508 = vmatpush1.bf16.msra.mxu1 (!%p14457_p12), %v17193_v48  ;;  %v17263_v48 = vld [vmem:[#allocation7 + $0x288] ss:$16 sps:$4 sm:$0xff] (!%p14457_p12)  }
 0x737   : > { %12509 = vmatprep.subr.bf16.mxu1 (!%p14457_p12), %v17196_v19  ;;  %v17266_v19 = vld [vmem:[#allocation7 + $0x2a0] ss:$16 sps:$4 sm:$0xff] (!%p14457_p12)  }
 0x73a   : > { %12510 = vmatpush1.bf16.msra.mxu1 (!%p14457_p12), %v17199_v31  ;;  %v17269_v31 = vld [vmem:[#allocation7 + $0x2a8] ss:$16 sps:$4 sm:$0xff] (!%p14457_p12)  }
 0x74f   : > { %v11480_v55 = vpop.f32.mrb[88].mxu0 }
 0x750   : > { %v11481_v29 = vadd.f32 %v11480_v55, %v11440_v21  ;;  %v11482_v1 = vpop.f32.mrb[89].mxu0  ;;  %v11587_v21 = vlaneseq (!%p14457_p12) }
 0x751   : > { %v11483_v15 = vadd.f32 %v11482_v1, %v11442_v36  ;;  %v11484_v32 = vpop.f32.mrb[90].mxu0  ;;  %v17198_v36 = vld [vmem:[#allocation7 + $0x120] ss:$16 sps:$4 sm:$0xff] (!%p14457_p12)  }
 0x752   : > { %v11485_v45 = vpop.f32.mrb[91].mxu0  ;;  %v19852_v55 = vshrl.u32 (!%p14457_p12), %v11587_v21, 7  ;;  %v17204_v1 = vld [vmem:[#allocation7 + $0x140] ss:$16 sps:$4 sm:$0xff] (!%p14457_p12)   ;;  %12428 = vmatpush1.bf16.msra.mxu0 (!%p14457_p12), %v17198_v36  ;;  %v17206_v32 = vld [vmem:[#allocation7 + $0x164] ss:$16 sps:$4 sm:$0xff] (!%p14457_p12)  }
 0x753   : > { %12429 = vmatprep.subr.bf16.mxu0 (!%p14457_p12), %v17200_v18  ;;  %v17271_v21 = vld [vmem:[#allocation7 + $0x2ac] ss:$16 sps:$4 sm:$0xff] (!%p14457_p12)   ;;  %v17274_v18 = vld [vmem:[#allocation7 + $0x2c4] ss:$16 sps:$4 sm:$0xff] (!%p14457_p12)  }
 0x754   : > { %v11593_v45 = vsub.s32 (!%p14457_p12), 1, %v19852_v55  ;;  %v11601_v54 = vsub.s32 (!%p14457_p12), 3, %v19852_v55 }
 0x756   : > { %12430 = vmatpush1.bf16.msra.mxu0 (!%p14457_p12), %v17204_v1 }
 0x757   : > { %12431 = vmatprep.subr.bf16.mxu0 (!%p14457_p12), %v17206_v32  ;;  %v17272_v32 = vld [vmem:[#allocation7 + $0x2c0] ss:$16 sps:$4 sm:$0xff] (!%p14457_p12)  }
 0x76f   : > { %v11562_v53 = vpop.f32.mrb[92].mxu0 }
 0x770   : > { %v11521_v23 = vpop.f32.mrb[92].mxu1  ;;  %v11564_v10 = vpop.f32.mrb[93].mxu0 }
 0x771   : > { %v11522_v16 = vadd.f32 %v11521_v23, %v11481_v29  ;;  %v11523_v11 = vpop.f32.mrb[93].mxu1  ;;  %v11566_v58 = vpop.f32.mrb[94].mxu0  ;;  %v17202_v29 = vld [vmem:[#allocation7 + $0x14c] ss:$16 sps:$4 sm:$0xff] (!%p14457_p12)  }
 0x772   : > { %v11524_v46 = vadd.f32 %v11523_v11, %v11483_v15  ;;  %v11525_v34 = vpop.f32.mrb[94].mxu1  ;;  %v11567_v22 = vpop.f32.mrb[95].mxu0  ;;  %11580 = sbr.rel (%p14457_p12) target bundleno = 2430 (0x97e), region = 80  ;;  %v17205_v15 = vld [vmem:[#allocation7 + $0x148] ss:$16 sps:$4 sm:$0xff] (!%p14457_p12)   ;;  %12511 = vmatprep.subr.bf16.mxu1 (!%p14457_p12), %v17202_v29 }
 0x773   : > { %v11563_v28 = vadd.f32 %v11562_v53, %v11522_v16  ;;  %v11526_v7 = vpop.f32.mrb[95].mxu1  ;;  %v17208_v23 = vld [vmem:[#allocation7 + $0x16c] ss:$16 sps:$4 sm:$0xff] (!%p14457_p12)   ;;  %v11582_v53 = vld [vmem:[#allocation2 + $0x8] sm:$0xff] (!%p14457_p12)  ;;  %12512 = vmatpush1.bf16.msra.mxu1 (!%p14457_p12), %v17205_v15  ;;  %v17210_v11 = vld [vmem:[#allocation7 + $0x160] ss:$16 sps:$4 sm:$0xff] (!%p14457_p12)  }
 0x774   : > { %v11565_v63 = vadd.f32 %v11564_v10, %v11524_v46  ;;  %v19855_v16 = vld [vmem:[#allocation5] sm:$0xf] (!%p14457_p12)  ;;  %v17211_v10 = vld [vmem:[#allocation7 + $0x168] ss:$16 sps:$4 sm:$0xff] (!%p14457_p12)   ;;  %12513 = vmatprep.subr.bf16.mxu1 (!%p14457_p12), %v17208_v23  ;;  %v17212_v46 = vld [vmem:[#allocation7 + $0x184] ss:$16 sps:$4 sm:$0xff] (!%p14457_p12)   ;;  %12432 = vmatpush1.bf16.msra.mxu0 (!%p14457_p12), %v17210_v11 }
 0x775   : > { %v11571_v51 = vadd.f32 %v11563_v28, %v386_v39  ;;  %v11594_v39 = vrot.slane (!%p14457_p12), %v19855_v16, %v11593_v45  ;;  %v17214_v34 = vld [vmem:[#allocation7 + $0x18c] ss:$16 sps:$4 sm:$0xff] (!%p14457_p12)   ;;  %v17216_v28 = vld [vmem:[#allocation7 + $0x180] ss:$16 sps:$4 sm:$0xff] (!%p14457_p12)   ;;  %v17217_v7 = vld [vmem:[#allocation7 + $0x188] ss:$16 sps:$4 sm:$0xff] (!%p14457_p12)   ;;  %12433 = vmatprep.subr.bf16.mxu0 (!%p14457_p12), %v17212_v46  ;;  %v11602_v36 = vrot.slane (!%p14457_p12), %v19855_v16, %v11601_v54 }
 0x776   : > { %v11572_v4 = vadd.f32 %v11565_v63, %v387_v40  ;;  %v11589_v40 = vsub.s32 (!%p14457_p12), 0, %v19852_v55  ;;  %v17218_v22 = vld [vmem:[#allocation7 + $0x1a4] ss:$16 sps:$4 sm:$0xff] (!%p14457_p12)   ;;  %v17277_v29 = vld [vmem:[#allocation7 + $0x2cc] ss:$16 sps:$4 sm:$0xff] (!%p14457_p12)  }
 0x777   : > { %11575 = vst [vmem:[#allocation2 + $0x10] sm:$0xff] %v11571_v51  ;;  %v11608_v58 = vadd.f32 (!%p14457_p12), %v11594_v39, %v11582_v53  ;;  %12514 = vmatpush1.bf16.msra.mxu1 (!%p14457_p12), %v17211_v10  ;;  %v17220_v51 = vld [vmem:[#allocation7 + $0x1ac] ss:$16 sps:$4 sm:$0xff] (!%p14457_p12)   ;;  %v17275_v23 = vld [vmem:[#allocation7 + $0x2c8] ss:$16 sps:$4 sm:$0xff] (!%p14457_p12)  }
 0x778   : > { %11576 = vst [vmem:[#allocation2 + $0x18] sm:$0xff] %v11572_v4  ;;  %12515 = vmatprep.subr.bf16.mxu1 (!%p14457_p12), %v17214_v34  ;;  %v11590_v44 = vrot.slane (!%p14457_p12), %v19855_v16, %v11589_v40  ;;  %12434 = vmatpush1.bf16.msra.mxu0 (!%p14457_p12), %v17216_v28  ;;  %v17280_v53 = vld [vmem:[#allocation7 + $0x2e4] ss:$16 sps:$4 sm:$0xff] (!%p14457_p12)   ;;  %v17283_v11 = vld [vmem:[#allocation7 + $0x2ec] ss:$16 sps:$4 sm:$0xff] (!%p14457_p12)  }
 0x779   : > { %v11612_v63 = vmax.f32 %v11608_v58, 0.0  ;;  %12435 = vmatprep.subr.bf16.mxu0 %v17218_v22  ;;  %v17278_v46 = vld [vmem:[#allocation7 + $0x2e0] ss:$16 sps:$4 sm:$0xff]   ;;  %v17281_v34 = vld [vmem:[#allocation7 + $0x2e8] ss:$16 sps:$4 sm:$0xff]  }
 0x77a   : > { %v11607_v12 = vadd.f32 %v11590_v44, %v11581_v24  ;;  %v17286_v58 = vld [vmem:[#allocation7 + $0x304] ss:$16 sps:$4 sm:$0xff]   ;;  %v17289_v28 = vld [vmem:[#allocation7 + $0x30c] ss:$16 sps:$4 sm:$0xff]   ;;  %v17287_v22 = vld [vmem:[#allocation7 + $0x308] ss:$16 sps:$4 sm:$0xff]  }
 0x77b   : > { %v11616_v4 = vpack.c.bf16 %v11612_v63, %v11612_v63  ;;  %12516 = vmatpush1.bf16.msra.mxu1 %v17217_v7  ;;  %v17284_v7 = vld [vmem:[#allocation7 + $0x300] ss:$16 sps:$4 sm:$0xff]   ;;  %v17292_v63 = vld [vmem:[#allocation7 + $0x324] ss:$16 sps:$4 sm:$0xff]   ;;  %v17301_v44 = vld [vmem:[#allocation7 + $0x34c] ss:$16 sps:$4 sm:$0xff]  }
 0x77c   : > { %12517 = vmatprep.subr.bf16.mxu1 %v17220_v51  ;;  %12436 = vmatpush1.bf16.msra.mxu0 %v17222_v13  ;;  %v11611_v57 = vmax.f32 %v11607_v12, 0.0  ;;  %v17295_v51 = vld [vmem:[#allocation7 + $0x32c] ss:$16 sps:$4 sm:$0xff]   ;;  %v17293_v13 = vld [vmem:[#allocation7 + $0x328] ss:$16 sps:$4 sm:$0xff]  }
 0x77d   : > { %12441 = vmatprep.mubr.bf16.mxu0 %v11616_v4  ;;  %12523 = vmatprep.mubr.bf16.mxu1 %v11616_v4  ;;  %v17290_v4 = vld [vmem:[#allocation7 + $0x320] ss:$16 sps:$4 sm:$0xff]   ;;  %v17299_v24 = vld [vmem:[#allocation7 + $0x348] ss:$16 sps:$4 sm:$0xff]  }
 0x77e   : > { %12437 = vmatprep.subr.bf16.mxu0 %v17224_v33  ;;  %v11615_v3 = vpack.c.bf16 %v11611_v57, %v11611_v57  ;;  %v17296_v33 = vld [vmem:[#allocation7 + $0x340] ss:$16 sps:$4 sm:$0xff]  }
 0x77f   : > { %12518 = vmatpush1.bf16.msra.mxu1 %v17223_v9  ;;  %v11584_v1 = vld [vmem:[#allocation2 + $0x18] sm:$0xff]  ;;  %v17302_v12 = vld [vmem:[#allocation7 + $0x360] ss:$16 sps:$4 sm:$0xff]  }
 0x780   : > { %12519 = vmatprep.subr.bf16.mxu1 %v17226_v17  ;;  %12438 = vmatpush1.bf16.msra.mxu0 %v17228_v6  ;;  %v11610_v15 = vadd.f32 %v11602_v36, %v11584_v1  ;;  %v17298_v9 = vld [vmem:[#allocation7 + $0x344] ss:$16 sps:$4 sm:$0xff]   ;;  %v17307_v6 = vld [vmem:[#allocation7 + $0x36c] ss:$16 sps:$4 sm:$0xff]   ;;  %v17308_v57 = vld [vmem:[#allocation7 + $0x380] ss:$16 sps:$4 sm:$0xff]  }
 0x781   : > { %12439 = vmatprep.subr.bf16.mxu0 %v17230_v49  ;;  %v17304_v17 = vld [vmem:[#allocation7 + $0x364] ss:$16 sps:$4 sm:$0xff]   ;;  %v12610_v36 = vld [vmem:[#allocation10 + $0x108] sm:$0xff]  ;;  %v12628_v1 = vld [vmem:[#allocation10 + $0x198] sm:$0xff] }
 0x782   : > { %v11614_v10 = vmax.f32 %v11610_v15, 0.0  ;;  %v17310_v49 = vld [vmem:[#allocation7 + $0x384] ss:$16 sps:$4 sm:$0xff]  }
 0x783   : > { %12520 = vmatpush1.bf16.msra.mxu1 %v17229_v50  ;;  %v17305_v50 = vld [vmem:[#allocation7 + $0x368] ss:$16 sps:$4 sm:$0xff]  }
 0x784   : > { %12521 = vmatprep.subr.bf16.mxu1 %v17232_v37  ;;  %12440 = vmatpush1.bf16.msra.mxu0 %v17234_v27  ;;  %v11618_v39 = vpack.c.bf16 %v11614_v10, %v11614_v10  ;;  %v17313_v37 = vld [vmem:[#allocation7 + $0x38c] ss:$16 sps:$4 sm:$0xff]   ;;  %v11597_v27 = vsub.s32 2, %v19852_v55 }
 0x785   : > { %12450 = vmatprep.subr.bf16.mxu0 %v17238_v61  ;;  %v17316_v61 = vld [vmem:[#allocation7 + $0x3a4] ss:$16 sps:$4 sm:$0xff]  }
 0x787   : > { %12522 = vmatpush1.bf16.msra.mxu1 %v17235_v47  ;;  %12442 = vmatmul.mubr.bf16.vlgmr.msra.gmra.mrb[0].mxu0 %v11615_v3  ;;  %v17311_v47 = vld [vmem:[#allocation7 + $0x388] ss:$16 sps:$4 sm:$0xff]  }
 0x788   : > { %12532 = vmatprep.subr.bf16.mxu1 %v17241_v20  ;;  %12451 = vmatpush1.bf16.msra.mxu0 %v17236_v62  ;;  %v17319_v20 = vld [vmem:[#allocation7 + $0x3ac] ss:$16 sps:$4 sm:$0xff]   ;;  %v11598_v62 = vrot.slane %v19855_v16, %v11597_v27 }
 0x789   : > { %12452 = vmatprep.subr.bf16.mxu0 %v17244_v25  ;;  %12482 = vmatprep.mubr.bf16.mxu0 %v11618_v39  ;;  %v11583_v25 = vld [vmem:[#allocation2 + $0x10] sm:$0xff] }
 0x78a   : > { %12524 = vmatmul.mubr.bf16.vlgmr.msra.gmra.mrb[0].mxu1 %v11615_v3  ;;  %v17314_v3 = vld [vmem:[#allocation7 + $0x3a0] ss:$16 sps:$4 sm:$0xff]  }
 0x78b   : > { %12533 = vmatpush1.bf16.msra.mxu1 %v17239_v60  ;;  %12564 = vmatprep.mubr.bf16.mxu1 %v11618_v39  ;;  %v17317_v60 = vld [vmem:[#allocation7 + $0x3a8] ss:$16 sps:$4 sm:$0xff]   ;;  %v12594_v16 = vld [vmem:[#allocation10 + $0x88] sm:$0xff] }
 0x78c   : > { %12534 = vmatprep.subr.bf16.mxu1 %v17247_v30  ;;  %12453 = vmatpush1.bf16.msra.mxu0 %v17242_v56  ;;  %v17322_v30 = vld [vmem:[#allocation7 + $0x3c4] ss:$16 sps:$4 sm:$0xff]   ;;  %v17325_v56 = vld [vmem:[#allocation7 + $0x3cc] ss:$16 sps:$4 sm:$0xff]  }
 0x78d   : > { %12454 = vmatprep.subr.bf16.mxu0 %v17250_v14  ;;  %v17320_v14 = vld [vmem:[#allocation7 + $0x3c0] ss:$16 sps:$4 sm:$0xff]  }
 0x78f   : > { %12535 = vmatpush1.bf16.msra.mxu1 %v17245_v59  ;;  %v11609_v59 = vadd.f32 %v11598_v62, %v11583_v25  ;;  %v12615_v62 = vld [vmem:[#allocation10 + $0x130] sm:$0xff]  ;;  %v12602_v25 = vld [vmem:[#allocation10 + $0xc8] sm:$0xff] }
 0x790   : > { %12536 = vmatprep.subr.bf16.mxu1 %v17253_v42  ;;  %12455 = vmatpush1.bf16.msra.mxu0 %v17248_v8  ;;  %v17323_v42 = vld [vmem:[#allocation7 + $0x3c8] ss:$16 sps:$4 sm:$0xff]   ;;  %v17328_v8 = vld [vmem:[#allocation7 + $0x3e4] ss:$16 sps:$4 sm:$0xff]  }
 0x791   : > { %12456 = vmatprep.subr.bf16.mxu0 %v17256_v2  ;;  %v12593_v2 = vld [vmem:[#allocation10 + $0x80] sm:$0xff] }
 0x793   : > { %12537 = vmatpush1.bf16.msra.mxu1 %v17251_v41  ;;  %v17331_v41 = vld [vmem:[#allocation7 + $0x3ec] ss:$16 sps:$4 sm:$0xff]  }
 0x794   : > { %12538 = vmatprep.subr.bf16.mxu1 %v17259_v35  ;;  %12457 = vmatpush1.bf16.msra.mxu0 %v17254_v5  ;;  %v12625_v35 = vld [vmem:[#allocation10 + $0x180] sm:$0xff]  ;;  %v12626_v5 = vld [vmem:[#allocation10 + $0x188] sm:$0xff] }
 0x795   : > { %12458 = vmatprep.subr.bf16.mxu0 %v17262_v52  ;;  %v11613_v52 = vmax.f32 %v11609_v59, 0.0 }
 0x797   : > { %12539 = vmatpush1.bf16.msra.mxu1 %v17257_v26  ;;  %v17326_v26 = vld [vmem:[#allocation7 + $0x3e0] ss:$16 sps:$4 sm:$0xff]   ;;  %v11617_v15 = vpack.c.bf16 %v11613_v52, %v11613_v52  ;;  %v12635_v52 = vld [vmem:[#allocation10 + $0x1d0] sm:$0xff] }
 0x798   : > { %12540 = vmatprep.subr.bf16.mxu1 %v17265_v0  ;;  %12459 = vmatpush1.bf16.msra.mxu0 %v17260_v38  ;;  %v17329_v0 = vld [vmem:[#allocation7 + $0x3e8] ss:$16 sps:$4 sm:$0xff]  }
 0x799   : > { %12460 = vmatprep.subr.bf16.mxu0 %v17268_v43  ;;  %v12577_v38 = vld [vmem:[#allocation10] sm:$0xff]  ;;  %v14662_v43 = vpack.c.bf16 %v12594_v16, %v12593_v2 }
 0x79a   : > { %v12617_v16 = vld [vmem:[#allocation10 + $0x140] sm:$0xff] }
 0x79b   : > { %12541 = vmatpush1.bf16.msra.mxu1 %v17263_v48  ;;  %v12578_v48 = vld [vmem:[#allocation10 + $0x8] sm:$0xff] }
 0x79c   : > { %12542 = vmatprep.subr.bf16.mxu1 %v17271_v21  ;;  %12461 = vmatpush1.bf16.msra.mxu0 %v17266_v19  ;;  %v14694_v21 = vpack.c.bf16 %v12626_v5, %v12625_v35  ;;  %v12609_v19 = vld [vmem:[#allocation10 + $0x100] sm:$0xff]  ;;  %v12618_v35 = vld [vmem:[#allocation10 + $0x148] sm:$0xff]  ;;  %v12603_v5 = vld [vmem:[#allocation10 + $0xd0] sm:$0xff] }
 0x79d   : > { %12462 = vmatprep.subr.bf16.mxu0 %v17274_v18  ;;  %v12596_v18 = vld [vmem:[#allocation10 + $0x98] sm:$0xff] }
 0x79f   : > { %12543 = vmatpush1.bf16.msra.mxu1 %v17269_v31  ;;  %v12595_v31 = vld [vmem:[#allocation10 + $0x90] sm:$0xff] }
 0x7a0   : > { %12544 = vmatprep.subr.bf16.mxu1 %v17277_v29  ;;  %12463 = vmatpush1.bf16.msra.mxu0 %v17272_v32  ;;  %v12627_v29 = vld [vmem:[#allocation10 + $0x190] sm:$0xff]  ;;  %v14664_v32 = vpack.c.bf16 %v12578_v48, %v12577_v38  ;;  %v14666_v10 = vpack.c.bf16 %v12596_v18, %v12595_v31  ;;  %v14712_v48 = vpack.c.bf16 %v12618_v35, %v12617_v16  ;;  %v12620_v18 = vld [vmem:[#allocation10 + $0x158] sm:$0xff] }
 0x7a1   : > { %12464 = vmatprep.subr.bf16.mxu0 %v17280_v53  ;;  %v12579_v53 = vld [vmem:[#allocation10 + $0x10] sm:$0xff]  ;;  %v14698_v39 = vpack.c.bf16 %v12628_v1, %v12627_v29  ;;  %v12605_v29 = vld [vmem:[#allocation10 + $0xe0] sm:$0xff]  ;;  %v12606_v1 = vld [vmem:[#allocation10 + $0xe8] sm:$0xff] }
 0x7a2   : > { %v12619_v31 = vld [vmem:[#allocation10 + $0x150] sm:$0xff] }
 0x7a3   : > { %12545 = vmatpush1.bf16.msra.mxu1 %v17275_v23  ;;  %v14696_v23 = vpack.c.bf16 %v12610_v36, %v12609_v19 }
 0x7a4   : > { %12546 = vmatprep.subr.bf16.mxu1 %v17283_v11  ;;  %12465 = vmatpush1.bf16.msra.mxu0 %v17278_v46  ;;  %v12580_v11 = vld [vmem:[#allocation10 + $0x18] sm:$0xff]  ;;  %v12611_v46 = vld [vmem:[#allocation10 + $0x110] sm:$0xff] }
 0x7a5   : > { %12466 = vmatprep.subr.bf16.mxu0 %v17286_v58  ;;  %v12597_v58 = vld [vmem:[#allocation10 + $0xa0] sm:$0xff] }
 0x7a7   : > { %12547 = vmatpush1.bf16.msra.mxu1 %v17281_v34  ;;  %v12612_v34 = vld [vmem:[#allocation10 + $0x118] sm:$0xff] }
 0x7a8   : > { %12548 = vmatprep.subr.bf16.mxu1 %v17289_v28  ;;  %12467 = vmatpush1.bf16.msra.mxu0 %v17284_v7  ;;  %v12598_v28 = vld [vmem:[#allocation10 + $0xa8] sm:$0xff]  ;;  %v12629_v7 = vld [vmem:[#allocation10 + $0x1a0] sm:$0xff] }
 0x7a9   : > { %12468 = vmatprep.subr.bf16.mxu0 %v17292_v63  ;;  %v14668_v63 = vpack.c.bf16 %v12580_v11, %v12579_v53  ;;  %v14716_v53 = vpack.c.bf16 %v12620_v18, %v12619_v31  ;;  %v14686_v11 = vpack.c.bf16 %v12606_v1, %v12605_v29 }
 0x7ab   : > { %12549 = vmatpush1.bf16.msra.mxu1 %v17287_v22  ;;  %v12630_v22 = vld [vmem:[#allocation10 + $0x1a8] sm:$0xff] }
 0x7ac   : > { %12550 = vmatprep.subr.bf16.mxu1 %v17295_v51  ;;  %12469 = vmatpush1.bf16.msra.mxu0 %v17290_v4  ;;  %v14700_v51 = vpack.c.bf16 %v12612_v34, %v12611_v46  ;;  %v12581_v4 = vld [vmem:[#allocation10 + $0x20] sm:$0xff]  ;;  %v12590_v46 = vld [vmem:[#allocation10 + $0x68] sm:$0xff] }
 0x7ad   : > { %12470 = vmatprep.subr.bf16.mxu0 %v17298_v9  ;;  %v14670_v9 = vpack.c.bf16 %v12598_v28, %v12597_v58  ;;  %v12621_v34 = vld [vmem:[#allocation10 + $0x160] sm:$0xff]  ;;  %v12622_v28 = vld [vmem:[#allocation10 + $0x168] sm:$0xff] }
 0x7af   : > { %12551 = vmatpush1.bf16.msra.mxu1 %v17293_v13  ;;  %v12582_v13 = vld [vmem:[#allocation10 + $0x28] sm:$0xff] }
 0x7b0   : > { %12552 = vmatprep.subr.bf16.mxu1 %v17301_v44  ;;  %12471 = vmatpush1.bf16.msra.mxu0 %v17296_v33  ;;  %v14702_v44 = vpack.c.bf16 %v12630_v22, %v12629_v7  ;;  %v12613_v33 = vld [vmem:[#allocation10 + $0x120] sm:$0xff]  ;;  %v14720_v7 = vpack.c.bf16 %v12622_v28, %v12621_v34  ;;  %v12607_v22 = vld [vmem:[#allocation10 + $0xf0] sm:$0xff] }
 0x7b1   : > { %12472 = vmatprep.subr.bf16.mxu0 %v17304_v17  ;;  %v12599_v17 = vld [vmem:[#allocation10 + $0xb0] sm:$0xff] }
 0x7b3   : > { %12553 = vmatpush1.bf16.msra.mxu1 %v17299_v24  ;;  %v12614_v24 = vld [vmem:[#allocation10 + $0x128] sm:$0xff] }
 0x7b4   : > { %12554 = vmatprep.subr.bf16.mxu1 %v17307_v6  ;;  %12473 = vmatpush1.bf16.msra.mxu0 %v17302_v12  ;;  %v12600_v6 = vld [vmem:[#allocation10 + $0xb8] sm:$0xff]  ;;  %v12631_v12 = vld [vmem:[#allocation10 + $0x1b0] sm:$0xff] }
 0x7b5   : > { %12474 = vmatprep.subr.bf16.mxu0 %v17310_v49  ;;  %v14672_v49 = vpack.c.bf16 %v12582_v13, %v12581_v4  ;;  %v12640_v13 = vld [vmem:[#allocation10 + $0x1f8] sm:$0xff] }
 0x7b7   : > { %12555 = vmatpush1.bf16.msra.mxu1 %v17305_v50  ;;  %v12632_v50 = vld [vmem:[#allocation10 + $0x1b8] sm:$0xff] }
 0x7b8   : > { %12556 = vmatprep.subr.bf16.mxu1 %v17313_v37  ;;  %12475 = vmatpush1.bf16.msra.mxu0 %v17308_v57  ;;  %v14704_v37 = vpack.c.bf16 %v12614_v24, %v12613_v33  ;;  %v12583_v57 = vld [vmem:[#allocation10 + $0x30] sm:$0xff] }
 0x7b9   : > { %12476 = vmatprep.subr.bf16.mxu0 %v17316_v61  ;;  %v14674_v61 = vpack.c.bf16 %v12600_v6, %v12599_v17  ;;  %v12623_v17 = vld [vmem:[#allocation10 + $0x170] sm:$0xff]  ;;  %v12624_v6 = vld [vmem:[#allocation10 + $0x178] sm:$0xff] }
 0x7bb   : > { %12557 = vmatpush1.bf16.msra.mxu1 %v17311_v47  ;;  %v12584_v47 = vld [vmem:[#allocation10 + $0x38] sm:$0xff] }
 0x7bc   : > { %12558 = vmatprep.subr.bf16.mxu1 %v17319_v20  ;;  %12477 = vmatpush1.bf16.msra.mxu0 %v17314_v3  ;;  %v14706_v20 = vpack.c.bf16 %v12632_v50, %v12631_v12  ;;  %v12616_v3 = vld [vmem:[#allocation10 + $0x138] sm:$0xff]  ;;  %v14676_v59 = vpack.c.bf16 %v12584_v47, %v12583_v57  ;;  %v14724_v12 = vpack.c.bf16 %v12624_v6, %v12623_v17 }
 0x7bd   : > { %12478 = vmatprep.subr.bf16.mxu0 %v17322_v30  ;;  %v12633_v30 = vld [vmem:[#allocation10 + $0x1c0] sm:$0xff]  ;;  %v11747_v50 = vld [vmem:[#allocation8] sm:$0xf] }
 0x7be   : > { %v11756_v57 = vrot.slane %v11747_v50, %v11593_v45  ;;  %v11764_v47 = vrot.slane %v11747_v50, %v11601_v54  ;;  %v14586_v54 = vld [vmem:[#allocation11] ss:$0 sm:$0xff] }
 0x7bf   : > { %12559 = vmatpush1.bf16.msra.mxu1 %v17317_v60  ;;  %v12601_v60 = vld [vmem:[#allocation10 + $0xc0] sm:$0xff] }
 0x7c0   : > { %12560 = vmatprep.subr.bf16.mxu1 %v17325_v56  ;;  %12479 = vmatpush1.bf16.msra.mxu0 %v17320_v14  ;;  %v12634_v56 = vld [vmem:[#allocation10 + $0x1c8] sm:$0xff]  ;;  %v14708_v14 = vpack.c.bf16 %v12616_v3, %v12615_v62 }
 0x7c1   : > { %12480 = vmatprep.subr.bf16.mxu0 %v17328_v8  ;;  %v12586_v8 = vld [vmem:[#allocation10 + $0x48] sm:$0xff]  ;;  %v14710_v2 = vpack.c.bf16 %v12634_v56, %v12633_v30 }
 0x7c3   : > { %12561 = vmatpush1.bf16.msra.mxu1 %v17323_v42  ;;  %v12585_v42 = vld [vmem:[#allocation10 + $0x40] sm:$0xff] }
 0x7c4   : > { %12562 = vmatprep.subr.bf16.mxu1 %v17331_v41  ;;  %12481 = vmatpush1.bf16.msra.mxu0 %v17326_v26  ;;  %v14678_v41 = vpack.c.bf16 %v12602_v25, %v12601_v60  ;;  %v12604_v26 = vld [vmem:[#allocation10 + $0xd8] sm:$0xff]  ;;  %v14680_v38 = vpack.c.bf16 %v12586_v8, %v12585_v42 }
 0x7c5   : > { %14663 = vmatprep.subr.bf16.mxu0 %v14662_v43  ;;  %v12587_v43 = vld [vmem:[#allocation10 + $0x50] sm:$0xff]  ;;  %v14682_v19 = vpack.c.bf16 %v12604_v26, %v12603_v5 }
 0x7c7   : > { %12563 = vmatpush1.bf16.msra.mxu1 %v17329_v0  ;;  %12483 = vmatmul.mubr.bf16.vlgmr.msra.gmra.mrb[0].mxu0 %v11617_v15  ;;  %v12636_v0 = vld [vmem:[#allocation10 + $0x1d8] sm:$0xff] }
 0x7c8   : > { %14695 = vmatprep.subr.bf16.mxu1 %v14694_v21  ;;  %14665 = vmatpush3.bf16.msra.mxu0 %v14664_v32  ;;  %v12588_v21 = vld [vmem:[#allocation10 + $0x58] sm:$0xff]  ;;  %v14714_v36 = vpack.c.bf16 %v12636_v0, %v12635_v52  ;;  %v12638_v32 = vld [vmem:[#allocation10 + $0x1e8] sm:$0xff] }
 0x7c9   : > { %14667 = vmatprep.subr.bf16.mxu0 %v14666_v10 }
 0x7ca   : > { %12565 = vmatmul.mubr.bf16.vlgmr.msra.gmra.mrb[0].mxu1 %v11617_v15  ;;  %v12637_v15 = vld [vmem:[#allocation10 + $0x1e0] sm:$0xff] }
 0x7cb   : > { %14697 = vmatpush3.bf16.msra.mxu1 %v14696_v23  ;;  %v14684_v23 = vpack.c.bf16 %v12588_v21, %v12587_v43  ;;  %v14718_v10 = vpack.c.bf16 %v12638_v32, %v12637_v15 }
 0x7cc   : > { %14699 = vmatprep.subr.bf16.mxu1 %v14698_v39  ;;  %14669 = vmatpush3.bf16.msra.mxu0 %v14668_v63  ;;  %v12589_v39 = vld [vmem:[#allocation10 + $0x60] sm:$0xff]  ;;  %v12608_v63 = vld [vmem:[#allocation10 + $0xf8] sm:$0xff] }
 0x7cd   : > { %14671 = vmatprep.subr.bf16.mxu0 %v14670_v9  ;;  %v14688_v58 = vpack.c.bf16 %v12590_v46, %v12589_v39  ;;  %v14690_v4 = vpack.c.bf16 %v12608_v63, %v12607_v22  ;;  %v12591_v9 = vld [vmem:[#allocation10 + $0x70] sm:$0xff] }
 0x7cf   : > { %14701 = vmatpush3.bf16.msra.mxu1 %v14700_v51  ;;  %v12639_v51 = vld [vmem:[#allocation10 + $0x1f0] sm:$0xff] }
 0x7d0   : > { %14703 = vmatprep.subr.bf16.mxu1 %v14702_v44  ;;  %14673 = vmatpush3.bf16.msra.mxu0 %v14672_v49  ;;  %v12592_v44 = vld [vmem:[#allocation10 + $0x78] sm:$0xff]  ;;  %v14722_v33 = vpack.c.bf16 %v12640_v13, %v12639_v51  ;;  %v11752_v49 = vrot.slane %v11747_v50, %v11589_v40 }
 0x7d1   : > { %14675 = vmatprep.subr.bf16.mxu0 %v14674_v61  ;;  %v14692_v24 = vpack.c.bf16 %v12592_v44, %v12591_v9 }
 0x7d3   : > { %14705 = vmatpush3.bf16.msra.mxu1 %v14704_v37  ;;  %v11760_v37 = vrot.slane %v11747_v50, %v11597_v27 }
 0x7d4   : > { %14707 = vmatprep.subr.bf16.mxu1 %v14706_v20  ;;  %14677 = vmatpush3.bf16.msra.mxu0 %v14676_v59 }
 0x7d5   : > { %14679 = vmatprep.subr.bf16.mxu0 %v14678_v41 }
 0x7d7   : > { %14709 = vmatpush3.bf16.msra.mxu1 %v14708_v14 }
 0x7d8   : > { %14711 = vmatprep.subr.bf16.mxu1 %v14710_v2  ;;  %14681 = vmatpush3.bf16.msra.mxu0 %v14680_v38 }
 0x7d9   : > { %14683 = vmatprep.subr.bf16.mxu0 %v14682_v19 }
 0x7db   : > { %14713 = vmatpush3.bf16.msra.mxu1 %v14712_v48 }
 0x7dc   : > { %14715 = vmatprep.subr.bf16.mxu1 %v14714_v36  ;;  %14685 = vmatpush3.bf16.msra.mxu0 %v14684_v23 }
 0x7dd   : > { %14687 = vmatprep.subr.bf16.mxu0 %v14686_v11 }
 0x7df   : > { %14717 = vmatpush3.bf16.msra.mxu1 %v14716_v53 }
 0x7e0   : > { %14719 = vmatprep.subr.bf16.mxu1 %v14718_v10  ;;  %14689 = vmatpush3.bf16.msra.mxu0 %v14688_v58 }
 0x7e1   : > { %14691 = vmatprep.subr.bf16.mxu0 %v14690_v4 }
 0x7e3   : > { %14721 = vmatpush3.bf16.msra.mxu1 %v14720_v7 }
 0x7e4   : > { %14723 = vmatprep.subr.bf16.mxu1 %v14722_v33  ;;  %14693 = vmatpush3.bf16.msra.mxu0 %v14692_v24 }
 0x7e7   : > { %14725 = vmatpush3.bf16.msra.mxu1 %v14724_v12 }
 0x89a   : > { %v12484_v61 = vpop.f32.mrb[0].mxu0 }
 0x89b   : > { %v14726_v62 = vadd.f32 %v12484_v61, %v11752_v49  ;;  %v12486_v60 = vpop.f32.mrb[1].mxu0 }
 0x89c   : > { %v14727_v30 = vadd.f32 %v12486_v60, %v11756_v57  ;;  %v12488_v59 = vpop.f32.mrb[2].mxu0 }
 0x89d   : > { %v12566_v20 = vpop.f32.mrb[0].mxu1  ;;  %v12489_v40 = vpop.f32.mrb[3].mxu0  ;;  %v12573_v41 = vmax.f32 %v14726_v62, 0.0 }
 0x89e   : > { %v14728_v3 = vadd.f32 %v12566_v20, %v11760_v37  ;;  %v12568_v25 = vpop.f32.mrb[1].mxu1  ;;  %v12574_v8 = vmax.f32 %v14727_v30, 0.0 }
 0x89f   : > { %v14729_v56 = vadd.f32 %v12568_v25, %v11764_v47  ;;  %v12570_v14 = vpop.f32.mrb[2].mxu1 }
 0x8a0   : > { %v12571_v42 = vpop.f32.mrb[3].mxu1  ;;  %v12575_v2 = vmax.f32 %v14728_v3, 0.0  ;;  %12712 = vmatprep.mubr.f32.mxu0 %v12574_v8 }
 0x8a1   : > { %v12576_v27 = vmax.f32 %v14729_v56, 0.0  ;;  %12713 = vmatmul.mubr.f32.vlgmr.msra.gmra.mrb[4].mxu0 %v12573_v41 }
 0x8a3   : > { %12782 = vmatprep.mubr.f32.mxu1 %v12576_v27 }
 0x8a4   : > { %12783 = vmatmul.mubr.f32.vlgmr.msra.gmra.mrb[4].mxu1 %v12575_v2 }
 0x974   : > { %v14624_v55 = vpop.f32.mrb[4].mxu0 }
 0x975   : > { %v14625_v16 = vpop.f32.mrb[5].mxu0 }
 0x976   : > { %v14626_v5 = vadd.f32 %v14625_v16, %v14624_v55 }
 0x977   : > { %v14659_v45 = vpop.f32.mrb[4].mxu1 }
 0x978   : > { %v14660_v35 = vpop.f32.mrb[5].mxu1  ;;  %v12715_v52 = vadd.f32 %v14626_v5, %v14586_v54 }
 0x979   : > { %v14661_v26 = vadd.f32 %v14660_v35, %v14659_v45 }
 0x97b   : > { %v12785_v0 = vadd.f32 %v14661_v26, %v12715_v52 }
 0x97d   : > { %12788 = vst [vmem:[%s19903_s7] sm:$0xff] %v12785_v0 }
 0x97e PF: > { %p20_p0 = scmp.ge.s32.totalorder %s17755_s19, 7   ;;  %s19930_s24 = smov %s17540_s25 }
 0x97f   : > { %s19931_s25 = smov %s17544_s26  ;;  %s19932_s26 = smov %s17766_s20 }
 0x980   : > { %s19933_s27 = smov %s17755_s19  ;;  %22 = sbr.rel (!%p20_p0) target bundleno = 6 (0x6), region = 115 }
 0x987   :  { %12800 = vsyncpa [#allocation4], 1 }
 0x988   :  { %12802 = vsyncpa [#allocation4 + $0x1], 1 }
 0x989   :  { %12803 = vsyncpa [#allocation6], 1 }
 0x98a   :  { %12804 = vsyncpa [#allocation9], 1 }
 0x98b   :  { %12805 = vsyncpa [#allocation12], 1 }

</bundles_post_ra>
